<compile_context>
chip_gen: v6e
topology: v6e:2x2x1
jax: 0.10.0
libtpu: 0.0.40
codegen_flags: <defaults>
</compile_context>

<pallas_src>
import jax
import jax.numpy as jnp
from jax.experimental import pallas as pl
from jax.experimental.pallas import tpu as pltpu

# ----------------------------- config -----------------------------
B = 2              # batch
C = 3              # input channels
H_IN = W_IN = 16   # raw input spatial size
IMG = 32           # "resize" target (real model: 384)
PATCH = 8          # patch size (real model: 16)
N_PATCH = (IMG // PATCH) ** 2     # 16 patches
N_TOK = N_PATCH + 1               # + cls token = 17
R = B * N_TOK                     # folded rows = 34 (row = t*B + b, cls at t=0)
D = 64             # embed dim (real: 768)
HEADS = 4          # num heads (real: 12)
HD = D // HEADS    # head dim
MLP = 4 * D        # mlp hidden dim
DEPTH = 2          # transformer blocks (real: 12)
NUM_CLASSES = 10
HEAD_PAD = 128     # lane-dense padded classifier width
LN_EPS = 1e-6      # timm ViT LayerNorm eps
CHW = C * H_IN * W_IN
NEG = -1e30        # additive mask for cross-image attention


# ----------------------------- kernel -----------------------------
def _vit_fused_kernel(x_ref, w_emb_ref, b_emb_ref, bias_ref, hmask_ref,
                      ln1_g_ref, ln1_b_ref,
                      wq_ref, bq_ref, wk_ref, bk_ref, wv_ref, bv_ref,
                      wp_ref, bp_ref,
                      ln2_g_ref, ln2_b_ref,
                      w1_ref, b1_ref, w2_ref, b2_ref,
                      lnf_g_ref, lnf_b_ref,
                      hw_ref, hb_ref,
                      out_ref,
                      tok_s, h_s):
    """Fused resize+patch-embed + full ViT trunk + head, batch folded into rows.

    x: (B, C*H*W) f32 raw pixels.  out: (B, HEAD_PAD) f32 padded logits.
    Rows of the token stream are token-major: row t*B + b; cls tokens are
    rows 0..B-1; bias_ref is the (R, R) block-diagonal attention mask.
    """

    def mm(a, w):
        # cast activations to bf16 only at the dot operand; accumulate in f32.
        return jax.lax.dot_general(a.astype(jnp.bfloat16), w,
                                   (((1,), (0,)), ((), ())),
                                   preferred_element_type=jnp.float32)

    def layer_norm(x, g, b):
        mu = jnp.mean(x, axis=-1, keepdims=True)
        xc = x - mu
        var = jnp.mean(xc * xc, axis=-1, keepdims=True)
        return xc * jax.lax.rsqrt(var + LN_EPS) * g + b

    def gelu(x):
        # TODO(synk): timm ViT uses exact (erf) GELU; tanh approximation here.
        c = 0.7978845608028654  # sqrt(2/pi)
        return 0.5 * x * (1.0 + jnp.tanh(c * (x + 0.044715 * x * x * x)))

    # ---- stage 1 (fused): folded resize+patchify+patch-embed, one matmul ----
    tok_s[...] = mm(x_ref[...], w_emb_ref[...])         # (B, N_TOK*D) f32
    # scatter lane-blocked tokens into folded (R, D) rows, token-major:
    #   h[t*B + b, :] <- tok[b, t*D:(t+1)*D]
    for t in range(N_TOK):
        h_s[t * B:(t + 1) * B, :] = tok_s[:, t * D:(t + 1) * D]
    h = h_s[...] + b_emb_ref[...]                        # +patch/cls bias +pos

    # hoisted per-head / per-batch constants
    attn_bias = bias_ref[...]                            # (R, R) 0 / -1e30
    head_masks = [hmask_ref[hh:hh + 1, :] for hh in range(HEADS)]  # (1, D) 0/1
    scale = float(HD) ** -0.5

    for l in range(DEPTH):                               # unrolled (DEPTH=2)
        # ---------------- multi-head self-attention ----------------
        hn = layer_norm(h, ln1_g_ref[l], ln1_b_ref[l])
        q = mm(hn, wq_ref[l]) + bq_ref[l]                # (R, D)
        k = mm(hn, wk_ref[l]) + bk_ref[l]
        v = mm(hn, wv_ref[l]) + bv_ref[l]
        q_bf = q.astype(jnp.bfloat16)                    # cast once per layer

        attn = None
        for hh in range(HEADS):                          # unrolled (HEADS=4)
            m = head_masks[hh]
            k_h = (k * m).astype(jnp.bfloat16)           # zero outside head
            v_h = (v * m).astype(jnp.bfloat16)
            # q . k_h contracts only this head's lanes (others are zero).
            s = jax.lax.dot_general(q_bf, k_h, (((1,), (1,)), ((), ())),
                                    preferred_element_type=jnp.float32)
            s = s * scale + attn_bias                    # block-diag over batch
            s = s - jnp.max(s, axis=-1, keepdims=True)
            p = jnp.exp(s)
            p = p * pl.reciprocal(jnp.sum(p, axis=-1, keepdims=True),
                                  approx=True)
            o_h = jax.lax.dot_general(p.astype(jnp.bfloat16), v_h,
                                      (((1,), (0,)), ((), ())),
                                      preferred_element_type=jnp.float32)
            attn = o_h if attn is None else attn + o_h   # head 0 seeds the acc

        h = h + mm(attn, wp_ref[l]) + bp_ref[l]

        # --------------------------- MLP ----------------------------
        hn = layer_norm(h, ln2_g_ref[l], ln2_b_ref[l])
        u = gelu(mm(hn, w1_ref[l]) + b1_ref[l])          # (R, MLP)
        h = h + mm(u, w2_ref[l]) + b2_ref[l]

    # ---------------- final norm + cls-token head ----------------
    hn = layer_norm(h, lnf_g_ref[...], lnf_b_ref[...])
    cls = hn[0:B, :]                                     # aligned rows 0..B-1
    out_ref[...] = mm(cls, hw_ref[...]) + hb_ref[...]    # (B, HEAD_PAD)


# ----------------------------- params -----------------------------
def init_params(key):
    """Random weights with the ViT-B architecture shape (toy dims)."""
    keys = jax.random.split(key, 8 + DEPTH * 16)
    ki = iter(range(len(keys)))
    std = 0.02

    def nrm(shape):
        return std * jax.random.normal(keys[next(ki)], shape, jnp.float32)

    params = {
        "patch_w": nrm((C * PATCH * PATCH, D)),
        "patch_b": jnp.zeros((D,), jnp.float32),
        "cls": nrm((1, 1, D)),
        "pos": nrm((1, N_TOK, D)),          # index 0 = cls position (timm)
        "ln_f_g": jnp.ones((D,), jnp.float32),
        "ln_f_b": jnp.zeros((D,), jnp.float32),
        "head_w": nrm((D, NUM_CLASSES)),
        "head_b": jnp.zeros((NUM_CLASSES,), jnp.float32),
        "blocks": [],
    }
    for _ in range(DEPTH):
        blk = {
            "ln1_g": jnp.ones((D,), jnp.float32),
            "ln1_b": jnp.zeros((D,), jnp.float32),
            "w_q": nrm((D, D)), "b_q": jnp.zeros((D,), jnp.float32),
            "w_k": nrm((D, D)), "b_k": jnp.zeros((D,), jnp.float32),
            "w_v": nrm((D, D)), "b_v": jnp.zeros((D,), jnp.float32),
            "w_proj": nrm((D, D)), "b_proj": jnp.zeros((D,), jnp.float32),
            "ln2_g": jnp.ones((D,), jnp.float32),
            "ln2_b": jnp.zeros((D,), jnp.float32),
            "w_fc1": nrm((D, MLP)), "b_fc1": jnp.zeros((MLP,), jnp.float32),
            "w_fc2": nrm((MLP, D)), "b_fc2": jnp.zeros((D,), jnp.float32),
        }
        params["blocks"].append(blk)
    return params


# kernel-argument order (after x) for the fused kernel
_ARG_ORDER = ("w_emb", "b_emb", "attn_bias", "head_mask",
              "ln1_g", "ln1_b", "wq", "bq", "wk", "bk", "wv", "bv",
              "wp", "bp", "ln2_g", "ln2_b", "w1", "b1", "w2", "b2",
              "lnf_g", "lnf_b", "head_w", "head_b")


def prepare_params(params):
    """One-time weight folding (pure JAX, outside the kernel):
    resize+patchify+projection -> W_emb with the cls column block first,
    token-major folded bias rows, block-diagonal attention mask, per-head lane
    masks, stacked per-block weights (bf16 matmul matrices), padded head."""
    f32, bf16 = jnp.float32, jnp.bfloat16

    # Separable bilinear-resize operators (identical op to
    # jax.image.resize(..., 'bilinear')), extracted by resizing the identity.
    ry = jax.image.resize(jnp.eye(H_IN, dtype=f32), (IMG, H_IN), "bilinear")
    rx = jax.image.resize(jnp.eye(W_IN, dtype=f32), (IMG, W_IN), "bilinear")
    hp = IMG // PATCH
    ryp = ry.reshape(hp, PATCH, H_IN)            # Ry[pr*P+pi, i]
    rxp = rx.reshape(hp, PATCH, W_IN)            # Rx[pc*P+pj, j]
    pw = params["patch_w"].reshape(C, PATCH, PATCH, D)
    # W[c,i,j,pr,pc,d] = sum_{pi,pj} Ry[pr*P+pi,i] Rx[pc*P+pj,j] pw[c,pi,pj,d]
    w6 = jnp.einsum("api,bqj,cpqd->cijabd", ryp, rxp, pw)
    w_patch = w6.reshape(CHW, N_PATCH * D)
    # column block 0 = cls token (no pixel dependence -> zeros; its embedding
    # is carried by the bias), blocks 1..N_PATCH = patches in row-major order.
    w_emb = jnp.concatenate([jnp.zeros((CHW, D), f32), w_patch], axis=1)

    # Folded-row bias, token-major: row t*B + b = pos[t] + (cls | patch_bias).
    tok_bias = jnp.concatenate(
        [params["cls"][0] + params["pos"][0, 0:1, :],             # cls (1, D)
         params["patch_b"][None, :] + params["pos"][0, 1:, :]],   # (N_PATCH, D)
        axis=0)                                                   # (N_TOK, D)
    b_emb = jnp.repeat(tok_bias, B, axis=0)                       # (R, D)

    # Block-diagonal additive attention mask for the folded batch.
    rid = jnp.arange(R)
    same = (rid[:, None] % B) == (rid[None, :] % B)
    attn_bias = jnp.where(same, 0.0, NEG).astype(f32)             # (R, R)

    # Per-head 0/1 lane masks (hoisted out of the kernel loops entirely).
    lane = jnp.arange(D)
    head_mask = jnp.stack(
        [((lane >= h * HD) & (lane < (h + 1) * HD)).astype(f32)
         for h in range(HEADS)])                                  # (HEADS, D)

    blocks = params["blocks"]

    def stack_w(name):   # (DEPTH, K, N) bf16 matmul weights
        return jnp.stack([blk[name] for blk in blocks]).astype(bf16)

    def stack_v(name):   # (DEPTH, 1, N) f32 biases / LN params
        return jnp.stack([blk[name][None, :] for blk in blocks])

    head_w = jnp.zeros((D, HEAD_PAD), f32).at[:, :NUM_CLASSES].set(
        params["head_w"])
    head_b = jnp.zeros((1, HEAD_PAD), f32).at[0, :NUM_CLASSES].set(
        params["head_b"])

    return {
        "w_emb": w_emb.astype(bf16),
        "b_emb": b_emb,
        "attn_bias": attn_bias,
        "head_mask": head_mask,
        "ln1_g": stack_v("ln1_g"), "ln1_b": stack_v("ln1_b"),
        "wq": stack_w("w_q"), "bq": stack_v("b_q"),
        "wk": stack_w("w_k"), "bk": stack_v("b_k"),
        "wv": stack_w("w_v"), "bv": stack_v("b_v"),
        "wp": stack_w("w_proj"), "bp": stack_v("b_proj"),
        "ln2_g": stack_v("ln2_g"), "ln2_b": stack_v("ln2_b"),
        "w1": stack_w("w_fc1"), "b1": stack_v("b_fc1"),
        "w2": stack_w("w_fc2"), "b2": stack_v("b_fc2"),
        "lnf_g": params["ln_f_g"][None, :],
        "lnf_b": params["ln_f_b"][None, :],
        "head_w": head_w.astype(bf16),
        "head_b": head_b,
    }


# ----------------------------- forward -----------------------------
def vit_forward(prep, x):
    assert x.shape[0] == B
    x_flat = x.reshape(B, CHW)                  # NCHW flatten (contiguous)

    # Single fused kernel: embed + full transformer + head, one invocation.
    # All operands are whole-array VMEM blocks (~2 MB total at these dims).
    # TODO(synk): on v7x the two images could instead be split across the 2
    # TensorCores with a core-parallel grid; the batch-folded single
    # invocation is the right/portable default for single-TC v5e/v6e.
    # TODO(synk): at real ViT-B dims add a DEPTH grid axis ("arbitrary") with
    # per-layer weight index maps so layer weights pipeline HBM->VMEM instead
    # of being fully VMEM-resident.
    out_pad = pl.pallas_call(
        _vit_fused_kernel,
        out_shape=jax.ShapeDtypeStruct((B, HEAD_PAD), jnp.float32),
        scratch_shapes=[pltpu.VMEM((B, N_TOK * D), jnp.float32),
                        pltpu.VMEM((R, D), jnp.float32)],
    )(x_flat, *[prep[name] for name in _ARG_ORDER])

    return out_pad[:, :NUM_CLASSES]


# ----------------------------- main -----------------------------
if __name__ == "__main__":
    key = jax.random.PRNGKey(0)
    k_x, k_p = jax.random.split(key)
    x = jax.random.normal(k_x, (B, C, H_IN, W_IN), jnp.float32)
    params = init_params(k_p)
    prep = prepare_params(params)     # one-time weight folding (pure JAX)

    fwd = jax.jit(vit_forward)
    logits = fwd(prep, x)
    logits = jax.block_until_ready(logits)

    assert logits.shape == (B, NUM_CLASSES)
    assert bool(jnp.all(jnp.isfinite(logits)))
    print("KERNEL_OK")
</pallas_src>

<mosaic_0001>
module attributes {stable_mosaic.version = 11 : i64} {
  func.func @_vit_fused_kernel(%arg0: memref<2x768xf32, #tpu.memory_space<vmem>>, %arg1: memref<768x1088xbf16, #tpu.memory_space<vmem>>, %arg2: memref<34x64xf32, #tpu.memory_space<vmem>>, %arg3: memref<34x34xf32, #tpu.memory_space<vmem>>, %arg4: memref<4x64xf32, #tpu.memory_space<vmem>>, %arg5: memref<2x1x64xf32, #tpu.memory_space<vmem>>, %arg6: memref<2x1x64xf32, #tpu.memory_space<vmem>>, %arg7: memref<2x64x64xbf16, #tpu.memory_space<vmem>>, %arg8: memref<2x1x64xf32, #tpu.memory_space<vmem>>, %arg9: memref<2x64x64xbf16, #tpu.memory_space<vmem>>, %arg10: memref<2x1x64xf32, #tpu.memory_space<vmem>>, %arg11: memref<2x64x64xbf16, #tpu.memory_space<vmem>>, %arg12: memref<2x1x64xf32, #tpu.memory_space<vmem>>, %arg13: memref<2x64x64xbf16, #tpu.memory_space<vmem>>, %arg14: memref<2x1x64xf32, #tpu.memory_space<vmem>>, %arg15: memref<2x1x64xf32, #tpu.memory_space<vmem>>, %arg16: memref<2x1x64xf32, #tpu.memory_space<vmem>>, %arg17: memref<2x64x256xbf16, #tpu.memory_space<vmem>>, %arg18: memref<2x1x256xf32, #tpu.memory_space<vmem>>, %arg19: memref<2x256x64xbf16, #tpu.memory_space<vmem>>, %arg20: memref<2x1x64xf32, #tpu.memory_space<vmem>>, %arg21: memref<1x64xf32, #tpu.memory_space<vmem>>, %arg22: memref<1x64xf32, #tpu.memory_space<vmem>>, %arg23: memref<64x128xbf16, #tpu.memory_space<vmem>>, %arg24: memref<1x128xf32, #tpu.memory_space<vmem>>, %arg25: memref<2x128xf32, #tpu.memory_space<vmem>>, %arg26: memref<2x1088xf32, #tpu.memory_space<vmem>>, %arg27: memref<34x64xf32, #tpu.memory_space<vmem>>) attributes {dimension_semantics = [], scalar_prefetch = 0 : i64, scratch_operands = 2 : i64, tpu.core_type = #tpu.core_type<tc>} {
    %c0 = arith.constant 0 : index
    %c0_0 = arith.constant 0 : index
    %0 = vector.load %arg0[%c0, %c0_0] : memref<2x768xf32, #tpu.memory_space<vmem>>, vector<2x768xf32>
    %c0_1 = arith.constant 0 : index
    %c0_2 = arith.constant 0 : index
    %1 = vector.load %arg1[%c0_1, %c0_2] : memref<768x1088xbf16, #tpu.memory_space<vmem>>, vector<768x1088xbf16>
    %2 = arith.truncf %0 : vector<2x768xf32> to vector<2x768xbf16>
    %cst = arith.constant dense<0.000000e+00> : vector<2x1088xf32>
    %3 = tpu.matmul %2, %1, %cst {dimension_numbers = #tpu.dot_dimension_numbers<[1], [0], [0], [1], [0, 0, 1, 1], [], []>} : vector<2x768xbf16>, vector<768x1088xbf16>, vector<2x1088xf32> -> vector<2x1088xf32>
    %c0_3 = arith.constant 0 : index
    %c0_4 = arith.constant 0 : index
    %4 = vector.load %arg26[%c0_3, %c0_4] : memref<2x1088xf32, #tpu.memory_space<vmem>>, vector<2x1088xf32>
    tpu.vector_store %arg26[%c0_3, %c0_4], %3 {strides = array<i32>} : memref<2x1088xf32, #tpu.memory_space<vmem>>, vector<2x1088xf32>,
    %c0_5 = arith.constant 0 : index
    %c0_6 = arith.constant 0 : index
    %5 = vector.load %arg26[%c0_5, %c0_6] : memref<2x1088xf32, #tpu.memory_space<vmem>>, vector<2x64xf32>
    %c0_7 = arith.constant 0 : index
    %c0_8 = arith.constant 0 : index
    %6 = vector.load %arg27[%c0_7, %c0_8] : memref<34x64xf32, #tpu.memory_space<vmem>>, vector<2x64xf32>
    tpu.vector_store %arg27[%c0_7, %c0_8], %5 {strides = array<i32>} : memref<34x64xf32, #tpu.memory_space<vmem>>, vector<2x64xf32>,
    %c0_9 = arith.constant 0 : index
    %c64 = arith.constant 64 : index
    %7 = vector.load %arg26[%c0_9, %c64] : memref<2x1088xf32, #tpu.memory_space<vmem>>, vector<2x64xf32>
    %c2 = arith.constant 2 : index
    %c0_10 = arith.constant 0 : index
    %8 = vector.load %arg27[%c2, %c0_10] : memref<34x64xf32, #tpu.memory_space<vmem>>, vector<2x64xf32>
    tpu.vector_store %arg27[%c2, %c0_10], %7 {strides = array<i32>} : memref<34x64xf32, #tpu.memory_space<vmem>>, vector<2x64xf32>,
    %c0_11 = arith.constant 0 : index
    %c128 = arith.constant 128 : index
    %9 = vector.load %arg26[%c0_11, %c128] : memref<2x1088xf32, #tpu.memory_space<vmem>>, vector<2x64xf32>
    %c4 = arith.constant 4 : index
    %c0_12 = arith.constant 0 : index
    %10 = vector.load %arg27[%c4, %c0_12] : memref<34x64xf32, #tpu.memory_space<vmem>>, vector<2x64xf32>
    tpu.vector_store %arg27[%c4, %c0_12], %9 {strides = array<i32>} : memref<34x64xf32, #tpu.memory_space<vmem>>, vector<2x64xf32>,
    %c0_13 = arith.constant 0 : index
    %c192 = arith.constant 192 : index
    %11 = vector.load %arg26[%c0_13, %c192] : memref<2x1088xf32, #tpu.memory_space<vmem>>, vector<2x64xf32>
    %c6 = arith.constant 6 : index
    %c0_14 = arith.constant 0 : index
    %12 = vector.load %arg27[%c6, %c0_14] : memref<34x64xf32, #tpu.memory_space<vmem>>, vector<2x64xf32>
    tpu.vector_store %arg27[%c6, %c0_14], %11 {strides = array<i32>} : memref<34x64xf32, #tpu.memory_space<vmem>>, vector<2x64xf32>,
    %c0_15 = arith.constant 0 : index
    %c256 = arith.constant 256 : index
    %13 = vector.load %arg26[%c0_15, %c256] : memref<2x1088xf32, #tpu.memory_space<vmem>>, vector<2x64xf32>
    %c8 = arith.constant 8 : index
    %c0_16 = arith.constant 0 : index
    %14 = vector.load %arg27[%c8, %c0_16] : memref<34x64xf32, #tpu.memory_space<vmem>>, vector<2x64xf32>
    tpu.vector_store %arg27[%c8, %c0_16], %13 {strides = array<i32>} : memref<34x64xf32, #tpu.memory_space<vmem>>, vector<2x64xf32>,
    %c0_17 = arith.constant 0 : index
    %c320 = arith.constant 320 : index
    %15 = vector.load %arg26[%c0_17, %c320] : memref<2x1088xf32, #tpu.memory_space<vmem>>, vector<2x64xf32>
    %c10 = arith.constant 10 : index
    %c0_18 = arith.constant 0 : index
    %16 = vector.load %arg27[%c10, %c0_18] : memref<34x64xf32, #tpu.memory_space<vmem>>, vector<2x64xf32>
    tpu.vector_store %arg27[%c10, %c0_18], %15 {strides = array<i32>} : memref<34x64xf32, #tpu.memory_space<vmem>>, vector<2x64xf32>,
    %c0_19 = arith.constant 0 : index
    %c384 = arith.constant 384 : index
    %17 = vector.load %arg26[%c0_19, %c384] : memref<2x1088xf32, #tpu.memory_space<vmem>>, vector<2x64xf32>
    %c12 = arith.constant 12 : index
    %c0_20 = arith.constant 0 : index
    %18 = vector.load %arg27[%c12, %c0_20] : memref<34x64xf32, #tpu.memory_space<vmem>>, vector<2x64xf32>
    tpu.vector_store %arg27[%c12, %c0_20], %17 {strides = array<i32>} : memref<34x64xf32, #tpu.memory_space<vmem>>, vector<2x64xf32>,
    %c0_21 = arith.constant 0 : index
    %c448 = arith.constant 448 : index
    %19 = vector.load %arg26[%c0_21, %c448] : memref<2x1088xf32, #tpu.memory_space<vmem>>, vector<2x64xf32>
    %c14 = arith.constant 14 : index
    %c0_22 = arith.constant 0 : index
    %20 = vector.load %arg27[%c14, %c0_22] : memref<34x64xf32, #tpu.memory_space<vmem>>, vector<2x64xf32>
    tpu.vector_store %arg27[%c14, %c0_22], %19 {strides = array<i32>} : memref<34x64xf32, #tpu.memory_space<vmem>>, vector<2x64xf32>,
    %c0_23 = arith.constant 0 : index
    %c512 = arith.constant 512 : index
    %21 = vector.load %arg26[%c0_23, %c512] : memref<2x1088xf32, #tpu.memory_space<vmem>>, vector<2x64xf32>
    %c16 = arith.constant 16 : index
    %c0_24 = arith.constant 0 : index
    %22 = vector.load %arg27[%c16, %c0_24] : memref<34x64xf32, #tpu.memory_space<vmem>>, vector<2x64xf32>
    tpu.vector_store %arg27[%c16, %c0_24], %21 {strides = array<i32>} : memref<34x64xf32, #tpu.memory_space<vmem>>, vector<2x64xf32>,
    %c0_25 = arith.constant 0 : index
    %c576 = arith.constant 576 : index
    %23 = vector.load %arg26[%c0_25, %c576] : memref<2x1088xf32, #tpu.memory_space<vmem>>, vector<2x64xf32>
    %c18 = arith.constant 18 : index
    %c0_26 = arith.constant 0 : index
    %24 = vector.load %arg27[%c18, %c0_26] : memref<34x64xf32, #tpu.memory_space<vmem>>, vector<2x64xf32>
    tpu.vector_store %arg27[%c18, %c0_26], %23 {strides = array<i32>} : memref<34x64xf32, #tpu.memory_space<vmem>>, vector<2x64xf32>,
    %c0_27 = arith.constant 0 : index
    %c640 = arith.constant 640 : index
    %25 = vector.load %arg26[%c0_27, %c640] : memref<2x1088xf32, #tpu.memory_space<vmem>>, vector<2x64xf32>
    %c20 = arith.constant 20 : index
    %c0_28 = arith.constant 0 : index
    %26 = vector.load %arg27[%c20, %c0_28] : memref<34x64xf32, #tpu.memory_space<vmem>>, vector<2x64xf32>
    tpu.vector_store %arg27[%c20, %c0_28], %25 {strides = array<i32>} : memref<34x64xf32, #tpu.memory_space<vmem>>, vector<2x64xf32>,
    %c0_29 = arith.constant 0 : index
    %c704 = arith.constant 704 : index
    %27 = vector.load %arg26[%c0_29, %c704] : memref<2x1088xf32, #tpu.memory_space<vmem>>, vector<2x64xf32>
    %c22 = arith.constant 22 : index
    %c0_30 = arith.constant 0 : index
    %28 = vector.load %arg27[%c22, %c0_30] : memref<34x64xf32, #tpu.memory_space<vmem>>, vector<2x64xf32>
    tpu.vector_store %arg27[%c22, %c0_30], %27 {strides = array<i32>} : memref<34x64xf32, #tpu.memory_space<vmem>>, vector<2x64xf32>,
    %c0_31 = arith.constant 0 : index
    %c768 = arith.constant 768 : index
    %29 = vector.load %arg26[%c0_31, %c768] : memref<2x1088xf32, #tpu.memory_space<vmem>>, vector<2x64xf32>
    %c24 = arith.constant 24 : index
    %c0_32 = arith.constant 0 : index
    %30 = vector.load %arg27[%c24, %c0_32] : memref<34x64xf32, #tpu.memory_space<vmem>>, vector<2x64xf32>
    tpu.vector_store %arg27[%c24, %c0_32], %29 {strides = array<i32>} : memref<34x64xf32, #tpu.memory_space<vmem>>, vector<2x64xf32>,
    %c0_33 = arith.constant 0 : index
    %c832 = arith.constant 832 : index
    %31 = vector.load %arg26[%c0_33, %c832] : memref<2x1088xf32, #tpu.memory_space<vmem>>, vector<2x64xf32>
    %c26 = arith.constant 26 : index
    %c0_34 = arith.constant 0 : index
    %32 = vector.load %arg27[%c26, %c0_34] : memref<34x64xf32, #tpu.memory_space<vmem>>, vector<2x64xf32>
    tpu.vector_store %arg27[%c26, %c0_34], %31 {strides = array<i32>} : memref<34x64xf32, #tpu.memory_space<vmem>>, vector<2x64xf32>,
    %c0_35 = arith.constant 0 : index
    %c896 = arith.constant 896 : index
    %33 = vector.load %arg26[%c0_35, %c896] : memref<2x1088xf32, #tpu.memory_space<vmem>>, vector<2x64xf32>
    %c28 = arith.constant 28 : index
    %c0_36 = arith.constant 0 : index
    %34 = vector.load %arg27[%c28, %c0_36] : memref<34x64xf32, #tpu.memory_space<vmem>>, vector<2x64xf32>
    tpu.vector_store %arg27[%c28, %c0_36], %33 {strides = array<i32>} : memref<34x64xf32, #tpu.memory_space<vmem>>, vector<2x64xf32>,
    %c0_37 = arith.constant 0 : index
    %c960 = arith.constant 960 : index
    %35 = vector.load %arg26[%c0_37, %c960] : memref<2x1088xf32, #tpu.memory_space<vmem>>, vector<2x64xf32>
    %c30 = arith.constant 30 : index
    %c0_38 = arith.constant 0 : index
    %36 = vector.load %arg27[%c30, %c0_38] : memref<34x64xf32, #tpu.memory_space<vmem>>, vector<2x64xf32>
    tpu.vector_store %arg27[%c30, %c0_38], %35 {strides = array<i32>} : memref<34x64xf32, #tpu.memory_space<vmem>>, vector<2x64xf32>,
    %c0_39 = arith.constant 0 : index
    %c1024 = arith.constant 1024 : index
    %37 = vector.load %arg26[%c0_39, %c1024] : memref<2x1088xf32, #tpu.memory_space<vmem>>, vector<2x64xf32>
    %c32 = arith.constant 32 : index
    %c0_40 = arith.constant 0 : index
    %38 = vector.load %arg27[%c32, %c0_40] : memref<34x64xf32, #tpu.memory_space<vmem>>, vector<2x64xf32>
    tpu.vector_store %arg27[%c32, %c0_40], %37 {strides = array<i32>} : memref<34x64xf32, #tpu.memory_space<vmem>>, vector<2x64xf32>,
    %c0_41 = arith.constant 0 : index
    %c0_42 = arith.constant 0 : index
    %39 = vector.load %arg27[%c0_41, %c0_42] : memref<34x64xf32, #tpu.memory_space<vmem>>, vector<34x64xf32>
    %c0_43 = arith.constant 0 : index
    %c0_44 = arith.constant 0 : index
    %40 = vector.load %arg2[%c0_43, %c0_44] : memref<34x64xf32, #tpu.memory_space<vmem>>, vector<34x64xf32>
    %41 = arith.addf %39, %40 : vector<34x64xf32>
    %c0_45 = arith.constant 0 : index
    %c0_46 = arith.constant 0 : index
    %42 = vector.load %arg3[%c0_45, %c0_46] : memref<34x34xf32, #tpu.memory_space<vmem>>, vector<34x34xf32>
    %c0_47 = arith.constant 0 : index
    %c0_48 = arith.constant 0 : index
    %43 = vector.load %arg4[%c0_47, %c0_48] : memref<4x64xf32, #tpu.memory_space<vmem>>, vector<1x64xf32>
    %c1 = arith.constant 1 : index
    %c0_49 = arith.constant 0 : index
    %44 = vector.load %arg4[%c1, %c0_49] : memref<4x64xf32, #tpu.memory_space<vmem>>, vector<1x64xf32>
    %c2_50 = arith.constant 2 : index
    %c0_51 = arith.constant 0 : index
    %45 = vector.load %arg4[%c2_50, %c0_51] : memref<4x64xf32, #tpu.memory_space<vmem>>, vector<1x64xf32>
    %c3 = arith.constant 3 : index
    %c0_52 = arith.constant 0 : index
    %46 = vector.load %arg4[%c3, %c0_52] : memref<4x64xf32, #tpu.memory_space<vmem>>, vector<1x64xf32>
    %c0_53 = arith.constant 0 : index
    %c0_54 = arith.constant 0 : index
    %c0_55 = arith.constant 0 : index
    %47 = vector.load %arg5[%c0_53, %c0_54, %c0_55] : memref<2x1x64xf32, #tpu.memory_space<vmem>>, vector<1x1x64xf32>
    %48 = vector.shape_cast %47 : vector<1x1x64xf32> to vector<1x64xf32>
    %c0_56 = arith.constant 0 : index
    %c0_57 = arith.constant 0 : index
    %c0_58 = arith.constant 0 : index
    %49 = vector.load %arg6[%c0_56, %c0_57, %c0_58] : memref<2x1x64xf32, #tpu.memory_space<vmem>>, vector<1x1x64xf32>
    %50 = vector.shape_cast %49 : vector<1x1x64xf32> to vector<1x64xf32>
    %cst_59 = arith.constant dense<0.000000e+00> : vector<34xf32>
    %51 = vector.multi_reduction <add>, %41, %cst_59 [1] : vector<34x64xf32> to vector<34xf32>
    %52 = vector.shape_cast %51 : vector<34xf32> to vector<34x1xf32>
    %cst_60 = arith.constant 6.400000e+01 : f32
    %53 = vector.broadcast %cst_60 : f32 to vector<34x1xf32>
    %54 = arith.divf %52, %53 : vector<34x1xf32>
    %55 = vector.broadcast %54 : vector<34x1xf32> to vector<34x64xf32>
    %56 = arith.subf %41, %55 : vector<34x64xf32>
    %57 = arith.mulf %56, %56 : vector<34x64xf32>
    %cst_61 = arith.constant dense<0.000000e+00> : vector<34xf32>
    %58 = vector.multi_reduction <add>, %57, %cst_61 [1] : vector<34x64xf32> to vector<34xf32>
    %59 = vector.shape_cast %58 : vector<34xf32> to vector<34x1xf32>
    %cst_62 = arith.constant 6.400000e+01 : f32
    %60 = vector.broadcast %cst_62 : f32 to vector<34x1xf32>
    %61 = arith.divf %59, %60 : vector<34x1xf32>
    %cst_63 = arith.constant 9.99999997E-7 : f32
    %62 = vector.broadcast %cst_63 : f32 to vector<34x1xf32>
    %63 = arith.addf %61, %62 : vector<34x1xf32>
    %64 = math.rsqrt %63 : vector<34x1xf32>
    %65 = vector.broadcast %64 : vector<34x1xf32> to vector<34x64xf32>
    %66 = arith.mulf %56, %65 : vector<34x64xf32>
    %67 = vector.broadcast %48 : vector<1x64xf32> to vector<34x64xf32>
    %68 = arith.mulf %66, %67 : vector<34x64xf32>
    %69 = vector.broadcast %50 : vector<1x64xf32> to vector<34x64xf32>
    %70 = arith.addf %68, %69 : vector<34x64xf32>
    %c0_64 = arith.constant 0 : index
    %c0_65 = arith.constant 0 : index
    %c0_66 = arith.constant 0 : index
    %71 = vector.load %arg7[%c0_64, %c0_65, %c0_66] : memref<2x64x64xbf16, #tpu.memory_space<vmem>>, vector<1x64x64xbf16>
    %72 = vector.shape_cast %71 : vector<1x64x64xbf16> to vector<64x64xbf16>
    %73 = arith.truncf %70 : vector<34x64xf32> to vector<34x64xbf16>
    %cst_67 = arith.constant dense<0.000000e+00> : vector<34x64xf32>
    %74 = tpu.matmul %73, %72, %cst_67 {dimension_numbers = #tpu.dot_dimension_numbers<[1], [0], [0], [1], [0, 0, 1, 1], [], []>} : vector<34x64xbf16>, vector<64x64xbf16>, vector<34x64xf32> -> vector<34x64xf32>
    %c0_68 = arith.constant 0 : index
    %c0_69 = arith.constant 0 : index
    %c0_70 = arith.constant 0 : index
    %75 = vector.load %arg8[%c0_68, %c0_69, %c0_70] : memref<2x1x64xf32, #tpu.memory_space<vmem>>, vector<1x1x64xf32>
    %76 = vector.shape_cast %75 : vector<1x1x64xf32> to vector<1x64xf32>
    %77 = vector.broadcast %76 : vector<1x64xf32> to vector<34x64xf32>
    %78 = arith.addf %74, %77 : vector<34x64xf32>
    %c0_71 = arith.constant 0 : index
    %c0_72 = arith.constant 0 : index
    %c0_73 = arith.constant 0 : index
    %79 = vector.load %arg9[%c0_71, %c0_72, %c0_73] : memref<2x64x64xbf16, #tpu.memory_space<vmem>>, vector<1x64x64xbf16>
    %80 = vector.shape_cast %79 : vector<1x64x64xbf16> to vector<64x64xbf16>
    %81 = arith.truncf %70 : vector<34x64xf32> to vector<34x64xbf16>
    %cst_74 = arith.constant dense<0.000000e+00> : vector<34x64xf32>
    %82 = tpu.matmul %81, %80, %cst_74 {dimension_numbers = #tpu.dot_dimension_numbers<[1], [0], [0], [1], [0, 0, 1, 1], [], []>} : vector<34x64xbf16>, vector<64x64xbf16>, vector<34x64xf32> -> vector<34x64xf32>
    %c0_75 = arith.constant 0 : index
    %c0_76 = arith.constant 0 : index
    %c0_77 = arith.constant 0 : index
    %83 = vector.load %arg10[%c0_75, %c0_76, %c0_77] : memref<2x1x64xf32, #tpu.memory_space<vmem>>, vector<1x1x64xf32>
    %84 = vector.shape_cast %83 : vector<1x1x64xf32> to vector<1x64xf32>
    %85 = vector.broadcast %84 : vector<1x64xf32> to vector<34x64xf32>
    %86 = arith.addf %82, %85 : vector<34x64xf32>
    %c0_78 = arith.constant 0 : index
    %c0_79 = arith.constant 0 : index
    %c0_80 = arith.constant 0 : index
    %87 = vector.load %arg11[%c0_78, %c0_79, %c0_80] : memref<2x64x64xbf16, #tpu.memory_space<vmem>>, vector<1x64x64xbf16>
    %88 = vector.shape_cast %87 : vector<1x64x64xbf16> to vector<64x64xbf16>
    %89 = arith.truncf %70 : vector<34x64xf32> to vector<34x64xbf16>
    %cst_81 = arith.constant dense<0.000000e+00> : vector<34x64xf32>
    %90 = tpu.matmul %89, %88, %cst_81 {dimension_numbers = #tpu.dot_dimension_numbers<[1], [0], [0], [1], [0, 0, 1, 1], [], []>} : vector<34x64xbf16>, vector<64x64xbf16>, vector<34x64xf32> -> vector<34x64xf32>
    %c0_82 = arith.constant 0 : index
    %c0_83 = arith.constant 0 : index
    %c0_84 = arith.constant 0 : index
    %91 = vector.load %arg12[%c0_82, %c0_83, %c0_84] : memref<2x1x64xf32, #tpu.memory_space<vmem>>, vector<1x1x64xf32>
    %92 = vector.shape_cast %91 : vector<1x1x64xf32> to vector<1x64xf32>
    %93 = vector.broadcast %92 : vector<1x64xf32> to vector<34x64xf32>
    %94 = arith.addf %90, %93 : vector<34x64xf32>
    %95 = arith.truncf %78 : vector<34x64xf32> to vector<34x64xbf16>
    %96 = vector.broadcast %43 : vector<1x64xf32> to vector<34x64xf32>
    %97 = arith.mulf %86, %96 : vector<34x64xf32>
    %98 = arith.truncf %97 : vector<34x64xf32> to vector<34x64xbf16>
    %99 = vector.broadcast %43 : vector<1x64xf32> to vector<34x64xf32>
    %100 = arith.mulf %94, %99 : vector<34x64xf32>
    %101 = arith.truncf %100 : vector<34x64xf32> to vector<34x64xbf16>
    %cst_85 = arith.constant dense<0.000000e+00> : vector<34x34xf32>
    %102 = tpu.matmul %95, %98, %cst_85 {dimension_numbers = #tpu.dot_dimension_numbers<[1], [1], [0], [0], [0, 0, 1, 0], [], []>} : vector<34x64xbf16>, vector<34x64xbf16>, vector<34x34xf32> -> vector<34x34xf32>
    %cst_86 = arith.constant 2.500000e-01 : f32
    %103 = vector.broadcast %cst_86 : f32 to vector<34x34xf32>
    %104 = arith.mulf %102, %103 : vector<34x34xf32>
    %105 = arith.addf %104, %42 : vector<34x34xf32>
    %cst_87 = arith.constant dense<0xFF800000> : vector<34xf32>
    %106 = vector.multi_reduction <maximumf>, %105, %cst_87 [1] : vector<34x34xf32> to vector<34xf32>
    %107 = vector.shape_cast %106 : vector<34xf32> to vector<34x1xf32>
    %108 = vector.broadcast %107 : vector<34x1xf32> to vector<34x34xf32>
    %109 = arith.subf %105, %108 : vector<34x34xf32>
    %110 = math.exp %109 : vector<34x34xf32>
    %cst_88 = arith.constant dense<0.000000e+00> : vector<34xf32>
    %111 = vector.multi_reduction <add>, %110, %cst_88 [1] : vector<34x34xf32> to vector<34xf32>
    %112 = vector.shape_cast %111 : vector<34xf32> to vector<34x1xf32>
    %113 = tpu.reciprocal %112 {approx = true} : vector<34x1xf32> -> vector<34x1xf32>
    %114 = vector.broadcast %113 : vector<34x1xf32> to vector<34x34xf32>
    %115 = arith.mulf %110, %114 : vector<34x34xf32>
    %116 = arith.truncf %115 : vector<34x34xf32> to vector<34x34xbf16>
    %cst_89 = arith.constant dense<0.000000e+00> : vector<34x64xf32>
    %117 = tpu.matmul %116, %101, %cst_89 {dimension_numbers = #tpu.dot_dimension_numbers<[1], [0], [0], [1], [0, 0, 1, 1], [], []>} : vector<34x34xbf16>, vector<34x64xbf16>, vector<34x64xf32> -> vector<34x64xf32>
    %118 = vector.broadcast %44 : vector<1x64xf32> to vector<34x64xf32>
    %119 = arith.mulf %86, %118 : vector<34x64xf32>
    %120 = arith.truncf %119 : vector<34x64xf32> to vector<34x64xbf16>
    %121 = vector.broadcast %44 : vector<1x64xf32> to vector<34x64xf32>
    %122 = arith.mulf %94, %121 : vector<34x64xf32>
    %123 = arith.truncf %122 : vector<34x64xf32> to vector<34x64xbf16>
    %cst_90 = arith.constant dense<0.000000e+00> : vector<34x34xf32>
    %124 = tpu.matmul %95, %120, %cst_90 {dimension_numbers = #tpu.dot_dimension_numbers<[1], [1], [0], [0], [0, 0, 1, 0], [], []>} : vector<34x64xbf16>, vector<34x64xbf16>, vector<34x34xf32> -> vector<34x34xf32>
    %cst_91 = arith.constant 2.500000e-01 : f32
    %125 = vector.broadcast %cst_91 : f32 to vector<34x34xf32>
    %126 = arith.mulf %124, %125 : vector<34x34xf32>
    %127 = arith.addf %126, %42 : vector<34x34xf32>
    %cst_92 = arith.constant dense<0xFF800000> : vector<34xf32>
    %128 = vector.multi_reduction <maximumf>, %127, %cst_92 [1] : vector<34x34xf32> to vector<34xf32>
    %129 = vector.shape_cast %128 : vector<34xf32> to vector<34x1xf32>
    %130 = vector.broadcast %129 : vector<34x1xf32> to vector<34x34xf32>
    %131 = arith.subf %127, %130 : vector<34x34xf32>
    %132 = math.exp %131 : vector<34x34xf32>
    %cst_93 = arith.constant dense<0.000000e+00> : vector<34xf32>
    %133 = vector.multi_reduction <add>, %132, %cst_93 [1] : vector<34x34xf32> to vector<34xf32>
    %134 = vector.shape_cast %133 : vector<34xf32> to vector<34x1xf32>
    %135 = tpu.reciprocal %134 {approx = true} : vector<34x1xf32> -> vector<34x1xf32>
    %136 = vector.broadcast %135 : vector<34x1xf32> to vector<34x34xf32>
    %137 = arith.mulf %132, %136 : vector<34x34xf32>
    %138 = arith.truncf %137 : vector<34x34xf32> to vector<34x34xbf16>
    %cst_94 = arith.constant dense<0.000000e+00> : vector<34x64xf32>
    %139 = tpu.matmul %138, %123, %cst_94 {dimension_numbers = #tpu.dot_dimension_numbers<[1], [0], [0], [1], [0, 0, 1, 1], [], []>} : vector<34x34xbf16>, vector<34x64xbf16>, vector<34x64xf32> -> vector<34x64xf32>
    %140 = arith.addf %117, %139 : vector<34x64xf32>
    %141 = vector.broadcast %45 : vector<1x64xf32> to vector<34x64xf32>
    %142 = arith.mulf %86, %141 : vector<34x64xf32>
    %143 = arith.truncf %142 : vector<34x64xf32> to vector<34x64xbf16>
    %144 = vector.broadcast %45 : vector<1x64xf32> to vector<34x64xf32>
    %145 = arith.mulf %94, %144 : vector<34x64xf32>
    %146 = arith.truncf %145 : vector<34x64xf32> to vector<34x64xbf16>
    %cst_95 = arith.constant dense<0.000000e+00> : vector<34x34xf32>
    %147 = tpu.matmul %95, %143, %cst_95 {dimension_numbers = #tpu.dot_dimension_numbers<[1], [1], [0], [0], [0, 0, 1, 0], [], []>} : vector<34x64xbf16>, vector<34x64xbf16>, vector<34x34xf32> -> vector<34x34xf32>
    %cst_96 = arith.constant 2.500000e-01 : f32
    %148 = vector.broadcast %cst_96 : f32 to vector<34x34xf32>
    %149 = arith.mulf %147, %148 : vector<34x34xf32>
    %150 = arith.addf %149, %42 : vector<34x34xf32>
    %cst_97 = arith.constant dense<0xFF800000> : vector<34xf32>
    %151 = vector.multi_reduction <maximumf>, %150, %cst_97 [1] : vector<34x34xf32> to vector<34xf32>
    %152 = vector.shape_cast %151 : vector<34xf32> to vector<34x1xf32>
    %153 = vector.broadcast %152 : vector<34x1xf32> to vector<34x34xf32>
    %154 = arith.subf %150, %153 : vector<34x34xf32>
    %155 = math.exp %154 : vector<34x34xf32>
    %cst_98 = arith.constant dense<0.000000e+00> : vector<34xf32>
    %156 = vector.multi_reduction <add>, %155, %cst_98 [1] : vector<34x34xf32> to vector<34xf32>
    %157 = vector.shape_cast %156 : vector<34xf32> to vector<34x1xf32>
    %158 = tpu.reciprocal %157 {approx = true} : vector<34x1xf32> -> vector<34x1xf32>
    %159 = vector.broadcast %158 : vector<34x1xf32> to vector<34x34xf32>
    %160 = arith.mulf %155, %159 : vector<34x34xf32>
    %161 = arith.truncf %160 : vector<34x34xf32> to vector<34x34xbf16>
    %cst_99 = arith.constant dense<0.000000e+00> : vector<34x64xf32>
    %162 = tpu.matmul %161, %146, %cst_99 {dimension_numbers = #tpu.dot_dimension_numbers<[1], [0], [0], [1], [0, 0, 1, 1], [], []>} : vector<34x34xbf16>, vector<34x64xbf16>, vector<34x64xf32> -> vector<34x64xf32>
    %163 = arith.addf %140, %162 : vector<34x64xf32>
    %164 = vector.broadcast %46 : vector<1x64xf32> to vector<34x64xf32>
    %165 = arith.mulf %86, %164 : vector<34x64xf32>
    %166 = arith.truncf %165 : vector<34x64xf32> to vector<34x64xbf16>
    %167 = vector.broadcast %46 : vector<1x64xf32> to vector<34x64xf32>
    %168 = arith.mulf %94, %167 : vector<34x64xf32>
    %169 = arith.truncf %168 : vector<34x64xf32> to vector<34x64xbf16>
    %cst_100 = arith.constant dense<0.000000e+00> : vector<34x34xf32>
    %170 = tpu.matmul %95, %166, %cst_100 {dimension_numbers = #tpu.dot_dimension_numbers<[1], [1], [0], [0], [0, 0, 1, 0], [], []>} : vector<34x64xbf16>, vector<34x64xbf16>, vector<34x34xf32> -> vector<34x34xf32>
    %cst_101 = arith.constant 2.500000e-01 : f32
    %171 = vector.broadcast %cst_101 : f32 to vector<34x34xf32>
    %172 = arith.mulf %170, %171 : vector<34x34xf32>
    %173 = arith.addf %172, %42 : vector<34x34xf32>
    %cst_102 = arith.constant dense<0xFF800000> : vector<34xf32>
    %174 = vector.multi_reduction <maximumf>, %173, %cst_102 [1] : vector<34x34xf32> to vector<34xf32>
    %175 = vector.shape_cast %174 : vector<34xf32> to vector<34x1xf32>
    %176 = vector.broadcast %175 : vector<34x1xf32> to vector<34x34xf32>
    %177 = arith.subf %173, %176 : vector<34x34xf32>
    %178 = math.exp %177 : vector<34x34xf32>
    %cst_103 = arith.constant dense<0.000000e+00> : vector<34xf32>
    %179 = vector.multi_reduction <add>, %178, %cst_103 [1] : vector<34x34xf32> to vector<34xf32>
    %180 = vector.shape_cast %179 : vector<34xf32> to vector<34x1xf32>
    %181 = tpu.reciprocal %180 {approx = true} : vector<34x1xf32> -> vector<34x1xf32>
    %182 = vector.broadcast %181 : vector<34x1xf32> to vector<34x34xf32>
    %183 = arith.mulf %178, %182 : vector<34x34xf32>
    %184 = arith.truncf %183 : vector<34x34xf32> to vector<34x34xbf16>
    %cst_104 = arith.constant dense<0.000000e+00> : vector<34x64xf32>
    %185 = tpu.matmul %184, %169, %cst_104 {dimension_numbers = #tpu.dot_dimension_numbers<[1], [0], [0], [1], [0, 0, 1, 1], [], []>} : vector<34x34xbf16>, vector<34x64xbf16>, vector<34x64xf32> -> vector<34x64xf32>
    %186 = arith.addf %163, %185 : vector<34x64xf32>
    %c0_105 = arith.constant 0 : index
    %c0_106 = arith.constant 0 : index
    %c0_107 = arith.constant 0 : index
    %187 = vector.load %arg13[%c0_105, %c0_106, %c0_107] : memref<2x64x64xbf16, #tpu.memory_space<vmem>>, vector<1x64x64xbf16>
    %188 = vector.shape_cast %187 : vector<1x64x64xbf16> to vector<64x64xbf16>
    %189 = arith.truncf %186 : vector<34x64xf32> to vector<34x64xbf16>
    %cst_108 = arith.constant dense<0.000000e+00> : vector<34x64xf32>
    %190 = tpu.matmul %189, %188, %cst_108 {dimension_numbers = #tpu.dot_dimension_numbers<[1], [0], [0], [1], [0, 0, 1, 1], [], []>} : vector<34x64xbf16>, vector<64x64xbf16>, vector<34x64xf32> -> vector<34x64xf32>
    %191 = arith.addf %41, %190 : vector<34x64xf32>
    %c0_109 = arith.constant 0 : index
    %c0_110 = arith.constant 0 : index
    %c0_111 = arith.constant 0 : index
    %192 = vector.load %arg14[%c0_109, %c0_110, %c0_111] : memref<2x1x64xf32, #tpu.memory_space<vmem>>, vector<1x1x64xf32>
    %193 = vector.shape_cast %192 : vector<1x1x64xf32> to vector<1x64xf32>
    %194 = vector.broadcast %193 : vector<1x64xf32> to vector<34x64xf32>
    %195 = arith.addf %191, %194 : vector<34x64xf32>
    %c0_112 = arith.constant 0 : index
    %c0_113 = arith.constant 0 : index
    %c0_114 = arith.constant 0 : index
    %196 = vector.load %arg15[%c0_112, %c0_113, %c0_114] : memref<2x1x64xf32, #tpu.memory_space<vmem>>, vector<1x1x64xf32>
    %197 = vector.shape_cast %196 : vector<1x1x64xf32> to vector<1x64xf32>
    %c0_115 = arith.constant 0 : index
    %c0_116 = arith.constant 0 : index
    %c0_117 = arith.constant 0 : index
    %198 = vector.load %arg16[%c0_115, %c0_116, %c0_117] : memref<2x1x64xf32, #tpu.memory_space<vmem>>, vector<1x1x64xf32>
    %199 = vector.shape_cast %198 : vector<1x1x64xf32> to vector<1x64xf32>
    %cst_118 = arith.constant dense<0.000000e+00> : vector<34xf32>
    %200 = vector.multi_reduction <add>, %195, %cst_118 [1] : vector<34x64xf32> to vector<34xf32>
    %201 = vector.shape_cast %200 : vector<34xf32> to vector<34x1xf32>
    %cst_119 = arith.constant 6.400000e+01 : f32
    %202 = vector.broadcast %cst_119 : f32 to vector<34x1xf32>
    %203 = arith.divf %201, %202 : vector<34x1xf32>
    %204 = vector.broadcast %203 : vector<34x1xf32> to vector<34x64xf32>
    %205 = arith.subf %195, %204 : vector<34x64xf32>
    %206 = arith.mulf %205, %205 : vector<34x64xf32>
    %cst_120 = arith.constant dense<0.000000e+00> : vector<34xf32>
    %207 = vector.multi_reduction <add>, %206, %cst_120 [1] : vector<34x64xf32> to vector<34xf32>
    %208 = vector.shape_cast %207 : vector<34xf32> to vector<34x1xf32>
    %cst_121 = arith.constant 6.400000e+01 : f32
    %209 = vector.broadcast %cst_121 : f32 to vector<34x1xf32>
    %210 = arith.divf %208, %209 : vector<34x1xf32>
    %cst_122 = arith.constant 9.99999997E-7 : f32
    %211 = vector.broadcast %cst_122 : f32 to vector<34x1xf32>
    %212 = arith.addf %210, %211 : vector<34x1xf32>
    %213 = math.rsqrt %212 : vector<34x1xf32>
    %214 = vector.broadcast %213 : vector<34x1xf32> to vector<34x64xf32>
    %215 = arith.mulf %205, %214 : vector<34x64xf32>
    %216 = vector.broadcast %197 : vector<1x64xf32> to vector<34x64xf32>
    %217 = arith.mulf %215, %216 : vector<34x64xf32>
    %218 = vector.broadcast %199 : vector<1x64xf32> to vector<34x64xf32>
    %219 = arith.addf %217, %218 : vector<34x64xf32>
    %c0_123 = arith.constant 0 : index
    %c0_124 = arith.constant 0 : index
    %c0_125 = arith.constant 0 : index
    %220 = vector.load %arg17[%c0_123, %c0_124, %c0_125] : memref<2x64x256xbf16, #tpu.memory_space<vmem>>, vector<1x64x256xbf16>
    %221 = vector.shape_cast %220 : vector<1x64x256xbf16> to vector<64x256xbf16>
    %222 = arith.truncf %219 : vector<34x64xf32> to vector<34x64xbf16>
    %cst_126 = arith.constant dense<0.000000e+00> : vector<34x256xf32>
    %223 = tpu.matmul %222, %221, %cst_126 {dimension_numbers = #tpu.dot_dimension_numbers<[1], [0], [0], [1], [0, 0, 1, 1], [], []>} : vector<34x64xbf16>, vector<64x256xbf16>, vector<34x256xf32> -> vector<34x256xf32>
    %c0_127 = arith.constant 0 : index
    %c0_128 = arith.constant 0 : index
    %c0_129 = arith.constant 0 : index
    %224 = vector.load %arg18[%c0_127, %c0_128, %c0_129] : memref<2x1x256xf32, #tpu.memory_space<vmem>>, vector<1x1x256xf32>
    %225 = vector.shape_cast %224 : vector<1x1x256xf32> to vector<1x256xf32>
    %226 = vector.broadcast %225 : vector<1x256xf32> to vector<34x256xf32>
    %227 = arith.addf %223, %226 : vector<34x256xf32>
    %cst_130 = arith.constant 5.000000e-01 : f32
    %228 = vector.broadcast %cst_130 : f32 to vector<34x256xf32>
    %229 = arith.mulf %228, %227 : vector<34x256xf32>
    %cst_131 = arith.constant 4.471500e-02 : f32
    %230 = vector.broadcast %cst_131 : f32 to vector<34x256xf32>
    %231 = arith.mulf %230, %227 : vector<34x256xf32>
    %232 = arith.mulf %231, %227 : vector<34x256xf32>
    %233 = arith.mulf %232, %227 : vector<34x256xf32>
    %234 = arith.addf %227, %233 : vector<34x256xf32>
    %cst_132 = arith.constant 0.797884583 : f32
    %235 = vector.broadcast %cst_132 : f32 to vector<34x256xf32>
    %236 = arith.mulf %235, %234 : vector<34x256xf32>
    %237 = math.tanh %236 : vector<34x256xf32>
    %cst_133 = arith.constant 1.000000e+00 : f32
    %238 = vector.broadcast %cst_133 : f32 to vector<34x256xf32>
    %239 = arith.addf %238, %237 : vector<34x256xf32>
    %240 = arith.mulf %229, %239 : vector<34x256xf32>
    %c0_134 = arith.constant 0 : index
    %c0_135 = arith.constant 0 : index
    %c0_136 = arith.constant 0 : index
    %241 = vector.load %arg19[%c0_134, %c0_135, %c0_136] : memref<2x256x64xbf16, #tpu.memory_space<vmem>>, vector<1x256x64xbf16>
    %242 = vector.shape_cast %241 : vector<1x256x64xbf16> to vector<256x64xbf16>
    %243 = arith.truncf %240 : vector<34x256xf32> to vector<34x256xbf16>
    %cst_137 = arith.constant dense<0.000000e+00> : vector<34x64xf32>
    %244 = tpu.matmul %243, %242, %cst_137 {dimension_numbers = #tpu.dot_dimension_numbers<[1], [0], [0], [1], [0, 0, 1, 1], [], []>} : vector<34x256xbf16>, vector<256x64xbf16>, vector<34x64xf32> -> vector<34x64xf32>
    %245 = arith.addf %195, %244 : vector<34x64xf32>
    %c0_138 = arith.constant 0 : index
    %c0_139 = arith.constant 0 : index
    %c0_140 = arith.constant 0 : index
    %246 = vector.load %arg20[%c0_138, %c0_139, %c0_140] : memref<2x1x64xf32, #tpu.memory_space<vmem>>, vector<1x1x64xf32>
    %247 = vector.shape_cast %246 : vector<1x1x64xf32> to vector<1x64xf32>
    %248 = vector.broadcast %247 : vector<1x64xf32> to vector<34x64xf32>
    %249 = arith.addf %245, %248 : vector<34x64xf32>
    %c1_141 = arith.constant 1 : index
    %c0_142 = arith.constant 0 : index
    %c0_143 = arith.constant 0 : index
    %250 = vector.load %arg5[%c1_141, %c0_142, %c0_143] : memref<2x1x64xf32, #tpu.memory_space<vmem>>, vector<1x1x64xf32>
    %251 = vector.shape_cast %250 : vector<1x1x64xf32> to vector<1x64xf32>
    %c1_144 = arith.constant 1 : index
    %c0_145 = arith.constant 0 : index
    %c0_146 = arith.constant 0 : index
    %252 = vector.load %arg6[%c1_144, %c0_145, %c0_146] : memref<2x1x64xf32, #tpu.memory_space<vmem>>, vector<1x1x64xf32>
    %253 = vector.shape_cast %252 : vector<1x1x64xf32> to vector<1x64xf32>
    %cst_147 = arith.constant dense<0.000000e+00> : vector<34xf32>
    %254 = vector.multi_reduction <add>, %249, %cst_147 [1] : vector<34x64xf32> to vector<34xf32>
    %255 = vector.shape_cast %254 : vector<34xf32> to vector<34x1xf32>
    %cst_148 = arith.constant 6.400000e+01 : f32
    %256 = vector.broadcast %cst_148 : f32 to vector<34x1xf32>
    %257 = arith.divf %255, %256 : vector<34x1xf32>
    %258 = vector.broadcast %257 : vector<34x1xf32> to vector<34x64xf32>
    %259 = arith.subf %249, %258 : vector<34x64xf32>
    %260 = arith.mulf %259, %259 : vector<34x64xf32>
    %cst_149 = arith.constant dense<0.000000e+00> : vector<34xf32>
    %261 = vector.multi_reduction <add>, %260, %cst_149 [1] : vector<34x64xf32> to vector<34xf32>
    %262 = vector.shape_cast %261 : vector<34xf32> to vector<34x1xf32>
    %cst_150 = arith.constant 6.400000e+01 : f32
    %263 = vector.broadcast %cst_150 : f32 to vector<34x1xf32>
    %264 = arith.divf %262, %263 : vector<34x1xf32>
    %cst_151 = arith.constant 9.99999997E-7 : f32
    %265 = vector.broadcast %cst_151 : f32 to vector<34x1xf32>
    %266 = arith.addf %264, %265 : vector<34x1xf32>
    %267 = math.rsqrt %266 : vector<34x1xf32>
    %268 = vector.broadcast %267 : vector<34x1xf32> to vector<34x64xf32>
    %269 = arith.mulf %259, %268 : vector<34x64xf32>
    %270 = vector.broadcast %251 : vector<1x64xf32> to vector<34x64xf32>
    %271 = arith.mulf %269, %270 : vector<34x64xf32>
    %272 = vector.broadcast %253 : vector<1x64xf32> to vector<34x64xf32>
    %273 = arith.addf %271, %272 : vector<34x64xf32>
    %c1_152 = arith.constant 1 : index
    %c0_153 = arith.constant 0 : index
    %c0_154 = arith.constant 0 : index
    %274 = vector.load %arg7[%c1_152, %c0_153, %c0_154] : memref<2x64x64xbf16, #tpu.memory_space<vmem>>, vector<1x64x64xbf16>
    %275 = vector.shape_cast %274 : vector<1x64x64xbf16> to vector<64x64xbf16>
    %276 = arith.truncf %273 : vector<34x64xf32> to vector<34x64xbf16>
    %cst_155 = arith.constant dense<0.000000e+00> : vector<34x64xf32>
    %277 = tpu.matmul %276, %275, %cst_155 {dimension_numbers = #tpu.dot_dimension_numbers<[1], [0], [0], [1], [0, 0, 1, 1], [], []>} : vector<34x64xbf16>, vector<64x64xbf16>, vector<34x64xf32> -> vector<34x64xf32>
    %c1_156 = arith.constant 1 : index
    %c0_157 = arith.constant 0 : index
    %c0_158 = arith.constant 0 : index
    %278 = vector.load %arg8[%c1_156, %c0_157, %c0_158] : memref<2x1x64xf32, #tpu.memory_space<vmem>>, vector<1x1x64xf32>
    %279 = vector.shape_cast %278 : vector<1x1x64xf32> to vector<1x64xf32>
    %280 = vector.broadcast %279 : vector<1x64xf32> to vector<34x64xf32>
    %281 = arith.addf %277, %280 : vector<34x64xf32>
    %c1_159 = arith.constant 1 : index
    %c0_160 = arith.constant 0 : index
    %c0_161 = arith.constant 0 : index
    %282 = vector.load %arg9[%c1_159, %c0_160, %c0_161] : memref<2x64x64xbf16, #tpu.memory_space<vmem>>, vector<1x64x64xbf16>
    %283 = vector.shape_cast %282 : vector<1x64x64xbf16> to vector<64x64xbf16>
    %284 = arith.truncf %273 : vector<34x64xf32> to vector<34x64xbf16>
    %cst_162 = arith.constant dense<0.000000e+00> : vector<34x64xf32>
    %285 = tpu.matmul %284, %283, %cst_162 {dimension_numbers = #tpu.dot_dimension_numbers<[1], [0], [0], [1], [0, 0, 1, 1], [], []>} : vector<34x64xbf16>, vector<64x64xbf16>, vector<34x64xf32> -> vector<34x64xf32>
    %c1_163 = arith.constant 1 : index
    %c0_164 = arith.constant 0 : index
    %c0_165 = arith.constant 0 : index
    %286 = vector.load %arg10[%c1_163, %c0_164, %c0_165] : memref<2x1x64xf32, #tpu.memory_space<vmem>>, vector<1x1x64xf32>
    %287 = vector.shape_cast %286 : vector<1x1x64xf32> to vector<1x64xf32>
    %288 = vector.broadcast %287 : vector<1x64xf32> to vector<34x64xf32>
    %289 = arith.addf %285, %288 : vector<34x64xf32>
    %c1_166 = arith.constant 1 : index
    %c0_167 = arith.constant 0 : index
    %c0_168 = arith.constant 0 : index
    %290 = vector.load %arg11[%c1_166, %c0_167, %c0_168] : memref<2x64x64xbf16, #tpu.memory_space<vmem>>, vector<1x64x64xbf16>
    %291 = vector.shape_cast %290 : vector<1x64x64xbf16> to vector<64x64xbf16>
    %292 = arith.truncf %273 : vector<34x64xf32> to vector<34x64xbf16>
    %cst_169 = arith.constant dense<0.000000e+00> : vector<34x64xf32>
    %293 = tpu.matmul %292, %291, %cst_169 {dimension_numbers = #tpu.dot_dimension_numbers<[1], [0], [0], [1], [0, 0, 1, 1], [], []>} : vector<34x64xbf16>, vector<64x64xbf16>, vector<34x64xf32> -> vector<34x64xf32>
    %c1_170 = arith.constant 1 : index
    %c0_171 = arith.constant 0 : index
    %c0_172 = arith.constant 0 : index
    %294 = vector.load %arg12[%c1_170, %c0_171, %c0_172] : memref<2x1x64xf32, #tpu.memory_space<vmem>>, vector<1x1x64xf32>
    %295 = vector.shape_cast %294 : vector<1x1x64xf32> to vector<1x64xf32>
    %296 = vector.broadcast %295 : vector<1x64xf32> to vector<34x64xf32>
    %297 = arith.addf %293, %296 : vector<34x64xf32>
    %298 = arith.truncf %281 : vector<34x64xf32> to vector<34x64xbf16>
    %299 = vector.broadcast %43 : vector<1x64xf32> to vector<34x64xf32>
    %300 = arith.mulf %289, %299 : vector<34x64xf32>
    %301 = arith.truncf %300 : vector<34x64xf32> to vector<34x64xbf16>
    %302 = vector.broadcast %43 : vector<1x64xf32> to vector<34x64xf32>
    %303 = arith.mulf %297, %302 : vector<34x64xf32>
    %304 = arith.truncf %303 : vector<34x64xf32> to vector<34x64xbf16>
    %cst_173 = arith.constant dense<0.000000e+00> : vector<34x34xf32>
    %305 = tpu.matmul %298, %301, %cst_173 {dimension_numbers = #tpu.dot_dimension_numbers<[1], [1], [0], [0], [0, 0, 1, 0], [], []>} : vector<34x64xbf16>, vector<34x64xbf16>, vector<34x34xf32> -> vector<34x34xf32>
    %cst_174 = arith.constant 2.500000e-01 : f32
    %306 = vector.broadcast %cst_174 : f32 to vector<34x34xf32>
    %307 = arith.mulf %305, %306 : vector<34x34xf32>
    %308 = arith.addf %307, %42 : vector<34x34xf32>
    %cst_175 = arith.constant dense<0xFF800000> : vector<34xf32>
    %309 = vector.multi_reduction <maximumf>, %308, %cst_175 [1] : vector<34x34xf32> to vector<34xf32>
    %310 = vector.shape_cast %309 : vector<34xf32> to vector<34x1xf32>
    %311 = vector.broadcast %310 : vector<34x1xf32> to vector<34x34xf32>
    %312 = arith.subf %308, %311 : vector<34x34xf32>
    %313 = math.exp %312 : vector<34x34xf32>
    %cst_176 = arith.constant dense<0.000000e+00> : vector<34xf32>
    %314 = vector.multi_reduction <add>, %313, %cst_176 [1] : vector<34x34xf32> to vector<34xf32>
    %315 = vector.shape_cast %314 : vector<34xf32> to vector<34x1xf32>
    %316 = tpu.reciprocal %315 {approx = true} : vector<34x1xf32> -> vector<34x1xf32>
    %317 = vector.broadcast %316 : vector<34x1xf32> to vector<34x34xf32>
    %318 = arith.mulf %313, %317 : vector<34x34xf32>
    %319 = arith.truncf %318 : vector<34x34xf32> to vector<34x34xbf16>
    %cst_177 = arith.constant dense<0.000000e+00> : vector<34x64xf32>
    %320 = tpu.matmul %319, %304, %cst_177 {dimension_numbers = #tpu.dot_dimension_numbers<[1], [0], [0], [1], [0, 0, 1, 1], [], []>} : vector<34x34xbf16>, vector<34x64xbf16>, vector<34x64xf32> -> vector<34x64xf32>
    %321 = vector.broadcast %44 : vector<1x64xf32> to vector<34x64xf32>
    %322 = arith.mulf %289, %321 : vector<34x64xf32>
    %323 = arith.truncf %322 : vector<34x64xf32> to vector<34x64xbf16>
    %324 = vector.broadcast %44 : vector<1x64xf32> to vector<34x64xf32>
    %325 = arith.mulf %297, %324 : vector<34x64xf32>
    %326 = arith.truncf %325 : vector<34x64xf32> to vector<34x64xbf16>
    %cst_178 = arith.constant dense<0.000000e+00> : vector<34x34xf32>
    %327 = tpu.matmul %298, %323, %cst_178 {dimension_numbers = #tpu.dot_dimension_numbers<[1], [1], [0], [0], [0, 0, 1, 0], [], []>} : vector<34x64xbf16>, vector<34x64xbf16>, vector<34x34xf32> -> vector<34x34xf32>
    %cst_179 = arith.constant 2.500000e-01 : f32
    %328 = vector.broadcast %cst_179 : f32 to vector<34x34xf32>
    %329 = arith.mulf %327, %328 : vector<34x34xf32>
    %330 = arith.addf %329, %42 : vector<34x34xf32>
    %cst_180 = arith.constant dense<0xFF800000> : vector<34xf32>
    %331 = vector.multi_reduction <maximumf>, %330, %cst_180 [1] : vector<34x34xf32> to vector<34xf32>
    %332 = vector.shape_cast %331 : vector<34xf32> to vector<34x1xf32>
    %333 = vector.broadcast %332 : vector<34x1xf32> to vector<34x34xf32>
    %334 = arith.subf %330, %333 : vector<34x34xf32>
    %335 = math.exp %334 : vector<34x34xf32>
    %cst_181 = arith.constant dense<0.000000e+00> : vector<34xf32>
    %336 = vector.multi_reduction <add>, %335, %cst_181 [1] : vector<34x34xf32> to vector<34xf32>
    %337 = vector.shape_cast %336 : vector<34xf32> to vector<34x1xf32>
    %338 = tpu.reciprocal %337 {approx = true} : vector<34x1xf32> -> vector<34x1xf32>
    %339 = vector.broadcast %338 : vector<34x1xf32> to vector<34x34xf32>
    %340 = arith.mulf %335, %339 : vector<34x34xf32>
    %341 = arith.truncf %340 : vector<34x34xf32> to vector<34x34xbf16>
    %cst_182 = arith.constant dense<0.000000e+00> : vector<34x64xf32>
    %342 = tpu.matmul %341, %326, %cst_182 {dimension_numbers = #tpu.dot_dimension_numbers<[1], [0], [0], [1], [0, 0, 1, 1], [], []>} : vector<34x34xbf16>, vector<34x64xbf16>, vector<34x64xf32> -> vector<34x64xf32>
    %343 = arith.addf %320, %342 : vector<34x64xf32>
    %344 = vector.broadcast %45 : vector<1x64xf32> to vector<34x64xf32>
    %345 = arith.mulf %289, %344 : vector<34x64xf32>
    %346 = arith.truncf %345 : vector<34x64xf32> to vector<34x64xbf16>
    %347 = vector.broadcast %45 : vector<1x64xf32> to vector<34x64xf32>
    %348 = arith.mulf %297, %347 : vector<34x64xf32>
    %349 = arith.truncf %348 : vector<34x64xf32> to vector<34x64xbf16>
    %cst_183 = arith.constant dense<0.000000e+00> : vector<34x34xf32>
    %350 = tpu.matmul %298, %346, %cst_183 {dimension_numbers = #tpu.dot_dimension_numbers<[1], [1], [0], [0], [0, 0, 1, 0], [], []>} : vector<34x64xbf16>, vector<34x64xbf16>, vector<34x34xf32> -> vector<34x34xf32>
    %cst_184 = arith.constant 2.500000e-01 : f32
    %351 = vector.broadcast %cst_184 : f32 to vector<34x34xf32>
    %352 = arith.mulf %350, %351 : vector<34x34xf32>
    %353 = arith.addf %352, %42 : vector<34x34xf32>
    %cst_185 = arith.constant dense<0xFF800000> : vector<34xf32>
    %354 = vector.multi_reduction <maximumf>, %353, %cst_185 [1] : vector<34x34xf32> to vector<34xf32>
    %355 = vector.shape_cast %354 : vector<34xf32> to vector<34x1xf32>
    %356 = vector.broadcast %355 : vector<34x1xf32> to vector<34x34xf32>
    %357 = arith.subf %353, %356 : vector<34x34xf32>
    %358 = math.exp %357 : vector<34x34xf32>
    %cst_186 = arith.constant dense<0.000000e+00> : vector<34xf32>
    %359 = vector.multi_reduction <add>, %358, %cst_186 [1] : vector<34x34xf32> to vector<34xf32>
    %360 = vector.shape_cast %359 : vector<34xf32> to vector<34x1xf32>
    %361 = tpu.reciprocal %360 {approx = true} : vector<34x1xf32> -> vector<34x1xf32>
    %362 = vector.broadcast %361 : vector<34x1xf32> to vector<34x34xf32>
    %363 = arith.mulf %358, %362 : vector<34x34xf32>
    %364 = arith.truncf %363 : vector<34x34xf32> to vector<34x34xbf16>
    %cst_187 = arith.constant dense<0.000000e+00> : vector<34x64xf32>
    %365 = tpu.matmul %364, %349, %cst_187 {dimension_numbers = #tpu.dot_dimension_numbers<[1], [0], [0], [1], [0, 0, 1, 1], [], []>} : vector<34x34xbf16>, vector<34x64xbf16>, vector<34x64xf32> -> vector<34x64xf32>
    %366 = arith.addf %343, %365 : vector<34x64xf32>
    %367 = vector.broadcast %46 : vector<1x64xf32> to vector<34x64xf32>
    %368 = arith.mulf %289, %367 : vector<34x64xf32>
    %369 = arith.truncf %368 : vector<34x64xf32> to vector<34x64xbf16>
    %370 = vector.broadcast %46 : vector<1x64xf32> to vector<34x64xf32>
    %371 = arith.mulf %297, %370 : vector<34x64xf32>
    %372 = arith.truncf %371 : vector<34x64xf32> to vector<34x64xbf16>
    %cst_188 = arith.constant dense<0.000000e+00> : vector<34x34xf32>
    %373 = tpu.matmul %298, %369, %cst_188 {dimension_numbers = #tpu.dot_dimension_numbers<[1], [1], [0], [0], [0, 0, 1, 0], [], []>} : vector<34x64xbf16>, vector<34x64xbf16>, vector<34x34xf32> -> vector<34x34xf32>
    %cst_189 = arith.constant 2.500000e-01 : f32
    %374 = vector.broadcast %cst_189 : f32 to vector<34x34xf32>
    %375 = arith.mulf %373, %374 : vector<34x34xf32>
    %376 = arith.addf %375, %42 : vector<34x34xf32>
    %cst_190 = arith.constant dense<0xFF800000> : vector<34xf32>
    %377 = vector.multi_reduction <maximumf>, %376, %cst_190 [1] : vector<34x34xf32> to vector<34xf32>
    %378 = vector.shape_cast %377 : vector<34xf32> to vector<34x1xf32>
    %379 = vector.broadcast %378 : vector<34x1xf32> to vector<34x34xf32>
    %380 = arith.subf %376, %379 : vector<34x34xf32>
    %381 = math.exp %380 : vector<34x34xf32>
    %cst_191 = arith.constant dense<0.000000e+00> : vector<34xf32>
    %382 = vector.multi_reduction <add>, %381, %cst_191 [1] : vector<34x34xf32> to vector<34xf32>
    %383 = vector.shape_cast %382 : vector<34xf32> to vector<34x1xf32>
    %384 = tpu.reciprocal %383 {approx = true} : vector<34x1xf32> -> vector<34x1xf32>
    %385 = vector.broadcast %384 : vector<34x1xf32> to vector<34x34xf32>
    %386 = arith.mulf %381, %385 : vector<34x34xf32>
    %387 = arith.truncf %386 : vector<34x34xf32> to vector<34x34xbf16>
    %cst_192 = arith.constant dense<0.000000e+00> : vector<34x64xf32>
    %388 = tpu.matmul %387, %372, %cst_192 {dimension_numbers = #tpu.dot_dimension_numbers<[1], [0], [0], [1], [0, 0, 1, 1], [], []>} : vector<34x34xbf16>, vector<34x64xbf16>, vector<34x64xf32> -> vector<34x64xf32>
    %389 = arith.addf %366, %388 : vector<34x64xf32>
    %c1_193 = arith.constant 1 : index
    %c0_194 = arith.constant 0 : index
    %c0_195 = arith.constant 0 : index
    %390 = vector.load %arg13[%c1_193, %c0_194, %c0_195] : memref<2x64x64xbf16, #tpu.memory_space<vmem>>, vector<1x64x64xbf16>
    %391 = vector.shape_cast %390 : vector<1x64x64xbf16> to vector<64x64xbf16>
    %392 = arith.truncf %389 : vector<34x64xf32> to vector<34x64xbf16>
    %cst_196 = arith.constant dense<0.000000e+00> : vector<34x64xf32>
    %393 = tpu.matmul %392, %391, %cst_196 {dimension_numbers = #tpu.dot_dimension_numbers<[1], [0], [0], [1], [0, 0, 1, 1], [], []>} : vector<34x64xbf16>, vector<64x64xbf16>, vector<34x64xf32> -> vector<34x64xf32>
    %394 = arith.addf %249, %393 : vector<34x64xf32>
    %c1_197 = arith.constant 1 : index
    %c0_198 = arith.constant 0 : index
    %c0_199 = arith.constant 0 : index
    %395 = vector.load %arg14[%c1_197, %c0_198, %c0_199] : memref<2x1x64xf32, #tpu.memory_space<vmem>>, vector<1x1x64xf32>
    %396 = vector.shape_cast %395 : vector<1x1x64xf32> to vector<1x64xf32>
    %397 = vector.broadcast %396 : vector<1x64xf32> to vector<34x64xf32>
    %398 = arith.addf %394, %397 : vector<34x64xf32>
    %c1_200 = arith.constant 1 : index
    %c0_201 = arith.constant 0 : index
    %c0_202 = arith.constant 0 : index
    %399 = vector.load %arg15[%c1_200, %c0_201, %c0_202] : memref<2x1x64xf32, #tpu.memory_space<vmem>>, vector<1x1x64xf32>
    %400 = vector.shape_cast %399 : vector<1x1x64xf32> to vector<1x64xf32>
    %c1_203 = arith.constant 1 : index
    %c0_204 = arith.constant 0 : index
    %c0_205 = arith.constant 0 : index
    %401 = vector.load %arg16[%c1_203, %c0_204, %c0_205] : memref<2x1x64xf32, #tpu.memory_space<vmem>>, vector<1x1x64xf32>
    %402 = vector.shape_cast %401 : vector<1x1x64xf32> to vector<1x64xf32>
    %cst_206 = arith.constant dense<0.000000e+00> : vector<34xf32>
    %403 = vector.multi_reduction <add>, %398, %cst_206 [1] : vector<34x64xf32> to vector<34xf32>
    %404 = vector.shape_cast %403 : vector<34xf32> to vector<34x1xf32>
    %cst_207 = arith.constant 6.400000e+01 : f32
    %405 = vector.broadcast %cst_207 : f32 to vector<34x1xf32>
    %406 = arith.divf %404, %405 : vector<34x1xf32>
    %407 = vector.broadcast %406 : vector<34x1xf32> to vector<34x64xf32>
    %408 = arith.subf %398, %407 : vector<34x64xf32>
    %409 = arith.mulf %408, %408 : vector<34x64xf32>
    %cst_208 = arith.constant dense<0.000000e+00> : vector<34xf32>
    %410 = vector.multi_reduction <add>, %409, %cst_208 [1] : vector<34x64xf32> to vector<34xf32>
    %411 = vector.shape_cast %410 : vector<34xf32> to vector<34x1xf32>
    %cst_209 = arith.constant 6.400000e+01 : f32
    %412 = vector.broadcast %cst_209 : f32 to vector<34x1xf32>
    %413 = arith.divf %411, %412 : vector<34x1xf32>
    %cst_210 = arith.constant 9.99999997E-7 : f32
    %414 = vector.broadcast %cst_210 : f32 to vector<34x1xf32>
    %415 = arith.addf %413, %414 : vector<34x1xf32>
    %416 = math.rsqrt %415 : vector<34x1xf32>
    %417 = vector.broadcast %416 : vector<34x1xf32> to vector<34x64xf32>
    %418 = arith.mulf %408, %417 : vector<34x64xf32>
    %419 = vector.broadcast %400 : vector<1x64xf32> to vector<34x64xf32>
    %420 = arith.mulf %418, %419 : vector<34x64xf32>
    %421 = vector.broadcast %402 : vector<1x64xf32> to vector<34x64xf32>
    %422 = arith.addf %420, %421 : vector<34x64xf32>
    %c1_211 = arith.constant 1 : index
    %c0_212 = arith.constant 0 : index
    %c0_213 = arith.constant 0 : index
    %423 = vector.load %arg17[%c1_211, %c0_212, %c0_213] : memref<2x64x256xbf16, #tpu.memory_space<vmem>>, vector<1x64x256xbf16>
    %424 = vector.shape_cast %423 : vector<1x64x256xbf16> to vector<64x256xbf16>
    %425 = arith.truncf %422 : vector<34x64xf32> to vector<34x64xbf16>
    %cst_214 = arith.constant dense<0.000000e+00> : vector<34x256xf32>
    %426 = tpu.matmul %425, %424, %cst_214 {dimension_numbers = #tpu.dot_dimension_numbers<[1], [0], [0], [1], [0, 0, 1, 1], [], []>} : vector<34x64xbf16>, vector<64x256xbf16>, vector<34x256xf32> -> vector<34x256xf32>
    %c1_215 = arith.constant 1 : index
    %c0_216 = arith.constant 0 : index
    %c0_217 = arith.constant 0 : index
    %427 = vector.load %arg18[%c1_215, %c0_216, %c0_217] : memref<2x1x256xf32, #tpu.memory_space<vmem>>, vector<1x1x256xf32>
    %428 = vector.shape_cast %427 : vector<1x1x256xf32> to vector<1x256xf32>
    %429 = vector.broadcast %428 : vector<1x256xf32> to vector<34x256xf32>
    %430 = arith.addf %426, %429 : vector<34x256xf32>
    %cst_218 = arith.constant 5.000000e-01 : f32
    %431 = vector.broadcast %cst_218 : f32 to vector<34x256xf32>
    %432 = arith.mulf %431, %430 : vector<34x256xf32>
    %cst_219 = arith.constant 4.471500e-02 : f32
    %433 = vector.broadcast %cst_219 : f32 to vector<34x256xf32>
    %434 = arith.mulf %433, %430 : vector<34x256xf32>
    %435 = arith.mulf %434, %430 : vector<34x256xf32>
    %436 = arith.mulf %435, %430 : vector<34x256xf32>
    %437 = arith.addf %430, %436 : vector<34x256xf32>
    %cst_220 = arith.constant 0.797884583 : f32
    %438 = vector.broadcast %cst_220 : f32 to vector<34x256xf32>
    %439 = arith.mulf %438, %437 : vector<34x256xf32>
    %440 = math.tanh %439 : vector<34x256xf32>
    %cst_221 = arith.constant 1.000000e+00 : f32
    %441 = vector.broadcast %cst_221 : f32 to vector<34x256xf32>
    %442 = arith.addf %441, %440 : vector<34x256xf32>
    %443 = arith.mulf %432, %442 : vector<34x256xf32>
    %c1_222 = arith.constant 1 : index
    %c0_223 = arith.constant 0 : index
    %c0_224 = arith.constant 0 : index
    %444 = vector.load %arg19[%c1_222, %c0_223, %c0_224] : memref<2x256x64xbf16, #tpu.memory_space<vmem>>, vector<1x256x64xbf16>
    %445 = vector.shape_cast %444 : vector<1x256x64xbf16> to vector<256x64xbf16>
    %446 = arith.truncf %443 : vector<34x256xf32> to vector<34x256xbf16>
    %cst_225 = arith.constant dense<0.000000e+00> : vector<34x64xf32>
    %447 = tpu.matmul %446, %445, %cst_225 {dimension_numbers = #tpu.dot_dimension_numbers<[1], [0], [0], [1], [0, 0, 1, 1], [], []>} : vector<34x256xbf16>, vector<256x64xbf16>, vector<34x64xf32> -> vector<34x64xf32>
    %448 = arith.addf %398, %447 : vector<34x64xf32>
    %c1_226 = arith.constant 1 : index
    %c0_227 = arith.constant 0 : index
    %c0_228 = arith.constant 0 : index
    %449 = vector.load %arg20[%c1_226, %c0_227, %c0_228] : memref<2x1x64xf32, #tpu.memory_space<vmem>>, vector<1x1x64xf32>
    %450 = vector.shape_cast %449 : vector<1x1x64xf32> to vector<1x64xf32>
    %451 = vector.broadcast %450 : vector<1x64xf32> to vector<34x64xf32>
    %452 = arith.addf %448, %451 : vector<34x64xf32>
    %c0_229 = arith.constant 0 : index
    %c0_230 = arith.constant 0 : index
    %453 = vector.load %arg21[%c0_229, %c0_230] : memref<1x64xf32, #tpu.memory_space<vmem>>, vector<1x64xf32>
    %c0_231 = arith.constant 0 : index
    %c0_232 = arith.constant 0 : index
    %454 = vector.load %arg22[%c0_231, %c0_232] : memref<1x64xf32, #tpu.memory_space<vmem>>, vector<1x64xf32>
    %cst_233 = arith.constant dense<0.000000e+00> : vector<34xf32>
    %455 = vector.multi_reduction <add>, %452, %cst_233 [1] : vector<34x64xf32> to vector<34xf32>
    %456 = vector.shape_cast %455 : vector<34xf32> to vector<34x1xf32>
    %cst_234 = arith.constant 6.400000e+01 : f32
    %457 = vector.broadcast %cst_234 : f32 to vector<34x1xf32>
    %458 = arith.divf %456, %457 : vector<34x1xf32>
    %459 = vector.broadcast %458 : vector<34x1xf32> to vector<34x64xf32>
    %460 = arith.subf %452, %459 : vector<34x64xf32>
    %461 = arith.mulf %460, %460 : vector<34x64xf32>
    %cst_235 = arith.constant dense<0.000000e+00> : vector<34xf32>
    %462 = vector.multi_reduction <add>, %461, %cst_235 [1] : vector<34x64xf32> to vector<34xf32>
    %463 = vector.shape_cast %462 : vector<34xf32> to vector<34x1xf32>
    %cst_236 = arith.constant 6.400000e+01 : f32
    %464 = vector.broadcast %cst_236 : f32 to vector<34x1xf32>
    %465 = arith.divf %463, %464 : vector<34x1xf32>
    %cst_237 = arith.constant 9.99999997E-7 : f32
    %466 = vector.broadcast %cst_237 : f32 to vector<34x1xf32>
    %467 = arith.addf %465, %466 : vector<34x1xf32>
    %468 = math.rsqrt %467 : vector<34x1xf32>
    %469 = vector.broadcast %468 : vector<34x1xf32> to vector<34x64xf32>
    %470 = arith.mulf %460, %469 : vector<34x64xf32>
    %471 = vector.broadcast %453 : vector<1x64xf32> to vector<34x64xf32>
    %472 = arith.mulf %470, %471 : vector<34x64xf32>
    %473 = vector.broadcast %454 : vector<1x64xf32> to vector<34x64xf32>
    %474 = arith.addf %472, %473 : vector<34x64xf32>
    %475 = vector.extract_strided_slice %474 {offsets = [0, 0], sizes = [2, 64], strides = [1, 1]} : vector<34x64xf32> to vector<2x64xf32>
    %c0_238 = arith.constant 0 : index
    %c0_239 = arith.constant 0 : index
    %476 = vector.load %arg23[%c0_238, %c0_239] : memref<64x128xbf16, #tpu.memory_space<vmem>>, vector<64x128xbf16>
    %477 = arith.truncf %475 : vector<2x64xf32> to vector<2x64xbf16>
    %cst_240 = arith.constant dense<0.000000e+00> : vector<2x128xf32>
    %478 = tpu.matmul %477, %476, %cst_240 {dimension_numbers = #tpu.dot_dimension_numbers<[1], [0], [0], [1], [0, 0, 1, 1], [], []>} : vector<2x64xbf16>, vector<64x128xbf16>, vector<2x128xf32> -> vector<2x128xf32>
    %c0_241 = arith.constant 0 : index
    %c0_242 = arith.constant 0 : index
    %479 = vector.load %arg24[%c0_241, %c0_242] : memref<1x128xf32, #tpu.memory_space<vmem>>, vector<1x128xf32>
    %480 = vector.broadcast %479 : vector<1x128xf32> to vector<2x128xf32>
    %481 = arith.addf %478, %480 : vector<2x128xf32>
    %c0_243 = arith.constant 0 : index
    %c0_244 = arith.constant 0 : index
    %482 = vector.load %arg25[%c0_243, %c0_244] : memref<2x128xf32, #tpu.memory_space<vmem>>, vector<2x128xf32>
    tpu.vector_store %arg25[%c0_243, %c0_244], %481 {strides = array<i32>} : memref<2x128xf32, #tpu.memory_space<vmem>>, vector<2x128xf32>,
    return
  }
}

</mosaic_0001>

<bundles_post_ra>
// kernel: vit_forward.1
= control target key start
LH: loop header
LB: loop body
LE: loop exit
PB: predicated region body
PF: predicated region fallthrough
CT: control target
= control target key end

     0   :  { %s13496_s0 = inlined_call_operand.vmem [shape: f32[2,768], index: 0, kind: input, shape index: {}]   ;;  %s13497_s1 = inlined_call_operand.vmem [shape: bf16[768,1088], index: 1, kind: input, shape index: {}]   ;;  %s13498_s2 = inlined_call_operand.vmem [shape: f32[34,64], index: 2, kind: input, shape index: {}]   ;;  %s13499_s3 = inlined_call_operand.vmem [shape: f32[34,34], index: 3, kind: input, shape index: {}]   ;;  %s13500_s4 = inlined_call_operand.vmem [shape: f32[4,64], index: 4, kind: input, shape index: {}]   ;;  %s13501_s5 = inlined_call_operand.vmem [shape: f32[2,1,64], index: 5, kind: input, shape index: {}]   ;;  %s13502_s6 = inlined_call_operand.vmem [shape: f32[2,1,64], index: 6, kind: input, shape index: {}]   ;;  %s13503_s7 = inlined_call_operand.vmem [shape: bf16[2,64,64], index: 7, kind: input, shape index: {}]   ;;  %s13504_s8 = inlined_call_operand.vmem [shape: f32[2,1,64], index: 8, kind: input, shape index: {}]   ;;  %s13505_s9 = inlined_call_operand.vmem [shape: bf16[2,64,64], index: 9, kind: input, shape index: {}]   ;;  %s13506_s10 = inlined_call_operand.vmem [shape: f32[2,1,64], index: 10, kind: input, shape index: {}]   ;;  %s13507_s11 = inlined_call_operand.vmem [shape: bf16[2,64,64], index: 11, kind: input, shape index: {}]   ;;  %s13508_s12 = inlined_call_operand.vmem [shape: f32[2,1,64], index: 12, kind: input, shape index: {}]   ;;  %s13509_s13 = inlined_call_operand.vmem [shape: bf16[2,64,64], index: 13, kind: input, shape index: {}]   ;;  %s13510_s14 = inlined_call_operand.vmem [shape: f32[2,1,64], index: 14, kind: input, shape index: {}]   ;;  %s13511_s15 = inlined_call_operand.vmem [shape: f32[2,1,64], index: 15, kind: input, shape index: {}]   ;;  %s13512_s16 = inlined_call_operand.vmem [shape: f32[2,1,64], index: 16, kind: input, shape index: {}]   ;;  %s13513_s17 = inlined_call_operand.vmem [shape: bf16[2,64,256], index: 17, kind: input, shape index: {}]   ;;  %s13514_s18 = inlined_call_operand.vmem [shape: f32[2,1,256], index: 18, kind: input, shape index: {}]   ;;  %s13515_s19 = inlined_call_operand.vmem [shape: bf16[2,256,64], index: 19, kind: input, shape index: {}]   ;;  %s13516_s20 = inlined_call_operand.vmem [shape: f32[2,1,64], index: 20, kind: input, shape index: {}]   ;;  %s13517_s21 = inlined_call_operand.vmem [shape: f32[1,64], index: 21, kind: input, shape index: {}]   ;;  %s13518_s22 = inlined_call_operand.vmem [shape: f32[1,64], index: 22, kind: input, shape index: {}]   ;;  %s13519_s23 = inlined_call_operand.vmem [shape: bf16[64,128], index: 23, kind: input, shape index: {}]   ;;  %s13520_s24 = inlined_call_operand.vmem [shape: f32[1,128], index: 24, kind: input, shape index: {}]   ;;  %s13521_s25 = inlined_call_operand.hbm [shape: f32[2,128], index: 25, kind: output, shape index: {}]  }
   0x1   :  { %13536 = sst [smem:[#allocation7_spill]] %s13496_s0 }
   0x2   :  { %13537 = sst [smem:[#allocation8_spill]] %s13497_s1 }
   0x3   :  { %13538 = sst [smem:[#allocation9_spill]] %s13498_s2 }
   0x4   :  { %13539 = sst [smem:[#allocation10_spill]] %s13499_s3 }
   0x5   :  { %13540 = sst [smem:[#allocation11_spill]] %s13500_s4 }
   0x6   :  { %13541 = sst [smem:[#allocation12_spill]] %s13501_s5 }
   0x7   :  { %13542 = sst [smem:[#allocation13_spill]] %s13502_s6 }
   0x8   :  { %13543 = sst [smem:[#allocation14_spill]] %s13503_s7 }
   0x9   :  { %13544 = sst [smem:[#allocation15_spill]] %s13504_s8 }
   0xa   :  { %13545 = sst [smem:[#allocation16_spill]] %s13505_s9 }
   0xb   :  { %13546 = sst [smem:[#allocation17_spill]] %s13520_s24 }
   0xc   :  { %13547 = sst [smem:[#allocation18_spill]] %s13521_s25 }
   0xd   :  { %s13548_s6 = sld [smem:[#allocation8_spill]]  ;;  %v10068_v36 = vmov 1983009808   ;;  %v570_v38 = vlaneseq }
   0xe   :  { %v568_v37 = vunpack.c.l.s4 %v10068_v36  ;;  %s13549_s28 = sld [smem:[#allocation7_spill]] }
   0xf   :  { %v10321_v43 = vshrl.u32 %v570_v38, 7 }
  0x10   :  { %v569_v42 = vunpack.c.0.s8 %v568_v37 }
  0x12   :  { %v10339_v49 = vsub.s32 %v569_v42, %v10321_v43 }
  0x13   :  { %v9076_v0 = vld [vmem:[%s13548_s6 + $0x1fc] ss:$36 sps:$4 sm:$0xff]   ;;  %v9082_v4 = vld [vmem:[%s13548_s6 + $0x1b4] ss:$36 sps:$4 sm:$0xff]   ;;  %v9088_v8 = vld [vmem:[%s13548_s6 + $0x16c] ss:$36 sps:$4 sm:$0xff]  }
  0x14   :  { %v9078_v1 = vld [vmem:[%s13548_s6 + $0x67c] ss:$36 sps:$4 sm:$0xff]   ;;  %2811 = vmatprep.subr.bf16.mxu0 %v9076_v0  ;;  %v9084_v5 = vld [vmem:[%s13548_s6 + $0x634] ss:$36 sps:$4 sm:$0xff]   ;;  %v9090_v9 = vld [vmem:[%s13548_s6 + $0x5ec] ss:$36 sps:$4 sm:$0xff]  }
  0x15   :  { %v9080_v2 = vld [vmem:[%s13548_s6 + $0x1f8] ss:$36 sps:$4 sm:$0xff]   ;;  %2852 = vmatprep.subr.bf16.mxu1 %v9078_v1  ;;  %v9086_v6 = vld [vmem:[%s13548_s6 + $0x1b0] ss:$36 sps:$4 sm:$0xff]   ;;  %v9092_v10 = vld [vmem:[%s13548_s6 + $0x168] ss:$36 sps:$4 sm:$0xff]  }
  0x16   :  { %v9081_v3 = vld [vmem:[%s13548_s6 + $0x678] ss:$36 sps:$4 sm:$0xff]   ;;  %2812 = vmatpush1.bf16.msra.mxu0 %v9080_v2  ;;  %v9087_v7 = vld [vmem:[%s13548_s6 + $0x630] ss:$36 sps:$4 sm:$0xff]   ;;  %v9093_v11 = vld [vmem:[%s13548_s6 + $0x5e8] ss:$36 sps:$4 sm:$0xff]  }
  0x17   :  { %2853 = vmatpush1.bf16.msra.mxu1 %v9081_v3  ;;  %2813 = vmatprep.subr.bf16.mxu0 %v9082_v4  ;;  %v9094_v12 = vld [vmem:[%s13548_s6 + $0x124] ss:$36 sps:$4 sm:$0xff]   ;;  %v9100_v16 = vld [vmem:[%s13548_s6 + $0xdc] ss:$36 sps:$4 sm:$0xff]   ;;  %v9106_v20 = vld [vmem:[%s13548_s6 + $0x94] ss:$36 sps:$4 sm:$0xff]  }
  0x18   :  { %2854 = vmatprep.subr.bf16.mxu1 %v9084_v5  ;;  %v9096_v13 = vld [vmem:[%s13548_s6 + $0x5a4] ss:$36 sps:$4 sm:$0xff]   ;;  %v9102_v17 = vld [vmem:[%s13548_s6 + $0x55c] ss:$36 sps:$4 sm:$0xff]   ;;  %v9108_v21 = vld [vmem:[%s13548_s6 + $0x514] ss:$36 sps:$4 sm:$0xff]  }
  0x19   :  { %v9098_v14 = vld [vmem:[%s13548_s6 + $0x120] ss:$36 sps:$4 sm:$0xff]   ;;  %v9104_v18 = vld [vmem:[%s13548_s6 + $0xd8] ss:$36 sps:$4 sm:$0xff]   ;;  %v9110_v22 = vld [vmem:[%s13548_s6 + $0x90] ss:$36 sps:$4 sm:$0xff]  }
  0x1a   :  { %2814 = vmatpush1.bf16.msra.mxu0 %v9086_v6  ;;  %v9099_v15 = vld [vmem:[%s13548_s6 + $0x5a0] ss:$36 sps:$4 sm:$0xff]   ;;  %v9105_v19 = vld [vmem:[%s13548_s6 + $0x558] ss:$36 sps:$4 sm:$0xff]   ;;  %v9111_v23 = vld [vmem:[%s13548_s6 + $0x510] ss:$36 sps:$4 sm:$0xff]  }
  0x1b   :  { %2855 = vmatpush1.bf16.msra.mxu1 %v9087_v7  ;;  %2815 = vmatprep.subr.bf16.mxu0 %v9088_v8  ;;  %v9112_v24 = vld [vmem:[%s13548_s6 + $0x4c] ss:$36 sps:$4 sm:$0xff]   ;;  %v9118_v28 = vld [vmem:[%s13548_s6 + $0x4] ss:$36 sps:$4 sm:$0xff]   ;;  %v9124_v32 = vld [vmem:[%s13548_s6 + $0x43c] ss:$36 sps:$4 sm:$0xff]  }
  0x1c   :  { %2856 = vmatprep.subr.bf16.mxu1 %v9090_v9  ;;  %v9114_v25 = vld [vmem:[%s13548_s6 + $0x4cc] ss:$36 sps:$4 sm:$0xff]   ;;  %v9120_v29 = vld [vmem:[%s13548_s6 + $0x484] ss:$36 sps:$4 sm:$0xff]   ;;  %v9126_v33 = vld [vmem:[%s13548_s6 + $0x8bc] ss:$36 sps:$4 sm:$0xff]  }
  0x1d   :  { %v9116_v26 = vld [vmem:[%s13548_s6 + $0x48] ss:$36 sps:$4 sm:$0xff]   ;;  %v9122_v30 = vld [vmem:[%s13548_s6] ss:$36 sps:$4 sm:$0xff]   ;;  %v9128_v34 = vld [vmem:[%s13548_s6 + $0x438] ss:$36 sps:$4 sm:$0xff]  }
  0x1e   :  { %2816 = vmatpush1.bf16.msra.mxu0 %v9092_v10  ;;  %v9117_v27 = vld [vmem:[%s13548_s6 + $0x4c8] ss:$36 sps:$4 sm:$0xff]   ;;  %v9123_v31 = vld [vmem:[%s13548_s6 + $0x480] ss:$36 sps:$4 sm:$0xff]   ;;  %v9129_v35 = vld [vmem:[%s13548_s6 + $0x8b8] ss:$36 sps:$4 sm:$0xff]  }
  0x1f   :  { %2857 = vmatpush1.bf16.msra.mxu1 %v9093_v11  ;;  %2817 = vmatprep.subr.bf16.mxu0 %v9094_v12  ;;  %v9130_v39 = vld [vmem:[%s13548_s6 + $0x3f4] ss:$36 sps:$4 sm:$0xff]   ;;  %v9136_v45 = vld [vmem:[%s13548_s6 + $0x3ac] ss:$36 sps:$4 sm:$0xff]   ;;  %v9142_v50 = vld [vmem:[%s13548_s6 + $0x364] ss:$36 sps:$4 sm:$0xff]  }
  0x20   :  { %2858 = vmatprep.subr.bf16.mxu1 %v9096_v13  ;;  %v9132_v40 = vld [vmem:[%s13548_s6 + $0x874] ss:$36 sps:$4 sm:$0xff]   ;;  %v9138_v46 = vld [vmem:[%s13548_s6 + $0x82c] ss:$36 sps:$4 sm:$0xff]   ;;  %v9144_v51 = vld [vmem:[%s13548_s6 + $0x7e4] ss:$36 sps:$4 sm:$0xff]  }
  0x21   :  { %v9134_v41 = vld [vmem:[%s13548_s6 + $0x3f0] ss:$36 sps:$4 sm:$0xff]   ;;  %v9140_v47 = vld [vmem:[%s13548_s6 + $0x3a8] ss:$36 sps:$4 sm:$0xff]   ;;  %v82_v52 = vld [vmem:[%s13549_s28] sm:$0xff] }
  0x22   :  { %2818 = vmatpush1.bf16.msra.mxu0 %v9098_v14  ;;  %v9135_v44 = vld [vmem:[%s13548_s6 + $0x870] ss:$36 sps:$4 sm:$0xff]   ;;  %v9141_v48 = vld [vmem:[%s13548_s6 + $0x828] ss:$36 sps:$4 sm:$0xff]   ;;  %v9146_v53 = vld [vmem:[%s13548_s6 + $0x360] ss:$36 sps:$4 sm:$0xff]   ;;  %v573_v54 = vrot.slane %v82_v52, %v10339_v49  ;;  %v566_v55 = vcombine.high %v82_v52, %v82_v52 }
  0x23   :  { %2859 = vmatpush1.bf16.msra.mxu1 %v9099_v15  ;;  %2819 = vmatprep.subr.bf16.mxu0 %v9100_v16  ;;  %v9147_v56 = vld [vmem:[%s13548_s6 + $0x7e0] ss:$36 sps:$4 sm:$0xff]   ;;  %v9152_v61 = vld [vmem:[%s13548_s6 + $0x318] ss:$36 sps:$4 sm:$0xff]   ;;  %v9158_v4 = vld [vmem:[%s13548_s6 + $0x2d0] ss:$36 sps:$4 sm:$0xff]  }
  0x24   :  { %2860 = vmatprep.subr.bf16.mxu1 %v9102_v17  ;;  %v9148_v57 = vld [vmem:[%s13548_s6 + $0x31c] ss:$36 sps:$4 sm:$0xff]   ;;  %v581_v59 = vcombine.high %v573_v54, %v573_v54  ;;  %v580_v60 = vrot.slane %v566_v55, %v10339_v49  ;;  %v9154_v1 = vld [vmem:[%s13548_s6 + $0x2d4] ss:$36 sps:$4 sm:$0xff]   ;;  %v9160_v6 = vld [vmem:[%s13548_s6 + $0x28c] ss:$36 sps:$4 sm:$0xff]   ;;  %v10418_v16 = vpack.c.bf16 %v573_v54, %v573_v54 }
  0x25   :  { %v9150_v58 = vld [vmem:[%s13548_s6 + $0x79c] ss:$36 sps:$4 sm:$0xff]   ;;  %v9156_v2 = vld [vmem:[%s13548_s6 + $0x754] ss:$36 sps:$4 sm:$0xff]   ;;  %v9162_v7 = vld [vmem:[%s13548_s6 + $0x70c] ss:$36 sps:$4 sm:$0xff]  }
  0x26   :  { %2820 = vmatpush1.bf16.msra.mxu0 %v9104_v18  ;;  %v10367_v62 = vpack.c.bf16 %v581_v59, %v581_v59  ;;  %v582_v63 = vcombine.high %v580_v60, %v580_v60  ;;  %v9153_v0 = vld [vmem:[%s13548_s6 + $0x798] ss:$36 sps:$4 sm:$0xff]   ;;  %v9159_v5 = vld [vmem:[%s13548_s6 + $0x750] ss:$36 sps:$4 sm:$0xff]   ;;  %v9164_v8 = vld [vmem:[%s13548_s6 + $0x288] ss:$36 sps:$4 sm:$0xff]   ;;  %v10420_v17 = vpack.c.bf16 %v580_v60, %v580_v60 }
  0x27   :  { %2861 = vmatpush1.bf16.msra.mxu1 %v9105_v19  ;;  %2821 = vmatprep.subr.bf16.mxu0 %v9106_v20  ;;  %v9165_v9 = vld [vmem:[%s13548_s6 + $0x708] ss:$36 sps:$4 sm:$0xff]   ;;  %v9170_v12 = vld [vmem:[%s13548_s6 + $0x240] ss:$36 sps:$4 sm:$0xff]   ;;  %v9173_v18 = vld [vmem:[%s13548_s6 + $0xaf8] ss:$36 sps:$4 sm:$0xff]  }
  0x28   :  { %2862 = vmatprep.subr.bf16.mxu1 %v9108_v21  ;;  %v10378_v3 = vpack.c.bf16 %v582_v63, %v582_v63  ;;  %2843 = vmatprep.mubr.bf16.mxu0 %v10367_v62  ;;  %v9166_v10 = vld [vmem:[%s13548_s6 + $0x244] ss:$36 sps:$4 sm:$0xff]   ;;  %v9175_v14 = vld [vmem:[%s13548_s6 + $0xafc] ss:$36 sps:$4 sm:$0xff]   ;;  %v9181_v20 = vld [vmem:[%s13548_s6 + $0xab4] ss:$36 sps:$4 sm:$0xff]  }
  0x29   :  { %v9168_v11 = vld [vmem:[%s13548_s6 + $0x6c4] ss:$36 sps:$4 sm:$0xff]   ;;  %v9184_v21 = vld [vmem:[%s13548_s6 + $0x1bc] ss:$36 sps:$4 sm:$0xff]   ;;  %v9205_v36 = vld [vmem:[%s13548_s6 + $0x994] ss:$36 sps:$4 sm:$0xff]  }
  0x2a   :  { %2822 = vmatpush1.bf16.msra.mxu0 %v9110_v22  ;;  %2884 = vmatprep.mubr.bf16.mxu1 %v10378_v3  ;;  %v9171_v13 = vld [vmem:[%s13548_s6 + $0x6c0] ss:$36 sps:$4 sm:$0xff]   ;;  %v9179_v22 = vld [vmem:[%s13548_s6 + $0xab0] ss:$36 sps:$4 sm:$0xff]   ;;  %v9218_v52 = vld [vmem:[%s13548_s6 + $0x8] ss:$36 sps:$4 sm:$0xff]  }
  0x2b   :  { %2863 = vmatpush1.bf16.msra.mxu1 %v9111_v23  ;;  %2823 = vmatprep.subr.bf16.mxu0 %v9112_v24  ;;  %v9178_v15 = vld [vmem:[%s13548_s6 + $0x204] ss:$36 sps:$4 sm:$0xff]   ;;  %v9182_v23 = vld [vmem:[%s13548_s6 + $0x1b8] ss:$36 sps:$4 sm:$0xff]   ;;  %v9187_v24 = vld [vmem:[%s13548_s6 + $0xa6c] ss:$36 sps:$4 sm:$0xff]  }
  0x2c   :  { %2864 = vmatprep.subr.bf16.mxu1 %v9114_v25  ;;  %v9176_v19 = vld [vmem:[%s13548_s6 + $0x200] ss:$36 sps:$4 sm:$0xff]   ;;  %v9190_v25 = vld [vmem:[%s13548_s6 + $0x174] ss:$36 sps:$4 sm:$0xff]  }
  0x2d   :  { %v9208_v37 = vld [vmem:[%s13548_s6 + $0x9c] ss:$36 sps:$4 sm:$0xff]   ;;  %v9203_v38 = vld [vmem:[%s13548_s6 + $0x990] ss:$36 sps:$4 sm:$0xff]   ;;  %v9226_v54 = vld [vmem:[%s13548_s6 + $0x444] ss:$36 sps:$4 sm:$0xff]  }
  0x2e   :  { %2824 = vmatpush1.bf16.msra.mxu0 %v9116_v26  ;;  %v9185_v26 = vld [vmem:[%s13548_s6 + $0xa68] ss:$36 sps:$4 sm:$0xff]   ;;  %v9221_v55 = vld [vmem:[%s13548_s6 + $0xd38] ss:$36 sps:$4 sm:$0xff]   ;;  %v9227_v59 = vld [vmem:[%s13548_s6 + $0xcf0] ss:$36 sps:$4 sm:$0xff]  }
  0x2f   :  { %2865 = vmatpush1.bf16.msra.mxu1 %v9117_v27  ;;  %2825 = vmatprep.subr.bf16.mxu0 %v9118_v28  ;;  %v9188_v27 = vld [vmem:[%s13548_s6 + $0x170] ss:$36 sps:$4 sm:$0xff]   ;;  %v9193_v28 = vld [vmem:[%s13548_s6 + $0xa24] ss:$36 sps:$4 sm:$0xff]   ;;  %v9230_v60 = vld [vmem:[%s13548_s6 + $0x3f8] ss:$36 sps:$4 sm:$0xff]  }
  0x30   :  { %2866 = vmatprep.subr.bf16.mxu1 %v9120_v29  ;;  %v9196_v29 = vld [vmem:[%s13548_s6 + $0x12c] ss:$36 sps:$4 sm:$0xff]   ;;  %v10500_v42 = vld.sshfl [vmem:[%s13549_s28 + $0x8] sm:$0x33 pattern:$0x76325410] }
  0x31   :  { %v9238_v63 = vld [vmem:[%s13548_s6 + $0x3b4] ss:$36 sps:$4 sm:$0xff]  }
  0x32   :  { %2826 = vmatpush1.bf16.msra.mxu0 %v9122_v30  ;;  %v9191_v30 = vld [vmem:[%s13548_s6 + $0xa20] ss:$36 sps:$4 sm:$0xff]  }
  0x33   :  { %2867 = vmatpush1.bf16.msra.mxu1 %v9123_v31  ;;  %2827 = vmatprep.subr.bf16.mxu0 %v9124_v32  ;;  %v9194_v31 = vld [vmem:[%s13548_s6 + $0x128] ss:$36 sps:$4 sm:$0xff]   ;;  %v9199_v32 = vld [vmem:[%s13548_s6 + $0x9dc] ss:$36 sps:$4 sm:$0xff]  }
  0x34   :  { %2868 = vmatprep.subr.bf16.mxu1 %v9126_v33  ;;  %v9202_v33 = vld [vmem:[%s13548_s6 + $0xe4] ss:$36 sps:$4 sm:$0xff]  }
  0x36   :  { %2828 = vmatpush2.bf16.msra.mxu0 %v9128_v34  ;;  %v9197_v34 = vld [vmem:[%s13548_s6 + $0x9d8] ss:$36 sps:$4 sm:$0xff]  }
  0x37   :  { %2869 = vmatpush2.bf16.msra.mxu1 %v9129_v35  ;;  %2829 = vmatprep.subr.bf16.mxu0 %v9130_v39  ;;  %v9200_v35 = vld [vmem:[%s13548_s6 + $0xe0] ss:$36 sps:$4 sm:$0xff]   ;;  %v9206_v39 = vld [vmem:[%s13548_s6 + $0x98] ss:$36 sps:$4 sm:$0xff]  }
  0x38   :  { %2870 = vmatprep.subr.bf16.mxu1 %v9132_v40  ;;  %v9211_v40 = vld [vmem:[%s13548_s6 + $0x94c] ss:$36 sps:$4 sm:$0xff]  }
  0x3a   :  { %2830 = vmatpush2.bf16.msra.mxu0 %v9134_v41  ;;  %v9214_v41 = vld [vmem:[%s13548_s6 + $0x54] ss:$36 sps:$4 sm:$0xff]  }
  0x3b   :  { %2871 = vmatpush2.bf16.msra.mxu1 %v9135_v44  ;;  %2831 = vmatprep.subr.bf16.mxu0 %v9136_v45  ;;  %v590_v44 = vcombine.high %v10500_v42, %v10500_v42  ;;  %v9209_v45 = vld [vmem:[%s13548_s6 + $0x948] ss:$36 sps:$4 sm:$0xff]  }
  0x3c   :  { %2872 = vmatprep.subr.bf16.mxu1 %v9138_v46  ;;  %v9212_v46 = vld [vmem:[%s13548_s6 + $0x50] ss:$36 sps:$4 sm:$0xff]  }
  0x3e   :  { %2832 = vmatpush2.bf16.msra.mxu0 %v9140_v47  ;;  %v9217_v47 = vld [vmem:[%s13548_s6 + $0x904] ss:$36 sps:$4 sm:$0xff]  }
  0x3f   :  { %2873 = vmatpush2.bf16.msra.mxu1 %v9141_v48  ;;  %2833 = vmatprep.subr.bf16.mxu0 %v9142_v50  ;;  %v9220_v48 = vld [vmem:[%s13548_s6 + $0xc] ss:$36 sps:$4 sm:$0xff]   ;;  %v10516_v50 = vpack.c.bf16 %v590_v44, %v590_v44  ;;  %v9298_v44 = vld [vmem:[%s13548_s6 + $0x9e4] ss:$36 sps:$4 sm:$0xff]  }
  0x40   :  { %2874 = vmatprep.subr.bf16.mxu1 %v9144_v51  ;;  %v9215_v51 = vld [vmem:[%s13548_s6 + $0x900] ss:$36 sps:$4 sm:$0xff]  }
  0x42   :  { %2834 = vmatpush2.bf16.msra.mxu0 %v9146_v53  ;;  %v9223_v53 = vld [vmem:[%s13548_s6 + $0xd3c] ss:$36 sps:$4 sm:$0xff]  }
  0x43   :  { %2875 = vmatpush2.bf16.msra.mxu1 %v9147_v56  ;;  %2835 = vmatprep.subr.bf16.mxu0 %v9148_v57  ;;  %v9224_v56 = vld [vmem:[%s13548_s6 + $0x440] ss:$36 sps:$4 sm:$0xff]   ;;  %v9229_v57 = vld [vmem:[%s13548_s6 + $0xcf4] ss:$36 sps:$4 sm:$0xff]  }
  0x44   :  { %2876 = vmatprep.subr.bf16.mxu1 %v9150_v58  ;;  %v9232_v58 = vld [vmem:[%s13548_s6 + $0x3fc] ss:$36 sps:$4 sm:$0xff]  }
  0x46   :  { %2836 = vmatpush2.bf16.msra.mxu0 %v9152_v61  ;;  %v9235_v61 = vld [vmem:[%s13548_s6 + $0xcac] ss:$36 sps:$4 sm:$0xff]  }
  0x47   :  { %2877 = vmatpush2.bf16.msra.mxu1 %v9153_v0  ;;  %2837 = vmatprep.subr.bf16.mxu0 %v9154_v1  ;;  %v9233_v0 = vld [vmem:[%s13548_s6 + $0xca8] ss:$36 sps:$4 sm:$0xff]   ;;  %v9236_v1 = vld [vmem:[%s13548_s6 + $0x3b0] ss:$36 sps:$4 sm:$0xff]  }
  0x48   :  { %2878 = vmatprep.subr.bf16.mxu1 %v9156_v2  ;;  %v9241_v2 = vld [vmem:[%s13548_s6 + $0xc64] ss:$36 sps:$4 sm:$0xff]  }
  0x4a   :  { %2838 = vmatpush2.bf16.msra.mxu0 %v9158_v4  ;;  %v9244_v4 = vld [vmem:[%s13548_s6 + $0x36c] ss:$36 sps:$4 sm:$0xff]  }
  0x4b   :  { %2879 = vmatpush2.bf16.msra.mxu1 %v9159_v5  ;;  %2839 = vmatprep.subr.bf16.mxu0 %v9160_v6  ;;  %v9239_v5 = vld [vmem:[%s13548_s6 + $0xc60] ss:$36 sps:$4 sm:$0xff]   ;;  %v9242_v6 = vld [vmem:[%s13548_s6 + $0x368] ss:$36 sps:$4 sm:$0xff]  }
  0x4c   :  { %2880 = vmatprep.subr.bf16.mxu1 %v9162_v7  ;;  %v9247_v7 = vld [vmem:[%s13548_s6 + $0xc1c] ss:$36 sps:$4 sm:$0xff]  }
  0x4e   :  { %2840 = vmatpush2.bf16.msra.mxu0 %v9164_v8  ;;  %v9250_v8 = vld [vmem:[%s13548_s6 + $0x324] ss:$36 sps:$4 sm:$0xff]  }
  0x4f   :  { %2881 = vmatpush2.bf16.msra.mxu1 %v9165_v9  ;;  %2841 = vmatprep.subr.bf16.mxu0 %v9166_v10  ;;  %v9245_v9 = vld [vmem:[%s13548_s6 + $0xc18] ss:$36 sps:$4 sm:$0xff]   ;;  %v9248_v10 = vld [vmem:[%s13548_s6 + $0x320] ss:$36 sps:$4 sm:$0xff]  }
  0x50   :  { %2882 = vmatprep.subr.bf16.mxu1 %v9168_v11  ;;  %v9253_v11 = vld [vmem:[%s13548_s6 + $0xbd4] ss:$36 sps:$4 sm:$0xff]  }
  0x52   :  { %2842 = vmatpush2.bf16.msra.mxu0 %v9170_v12  ;;  %v9256_v12 = vld [vmem:[%s13548_s6 + $0x2dc] ss:$36 sps:$4 sm:$0xff]  }
  0x53   :  { %2883 = vmatpush2.bf16.msra.mxu1 %v9171_v13  ;;  %2893 = vmatprep.subr.bf16.mxu0 %v9175_v14  ;;  %v9251_v13 = vld [vmem:[%s13548_s6 + $0xbd0] ss:$36 sps:$4 sm:$0xff]   ;;  %v9254_v14 = vld [vmem:[%s13548_s6 + $0x2d8] ss:$36 sps:$4 sm:$0xff]  }
  0x54   :  { %2934 = vmatprep.subr.bf16.mxu1 %v9178_v15  ;;  %v9259_v15 = vld [vmem:[%s13548_s6 + $0xb8c] ss:$36 sps:$4 sm:$0xff]  }
  0x55   :  { %2844 = vmatmul.mubr.bf16.vlgmr.msra.gmra.mxu0 %v10418_v16 }
  0x56   :  { %2885 = vmatmul.mubr.bf16.vlgmr.msra.gmra.mxu1 %v10420_v17  ;;  %2894 = vmatpush1.bf16.msra.mxu0 %v9173_v18  ;;  %v9262_v18 = vld [vmem:[%s13548_s6 + $0x294] ss:$36 sps:$4 sm:$0xff]  }
  0x57   :  { %2935 = vmatpush1.bf16.msra.mxu1 %v9176_v19  ;;  %2895 = vmatprep.subr.bf16.mxu0 %v9181_v20  ;;  %v9257_v19 = vld [vmem:[%s13548_s6 + $0xb88] ss:$36 sps:$4 sm:$0xff]   ;;  %v9260_v20 = vld [vmem:[%s13548_s6 + $0x290] ss:$36 sps:$4 sm:$0xff]  }
  0x58   :  { %2936 = vmatprep.subr.bf16.mxu1 %v9184_v21  ;;  %2966 = vmatprep.mubr.bf16.mxu1 %v10367_v62  ;;  %v9265_v21 = vld [vmem:[%s13548_s6 + $0xb44] ss:$36 sps:$4 sm:$0xff]  }
  0x59   :  { %2925 = vmatprep.mubr.bf16.mxu0 %v10516_v50 }
  0x5a   :  { %2896 = vmatpush1.bf16.msra.mxu0 %v9179_v22  ;;  %v9268_v22 = vld [vmem:[%s13548_s6 + $0x24c] ss:$36 sps:$4 sm:$0xff]  }
  0x5b   :  { %2937 = vmatpush1.bf16.msra.mxu1 %v9182_v23  ;;  %2897 = vmatprep.subr.bf16.mxu0 %v9187_v24  ;;  %v9263_v23 = vld [vmem:[%s13548_s6 + $0xb40] ss:$36 sps:$4 sm:$0xff]   ;;  %v9266_v24 = vld [vmem:[%s13548_s6 + $0x248] ss:$36 sps:$4 sm:$0xff]  }
  0x5c   :  { %2938 = vmatprep.subr.bf16.mxu1 %v9190_v25  ;;  %v9271_v25 = vld [vmem:[%s13548_s6 + $0x684] ss:$36 sps:$4 sm:$0xff]  }
  0x5e   :  { %2898 = vmatpush1.bf16.msra.mxu0 %v9185_v26  ;;  %v9274_v26 = vld [vmem:[%s13548_s6 + $0xb04] ss:$36 sps:$4 sm:$0xff]  }
  0x5f   :  { %2939 = vmatpush1.bf16.msra.mxu1 %v9188_v27  ;;  %2899 = vmatprep.subr.bf16.mxu0 %v9193_v28  ;;  %v10629_v27 = vpack.c.bf16 %v10500_v42, %v10500_v42  ;;  %v9269_v28 = vld [vmem:[%s13548_s6 + $0x680] ss:$36 sps:$4 sm:$0xff]  }
  0x60   :  { %2940 = vmatprep.subr.bf16.mxu1 %v9196_v29  ;;  %v9272_v29 = vld [vmem:[%s13548_s6 + $0xb00] ss:$36 sps:$4 sm:$0xff]  }
  0x61   :  { %v9295_v42 = vld [vmem:[%s13548_s6 + $0x564] ss:$36 sps:$4 sm:$0xff]  }
  0x62   :  { %2900 = vmatpush1.bf16.msra.mxu0 %v9191_v30  ;;  %v9277_v30 = vld [vmem:[%s13548_s6 + $0x63c] ss:$36 sps:$4 sm:$0xff]  }
  0x63   :  { %2941 = vmatpush1.bf16.msra.mxu1 %v9194_v31  ;;  %2901 = vmatprep.subr.bf16.mxu0 %v9199_v32  ;;  %v9280_v31 = vld [vmem:[%s13548_s6 + $0xabc] ss:$36 sps:$4 sm:$0xff]  }
  0x64   :  { %2942 = vmatprep.subr.bf16.mxu1 %v9202_v33  ;;  %v9275_v32 = vld [vmem:[%s13548_s6 + $0x638] ss:$36 sps:$4 sm:$0xff]  }
  0x65   :  { %v9278_v33 = vld [vmem:[%s13548_s6 + $0xab8] ss:$36 sps:$4 sm:$0xff]  }
  0x66   :  { %2902 = vmatpush1.bf16.msra.mxu0 %v9197_v34  ;;  %v9283_v34 = vld [vmem:[%s13548_s6 + $0x5f4] ss:$36 sps:$4 sm:$0xff]  }
  0x67   :  { %2943 = vmatpush1.bf16.msra.mxu1 %v9200_v35  ;;  %2903 = vmatprep.subr.bf16.mxu0 %v9205_v36  ;;  %v9286_v35 = vld [vmem:[%s13548_s6 + $0xa74] ss:$36 sps:$4 sm:$0xff]  }
  0x68   :  { %2944 = vmatprep.subr.bf16.mxu1 %v9208_v37  ;;  %v9281_v36 = vld [vmem:[%s13548_s6 + $0x5f0] ss:$36 sps:$4 sm:$0xff]  }
  0x69   :  { %v9284_v37 = vld [vmem:[%s13548_s6 + $0xa70] ss:$36 sps:$4 sm:$0xff]  }
  0x6a   :  { %2904 = vmatpush1.bf16.msra.mxu0 %v9203_v38  ;;  %v9289_v38 = vld [vmem:[%s13548_s6 + $0x5ac] ss:$36 sps:$4 sm:$0xff]  }
  0x6b   :  { %2945 = vmatpush1.bf16.msra.mxu1 %v9206_v39  ;;  %2905 = vmatprep.subr.bf16.mxu0 %v9211_v40  ;;  %v9292_v39 = vld [vmem:[%s13548_s6 + $0xa2c] ss:$36 sps:$4 sm:$0xff]  }
  0x6c   :  { %2946 = vmatprep.subr.bf16.mxu1 %v9214_v41  ;;  %v9287_v40 = vld [vmem:[%s13548_s6 + $0x5a8] ss:$36 sps:$4 sm:$0xff]  }
  0x6d   :  { %v9290_v41 = vld [vmem:[%s13548_s6 + $0xa28] ss:$36 sps:$4 sm:$0xff]  }
  0x6e   :  { %2906 = vmatpush1.bf16.msra.mxu0 %v9209_v45  ;;  %v9293_v45 = vld [vmem:[%s13548_s6 + $0x560] ss:$36 sps:$4 sm:$0xff]  }
  0x6f   :  { %2947 = vmatpush1.bf16.msra.mxu1 %v9212_v46  ;;  %2907 = vmatprep.subr.bf16.mxu0 %v9217_v47  ;;  %v9296_v46 = vld [vmem:[%s13548_s6 + $0x9e0] ss:$36 sps:$4 sm:$0xff]  }
  0x70   :  { %2948 = vmatprep.subr.bf16.mxu1 %v9220_v48  ;;  %v9301_v47 = vld [vmem:[%s13548_s6 + $0x51c] ss:$36 sps:$4 sm:$0xff]  }
  0x71   :  { %v9304_v48 = vld [vmem:[%s13548_s6 + $0x99c] ss:$36 sps:$4 sm:$0xff]  }
  0x72   :  { %2908 = vmatpush1.bf16.msra.mxu0 %v9215_v51  ;;  %v9299_v51 = vld [vmem:[%s13548_s6 + $0x518] ss:$36 sps:$4 sm:$0xff]  }
  0x73   :  { %2949 = vmatpush1.bf16.msra.mxu1 %v9218_v52  ;;  %2909 = vmatprep.subr.bf16.mxu0 %v9223_v53  ;;  %v9302_v52 = vld [vmem:[%s13548_s6 + $0x998] ss:$36 sps:$4 sm:$0xff]  }
  0x74   :  { %2950 = vmatprep.subr.bf16.mxu1 %v9226_v54  ;;  %v9307_v53 = vld [vmem:[%s13548_s6 + $0x4d4] ss:$36 sps:$4 sm:$0xff]  }
  0x75   :  { %v9310_v54 = vld [vmem:[%s13548_s6 + $0x954] ss:$36 sps:$4 sm:$0xff]  }
  0x76   :  { %2910 = vmatpush2.bf16.msra.mxu0 %v9221_v55  ;;  %v9305_v55 = vld [vmem:[%s13548_s6 + $0x4d0] ss:$36 sps:$4 sm:$0xff]  }
  0x77   :  { %2951 = vmatpush2.bf16.msra.mxu1 %v9224_v56  ;;  %2911 = vmatprep.subr.bf16.mxu0 %v9229_v57  ;;  %v9308_v56 = vld [vmem:[%s13548_s6 + $0x950] ss:$36 sps:$4 sm:$0xff]  }
  0x78   :  { %2952 = vmatprep.subr.bf16.mxu1 %v9232_v58  ;;  %v9313_v57 = vld [vmem:[%s13548_s6 + $0x48c] ss:$36 sps:$4 sm:$0xff]  }
  0x79   :  { %v9316_v58 = vld [vmem:[%s13548_s6 + $0x90c] ss:$36 sps:$4 sm:$0xff]  }
  0x7a   :  { %2912 = vmatpush2.bf16.msra.mxu0 %v9227_v59  ;;  %v9311_v59 = vld [vmem:[%s13548_s6 + $0x488] ss:$36 sps:$4 sm:$0xff]  }
  0x7b   :  { %2953 = vmatpush2.bf16.msra.mxu1 %v9230_v60  ;;  %2913 = vmatprep.subr.bf16.mxu0 %v9235_v61  ;;  %v9314_v60 = vld [vmem:[%s13548_s6 + $0x908] ss:$36 sps:$4 sm:$0xff]  }
  0x7c   :  { %2954 = vmatprep.subr.bf16.mxu1 %v9238_v63  ;;  %v9319_v61 = vld [vmem:[%s13548_s6 + $0x8c4] ss:$36 sps:$4 sm:$0xff]  }
  0x7d   :  { %v9322_v63 = vld [vmem:[%s13548_s6 + $0xd44] ss:$36 sps:$4 sm:$0xff]  }
  0x7e   :  { %2914 = vmatpush2.bf16.msra.mxu0 %v9233_v0  ;;  %v9317_v0 = vld [vmem:[%s13548_s6 + $0x8c0] ss:$36 sps:$4 sm:$0xff]  }
  0x7f   :  { %2955 = vmatpush2.bf16.msra.mxu1 %v9236_v1  ;;  %2915 = vmatprep.subr.bf16.mxu0 %v9241_v2  ;;  %v9320_v1 = vld [vmem:[%s13548_s6 + $0xd40] ss:$36 sps:$4 sm:$0xff]  }
  0x80   :  { %2956 = vmatprep.subr.bf16.mxu1 %v9244_v4  ;;  %v9325_v2 = vld [vmem:[%s13548_s6 + $0x87c] ss:$36 sps:$4 sm:$0xff]  }
  0x81   :  { %v9328_v4 = vld [vmem:[%s13548_s6 + $0xcfc] ss:$36 sps:$4 sm:$0xff]  }
  0x82   :  { %2916 = vmatpush2.bf16.msra.mxu0 %v9239_v5  ;;  %v9323_v5 = vld [vmem:[%s13548_s6 + $0x878] ss:$36 sps:$4 sm:$0xff]  }
  0x83   :  { %2957 = vmatpush2.bf16.msra.mxu1 %v9242_v6  ;;  %2917 = vmatprep.subr.bf16.mxu0 %v9247_v7  ;;  %v9326_v6 = vld [vmem:[%s13548_s6 + $0xcf8] ss:$36 sps:$4 sm:$0xff]  }
  0x84   :  { %2958 = vmatprep.subr.bf16.mxu1 %v9250_v8  ;;  %v9331_v7 = vld [vmem:[%s13548_s6 + $0x834] ss:$36 sps:$4 sm:$0xff]  }
  0x85   :  { %v9334_v8 = vld [vmem:[%s13548_s6 + $0xcb4] ss:$36 sps:$4 sm:$0xff]  }
  0x86   :  { %2918 = vmatpush2.bf16.msra.mxu0 %v9245_v9  ;;  %v9329_v9 = vld [vmem:[%s13548_s6 + $0x830] ss:$36 sps:$4 sm:$0xff]  }
  0x87   :  { %2959 = vmatpush2.bf16.msra.mxu1 %v9248_v10  ;;  %2919 = vmatprep.subr.bf16.mxu0 %v9253_v11  ;;  %v9332_v10 = vld [vmem:[%s13548_s6 + $0xcb0] ss:$36 sps:$4 sm:$0xff]  }
  0x88   :  { %2960 = vmatprep.subr.bf16.mxu1 %v9256_v12  ;;  %v9337_v11 = vld [vmem:[%s13548_s6 + $0x7ec] ss:$36 sps:$4 sm:$0xff]  }
  0x89   :  { %v9340_v12 = vld [vmem:[%s13548_s6 + $0xc6c] ss:$36 sps:$4 sm:$0xff]  }
  0x8a   :  { %2920 = vmatpush2.bf16.msra.mxu0 %v9251_v13  ;;  %v9335_v13 = vld [vmem:[%s13548_s6 + $0x7e8] ss:$36 sps:$4 sm:$0xff]  }
  0x8b   :  { %2961 = vmatpush2.bf16.msra.mxu1 %v9254_v14  ;;  %2921 = vmatprep.subr.bf16.mxu0 %v9259_v15  ;;  %v9338_v14 = vld [vmem:[%s13548_s6 + $0xc68] ss:$36 sps:$4 sm:$0xff]  }
  0x8c   :  { %2962 = vmatprep.subr.bf16.mxu1 %v9262_v18  ;;  %v9343_v15 = vld [vmem:[%s13548_s6 + $0x7a4] ss:$36 sps:$4 sm:$0xff]  }
  0x8d   :  { %v9346_v18 = vld [vmem:[%s13548_s6 + $0xc24] ss:$36 sps:$4 sm:$0xff]  }
  0x8e   :  { %2922 = vmatpush2.bf16.msra.mxu0 %v9257_v19  ;;  %v9341_v19 = vld [vmem:[%s13548_s6 + $0x7a0] ss:$36 sps:$4 sm:$0xff]  }
  0x8f   :  { %2963 = vmatpush2.bf16.msra.mxu1 %v9260_v20  ;;  %2923 = vmatprep.subr.bf16.mxu0 %v9265_v21  ;;  %v9344_v20 = vld [vmem:[%s13548_s6 + $0xc20] ss:$36 sps:$4 sm:$0xff]  }
  0x90   :  { %2964 = vmatprep.subr.bf16.mxu1 %v9268_v22  ;;  %v9349_v21 = vld [vmem:[%s13548_s6 + $0x75c] ss:$36 sps:$4 sm:$0xff]  }
  0x91   :  { %v9352_v22 = vld [vmem:[%s13548_s6 + $0xbdc] ss:$36 sps:$4 sm:$0xff]  }
  0x92   :  { %2924 = vmatpush2.bf16.msra.mxu0 %v9263_v23  ;;  %v9347_v23 = vld [vmem:[%s13548_s6 + $0x758] ss:$36 sps:$4 sm:$0xff]  }
  0x93   :  { %2965 = vmatpush2.bf16.msra.mxu1 %v9266_v24  ;;  %2975 = vmatprep.subr.bf16.mxu0 %v9271_v25  ;;  %v9350_v24 = vld [vmem:[%s13548_s6 + $0xbd8] ss:$36 sps:$4 sm:$0xff]  }
  0x94   :  { %3016 = vmatprep.subr.bf16.mxu1 %v9274_v26  ;;  %v9355_v25 = vld [vmem:[%s13548_s6 + $0x714] ss:$36 sps:$4 sm:$0xff]  }
  0x95   :  { %2926 = vmatmul.mubr.bf16.vlgmr.msra.gmra.mxu0 %v10629_v27  ;;  %v9358_v26 = vld [vmem:[%s13548_s6 + $0xb94] ss:$36 sps:$4 sm:$0xff]  }
  0x96   :  { %2967 = vmatmul.mubr.bf16.vlgmr.msra.gmra.mxu1 %v10418_v16  ;;  %2976 = vmatpush1.bf16.msra.mxu0 %v9269_v28  ;;  %v9353_v28 = vld [vmem:[%s13548_s6 + $0x710] ss:$36 sps:$4 sm:$0xff]  }
  0x97   :  { %3017 = vmatpush1.bf16.msra.mxu1 %v9272_v29  ;;  %2977 = vmatprep.subr.bf16.mxu0 %v9277_v30  ;;  %v9356_v29 = vld [vmem:[%s13548_s6 + $0xb90] ss:$36 sps:$4 sm:$0xff]  }
  0x98   :  { %3018 = vmatprep.subr.bf16.mxu1 %v9280_v31  ;;  %3007 = vmatprep.mubr.bf16.mxu0 %v10378_v3  ;;  %v9361_v30 = vld [vmem:[%s13548_s6 + $0x6cc] ss:$36 sps:$4 sm:$0xff]  }
  0x99   :  { %3048 = vmatprep.mubr.bf16.mxu1 %v10516_v50  ;;  %v9364_v31 = vld [vmem:[%s13548_s6 + $0xb4c] ss:$36 sps:$4 sm:$0xff]  }
  0x9a   :  { %2978 = vmatpush1.bf16.msra.mxu0 %v9275_v32  ;;  %v9359_v32 = vld [vmem:[%s13548_s6 + $0x6c8] ss:$36 sps:$4 sm:$0xff]  }
  0x9b   :  { %3019 = vmatpush1.bf16.msra.mxu1 %v9278_v33  ;;  %2979 = vmatprep.subr.bf16.mxu0 %v9283_v34  ;;  %v9362_v33 = vld [vmem:[%s13548_s6 + $0xb48] ss:$36 sps:$4 sm:$0xff]  }
  0x9c   :  { %3020 = vmatprep.subr.bf16.mxu1 %v9286_v35  ;;  %v9367_v34 = vld [vmem:[%s13548_s6 + $0x20c] ss:$36 sps:$4 sm:$0xff]  }
  0x9d   :  { %v9370_v35 = vld [vmem:[%s13548_s6 + $0x68c] ss:$36 sps:$4 sm:$0xff]  }
  0x9e   :  { %2980 = vmatpush1.bf16.msra.mxu0 %v9281_v36  ;;  %v9365_v36 = vld [vmem:[%s13548_s6 + $0x208] ss:$36 sps:$4 sm:$0xff]  }
  0x9f   :  { %3021 = vmatpush1.bf16.msra.mxu1 %v9284_v37  ;;  %2981 = vmatprep.subr.bf16.mxu0 %v9289_v38  ;;  %v9368_v37 = vld [vmem:[%s13548_s6 + $0x688] ss:$36 sps:$4 sm:$0xff]  }
  0xa0   :  { %3022 = vmatprep.subr.bf16.mxu1 %v9292_v39  ;;  %v9373_v38 = vld [vmem:[%s13548_s6 + $0x1c4] ss:$36 sps:$4 sm:$0xff]  }
  0xa1   :  { %v9376_v39 = vld [vmem:[%s13548_s6 + $0x644] ss:$36 sps:$4 sm:$0xff]  }
  0xa2   :  { %2982 = vmatpush1.bf16.msra.mxu0 %v9287_v40  ;;  %v9371_v40 = vld [vmem:[%s13548_s6 + $0x1c0] ss:$36 sps:$4 sm:$0xff]  }
  0xa3   :  { %3023 = vmatpush1.bf16.msra.mxu1 %v9290_v41  ;;  %2983 = vmatprep.subr.bf16.mxu0 %v9295_v42  ;;  %v9374_v41 = vld [vmem:[%s13548_s6 + $0x640] ss:$36 sps:$4 sm:$0xff]  }
  0xa4   :  { %3024 = vmatprep.subr.bf16.mxu1 %v9298_v44  ;;  %v9379_v42 = vld [vmem:[%s13548_s6 + $0x17c] ss:$36 sps:$4 sm:$0xff]  }
  0xa5   :  { %v9382_v44 = vld [vmem:[%s13548_s6 + $0x5fc] ss:$36 sps:$4 sm:$0xff]  }
  0xa6   :  { %2984 = vmatpush1.bf16.msra.mxu0 %v9293_v45  ;;  %v9377_v45 = vld [vmem:[%s13548_s6 + $0x178] ss:$36 sps:$4 sm:$0xff]  }
  0xa7   :  { %3025 = vmatpush1.bf16.msra.mxu1 %v9296_v46  ;;  %2985 = vmatprep.subr.bf16.mxu0 %v9301_v47  ;;  %v9380_v46 = vld [vmem:[%s13548_s6 + $0x5f8] ss:$36 sps:$4 sm:$0xff]  }
  0xa8   :  { %3026 = vmatprep.subr.bf16.mxu1 %v9304_v48  ;;  %v9385_v47 = vld [vmem:[%s13548_s6 + $0x134] ss:$36 sps:$4 sm:$0xff]  }
  0xa9   :  { %v9388_v48 = vld [vmem:[%s13548_s6 + $0x5b4] ss:$36 sps:$4 sm:$0xff]  }
  0xaa   :  { %2986 = vmatpush1.bf16.msra.mxu0 %v9299_v51  ;;  %v9383_v51 = vld [vmem:[%s13548_s6 + $0x130] ss:$36 sps:$4 sm:$0xff]  }
  0xab   :  { %3027 = vmatpush1.bf16.msra.mxu1 %v9302_v52  ;;  %2987 = vmatprep.subr.bf16.mxu0 %v9307_v53  ;;  %v9386_v52 = vld [vmem:[%s13548_s6 + $0x5b0] ss:$36 sps:$4 sm:$0xff]  }
  0xac   :  { %3028 = vmatprep.subr.bf16.mxu1 %v9310_v54  ;;  %v9391_v53 = vld [vmem:[%s13548_s6 + $0xec] ss:$36 sps:$4 sm:$0xff]  }
  0xad   :  { %v9394_v54 = vld [vmem:[%s13548_s6 + $0x56c] ss:$36 sps:$4 sm:$0xff]  }
  0xae   :  { %2988 = vmatpush1.bf16.msra.mxu0 %v9305_v55  ;;  %v9389_v55 = vld [vmem:[%s13548_s6 + $0xe8] ss:$36 sps:$4 sm:$0xff]  }
  0xaf   :  { %3029 = vmatpush1.bf16.msra.mxu1 %v9308_v56  ;;  %2989 = vmatprep.subr.bf16.mxu0 %v9313_v57  ;;  %v9392_v56 = vld [vmem:[%s13548_s6 + $0x568] ss:$36 sps:$4 sm:$0xff]  }
  0xb0   :  { %3030 = vmatprep.subr.bf16.mxu1 %v9316_v58  ;;  %v9397_v57 = vld [vmem:[%s13548_s6 + $0xa4] ss:$36 sps:$4 sm:$0xff]  }
  0xb1   :  { %v9400_v58 = vld [vmem:[%s13548_s6 + $0x524] ss:$36 sps:$4 sm:$0xff]  }
  0xb2   :  { %2990 = vmatpush1.bf16.msra.mxu0 %v9311_v59  ;;  %v9395_v59 = vld [vmem:[%s13548_s6 + $0xa0] ss:$36 sps:$4 sm:$0xff]  }
  0xb3   :  { %3031 = vmatpush1.bf16.msra.mxu1 %v9314_v60  ;;  %2991 = vmatprep.subr.bf16.mxu0 %v9319_v61  ;;  %v9398_v60 = vld [vmem:[%s13548_s6 + $0x520] ss:$36 sps:$4 sm:$0xff]  }
  0xb4   :  { %3032 = vmatprep.subr.bf16.mxu1 %v9322_v63  ;;  %v9403_v61 = vld [vmem:[%s13548_s6 + $0x5c] ss:$36 sps:$4 sm:$0xff]  }
  0xb5   :  { %v9406_v63 = vld [vmem:[%s13548_s6 + $0x4dc] ss:$36 sps:$4 sm:$0xff]  }
  0xb6   :  { %2992 = vmatpush2.bf16.msra.mxu0 %v9317_v0  ;;  %v9401_v0 = vld [vmem:[%s13548_s6 + $0x58] ss:$36 sps:$4 sm:$0xff]  }
  0xb7   :  { %3033 = vmatpush2.bf16.msra.mxu1 %v9320_v1  ;;  %2993 = vmatprep.subr.bf16.mxu0 %v9325_v2  ;;  %v9404_v1 = vld [vmem:[%s13548_s6 + $0x4d8] ss:$36 sps:$4 sm:$0xff]  }
  0xb8   :  { %3034 = vmatprep.subr.bf16.mxu1 %v9328_v4  ;;  %v9409_v2 = vld [vmem:[%s13548_s6 + $0x14] ss:$36 sps:$4 sm:$0xff]  }
  0xb9   :  { %v9412_v4 = vld [vmem:[%s13548_s6 + $0x494] ss:$36 sps:$4 sm:$0xff]  }
  0xba   :  { %2994 = vmatpush2.bf16.msra.mxu0 %v9323_v5  ;;  %v9407_v5 = vld [vmem:[%s13548_s6 + $0x10] ss:$36 sps:$4 sm:$0xff]  }
  0xbb   :  { %3035 = vmatpush2.bf16.msra.mxu1 %v9326_v6  ;;  %2995 = vmatprep.subr.bf16.mxu0 %v9331_v7  ;;  %v9410_v6 = vld [vmem:[%s13548_s6 + $0x490] ss:$36 sps:$4 sm:$0xff]  }
  0xbc   :  { %3036 = vmatprep.subr.bf16.mxu1 %v9334_v8  ;;  %v9415_v7 = vld [vmem:[%s13548_s6 + $0x44c] ss:$36 sps:$4 sm:$0xff]  }
  0xbd   :  { %v9418_v8 = vld [vmem:[%s13548_s6 + $0x8cc] ss:$36 sps:$4 sm:$0xff]  }
  0xbe   :  { %2996 = vmatpush2.bf16.msra.mxu0 %v9329_v9  ;;  %v9413_v9 = vld [vmem:[%s13548_s6 + $0x448] ss:$36 sps:$4 sm:$0xff]  }
  0xbf   :  { %3037 = vmatpush2.bf16.msra.mxu1 %v9332_v10  ;;  %2997 = vmatprep.subr.bf16.mxu0 %v9337_v11  ;;  %v9416_v10 = vld [vmem:[%s13548_s6 + $0x8c8] ss:$36 sps:$4 sm:$0xff]  }
  0xc0   :  { %3038 = vmatprep.subr.bf16.mxu1 %v9340_v12  ;;  %v9421_v11 = vld [vmem:[%s13548_s6 + $0x404] ss:$36 sps:$4 sm:$0xff]  }
  0xc1   :  { %v9424_v12 = vld [vmem:[%s13548_s6 + $0x884] ss:$36 sps:$4 sm:$0xff]  }
  0xc2   :  { %2998 = vmatpush2.bf16.msra.mxu0 %v9335_v13  ;;  %v9419_v13 = vld [vmem:[%s13548_s6 + $0x400] ss:$36 sps:$4 sm:$0xff]  }
  0xc3   :  { %3039 = vmatpush2.bf16.msra.mxu1 %v9338_v14  ;;  %2999 = vmatprep.subr.bf16.mxu0 %v9343_v15  ;;  %v9422_v14 = vld [vmem:[%s13548_s6 + $0x880] ss:$36 sps:$4 sm:$0xff]  }
  0xc4   :  { %3040 = vmatprep.subr.bf16.mxu1 %v9346_v18  ;;  %v9427_v15 = vld [vmem:[%s13548_s6 + $0x3bc] ss:$36 sps:$4 sm:$0xff]  }
  0xc5   :  { %v9430_v18 = vld [vmem:[%s13548_s6 + $0x83c] ss:$36 sps:$4 sm:$0xff]  }
  0xc6   :  { %3000 = vmatpush2.bf16.msra.mxu0 %v9341_v19  ;;  %v9425_v19 = vld [vmem:[%s13548_s6 + $0x3b8] ss:$36 sps:$4 sm:$0xff]  }
  0xc7   :  { %3041 = vmatpush2.bf16.msra.mxu1 %v9344_v20  ;;  %3001 = vmatprep.subr.bf16.mxu0 %v9349_v21  ;;  %v9428_v20 = vld [vmem:[%s13548_s6 + $0x838] ss:$36 sps:$4 sm:$0xff]  }
  0xc8   :  { %3042 = vmatprep.subr.bf16.mxu1 %v9352_v22  ;;  %v9433_v21 = vld [vmem:[%s13548_s6 + $0x374] ss:$36 sps:$4 sm:$0xff]  }
  0xc9   :  { %v9436_v22 = vld [vmem:[%s13548_s6 + $0x7f4] ss:$36 sps:$4 sm:$0xff]  }
  0xca   :  { %3002 = vmatpush2.bf16.msra.mxu0 %v9347_v23  ;;  %v9431_v23 = vld [vmem:[%s13548_s6 + $0x370] ss:$36 sps:$4 sm:$0xff]  }
  0xcb   :  { %3043 = vmatpush2.bf16.msra.mxu1 %v9350_v24  ;;  %3003 = vmatprep.subr.bf16.mxu0 %v9355_v25  ;;  %v9434_v24 = vld [vmem:[%s13548_s6 + $0x7f0] ss:$36 sps:$4 sm:$0xff]  }
  0xcc   :  { %3044 = vmatprep.subr.bf16.mxu1 %v9358_v26  ;;  %v9439_v25 = vld [vmem:[%s13548_s6 + $0x32c] ss:$36 sps:$4 sm:$0xff]  }
  0xcd   :  { %v9442_v26 = vld [vmem:[%s13548_s6 + $0x7ac] ss:$36 sps:$4 sm:$0xff]  }
  0xce   :  { %3004 = vmatpush2.bf16.msra.mxu0 %v9353_v28  ;;  %v9437_v28 = vld [vmem:[%s13548_s6 + $0x328] ss:$36 sps:$4 sm:$0xff]  }
  0xcf   :  { %3045 = vmatpush2.bf16.msra.mxu1 %v9356_v29  ;;  %3005 = vmatprep.subr.bf16.mxu0 %v9361_v30  ;;  %v9440_v29 = vld [vmem:[%s13548_s6 + $0x7a8] ss:$36 sps:$4 sm:$0xff]  }
  0xd0   :  { %3046 = vmatprep.subr.bf16.mxu1 %v9364_v31  ;;  %v9445_v30 = vld [vmem:[%s13548_s6 + $0x2e4] ss:$36 sps:$4 sm:$0xff]  }
  0xd1   :  { %v9448_v31 = vld [vmem:[%s13548_s6 + $0x764] ss:$36 sps:$4 sm:$0xff]  }
  0xd2   :  { %3006 = vmatpush2.bf16.msra.mxu0 %v9359_v32  ;;  %v9443_v32 = vld [vmem:[%s13548_s6 + $0x2e0] ss:$36 sps:$4 sm:$0xff]  }
  0xd3   :  { %3047 = vmatpush2.bf16.msra.mxu1 %v9362_v33  ;;  %3057 = vmatprep.subr.bf16.mxu0 %v9367_v34  ;;  %v9446_v33 = vld [vmem:[%s13548_s6 + $0x760] ss:$36 sps:$4 sm:$0xff]  }
  0xd4   :  { %3098 = vmatprep.subr.bf16.mxu1 %v9370_v35  ;;  %v9451_v34 = vld [vmem:[%s13548_s6 + $0x29c] ss:$36 sps:$4 sm:$0xff]  }
  0xd5   :  { %3008 = vmatmul.mubr.bf16.vlgmr.msra.gmra.mxu0 %v10420_v17  ;;  %v9454_v35 = vld [vmem:[%s13548_s6 + $0x71c] ss:$36 sps:$4 sm:$0xff]  }
  0xd6   :  { %3049 = vmatmul.mubr.bf16.vlgmr.msra.gmra.mxu1 %v10629_v27  ;;  %3058 = vmatpush1.bf16.msra.mxu0 %v9365_v36  ;;  %v9449_v36 = vld [vmem:[%s13548_s6 + $0x298] ss:$36 sps:$4 sm:$0xff]  }
  0xd7   :  { %3099 = vmatpush1.bf16.msra.mxu1 %v9368_v37  ;;  %3059 = vmatprep.subr.bf16.mxu0 %v9373_v38  ;;  %v9452_v37 = vld [vmem:[%s13548_s6 + $0x718] ss:$36 sps:$4 sm:$0xff]  }
  0xd8   :  { %3100 = vmatprep.subr.bf16.mxu1 %v9376_v39  ;;  %3089 = vmatprep.mubr.bf16.mxu0 %v10367_v62  ;;  %v9457_v38 = vld [vmem:[%s13548_s6 + $0x254] ss:$36 sps:$4 sm:$0xff]  }
  0xd9   :  { %3130 = vmatprep.mubr.bf16.mxu1 %v10378_v3  ;;  %v9460_v39 = vld [vmem:[%s13548_s6 + $0x6d4] ss:$36 sps:$4 sm:$0xff]  }
  0xda   :  { %3060 = vmatpush1.bf16.msra.mxu0 %v9371_v40  ;;  %v9455_v40 = vld [vmem:[%s13548_s6 + $0x250] ss:$36 sps:$4 sm:$0xff]  }
  0xdb   :  { %3101 = vmatpush1.bf16.msra.mxu1 %v9374_v41  ;;  %3061 = vmatprep.subr.bf16.mxu0 %v9379_v42  ;;  %v9458_v41 = vld [vmem:[%s13548_s6 + $0x6d0] ss:$36 sps:$4 sm:$0xff]  }
  0xdc   :  { %3102 = vmatprep.subr.bf16.mxu1 %v9382_v44  ;;  %v9463_v42 = vld [vmem:[%s13548_s6 + $0xb0c] ss:$36 sps:$4 sm:$0xff]   ;;  %v9466_v44 = vld [vmem:[%s13548_s6 + $0x214] ss:$36 sps:$4 sm:$0xff]  }
  0xde   :  { %3062 = vmatpush1.bf16.msra.mxu0 %v9377_v45  ;;  %v9461_v45 = vld [vmem:[%s13548_s6 + $0xb08] ss:$36 sps:$4 sm:$0xff]  }
  0xdf   :  { %3103 = vmatpush1.bf16.msra.mxu1 %v9380_v46  ;;  %3063 = vmatprep.subr.bf16.mxu0 %v9385_v47  ;;  %v9464_v46 = vld [vmem:[%s13548_s6 + $0x210] ss:$36 sps:$4 sm:$0xff]   ;;  %v9469_v47 = vld [vmem:[%s13548_s6 + $0xac4] ss:$36 sps:$4 sm:$0xff]  }
  0xe0   :  { %3104 = vmatprep.subr.bf16.mxu1 %v9388_v48  ;;  %v9472_v48 = vld [vmem:[%s13548_s6 + $0x1cc] ss:$36 sps:$4 sm:$0xff]  }
  0xe2   :  { %3064 = vmatpush1.bf16.msra.mxu0 %v9383_v51  ;;  %v9467_v51 = vld [vmem:[%s13548_s6 + $0xac0] ss:$36 sps:$4 sm:$0xff]  }
  0xe3   :  { %3105 = vmatpush1.bf16.msra.mxu1 %v9386_v52  ;;  %3065 = vmatprep.subr.bf16.mxu0 %v9391_v53  ;;  %v9470_v52 = vld [vmem:[%s13548_s6 + $0x1c8] ss:$36 sps:$4 sm:$0xff]  }
  0xe4   :  { %3106 = vmatprep.subr.bf16.mxu1 %v9394_v54 }
  0xe6   :  { %3066 = vmatpush1.bf16.msra.mxu0 %v9389_v55  ;;  %v9475_v55 = vld [vmem:[%s13548_s6 + $0xa7c] ss:$36 sps:$4 sm:$0xff]  }
  0xe7   :  { %3107 = vmatpush1.bf16.msra.mxu1 %v9392_v56  ;;  %3067 = vmatprep.subr.bf16.mxu0 %v9397_v57 }
  0xe8   :  { %3108 = vmatprep.subr.bf16.mxu1 %v9400_v58 }
  0xea   :  { %3068 = vmatpush1.bf16.msra.mxu0 %v9395_v59  ;;  %v9478_v59 = vld [vmem:[%s13548_s6 + $0x184] ss:$36 sps:$4 sm:$0xff]  }
  0xeb   :  { %3109 = vmatpush1.bf16.msra.mxu1 %v9398_v60  ;;  %3069 = vmatprep.subr.bf16.mxu0 %v9403_v61  ;;  %v9473_v61 = vld [vmem:[%s13548_s6 + $0xa78] ss:$36 sps:$4 sm:$0xff]  }
  0xec   :  { %3110 = vmatprep.subr.bf16.mxu1 %v9406_v63  ;;  %v9476_v63 = vld [vmem:[%s13548_s6 + $0x180] ss:$36 sps:$4 sm:$0xff]  }
  0xee   :  { %3070 = vmatpush1.bf16.msra.mxu0 %v9401_v0 }
  0xef   :  { %3111 = vmatpush1.bf16.msra.mxu1 %v9404_v1  ;;  %3071 = vmatprep.subr.bf16.mxu0 %v9409_v2  ;;  %v9481_v2 = vld [vmem:[%s13548_s6 + $0xa34] ss:$36 sps:$4 sm:$0xff]  }
  0xf0   :  { %3112 = vmatprep.subr.bf16.mxu1 %v9412_v4 }
  0xf2   :  { %3072 = vmatpush1.bf16.msra.mxu0 %v9407_v5 }
  0xf3   :  { %3113 = vmatpush1.bf16.msra.mxu1 %v9410_v6  ;;  %3073 = vmatprep.subr.bf16.mxu0 %v9415_v7  ;;  %v9484_v6 = vld [vmem:[%s13548_s6 + $0x13c] ss:$36 sps:$4 sm:$0xff]   ;;  %v9479_v7 = vld [vmem:[%s13548_s6 + $0xa30] ss:$36 sps:$4 sm:$0xff]  }
  0xf4   :  { %3114 = vmatprep.subr.bf16.mxu1 %v9418_v8  ;;  %v9482_v8 = vld [vmem:[%s13548_s6 + $0x138] ss:$36 sps:$4 sm:$0xff]  }
  0xf6   :  { %3074 = vmatpush2.bf16.msra.mxu0 %v9413_v9  ;;  %v9487_v9 = vld [vmem:[%s13548_s6 + $0x9ec] ss:$36 sps:$4 sm:$0xff]  }
  0xf7   :  { %3115 = vmatpush2.bf16.msra.mxu1 %v9416_v10  ;;  %3075 = vmatprep.subr.bf16.mxu0 %v9421_v11  ;;  %v9490_v10 = vld [vmem:[%s13548_s6 + $0xf4] ss:$36 sps:$4 sm:$0xff]   ;;  %v9485_v11 = vld [vmem:[%s13548_s6 + $0x9e8] ss:$36 sps:$4 sm:$0xff]  }
  0xf8   :  { %3116 = vmatprep.subr.bf16.mxu1 %v9424_v12  ;;  %v9488_v12 = vld [vmem:[%s13548_s6 + $0xf0] ss:$36 sps:$4 sm:$0xff]  }
  0xfa   :  { %3076 = vmatpush2.bf16.msra.mxu0 %v9419_v13  ;;  %v9493_v13 = vld [vmem:[%s13548_s6 + $0x9a4] ss:$36 sps:$4 sm:$0xff]  }
  0xfb   :  { %3117 = vmatpush2.bf16.msra.mxu1 %v9422_v14  ;;  %3077 = vmatprep.subr.bf16.mxu0 %v9427_v15  ;;  %v9496_v14 = vld [vmem:[%s13548_s6 + $0xac] ss:$36 sps:$4 sm:$0xff]   ;;  %v9491_v15 = vld [vmem:[%s13548_s6 + $0x9a0] ss:$36 sps:$4 sm:$0xff]  }
  0xfc   :  { %3118 = vmatprep.subr.bf16.mxu1 %v9430_v18  ;;  %v9494_v18 = vld [vmem:[%s13548_s6 + $0xa8] ss:$36 sps:$4 sm:$0xff]  }
  0xfe   :  { %3078 = vmatpush2.bf16.msra.mxu0 %v9425_v19  ;;  %v9499_v19 = vld [vmem:[%s13548_s6 + $0x95c] ss:$36 sps:$4 sm:$0xff]  }
  0xff   :  { %3119 = vmatpush2.bf16.msra.mxu1 %v9428_v20  ;;  %3079 = vmatprep.subr.bf16.mxu0 %v9433_v21  ;;  %v9502_v20 = vld [vmem:[%s13548_s6 + $0x64] ss:$36 sps:$4 sm:$0xff]   ;;  %v9497_v21 = vld [vmem:[%s13548_s6 + $0x958] ss:$36 sps:$4 sm:$0xff]  }
 0x100   :  { %3120 = vmatprep.subr.bf16.mxu1 %v9436_v22  ;;  %v9500_v22 = vld [vmem:[%s13548_s6 + $0x60] ss:$36 sps:$4 sm:$0xff]  }
 0x102   :  { %3080 = vmatpush2.bf16.msra.mxu0 %v9431_v23  ;;  %v9505_v23 = vld [vmem:[%s13548_s6 + $0x914] ss:$36 sps:$4 sm:$0xff]  }
 0x103   :  { %3121 = vmatpush2.bf16.msra.mxu1 %v9434_v24  ;;  %3081 = vmatprep.subr.bf16.mxu0 %v9439_v25  ;;  %v9508_v24 = vld [vmem:[%s13548_s6 + $0x1c] ss:$36 sps:$4 sm:$0xff]   ;;  %v9503_v25 = vld [vmem:[%s13548_s6 + $0x910] ss:$36 sps:$4 sm:$0xff]  }
 0x104   :  { %3122 = vmatprep.subr.bf16.mxu1 %v9442_v26  ;;  %v9506_v26 = vld [vmem:[%s13548_s6 + $0x18] ss:$36 sps:$4 sm:$0xff]  }
 0x106   :  { %3082 = vmatpush2.bf16.msra.mxu0 %v9437_v28  ;;  %v9511_v28 = vld [vmem:[%s13548_s6 + $0xd4c] ss:$36 sps:$4 sm:$0xff]  }
 0x107   :  { %3123 = vmatpush2.bf16.msra.mxu1 %v9440_v29  ;;  %3083 = vmatprep.subr.bf16.mxu0 %v9445_v30  ;;  %v9514_v29 = vld [vmem:[%s13548_s6 + $0x454] ss:$36 sps:$4 sm:$0xff]   ;;  %v9509_v30 = vld [vmem:[%s13548_s6 + $0xd48] ss:$36 sps:$4 sm:$0xff]  }
 0x108   :  { %3124 = vmatprep.subr.bf16.mxu1 %v9448_v31  ;;  %v9512_v31 = vld [vmem:[%s13548_s6 + $0x450] ss:$36 sps:$4 sm:$0xff]  }
 0x10a   :  { %3084 = vmatpush2.bf16.msra.mxu0 %v9443_v32  ;;  %v9517_v32 = vld [vmem:[%s13548_s6 + $0xd04] ss:$36 sps:$4 sm:$0xff]  }
 0x10b   :  { %3125 = vmatpush2.bf16.msra.mxu1 %v9446_v33  ;;  %3085 = vmatprep.subr.bf16.mxu0 %v9451_v34  ;;  %v9520_v33 = vld [vmem:[%s13548_s6 + $0x40c] ss:$36 sps:$4 sm:$0xff]   ;;  %v9515_v34 = vld [vmem:[%s13548_s6 + $0xd00] ss:$36 sps:$4 sm:$0xff]  }
 0x10c   :  { %3126 = vmatprep.subr.bf16.mxu1 %v9454_v35  ;;  %v9518_v35 = vld [vmem:[%s13548_s6 + $0x408] ss:$36 sps:$4 sm:$0xff]  }
 0x10e   :  { %3086 = vmatpush2.bf16.msra.mxu0 %v9449_v36  ;;  %v9523_v36 = vld [vmem:[%s13548_s6 + $0xcbc] ss:$36 sps:$4 sm:$0xff]  }
 0x10f   :  { %3127 = vmatpush2.bf16.msra.mxu1 %v9452_v37  ;;  %3087 = vmatprep.subr.bf16.mxu0 %v9457_v38  ;;  %v9526_v37 = vld [vmem:[%s13548_s6 + $0x3c4] ss:$36 sps:$4 sm:$0xff]   ;;  %v9521_v38 = vld [vmem:[%s13548_s6 + $0xcb8] ss:$36 sps:$4 sm:$0xff]  }
 0x110   :  { %3128 = vmatprep.subr.bf16.mxu1 %v9460_v39  ;;  %v9524_v39 = vld [vmem:[%s13548_s6 + $0x3c0] ss:$36 sps:$4 sm:$0xff]  }
 0x112   :  { %3088 = vmatpush2.bf16.msra.mxu0 %v9455_v40  ;;  %v9529_v40 = vld [vmem:[%s13548_s6 + $0xc74] ss:$36 sps:$4 sm:$0xff]  }
 0x113   :  { %3129 = vmatpush2.bf16.msra.mxu1 %v9458_v41  ;;  %3139 = vmatprep.subr.bf16.mxu0 %v9463_v42  ;;  %v9532_v41 = vld [vmem:[%s13548_s6 + $0x37c] ss:$36 sps:$4 sm:$0xff]   ;;  %v9527_v42 = vld [vmem:[%s13548_s6 + $0xc70] ss:$36 sps:$4 sm:$0xff]  }
 0x114   :  { %3180 = vmatprep.subr.bf16.mxu1 %v9466_v44  ;;  %v9530_v44 = vld [vmem:[%s13548_s6 + $0x378] ss:$36 sps:$4 sm:$0xff]  }
 0x115   :  { %v2845_v53 = vpop.f32.mrf.mxu0  ;;  %3090 = vmatmul.mubr.bf16.vlgmr.msra.gmra.mxu0 %v10418_v16 }
 0x116   :  { %v2886_v54 = vpop.f32.mrf.mxu1  ;;  %3131 = vmatmul.mubr.bf16.vlgmr.msra.gmra.mxu1 %v10420_v17  ;;  %3140 = vmatpush1.bf16.msra.mxu0 %v9461_v45  ;;  %v9535_v45 = vld [vmem:[%s13548_s6 + $0xc2c] ss:$36 sps:$4 sm:$0xff]  }
 0x117   :  { %v11046_v56 = vadd.f32 %v2886_v54, %v2845_v53  ;;  %3181 = vmatpush1.bf16.msra.mxu1 %v9464_v46  ;;  %v2847_v57 = vpop.f32.mrf.mxu0  ;;  %3141 = vmatprep.subr.bf16.mxu0 %v9469_v47  ;;  %v9538_v46 = vld [vmem:[%s13548_s6 + $0x334] ss:$36 sps:$4 sm:$0xff]   ;;  %v9533_v47 = vld [vmem:[%s13548_s6 + $0xc28] ss:$36 sps:$4 sm:$0xff]   ;;  %v9539_v53 = vld [vmem:[%s13548_s6 + $0xbe0] ss:$36 sps:$4 sm:$0xff]  }
 0x118   :  { %v2888_v58 = vpop.f32.mrf.mxu1  ;;  %3182 = vmatprep.subr.bf16.mxu1 %v9472_v48  ;;  %3171 = vmatprep.mubr.bf16.mxu0 %v10516_v50  ;;  %v9536_v48 = vld [vmem:[%s13548_s6 + $0x330] ss:$36 sps:$4 sm:$0xff]   ;;  %v9542_v54 = vld [vmem:[%s13548_s6 + $0x2e8] ss:$36 sps:$4 sm:$0xff]  }
 0x119   :  { %v11051_v60 = vadd.f32 %v2888_v58, %v2847_v57  ;;  %3212 = vmatprep.mubr.bf16.mxu1 %v10367_v62  ;;  %v2849_v0 = vpop.f32.mrf.mxu0  ;;  %v9550_v57 = vld [vmem:[%s13548_s6 + $0x2a4] ss:$36 sps:$4 sm:$0xff]   ;;  %v9545_v58 = vld [vmem:[%s13548_s6 + $0xb98] ss:$36 sps:$4 sm:$0xff]  }
 0x11a   :  { %v2890_v1 = vpop.f32.mrf.mxu1  ;;  %3142 = vmatpush1.bf16.msra.mxu0 %v9467_v51  ;;  %v9541_v51 = vld [vmem:[%s13548_s6 + $0xbe4] ss:$36 sps:$4 sm:$0xff]   ;;  %v9551_v0 = vld [vmem:[%s13548_s6 + $0xb50] ss:$36 sps:$4 sm:$0xff]  }
 0x11b   :  { %3183 = vmatpush1.bf16.msra.mxu1 %v9470_v52  ;;  %v2850_v4 = vpop.f32.mrf.mxu0  ;;  %3143 = vmatprep.subr.bf16.mxu0 %v9475_v55  ;;  %v9544_v52 = vld [vmem:[%s13548_s6 + $0x2ec] ss:$36 sps:$4 sm:$0xff]   ;;  %v9547_v55 = vld [vmem:[%s13548_s6 + $0xb9c] ss:$36 sps:$4 sm:$0xff]  }
 0x11c   :  { %v2891_v5 = vpop.f32.mrf.mxu1  ;;  %3184 = vmatprep.subr.bf16.mxu1 %v9478_v59  ;;  %v9548_v59 = vld [vmem:[%s13548_s6 + $0x2a0] ss:$36 sps:$4 sm:$0xff]   ;;  %v9554_v1 = vld [vmem:[%s13548_s6 + $0x258] ss:$36 sps:$4 sm:$0xff]  }
 0x11d   :  { %v9562_v4 = vld [vmem:[%s13548_s6 + $0xb14] ss:$36 sps:$4 sm:$0xff]  }
 0x11e   :  { %3144 = vmatpush1.bf16.msra.mxu0 %v9473_v61  ;;  %v9553_v61 = vld [vmem:[%s13548_s6 + $0xb54] ss:$36 sps:$4 sm:$0xff]  }
 0x11f   :  { %3185 = vmatpush1.bf16.msra.mxu1 %v9476_v63  ;;  %3145 = vmatprep.subr.bf16.mxu0 %v9481_v2  ;;  %v9556_v63 = vld [vmem:[%s13548_s6 + $0x25c] ss:$36 sps:$4 sm:$0xff]   ;;  %v9559_v2 = vld [vmem:[%s13548_s6 + $0x694] ss:$36 sps:$4 sm:$0xff]  }
 0x120   :  { %3186 = vmatprep.subr.bf16.mxu1 %v9484_v6  ;;  %v9557_v5 = vld [vmem:[%s13548_s6 + $0x690] ss:$36 sps:$4 sm:$0xff]  }
 0x121   :  { %v9560_v6 = vld [vmem:[%s13548_s6 + $0xb10] ss:$36 sps:$4 sm:$0xff]  }
 0x122   :  { %3146 = vmatpush1.bf16.msra.mxu0 %v9479_v7  ;;  %v9565_v7 = vld [vmem:[%s13548_s6 + $0x64c] ss:$36 sps:$4 sm:$0xff]  }
 0x123   :  { %3187 = vmatpush1.bf16.msra.mxu1 %v9482_v8  ;;  %3147 = vmatprep.subr.bf16.mxu0 %v9487_v9  ;;  %v9568_v8 = vld [vmem:[%s13548_s6 + $0xacc] ss:$36 sps:$4 sm:$0xff]  }
 0x124   :  { %3188 = vmatprep.subr.bf16.mxu1 %v9490_v10  ;;  %v9563_v9 = vld [vmem:[%s13548_s6 + $0x648] ss:$36 sps:$4 sm:$0xff]  }
 0x125   :  { %v9566_v10 = vld [vmem:[%s13548_s6 + $0xac8] ss:$36 sps:$4 sm:$0xff]  }
 0x126   :  { %3148 = vmatpush1.bf16.msra.mxu0 %v9485_v11 }
 0x127   :  { %3189 = vmatpush1.bf16.msra.mxu1 %v9488_v12  ;;  %3149 = vmatprep.subr.bf16.mxu0 %v9493_v13  ;;  %v9571_v13 = vld [vmem:[%s13548_s6 + $0x604] ss:$36 sps:$4 sm:$0xff]  }
 0x128   :  { %3190 = vmatprep.subr.bf16.mxu1 %v9496_v14  ;;  %v9574_v14 = vld [vmem:[%s13548_s6 + $0xa84] ss:$36 sps:$4 sm:$0xff]  }
 0x12a   :  { %3150 = vmatpush1.bf16.msra.mxu0 %v9491_v15 }
 0x12b   :  { %3191 = vmatpush1.bf16.msra.mxu1 %v9494_v18  ;;  %3151 = vmatprep.subr.bf16.mxu0 %v9499_v19 }
 0x12c   :  { %3192 = vmatprep.subr.bf16.mxu1 %v9502_v20 }
 0x12e   :  { %3152 = vmatpush1.bf16.msra.mxu0 %v9497_v21  ;;  %v9569_v21 = vld [vmem:[%s13548_s6 + $0x600] ss:$36 sps:$4 sm:$0xff]  }
 0x12f   :  { %3193 = vmatpush1.bf16.msra.mxu1 %v9500_v22  ;;  %3153 = vmatprep.subr.bf16.mxu0 %v9505_v23  ;;  %v9572_v22 = vld [vmem:[%s13548_s6 + $0xa80] ss:$36 sps:$4 sm:$0xff]  }
 0x130   :  { %3194 = vmatprep.subr.bf16.mxu1 %v9508_v24  ;;  %v9577_v24 = vld [vmem:[%s13548_s6 + $0x5bc] ss:$36 sps:$4 sm:$0xff]  }
 0x132   :  { %3154 = vmatpush1.bf16.msra.mxu0 %v9503_v25 }
 0x133   :  { %3195 = vmatpush1.bf16.msra.mxu1 %v9506_v26  ;;  %3155 = vmatprep.subr.bf16.mxu0 %v9511_v28 }
 0x134   :  { %3196 = vmatprep.subr.bf16.mxu1 %v9514_v29  ;;  %v9575_v29 = vld [vmem:[%s13548_s6 + $0x5b8] ss:$36 sps:$4 sm:$0xff]  }
 0x136   :  { %3156 = vmatpush2.bf16.msra.mxu0 %v9509_v30  ;;  %v9578_v30 = vld [vmem:[%s13548_s6 + $0xa38] ss:$36 sps:$4 sm:$0xff]  }
 0x137   :  { %3197 = vmatpush2.bf16.msra.mxu1 %v9512_v31  ;;  %3157 = vmatprep.subr.bf16.mxu0 %v9517_v32  ;;  %v9583_v31 = vld [vmem:[%s13548_s6 + $0x574] ss:$36 sps:$4 sm:$0xff]  }
 0x138   :  { %3198 = vmatprep.subr.bf16.mxu1 %v9520_v33  ;;  %v9586_v32 = vld [vmem:[%s13548_s6 + $0x9f4] ss:$36 sps:$4 sm:$0xff]  }
 0x139   :  { %v9581_v33 = vld [vmem:[%s13548_s6 + $0x570] ss:$36 sps:$4 sm:$0xff]  }
 0x13a   :  { %3158 = vmatpush2.bf16.msra.mxu0 %v9515_v34  ;;  %v9584_v34 = vld [vmem:[%s13548_s6 + $0x9f0] ss:$36 sps:$4 sm:$0xff]  }
 0x13b   :  { %3199 = vmatpush2.bf16.msra.mxu1 %v9518_v35  ;;  %3159 = vmatprep.subr.bf16.mxu0 %v9523_v36  ;;  %v9589_v35 = vld [vmem:[%s13548_s6 + $0x52c] ss:$36 sps:$4 sm:$0xff]  }
 0x13c   :  { %3200 = vmatprep.subr.bf16.mxu1 %v9526_v37  ;;  %v9592_v36 = vld [vmem:[%s13548_s6 + $0x9ac] ss:$36 sps:$4 sm:$0xff]  }
 0x13d   :  { %v9587_v37 = vld [vmem:[%s13548_s6 + $0x528] ss:$36 sps:$4 sm:$0xff]  }
 0x13e   :  { %3160 = vmatpush2.bf16.msra.mxu0 %v9521_v38  ;;  %v9590_v38 = vld [vmem:[%s13548_s6 + $0x9a8] ss:$36 sps:$4 sm:$0xff]  }
 0x13f   :  { %3201 = vmatpush2.bf16.msra.mxu1 %v9524_v39  ;;  %3161 = vmatprep.subr.bf16.mxu0 %v9529_v40  ;;  %v9595_v39 = vld [vmem:[%s13548_s6 + $0x4e4] ss:$36 sps:$4 sm:$0xff]  }
 0x140   :  { %3202 = vmatprep.subr.bf16.mxu1 %v9532_v41  ;;  %v9598_v40 = vld [vmem:[%s13548_s6 + $0x964] ss:$36 sps:$4 sm:$0xff]  }
 0x141   :  { %v9593_v41 = vld [vmem:[%s13548_s6 + $0x4e0] ss:$36 sps:$4 sm:$0xff]  }
 0x142   :  { %3162 = vmatpush2.bf16.msra.mxu0 %v9527_v42  ;;  %v9596_v42 = vld [vmem:[%s13548_s6 + $0x960] ss:$36 sps:$4 sm:$0xff]  }
 0x143   :  { %3203 = vmatpush2.bf16.msra.mxu1 %v9530_v44  ;;  %3163 = vmatprep.subr.bf16.mxu0 %v9535_v45  ;;  %v9601_v44 = vld [vmem:[%s13548_s6 + $0x49c] ss:$36 sps:$4 sm:$0xff]  }
 0x144   :  { %3204 = vmatprep.subr.bf16.mxu1 %v9538_v46  ;;  %v9604_v45 = vld [vmem:[%s13548_s6 + $0x91c] ss:$36 sps:$4 sm:$0xff]  }
 0x145   :  { %v9599_v46 = vld [vmem:[%s13548_s6 + $0x498] ss:$36 sps:$4 sm:$0xff]  }
 0x146   :  { %3164 = vmatpush2.bf16.msra.mxu0 %v9533_v47  ;;  %v9602_v47 = vld [vmem:[%s13548_s6 + $0x918] ss:$36 sps:$4 sm:$0xff]  }
 0x147   :  { %3205 = vmatpush2.bf16.msra.mxu1 %v9536_v48  ;;  %3165 = vmatprep.subr.bf16.mxu0 %v9541_v51  ;;  %v9607_v48 = vld [vmem:[%s13548_s6 + $0x8d4] ss:$36 sps:$4 sm:$0xff]  }
 0x148   :  { %3206 = vmatprep.subr.bf16.mxu1 %v9544_v52  ;;  %v9610_v51 = vld [vmem:[%s13548_s6 + $0xd54] ss:$36 sps:$4 sm:$0xff]  }
 0x149   :  { %v9605_v52 = vld [vmem:[%s13548_s6 + $0x8d0] ss:$36 sps:$4 sm:$0xff]  }
 0x14a   :  { %3166 = vmatpush2.bf16.msra.mxu0 %v9539_v53  ;;  %v9608_v53 = vld [vmem:[%s13548_s6 + $0xd50] ss:$36 sps:$4 sm:$0xff]  }
 0x14b   :  { %3207 = vmatpush2.bf16.msra.mxu1 %v9542_v54  ;;  %3167 = vmatprep.subr.bf16.mxu0 %v9547_v55  ;;  %v9613_v54 = vld [vmem:[%s13548_s6 + $0x88c] ss:$36 sps:$4 sm:$0xff]  }
 0x14c   :  { %3208 = vmatprep.subr.bf16.mxu1 %v9550_v57  ;;  %v9616_v55 = vld [vmem:[%s13548_s6 + $0xd0c] ss:$36 sps:$4 sm:$0xff]  }
 0x14e   :  { %3168 = vmatpush2.bf16.msra.mxu0 %v9545_v58 }
 0x14f   :  { %3209 = vmatpush2.bf16.msra.mxu1 %v9548_v59  ;;  %3169 = vmatprep.subr.bf16.mxu0 %v9553_v61 }
 0x150   :  { %3210 = vmatprep.subr.bf16.mxu1 %v9556_v63 }
 0x152   :  { %3170 = vmatpush2.bf16.msra.mxu0 %v9551_v0 }
 0x153   :  { %3211 = vmatpush2.bf16.msra.mxu1 %v9554_v1  ;;  %3221 = vmatprep.subr.bf16.mxu0 %v9559_v2 }
 0x154   :  { %3262 = vmatprep.subr.bf16.mxu1 %v9562_v4 }
 0x155   :  { %v2927_v11 = vpop.f32.mrf.mxu0  ;;  %3172 = vmatmul.mubr.bf16.vlgmr.msra.gmra.mxu0 %v10629_v27 }
 0x156   :  { %v11241_v12 = vpop.f32.mrf.mxu1  ;;  %3213 = vmatmul.mubr.bf16.vlgmr.msra.gmra.mxu1 %v10418_v16  ;;  %v11252_v15 = vadd.f32 %v2927_v11, %v11046_v56  ;;  %3222 = vmatpush1.bf16.msra.mxu0 %v9557_v5 }
 0x157   :  { %3263 = vmatpush1.bf16.msra.mxu1 %v9560_v6  ;;  %v2929_v18 = vpop.f32.mrf.mxu0  ;;  %3223 = vmatprep.subr.bf16.mxu0 %v9565_v7 }
 0x158   :  { %v11254_v19 = vpop.f32.mrf.mxu1  ;;  %3264 = vmatprep.subr.bf16.mxu1 %v9568_v8  ;;  %v11257_v20 = vadd.f32 %v2929_v18, %v11051_v60  ;;  %3253 = vmatprep.mubr.bf16.mxu0 %v10378_v3  ;;  %v9580_v60 = vld [vmem:[%s13548_s6 + $0xa3c] ss:$36 sps:$4 sm:$0xff]  }
 0x159   :  { %3294 = vmatprep.mubr.bf16.mxu1 %v10516_v50  ;;  %v2931_v56 = vpop.f32.mrf.mxu0 }
 0x15a   :  { %v2972_v23 = vpop.f32.mrf.mxu1  ;;  %v3432_v25 = vcombine.low %v11252_v15, %v11257_v20  ;;  %3224 = vmatpush1.bf16.msra.mxu0 %v9563_v9 }
 0x15b   :  { %3265 = vmatpush1.bf16.msra.mxu1 %v9566_v10  ;;  %v2932_v26 = vpop.f32.mrf.mxu0  ;;  %3225 = vmatprep.subr.bf16.mxu0 %v9571_v13 }
 0x15c   :  { %v2973_v28 = vpop.f32.mrf.mxu1  ;;  %3266 = vmatprep.subr.bf16.mxu1 %v9574_v14 }
 0x15e   :  { %3226 = vmatpush1.bf16.msra.mxu0 %v9569_v21 }
 0x15f   :  { %3267 = vmatpush1.bf16.msra.mxu1 %v9572_v22  ;;  %3227 = vmatprep.subr.bf16.mxu0 %v9577_v24 }
 0x160   :  { %3268 = vmatprep.subr.bf16.mxu1 %v9580_v60 }
 0x162   :  { %3228 = vmatpush1.bf16.msra.mxu0 %v9575_v29 }
 0x163   :  { %3269 = vmatpush1.bf16.msra.mxu1 %v9578_v30  ;;  %3229 = vmatprep.subr.bf16.mxu0 %v9583_v31 }
 0x164   :  { %3270 = vmatprep.subr.bf16.mxu1 %v9586_v32 }
 0x166   :  { %3230 = vmatpush1.bf16.msra.mxu0 %v9581_v33 }
 0x167   :  { %3271 = vmatpush1.bf16.msra.mxu1 %v9584_v34  ;;  %3231 = vmatprep.subr.bf16.mxu0 %v9589_v35 }
 0x168   :  { %3272 = vmatprep.subr.bf16.mxu1 %v9592_v36 }
 0x16a   :  { %3232 = vmatpush1.bf16.msra.mxu0 %v9587_v37 }
 0x16b   :  { %3273 = vmatpush1.bf16.msra.mxu1 %v9590_v38  ;;  %3233 = vmatprep.subr.bf16.mxu0 %v9595_v39 }
 0x16c   :  { %3274 = vmatprep.subr.bf16.mxu1 %v9598_v40 }
 0x16e   :  { %3234 = vmatpush1.bf16.msra.mxu0 %v9593_v41 }
 0x16f   :  { %3275 = vmatpush1.bf16.msra.mxu1 %v9596_v42  ;;  %3235 = vmatprep.subr.bf16.mxu0 %v9601_v44 }
 0x170   :  { %3276 = vmatprep.subr.bf16.mxu1 %v9604_v45 }
 0x172   :  { %3236 = vmatpush1.bf16.msra.mxu0 %v9599_v46 }
 0x173   :  { %3277 = vmatpush1.bf16.msra.mxu1 %v9602_v47  ;;  %3237 = vmatprep.subr.bf16.mxu0 %v9607_v48 }
 0x174   :  { %3278 = vmatprep.subr.bf16.mxu1 %v9610_v51 }
 0x175   :  { %30 = vsyncpa [#allocation5], 0  ;;  %v9611_v57 = vld [vmem:[%s13548_s6 + $0x888] ss:$36 sps:$4 sm:$0xff]   ;;  %v9617_v63 = vld [vmem:[%s13548_s6 + $0x840] ss:$36 sps:$4 sm:$0xff]  }
 0x176   :  { %3238 = vmatpush2.bf16.msra.mxu0 %v9605_v52  ;;  %v9614_v58 = vld [vmem:[%s13548_s6 + $0xd08] ss:$36 sps:$4 sm:$0xff]   ;;  %v9620_v0 = vld [vmem:[%s13548_s6 + $0xcc0] ss:$36 sps:$4 sm:$0xff]   ;;  %v9623_v4 = vld [vmem:[%s13548_s6 + $0x7f8] ss:$36 sps:$4 sm:$0xff]  }
 0x177   :  { %3279 = vmatpush2.bf16.msra.mxu1 %v9608_v53  ;;  %3239 = vmatprep.subr.bf16.mxu0 %v9613_v54  ;;  %v9619_v59 = vld [vmem:[%s13548_s6 + $0x844] ss:$36 sps:$4 sm:$0xff]   ;;  %v9625_v1 = vld [vmem:[%s13548_s6 + $0x7fc] ss:$36 sps:$4 sm:$0xff]   ;;  %v9631_v6 = vld [vmem:[%s13548_s6 + $0x7b4] ss:$36 sps:$4 sm:$0xff]   ;;  %v3440_v54 = vrot.slane %v3432_v25, %v10339_v49 }
 0x178   :  { %3280 = vmatprep.subr.bf16.mxu1 %v9616_v55  ;;  %v9622_v61 = vld [vmem:[%s13548_s6 + $0xcc4] ss:$36 sps:$4 sm:$0xff]   ;;  %v9628_v2 = vld [vmem:[%s13548_s6 + $0xc7c] ss:$36 sps:$4 sm:$0xff]   ;;  %v9634_v7 = vld [vmem:[%s13548_s6 + $0xc34] ss:$36 sps:$4 sm:$0xff]  }
 0x179   :  { %v9626_v5 = vld [vmem:[%s13548_s6 + $0xc78] ss:$36 sps:$4 sm:$0xff]   ;;  %v9629_v8 = vld [vmem:[%s13548_s6 + $0x7b0] ss:$36 sps:$4 sm:$0xff]   ;;  %v9635_v13 = vld [vmem:[%s13548_s6 + $0x768] ss:$36 sps:$4 sm:$0xff]  }
 0x17a   :  { %3240 = vmatpush2.bf16.msra.mxu0 %v9611_v57  ;;  %v9632_v9 = vld [vmem:[%s13548_s6 + $0xc30] ss:$36 sps:$4 sm:$0xff]   ;;  %v9638_v14 = vld [vmem:[%s13548_s6 + $0xbe8] ss:$36 sps:$4 sm:$0xff]   ;;  %v9641_v22 = vld [vmem:[%s13548_s6 + $0x720] ss:$36 sps:$4 sm:$0xff]  }
 0x17b   :  { %3281 = vmatpush2.bf16.msra.mxu1 %v9614_v58  ;;  %3241 = vmatprep.subr.bf16.mxu0 %v9619_v59  ;;  %v9637_v10 = vld [vmem:[%s13548_s6 + $0x76c] ss:$36 sps:$4 sm:$0xff]   ;;  %v9643_v18 = vld [vmem:[%s13548_s6 + $0x724] ss:$36 sps:$4 sm:$0xff]   ;;  %v9649_v23 = vld [vmem:[%s13548_s6 + $0x6dc] ss:$36 sps:$4 sm:$0xff]  }
 0x17c   :  { %3282 = vmatprep.subr.bf16.mxu1 %v9622_v61  ;;  %v9640_v11 = vld [vmem:[%s13548_s6 + $0xbec] ss:$36 sps:$4 sm:$0xff]   ;;  %v9646_v21 = vld [vmem:[%s13548_s6 + $0xba4] ss:$36 sps:$4 sm:$0xff]   ;;  %v9652_v24 = vld [vmem:[%s13548_s6 + $0xb5c] ss:$36 sps:$4 sm:$0xff]  }
 0x17d   :  { %v9644_v56 = vld [vmem:[%s13548_s6 + $0xba0] ss:$36 sps:$4 sm:$0xff]   ;;  %v9647_v60 = vld [vmem:[%s13548_s6 + $0x6d8] ss:$36 sps:$4 sm:$0xff]   ;;  %v9655_v32 = vld [vmem:[%s13548_s6 + $0x410] ss:$36 sps:$4 sm:$0xff]  }
 0x17e   :  { %3242 = vmatpush2.bf16.msra.mxu0 %v9617_v63  ;;  %v9650_v26 = vld [vmem:[%s13548_s6 + $0xb58] ss:$36 sps:$4 sm:$0xff]   ;;  %v9673_v33 = vld [vmem:[%s13548_s6 + $0x890] ss:$36 sps:$4 sm:$0xff]   ;;  %v9657_v41 = vld [vmem:[%s13548_s6 + $0x3c8] ss:$36 sps:$4 sm:$0xff]  }
 0x17f   :  { %3283 = vmatpush2.bf16.msra.mxu1 %v9620_v0  ;;  %3243 = vmatprep.subr.bf16.mxu0 %v9625_v1  ;;  %v9653_v28 = vld [vmem:[%s13548_s6 + $0x458] ss:$36 sps:$4 sm:$0xff]   ;;  %v9656_v37 = vld [vmem:[%s13548_s6 + $0x1d0] ss:$36 sps:$4 sm:$0xff]   ;;  %v9658_v48 = vld [vmem:[%s13548_s6 + $0x188] ss:$36 sps:$4 sm:$0xff]  }
 0x180   :  { %3284 = vmatprep.subr.bf16.mxu1 %v9628_v2  ;;  %v9669_v29 = vld [vmem:[%s13548_s6 + $0x8d8] ss:$36 sps:$4 sm:$0xff]   ;;  %v9674_v38 = vld [vmem:[%s13548_s6 + $0x650] ss:$36 sps:$4 sm:$0xff]   ;;  %v9660_v57 = vld [vmem:[%s13548_s6 + $0x140] ss:$36 sps:$4 sm:$0xff]  }
 0x181   :  { %v9654_v30 = vld [vmem:[%s13548_s6 + $0x218] ss:$36 sps:$4 sm:$0xff]   ;;  %v9682_v58 = vld [vmem:[%s13548_s6 + $0x5c0] ss:$36 sps:$4 sm:$0xff]   ;;  %v9663_v63 = vld [vmem:[%s13548_s6 + $0x2f0] ss:$36 sps:$4 sm:$0xff]  }
 0x182   :  { %3244 = vmatpush2.bf16.msra.mxu0 %v9623_v4  ;;  %v9670_v31 = vld [vmem:[%s13548_s6 + $0x698] ss:$36 sps:$4 sm:$0xff]   ;;  %v9689_v0 = vld [vmem:[%s13548_s6 + $0x770] ss:$36 sps:$4 sm:$0xff]   ;;  %v9665_v2 = vld [vmem:[%s13548_s6 + $0x2a8] ss:$36 sps:$4 sm:$0xff]  }
 0x183   :  { %3285 = vmatpush2.bf16.msra.mxu1 %v9626_v5  ;;  %3245 = vmatprep.subr.bf16.mxu0 %v9631_v6  ;;  %v9661_v59 = vld [vmem:[%s13548_s6 + $0x338] ss:$36 sps:$4 sm:$0xff]   ;;  %v9664_v1 = vld [vmem:[%s13548_s6 + $0xb0] ss:$36 sps:$4 sm:$0xff]   ;;  %vm3478_vm0 = vcmask 517120   ;;  %s10069_s8 = smov 64  }
 0x184   :  { %3286 = vmatprep.subr.bf16.mxu1 %v9634_v7  ;;  %v9685_v15 = vld [vmem:[%s13548_s6 + $0x7b8] ss:$36 sps:$4 sm:$0xff]   ;;  %v9666_v4 = vld [vmem:[%s13548_s6 + $0x68] ss:$36 sps:$4 sm:$0xff]   ;;  %v9690_v5 = vld [vmem:[%s13548_s6 + $0x530] ss:$36 sps:$4 sm:$0xff]  }
 0x185   :  { %v9662_v25 = vld [vmem:[%s13548_s6 + $0xf8] ss:$36 sps:$4 sm:$0xff]   ;;  %v9693_v6 = vld [vmem:[%s13548_s6 + $0x728] ss:$36 sps:$4 sm:$0xff]   ;;  %s13550_s0 = sld [smem:[#allocation9_spill]]  ;;  %vm3628_vm1 = vcmask 523264  }
 0x186   :  { %3246 = vmatpush2.bf16.msra.mxu0 %v9629_v8  ;;  %v9686_v61 = vld [vmem:[%s13548_s6 + $0x578] ss:$36 sps:$4 sm:$0xff]   ;;  %s13551_s4 = sld [smem:[#allocation14_spill]]  ;;  %vm10071_vm2 = vmmov 0   ;;  %vm4343_vm3 = vcmask 1040384   ;;  %vm4121_vm4 = vcmask 277504  }
 0x187   :  { %3287 = vmatpush2.bf16.msra.mxu1 %v9632_v9  ;;  %3247 = vmatprep.subr.bf16.mxu0 %v9637_v10  ;;  %s13552_s5 = sld [smem:[#allocation12_spill]]  ;;  %vm4134_vm5 = vcmask 271360  }
 0x188   :  { %3288 = vmatprep.subr.bf16.mxu1 %v9640_v11  ;;  %v9667_v11 = vld [vmem:[%s13548_s6 + $0x260] ss:$36 sps:$4 sm:$0xff]   ;;  %s13553_s2 = sld [smem:[#allocation13_spill]] }
 0x189   :  { %s13554_s30 = sld [smem:[#allocation16_spill]] }
 0x18a   :  { %3248 = vmatpush2.bf16.msra.mxu0 %v9635_v13  ;;  %v9694_v13 = vld [vmem:[%s13548_s6 + $0x4e8] ss:$36 sps:$4 sm:$0xff]   ;;  %s13555_s28 = sld [smem:[#allocation15_spill]] }
 0x18b   :  { %3289 = vmatpush2.bf16.msra.mxu1 %v9638_v14  ;;  %3249 = vmatprep.subr.bf16.mxu0 %v9643_v18  ;;  %v9697_v14 = vld [vmem:[%s13548_s6 + $0x6e0] ss:$36 sps:$4 sm:$0xff]   ;;  %s13556_s26 = sld [smem:[#allocation11_spill]] }
 0x18c   :  { %3290 = vmatprep.subr.bf16.mxu1 %v9646_v21  ;;  %s13557_s27 = sld [smem:[#allocation10_spill]] }
 0x18e   :  { %3250 = vmatpush2.bf16.msra.mxu0 %v9641_v22 }
 0x18f   :  { %3291 = vmatpush2.bf16.msra.mxu1 %v9644_v56  ;;  %3251 = vmatprep.subr.bf16.mxu0 %v9649_v23  ;;  %v9668_v23 = vld [vmem:[%s13548_s6 + $0x20] ss:$36 sps:$4 sm:$0xff]  }
 0x190   :  { %3292 = vmatprep.subr.bf16.mxu1 %v9652_v24  ;;  %v9671_v24 = vld [vmem:[%s13548_s6 + $0xd58] ss:$36 sps:$4 sm:$0xff]  }
 0x192   :  { %3252 = vmatpush2.bf16.msra.mxu0 %v9647_v60  ;;  %v9698_v60 = vld [vmem:[%s13548_s6 + $0x4a0] ss:$36 sps:$4 sm:$0xff]  }
 0x193   :  { %3293 = vmatpush2.bf16.msra.mxu1 %v9650_v26  ;;  %8313 = vmatprep.subr.bf16.mxu0 %v9653_v28  ;;  %v9672_v26 = vld [vmem:[%s13548_s6 + $0xb18] ss:$36 sps:$4 sm:$0xff]   ;;  %v9675_v28 = vld [vmem:[%s13548_s6 + $0xd10] ss:$36 sps:$4 sm:$0xff]  }
 0x194   :  { %8335 = vmatprep.subr.bf16.mxu1 %v9669_v29  ;;  %v9676_v29 = vld [vmem:[%s13548_s6 + $0xad0] ss:$36 sps:$4 sm:$0xff]  }
 0x195   :  { %v3009_v34 = vpop.f32.mrf.mxu0  ;;  %3254 = vmatmul.mubr.bf16.vlgmr.msra.gmra.mxu0 %v10420_v17 }
 0x196   :  { %v3050_v35 = vpop.f32.mrf.mxu1  ;;  %3295 = vmatmul.mubr.bf16.vlgmr.msra.gmra.mxu1 %v10629_v27  ;;  %v3010_v36 = vadd.f32 %v3009_v34, %v11241_v12  ;;  %8314 = vmatpush3.bf16.msra.mxu0 %v9654_v30  ;;  %v9677_v12 = vld [vmem:[%s13548_s6 + $0x848] ss:$36 sps:$4 sm:$0xff]   ;;  %v9692_v34 = vld [vmem:[%s13548_s6 + $0x9b0] ss:$36 sps:$4 sm:$0xff]  }
 0x197   :  { %8336 = vmatpush3.bf16.msra.mxu1 %v9670_v31  ;;  %v3011_v39 = vpop.f32.mrf.mxu0  ;;  %8315 = vmatprep.subr.bf16.mxu0 %v9655_v32  ;;  %v9679_v30 = vld [vmem:[%s13548_s6 + $0xcc8] ss:$36 sps:$4 sm:$0xff]   ;;  %v9688_v32 = vld [vmem:[%s13548_s6 + $0x9f8] ss:$36 sps:$4 sm:$0xff]  }
 0x198   :  { %v3052_v40 = vpop.f32.mrf.mxu1  ;;  %3335 = vmatprep.mubr.bf16.mxu0 %v10367_v62  ;;  %v3012_v42 = vadd.f32 %v3011_v39, %v11254_v19  ;;  %8337 = vmatprep.subr.bf16.mxu1 %v9673_v33  ;;  %v3051_v46 = vadd.f32 %v3050_v35, %v3010_v36  ;;  %v9678_v62 = vld [vmem:[%s13548_s6 + $0x608] ss:$36 sps:$4 sm:$0xff]   ;;  %v9681_v19 = vld [vmem:[%s13548_s6 + $0x800] ss:$36 sps:$4 sm:$0xff]   ;;  %v9691_v33 = vld [vmem:[%s13548_s6 + $0xbf0] ss:$36 sps:$4 sm:$0xff]  }
 0x199   :  { %3375 = vmatprep.mubr.bf16.mxu1 %v10378_v3  ;;  %v3013_v44 = vpop.f32.mrf.mxu0  ;;  %v9659_v3 = vld [vmem:[%s13548_s6 + $0x380] ss:$36 sps:$4 sm:$0xff]   ;;  %v9680_v31 = vld [vmem:[%s13548_s6 + $0xa88] ss:$36 sps:$4 sm:$0xff]  }
 0x19a   :  { %v3054_v45 = vpop.f32.mrf.mxu1  ;;  %v3053_v47 = vadd.f32 %v3052_v40, %v3012_v42  ;;  %8316 = vmatpush3.bf16.msra.mxu0 %v9656_v37  ;;  %v9695_v35 = vld [vmem:[%s13548_s6 + $0xba8] ss:$36 sps:$4 sm:$0xff]   ;;  %v9699_v37 = vld [vmem:[%s13548_s6 + $0xb60] ss:$36 sps:$4 sm:$0xff]  }
 0x19b   :  { %8338 = vmatpush3.bf16.msra.mxu1 %v9674_v38  ;;  %v3014_v51 = vpop.f32.mrf.mxu0  ;;  %8317 = vmatprep.subr.bf16.mxu0 %v9657_v41  ;;  %v9696_v36 = vld [vmem:[%s13548_s6 + $0x968] ss:$36 sps:$4 sm:$0xff]   ;;  %v9700_v38 = vld [vmem:[%s13548_s6 + $0x920] ss:$36 sps:$4 sm:$0xff]  }
 0x19c   :  { %v3055_v52 = vpop.f32.mrf.mxu1  ;;  %8339 = vmatprep.subr.bf16.mxu1 %v9677_v12  ;;  %v3433_v53 = vcombine.low %v3051_v46, %v3053_v47 }
 0x19e   :  { %v3447_v55 = vrot.slane %v3433_v53, %v10339_v49  ;;  %8318 = vmatpush3.bf16.msra.mxu0 %v9658_v48 }
 0x19f   :  { %8340 = vmatpush3.bf16.msra.mxu1 %v9678_v62  ;;  %8319 = vmatprep.subr.bf16.mxu0 %v9659_v3 }
 0x1a0   :  { %8341 = vmatprep.subr.bf16.mxu1 %v9681_v19  ;;  %v3448_v20 = vcombine.low %v3440_v54, %v3447_v55 }
 0x1a2   :  { %3476 = vst [vmem:[#allocation2] sm:$0xff] %v3448_v20  ;;  %8320 = vmatpush3.bf16.msra.mxu0 %v9660_v57 }
 0x1a3   :  { %8342 = vmatpush3.bf16.msra.mxu1 %v9682_v58  ;;  %8321 = vmatprep.subr.bf16.mxu0 %v9661_v59 }
 0x1a4   :  { %8343 = vmatprep.subr.bf16.mxu1 %v9685_v15 }
 0x1a6   :  { %8322 = vmatpush3.bf16.msra.mxu0 %v9662_v25 }
 0x1a7   :  { %8344 = vmatpush3.bf16.msra.mxu1 %v9686_v61  ;;  %8323 = vmatprep.subr.bf16.mxu0 %v9663_v63 }
 0x1a8   :  { %8345 = vmatprep.subr.bf16.mxu1 %v9689_v0 }
 0x1a9   :  { %v8037_v7 = vld.sshfl [vmem:[#allocation2 + $0x4] sm:$0x3 pattern:$0x76325410]  ;;  %v3480_v8 = vld [vmem:[#allocation2] sm:$0x3] }
 0x1aa   :  { %8324 = vmatpush3.bf16.msra.mxu0 %v9664_v1  ;;  %3521 = vrot.lane.b32.xlu1 %v8037_v7, %s10069_s8  ;;  %v8035_v9 = vld.sshfl [vmem:[#allocation2] sm:$0x3 pattern:$0x76325410]  ;;  %3481 = vst.msk [vmem:[#allocation3] sm:$0x3] %vm3478_vm0, %v3480_v8 }
 0x1ab   :  { %v3495_v10 = vld [vmem:[#allocation2 + $0x2] sm:$0x3]  ;;  %3491 = vrot.lane.b32.xlu0 %v8035_v9, %s10069_s8  ;;  %8325 = vmatprep.subr.bf16.mxu0 %v9665_v2  ;;  %v3510_v18 = vld [vmem:[#allocation2 + $0x4] sm:$0x3]  ;;  %v3525_v22 = vld [vmem:[#allocation2 + $0x6] sm:$0x3] }
 0x1ac   :  { %3496 = vst.msk [vmem:[#allocation3 + $0x4] sm:$0x3] %vm3478_vm0, %v3495_v10  ;;  %8346 = vmatpush3.bf16.msra.mxu1 %v9690_v5  ;;  %v8038_v21 = vld.sshfl [vmem:[#allocation2 + $0x6] sm:$0x3 pattern:$0x76325410] }
 0x1ad   :  { %8347 = vmatprep.subr.bf16.mxu1 %v9693_v6  ;;  %3511 = vst.msk [vmem:[#allocation3 + $0x8] sm:$0x3] %vm3478_vm0, %v3510_v18  ;;  %v8036_v56 = vld.sshfl [vmem:[#allocation2 + $0x2] sm:$0x3 pattern:$0x76325410] }
 0x1ae   :  { %8326 = vmatpush3.bf16.msra.mxu0 %v9666_v4  ;;  %3536 = vrot.lane.b32.xlu1 %v8038_v21, %s10069_s8  ;;  %3526 = vst.msk [vmem:[#allocation3 + $0xc] sm:$0x3] %vm3478_vm0, %v3525_v22 }
 0x1af   :  { %3506 = vrot.lane.b32.xlu0 %v8036_v56, %s10069_s8  ;;  %8327 = vmatprep.subr.bf16.mxu0 %v9667_v11 }
 0x1b0   :  { %8348 = vmatpush3.bf16.msra.mxu1 %v9694_v13 }
 0x1b1   :  { %8349 = vmatprep.subr.bf16.mxu1 %v9697_v14 }
 0x1b2   :  { %8328 = vmatpush3.bf16.msra.mxu0 %v9668_v23 }
 0x1b3   :  { %8357 = vmatprep.subr.bf16.mxu0 %v9671_v24 }
 0x1b4   :  { %8350 = vmatpush3.bf16.msra.mxu1 %v9698_v60 }
 0x1b5   :  { %3336 = vmatmul.mubr.bf16.vlgmr.msra.gmra.mxu0 %v10418_v16  ;;  %v9683_v16 = vld [vmem:[%s13548_s6 + $0xc80] ss:$36 sps:$4 sm:$0xff]  }
 0x1b6   :  { %8358 = vmatpush3.bf16.msra.mxu0 %v9672_v26  ;;  %3415 = vmatprep.mubr.bf16.mxu0 %v10516_v50  ;;  %v9684_v50 = vld [vmem:[%s13548_s6 + $0xa40] ss:$36 sps:$4 sm:$0xff]  }
 0x1b7   :  { %8359 = vmatprep.subr.bf16.mxu0 %v9675_v28  ;;  %3376 = vmatmul.mubr.bf16.vlgmr.msra.gmra.mxu1 %v10420_v17  ;;  %v9687_v17 = vld [vmem:[%s13548_s6 + $0xc38] ss:$36 sps:$4 sm:$0xff]  }
 0x1ba   :  { %8360 = vmatpush3.bf16.msra.mxu0 %v9676_v29 }
 0x1bb   :  { %8361 = vmatprep.subr.bf16.mxu0 %v9679_v30 }
 0x1be   :  { %8362 = vmatpush3.bf16.msra.mxu0 %v9680_v31 }
 0x1bf   :  { %8363 = vmatprep.subr.bf16.mxu0 %v9683_v16 }
 0x1c2   :  { %8364 = vmatpush3.bf16.msra.mxu0 %v9684_v50 }
 0x1c3   :  { %8365 = vmatprep.subr.bf16.mxu0 %v9687_v17 }
 0x1c6   :  { %8366 = vmatpush3.bf16.msra.mxu0 %v9688_v32 }
 0x1c7   :  { %8367 = vmatprep.subr.bf16.mxu0 %v9691_v33 }
 0x1ca   :  { %8368 = vmatpush3.bf16.msra.mxu0 %v9692_v34 }
 0x1cb   :  { %8369 = vmatprep.subr.bf16.mxu0 %v9695_v35  ;;  %v3607_v35 = vld [vmem:[%s13550_s0] sm:$0xff] }
 0x1ce   :  { %8370 = vmatpush3.bf16.msra.mxu0 %v9696_v36 }
 0x1cf   :  { %8371 = vmatprep.subr.bf16.mxu0 %v9699_v37 }
 0x1d2   :  { %8372 = vmatpush3.bf16.msra.mxu0 %v9700_v38  ;;  %v3608_v38 = vld [vmem:[%s13550_s0 + $0x8] sm:$0xff] }
 0x1d5   :  { %v3091_v39 = vpop.f32.mrf.mxu0  ;;  %3416 = vmatmul.mubr.bf16.vlgmr.msra.gmra.mxu0 %v10629_v27 }
 0x1d6   :  { %v3132_v40 = vpop.f32.mrf.mxu1 }
 0x1d7   :  { %v3133_v41 = vadd.f32 %v3132_v40, %v3091_v39  ;;  %v3093_v12 = vpop.f32.mrf.mxu0 }
 0x1d8   :  { %v3134_v42 = vpop.f32.mrf.mxu1 }
 0x1d9   :  { %v3135_v44 = vadd.f32 %v3134_v42, %v3093_v12  ;;  %v3095_v45 = vpop.f32.mrf.mxu0 }
 0x1da   :  { %v3136_v46 = vpop.f32.mrf.mxu1 }
 0x1db   :  { %v3096_v47 = vpop.f32.mrf.mxu0 }
 0x1dc   :  { %v3137_v48 = vpop.f32.mrf.mxu1 }
 0x215   :  { %v3173_v62 = vpop.f32.mrf.mxu0 }
 0x216   :  { %v3214_v51 = vpop.f32.mrf.mxu1  ;;  %v3174_v52 = vadd.f32 %v3173_v62, %v3133_v41 }
 0x217   :  { %v3175_v3 = vpop.f32.mrf.mxu0 }
 0x218   :  { %v3216_v19 = vpop.f32.mrf.mxu1  ;;  %v3176_v53 = vadd.f32 %v3175_v3, %v3135_v44 }
 0x219   :  { %v3177_v54 = vpop.f32.mrf.mxu0 }
 0x21a   :  { %v3218_v55 = vpop.f32.mrf.mxu1  ;;  %v3449_v57 = vcombine.low %v3174_v52, %v3176_v53 }
 0x21b   :  { %v3178_v58 = vpop.f32.mrf.mxu0 }
 0x21c   :  { %v3219_v59 = vpop.f32.mrf.mxu1  ;;  %v3522_v27 = vpop.permute.xlu1 %3521  ;;  %v3457_v13 = vrot.slane %v3449_v57, %v10339_v49 }
 0x21d   :  { %3524 = vst.msk [vmem:[#allocation3 + $0xa] sm:$0x3] %vm3478_vm0, %v3522_v27  ;;  %v3492_v15 = vpop.permute.xlu0 %3491  ;;  %v3609_v27 = vld [vmem:[%s13550_s0 + $0x10] sm:$0xff] }
 0x21e   :  { %3494 = vst.msk [vmem:[#allocation3 + $0x2] sm:$0x3] %vm3478_vm0, %v3492_v15 }
 0x220   :  { %v3537_v20 = vpop.permute.xlu1 %3536 }
 0x221   :  { %3539 = vst.msk [vmem:[#allocation3 + $0xe] sm:$0x3] %vm3478_vm0, %v3537_v20  ;;  %v3507_v25 = vpop.permute.xlu0 %3506 }
 0x222   :  { %3509 = vst.msk [vmem:[#allocation3 + $0x6] sm:$0x3] %vm3478_vm0, %v3507_v25  ;;  %v3610_v25 = vld [vmem:[%s13550_s0 + $0x18] sm:$0xff] }
 0x228   :  { %v3603_v37 = vld [vmem:[#allocation3 + $0x8] sm:$0xff] }
 0x229   :  { %v3602_v34 = vld [vmem:[#allocation3] sm:$0xff]  ;;  %v11616_v40 = vadd.f32 %v3608_v38, %v3603_v37 }
 0x22a   :  { %v11609_v36 = vadd.f32 %v3607_v35, %v3602_v34 }
 0x22b   :  { %v3632_v41 = vsel %vm3628_vm1, %v11616_v40, 0.0 }
 0x22c   :  { %v3629_v39 = vsel %vm3628_vm1, %v11609_v36, 0.0 }
 0x255   :  { %v3255_v61 = vpop.f32.mrf.mxu0 }
 0x256   :  { %v3296_v63 = vpop.f32.mrf.mxu1  ;;  %v3256_v0 = vadd.f32 %v3255_v61, %v3214_v51 }
 0x257   :  { %v3257_v1 = vpop.f32.mrf.mxu0 }
 0x258   :  { %v3298_v2 = vpop.f32.mrf.mxu1  ;;  %v3258_v4 = vadd.f32 %v3257_v1, %v3216_v19  ;;  %v3297_v7 = vadd.f32 %v3296_v63, %v3256_v0  ;;  %v3611_v19 = vld [vmem:[%s13550_s0 + $0x20] sm:$0x3]  ;;  %s13570_s0 = sld [smem:[#allocation17_spill]] }
 0x259   :  { %v3259_v5 = vpop.f32.mrf.mxu0 }
 0x25a   :  { %v3300_v6 = vpop.f32.mrf.mxu1  ;;  %v3299_v8 = vadd.f32 %v3298_v2, %v3258_v4 }
 0x25b   :  { %v3260_v9 = vpop.f32.mrf.mxu0 }
 0x25c   :  { %v3301_v10 = vpop.f32.mrf.mxu1  ;;  %v3450_v11 = vcombine.low %v3297_v7, %v3299_v8 }
 0x25e   :  { %v3464_v14 = vrot.slane %v3450_v11, %v10339_v49 }
 0x260   :  { %v3465_v18 = vcombine.low %v3457_v13, %v3464_v14  ;;  %v9701_v14 = vld [vmem:[%s13551_s4 + $0x18] sm:$0xff]  }
 0x262   :  { %3477 = vst [vmem:[#allocation2 + $0x8] sm:$0xff] %v3465_v18  ;;  %v9702_v18 = vld [vmem:[%s13507_s11 + $0x18] sm:$0xff]  }
 0x269   :  { %v8040_v21 = vld.sshfl [vmem:[#allocation2 + $0xa] sm:$0x3 pattern:$0x76325410]  ;;  %v3540_v22 = vld [vmem:[#allocation2 + $0x8] sm:$0x3] }
 0x26a   :  { %3566 = vrot.lane.b32.xlu1 %v8040_v21, %s10069_s8  ;;  %v8039_v56 = vld.sshfl [vmem:[#allocation2 + $0x8] sm:$0x3 pattern:$0x76325410]  ;;  %3541 = vst.msk [vmem:[#allocation3 + $0x10] sm:$0x3] %vm3478_vm0, %v3540_v22 }
 0x26b   :  { %v3555_v23 = vld [vmem:[#allocation2 + $0xa] sm:$0x3]  ;;  %3551 = vrot.lane.b32.xlu0 %v8039_v56, %s10069_s8  ;;  %v3570_v24 = vld [vmem:[#allocation2 + $0xc] sm:$0x3]  ;;  %v3585_v60 = vld [vmem:[#allocation2 + $0xe] sm:$0x3] }
 0x26c   :  { %3556 = vst.msk [vmem:[#allocation3 + $0x14] sm:$0x3] %vm3478_vm0, %v3555_v23  ;;  %3571 = vst.msk [vmem:[#allocation3 + $0x18] sm:$0x3] %vm3478_vm0, %v3570_v24  ;;  %v10070_v21 = vmov 0.0   ;;  %v9703_v22 = vld [vmem:[%s13551_s4 + $0x10] sm:$0xff]  }
 0x26d   :  { %v8042_v26 = vld.sshfl [vmem:[#allocation2 + $0xe] sm:$0x3 pattern:$0x76325410]  ;;  %3586 = vst.msk [vmem:[#allocation3 + $0x1c] sm:$0x3] %vm3478_vm0, %v3585_v60  ;;  %8604 = vmatprep.subr.bf16.mxu1 %v10070_v21  ;;  %8644 = vmatprep.subr.bf16.mxu0 %v10070_v21 }
 0x26e   :  { %3596 = vrot.lane.b32.xlu1 %v8042_v26, %s10069_s8  ;;  %v8041_v28 = vld.sshfl [vmem:[#allocation2 + $0xc] sm:$0x3 pattern:$0x76325410]  ;;  %8605 = vmatpush3.bf16.msra.mxu1 %v9701_v14  ;;  %v9704_v56 = vld [vmem:[%s13507_s11 + $0x10] sm:$0xff]   ;;  %v9707_v60 = vld [vmem:[%s13551_s4] sm:$0xff]  }
 0x26f   :  { %3581 = vrot.lane.b32.xlu0 %v8041_v28, %s10069_s8  ;;  %8645 = vmatpush3.bf16.msra.mxu0 %v9702_v18  ;;  %v9705_v23 = vld [vmem:[%s13551_s4 + $0x8] sm:$0xff]   ;;  %v9708_v26 = vld [vmem:[%s13507_s11] sm:$0xff]  }
 0x270   :  { %8606 = vmatprep.subr.bf16.mxu1 %v10070_v21  ;;  %8646 = vmatprep.subr.bf16.mxu0 %v10070_v21  ;;  %v9706_v24 = vld [vmem:[%s13507_s11 + $0x8] sm:$0xff]  }
 0x271   :  { %8612 = vmatprep.mubr.msk.bf16.mxu1 %vm10071_vm2, %v10070_v21  ;;  %8652 = vmatprep.mubr.msk.bf16.mxu0 %vm10071_vm2, %v10070_v21 }
 0x272   :  { %8607 = vmatpush3.bf16.msra.mxu1 %v9703_v22 }
 0x273   :  { %8647 = vmatpush3.bf16.msra.mxu0 %v9704_v56  ;;  %8608 = vmatprep.subr.bf16.mxu1 %v10070_v21 }
 0x274   :  { %8648 = vmatprep.subr.bf16.mxu0 %v10070_v21 }
 0x275   :  { %v8329_v29 = vpop.f32.mrf.mxu0 }
 0x276   :  { %8609 = vmatpush3.bf16.msra.mxu1 %v9705_v23 }
 0x277   :  { %v8330_v30 = vpop.f32.mrf.mxu0  ;;  %v8351_v31 = vpop.f32.mrf.mxu1  ;;  %8649 = vmatpush3.bf16.msra.mxu0 %v9706_v24  ;;  %8610 = vmatprep.subr.bf16.mxu1 %v10070_v21 }
 0x278   :  { %v8331_v12 = vadd.f32 %v8330_v30, %v8329_v29  ;;  %8650 = vmatprep.subr.bf16.mxu0 %v10070_v21 }
 0x279   :  { %v8332_v16 = vpop.f32.mrf.mxu0  ;;  %v8352_v50 = vpop.f32.mrf.mxu1 }
 0x27a   :  { %v8353_v42 = vadd.f32 %v8352_v50, %v8351_v31  ;;  %8611 = vmatpush3.bf16.msra.mxu1 %v9707_v60 }
 0x27b   :  { %v8333_v17 = vpop.f32.mrf.mxu0  ;;  %v8354_v32 = vpop.f32.mrf.mxu1  ;;  %8651 = vmatpush3.bf16.msra.mxu0 %v9708_v26  ;;  %8624 = vmatprep.subr.bf16.mxu1 %v10070_v21 }
 0x27c   :  { %v3378_v45 = vadd.f32 %v8353_v42, %v8331_v12  ;;  %8682 = vmatprep.subr.bf16.mxu0 %v10070_v21 }
 0x27d   :  { %v8355_v33 = vpop.f32.mrf.mxu1 }
 0x28e   :  { %3630 = vadd.xlane.f32.xlu0 %v3629_v39 }
 0x292   :  { %3633 = vadd.xlane.f32.xlu1 %v3632_v41 }
 0x295   :  { %v8373_v44 = vpop.f32.mrf.mxu0 }
 0x297   :  { %v8374_v46 = vpop.f32.mrf.mxu0 }
 0x298   :  { %v8375_v47 = vadd.f32 %v8374_v46, %v8373_v44 }
 0x299   :  { %v8376_v48 = vpop.f32.mrf.mxu0 }
 0x29a   :  { %v3418_v62 = vadd.f32 %v8375_v47, %v3378_v45 }
 0x29b   :  { %v8377_v51 = vpop.f32.mrf.mxu0 }
 0x29c   :  { %v3472_v52 = vrot.slane %v3418_v62, %v10339_v49  ;;  %v8043_v51 = vld [vmem:[%s13552_s5] ss:$0 sm:$0xff] }
 0x29e   :  { %3479 = vst.msk [vmem:[#allocation2 + $0x10] sm:$0x3] %vm3478_vm0, %v3472_v52 }
 0x2a5   :  { %v3600_v3 = vld [vmem:[#allocation2 + $0x10] sm:$0x3] }
 0x2a6   :  { %3601 = vst.msk [vmem:[#allocation3 + $0x20] sm:$0x3] %vm3478_vm0, %v3600_v3 }
 0x2ad   :  { %v3606_v53 = vld [vmem:[#allocation3 + $0x20] sm:$0x3] }
 0x2ae   :  { %v11626_v54 = vadd.f32 %v3611_v19, %v3606_v53  ;;  %v8044_v53 = vld [vmem:[%s13553_s2] ss:$0 sm:$0xff] }
 0x2b0   :  { %v3641_v55 = vsel %vm3478_vm0, %v11626_v54, 0.0 }
 0x2b1   :  { %3642 = vadd.xlane.f32.xlu1 %v3641_v55 }
 0x2dc   :  { %v3567_v57 = vpop.permute.xlu1 %3566 }
 0x2dd   :  { %3569 = vst.msk [vmem:[#allocation3 + $0x16] sm:$0x3] %vm3478_vm0, %v3567_v57  ;;  %v3552_v49 = vpop.permute.xlu0 %3551 }
 0x2de   :  { %3554 = vst.msk [vmem:[#allocation3 + $0x12] sm:$0x3] %vm3478_vm0, %v3552_v49 }
 0x2e0   :  { %v3597_v58 = vpop.permute.xlu1 %3596 }
 0x2e1   :  { %3599 = vst.msk [vmem:[#allocation3 + $0x1e] sm:$0x3] %vm3478_vm0, %v3597_v58  ;;  %v3582_v59 = vpop.permute.xlu0 %3581  ;;  %v9709_v58 = vld [vmem:[%s13554_s30 + $0x18] sm:$0xff]  }
 0x2e2   :  { %3584 = vst.msk [vmem:[#allocation3 + $0x1a] sm:$0x3] %vm3478_vm0, %v3582_v59 }
 0x2e5   :  { %v3604_v15 = vld [vmem:[#allocation3 + $0x10] sm:$0xff] }
 0x2e6   :  { %v11637_v20 = vadd.f32 %v3609_v27, %v3604_v15  ;;  %v9710_v27 = vld [vmem:[%s13554_s30 + $0x10] sm:$0xff]   ;;  %v9711_v15 = vld [vmem:[%s13554_s30 + $0x8] sm:$0xff]  }
 0x2e8   :  { %v3635_v61 = vsel %vm3628_vm1, %v11637_v20, 0.0 }
 0x2e9   :  { %3636 = vadd.xlane.f32.xlu0 %v3635_v61  ;;  %v3605_v63 = vld [vmem:[#allocation3 + $0x18] sm:$0xff] }
 0x2ea   :  { %v11644_v0 = vadd.f32 %v3610_v25, %v3605_v63  ;;  %v9712_v25 = vld [vmem:[%s13554_s30] sm:$0xff]  }
 0x2ec   :  { %v3638_v1 = vsel %vm3628_vm1, %v11644_v0, 0.0 }
 0x2ed   :  { %3639 = vadd.xlane.f32.xlu0 %v3638_v1 }
 0x317   :  { %v3631_v2 = vpop.xlane.xlu0 %3630 }
 0x318   :  { %v3645_v4 = vmul.f32 0.015625, %v3631_v2 }
 0x31a   :  { %v11649_v5 = vsub.f32 %v11609_v36, %v3645_v4 }
 0x31b   :  { %v3634_v6 = vpop.xlane.xlu1 %3633 }
 0x31c   :  { %v3646_v7 = vmul.f32 0.015625, %v3634_v6  ;;  %v3655_v8 = vmul.f32 %v11649_v5, %v11649_v5 }
 0x31e   :  { %v11654_v9 = vsub.f32 %v11616_v40, %v3646_v7  ;;  %v3660_v10 = vsel %vm3628_vm1, %v3655_v8, 0.0 }
 0x31f   :  { %3661 = vadd.xlane.f32.xlu0 %v3660_v10 }
 0x320   :  { %v3656_v11 = vmul.f32 %v11654_v9, %v11654_v9 }
 0x322   :  { %v3663_v13 = vsel %vm3628_vm1, %v3656_v11, 0.0 }
 0x323   :  { %3664 = vadd.xlane.f32.xlu1 %v3663_v13 }
 0x33a   :  { %v3643_v28 = vpop.xlane.xlu1 %3642 }
 0x33b   :  { %v3649_v29 = vmul.f32 0.015625, %v3643_v28 }
 0x33d   :  { %v11699_v16 = vsub.f32 %v11626_v54, %v3649_v29 }
 0x33f   :  { %v3659_v37 = vmul.f32 %v11699_v16, %v11699_v16 }
 0x341   :  { %v3672_v39 = vsel %vm3478_vm0, %v3659_v37, 0.0  ;;  %v11784_v37 = vld [vmem:[%s13556_s26 + $0x2] ss:$0 sm:$0xff] }
 0x372   :  { %v3637_v30 = vpop.xlane.xlu0 %3636 }
 0x373   :  { %v3647_v31 = vmul.f32 0.015625, %v3637_v30  ;;  %v11763_v30 = vld [vmem:[%s13508_s12] ss:$0 sm:$0xff] }
 0x375   :  { %v3652_v50 = vsub.f32 %v11637_v20, %v3647_v31 }
 0x376   :  { %v3640_v17 = vpop.xlane.xlu0 %3639 }
 0x377   :  { %v3648_v32 = vmul.f32 0.015625, %v3640_v17  ;;  %v3657_v33 = vmul.f32 %v3652_v50, %v3652_v50 }
 0x379   :  { %v3653_v34 = vsub.f32 %v11644_v0, %v3648_v32  ;;  %v3666_v35 = vsel %vm3628_vm1, %v3657_v33, 0.0 }
 0x37a   :  { %3667 = vadd.xlane.f32.xlu0 %v3666_v35  ;;  %v11779_v35 = vld [vmem:[%s13556_s26 + $0x1] ss:$0 sm:$0xff] }
 0x37b   :  { %v3658_v38 = vmul.f32 %v3653_v34, %v3653_v34 }
 0x37d   :  { %v3669_v41 = vsel %vm3628_vm1, %v3658_v38, 0.0 }
 0x37e   :  { %3673 = vadd.xlane.f32.xlu0 %v3672_v39  ;;  %3670 = vadd.xlane.f32.xlu1 %v3669_v41 }
 0x3a8   :  { %v3662_v12 = vpop.xlane.xlu0 %3661 }
 0x3a9   :  { %v3675_v42 = vmul.f32 0.015625, %v3662_v12  ;;  %v11790_v12 = vld [vmem:[%s13556_s26 + $0x3] ss:$0 sm:$0xff] }
 0x3ab   :  { %v3680_v44 = vadd.f32 1e-06, %v3675_v42 }
 0x3ac   :  { %v3665_v45 = vpop.xlane.xlu1 %3664 }
 0x3ad   :  { %9793 = vrsqrt.f32 %v3680_v44  ;;  %v3676_v46 = vmul.f32 0.015625, %v3665_v45 }
 0x3af   :  { %v3681_v47 = vadd.f32 1e-06, %v3676_v46 }
 0x3b1   :  { %9795 = vrsqrt.f32 %v3681_v47 }
 0x3ba   :  { %v9794_v48 = vpop.eup %9793 }
 0x3bb   :  { %v3690_v62 = vmul.f32 %v9794_v48, %v11649_v5 }
 0x3bd   :  { %v3701_v19 = vmul.f32 %v8043_v51, %v3690_v62 }
 0x3be   :  { %v9796_v52 = vpop.eup %9795 }
 0x3bf   :  { %v3691_v3 = vmul.f32 %v9796_v52, %v11654_v9  ;;  %v3712_v57 = vadd.f32 %v8044_v53, %v3701_v19 }
 0x3c1   :  { %v3702_v55 = vmul.f32 %v8043_v51, %v3691_v3 }
 0x3c3   :  { %v3713_v49 = vadd.f32 %v8044_v53, %v3702_v55 }
 0x3c5   :  { %v3725_v59 = vpack.c.bf16 %v3713_v49, %v3712_v57 }
 0x3c7   :  { %8613 = vmatmul.mubr.msk.bf16.vlgmr.msra.gmra.mxu1 %vm3628_vm1, %v3725_v59  ;;  %8653 = vmatmul.mubr.msk.bf16.vlgmr.msra.gmra.mxu0 %vm3628_vm1, %v3725_v59 }
 0x3c8   :  { %8625 = vmatpush3.bf16.msra.mxu1 %v9709_v58  ;;  %8616 = vmatprep.mubr.msk.bf16.mxu1 %vm10071_vm2, %v10070_v21 }
 0x3c9   :  { %8626 = vmatprep.subr.bf16.mxu1 %v10070_v21  ;;  %8656 = vmatprep.mubr.msk.bf16.mxu0 %vm10071_vm2, %v10070_v21 }
 0x3cc   :  { %8627 = vmatpush3.bf16.msra.mxu1 %v9710_v27 }
 0x3cd   :  { %8628 = vmatprep.subr.bf16.mxu1 %v10070_v21 }
 0x3d0   :  { %8629 = vmatpush3.bf16.msra.mxu1 %v9711_v15 }
 0x3d1   :  { %8630 = vmatprep.subr.bf16.mxu1 %v10070_v21 }
 0x3d4   :  { %8631 = vmatpush3.bf16.msra.mxu1 %v9712_v25 }
 0x3d5   :  { %8664 = vmatprep.subr.bf16.mxu1 %v10070_v21 }
 0x403   :  { %v3668_v61 = vpop.xlane.xlu0 %3667 }
 0x404   :  { %v3677_v63 = vmul.f32 0.015625, %v3668_v61 }
 0x406   :  { %v3682_v1 = vadd.f32 1e-06, %v3677_v63 }
 0x407   :  { %v3671_v2 = vpop.xlane.xlu1 %3670  ;;  %v3674_v4 = vpop.xlane.xlu0 %3673 }
 0x408   :  { %9797 = vrsqrt.f32 %v3682_v1  ;;  %v3678_v5 = vmul.f32 0.015625, %v3671_v2  ;;  %v3679_v6 = vmul.f32 0.015625, %v3674_v4 }
 0x40a   :  { %v3683_v7 = vadd.f32 1e-06, %v3678_v5  ;;  %v3684_v8 = vadd.f32 1e-06, %v3679_v6 }
 0x40c   :  { %9799 = vrsqrt.f32 %v3683_v7 }
 0x40d   :  { %9801 = vrsqrt.f32 %v3684_v8 }
 0x415   :  { %v9798_v9 = vpop.eup %9797 }
 0x416   :  { %v3692_v10 = vmul.f32 %v9798_v9, %v3652_v50  ;;  %v11768_v50 = vld [vmem:[%s13555_s28] ss:$0 sm:$0xff] }
 0x418   :  { %v3703_v18 = vmul.f32 %v8043_v51, %v3692_v10 }
 0x419   :  { %v9800_v11 = vpop.eup %9799 }
 0x41a   :  { %v9802_v13 = vpop.eup %9801  ;;  %v3693_v14 = vmul.f32 %v9800_v11, %v3653_v34  ;;  %v3714_v23 = vadd.f32 %v8044_v53, %v3703_v18  ;;  %v11774_v34 = vld [vmem:[%s13556_s26] ss:$0 sm:$0xff] }
 0x41b   :  { %v3694_v56 = vmul.f32 %v9802_v13, %v11699_v16 }
 0x41c   :  { %v3704_v22 = vmul.f32 %v8043_v51, %v3693_v14 }
 0x41d   :  { %v3705_v26 = vmul.f32 %v8043_v51, %v3694_v56 }
 0x41e   :  { %v3715_v24 = vadd.f32 %v8044_v53, %v3704_v22 }
 0x41f   :  { %v3716_v28 = vadd.f32 %v8044_v53, %v3705_v26 }
 0x420   :  { %v3726_v60 = vpack.c.bf16 %v3715_v24, %v3714_v23 }
 0x421   :  { %v3727_v29 = vpack.c.bf16 %v3716_v28, %v3716_v28  ;;  %v8053_v28 = vld [vmem:[%s13506_s10] ss:$0 sm:$0xff] }
 0x422   :  { %8617 = vmatmul.mubr.msk.bf16.gmra.mxu1 %vm3628_vm1, %v3726_v60  ;;  %8657 = vmatmul.mubr.msk.bf16.gmra.mxu0 %vm3628_vm1, %v3726_v60 }
 0x423   :  { %8620 = vmatprep.mubr.msk.bf16.mxu1 %vm10071_vm2, %v10070_v21  ;;  %8660 = vmatprep.mubr.msk.bf16.mxu0 %vm10071_vm2, %v10070_v21 }
 0x42a   :  { %8621 = vmatmul.mubr.msk.bf16.gmra.mxu1 %vm3628_vm1, %v3727_v29  ;;  %8661 = vmatmul.mubr.msk.bf16.gmra.mxu0 %vm3628_vm1, %v3727_v29 }
 0x42b   :  { %8632 = vmatprep.mubr.msk.bf16.mxu1 %vm10071_vm2, %v10070_v21  ;;  %8688 = vmatprep.mubr.msk.bf16.mxu0 %vm10071_vm2, %v10070_v21 }
 0x432   :  { %8633 = vmatmul.mubr.msk.bf16.vlgmr.msra.gmra.mxu1 %vm3628_vm1, %v3725_v59 }
 0x433   :  { %8636 = vmatprep.mubr.msk.bf16.mxu1 %vm10071_vm2, %v10070_v21 }
 0x43a   :  { %8637 = vmatmul.mubr.msk.bf16.gmra.mxu1 %vm3628_vm1, %v3726_v60 }
 0x43b   :  { %8640 = vmatprep.mubr.msk.bf16.mxu1 %vm10071_vm2, %v10070_v21 }
 0x442   :  { %8641 = vmatmul.mubr.msk.bf16.gmra.mxu1 %vm3628_vm1, %v3727_v29 }
 0x443   :  { %8670 = vmatprep.mubr.msk.bf16.mxu1 %vm10071_vm2, %v10070_v21 }
 0x487   :  { %v3802_v31 = vpop.f32.mrf.mxu1  ;;  %v3992_v16 = vpop.f32.mrf.mxu0 }
 0x488   :  { %v3993_v17 = vadd.f32 %v11763_v30, %v3992_v16  ;;  %v3803_v41 = vadd.f32 %v11768_v50, %v3802_v31 }
 0x489   :  { %v8614_v32 = vpop.f32.mrf.mxu1  ;;  %v8654_v33 = vpop.f32.mrf.mxu0 }
 0x48a   :  { %v11795_v45 = vmul.f32 %v11774_v34, %v3993_v17  ;;  %v11798_v46 = vmul.f32 %v11779_v35, %v3993_v17  ;;  %v11801_v47 = vmul.f32 %v11784_v37, %v3993_v17  ;;  %v11815_v53 = vmul.f32 %v11790_v12, %v3993_v17 }
 0x48b   :  { %v3805_v38 = vpop.f32.mrf.mxu1  ;;  %v3995_v39 = vpop.f32.mrf.mxu0 }
 0x48c   :  { %v3806_v42 = vadd.f32 %v11768_v50, %v3805_v38  ;;  %v3996_v44 = vadd.f32 %v11763_v30, %v3995_v39 }
 0x48d   :  { %v8615_v48 = vpop.f32.mrf.mxu1  ;;  %v8655_v62 = vpop.f32.mrf.mxu0 }
 0x48e   :  { %v11803_v51 = vpack.c.bf16 %v3806_v42, %v3803_v41  ;;  %v11806_v52 = vmul.f32 %v11774_v34, %v3996_v44  ;;  %v11809_v3 = vmul.f32 %v11779_v35, %v3996_v44  ;;  %v11812_v19 = vmul.f32 %v11784_v37, %v3996_v44 }
 0x48f   :  { %v11818_v55 = vmul.f32 %v11790_v12, %v3996_v44 }
 0x490   :  { %v4034_v57 = vpack.c.bf16 %v11806_v52, %v11795_v45  ;;  %v4198_v49 = vpack.c.bf16 %v11809_v3, %v11798_v46  ;;  %v12003_v3 = vld [vmem:[%s13557_s27 + $0x8] sm:$0xff] }
 0x4e2   :  { %v11828_v27 = vpop.f32.mrf.mxu1  ;;  %v4000_v15 = vpop.f32.mrf.mxu0 }
 0x4e3   :  { %v11831_v63 = vadd.f32 %v11763_v30, %v4000_v15 }
 0x4e4   :  { %v8618_v25 = vpop.f32.mrf.mxu1  ;;  %v8658_v61 = vpop.f32.mrf.mxu0 }
 0x4e5   :  { %v11844_v8 = vmul.f32 %v11784_v37, %v11831_v63  ;;  %v11848_v9 = vmul.f32 %v11790_v12, %v11831_v63 }
 0x4e6   :  { %v11833_v1 = vpop.f32.mrf.mxu1  ;;  %v4003_v2 = vpop.f32.mrf.mxu0 }
 0x4e7   :  { %v11836_v4 = vadd.f32 %v11763_v30, %v4003_v2 }
 0x4e8   :  { %v8619_v5 = vpop.f32.mrf.mxu1  ;;  %v8659_v6 = vpop.f32.mrf.mxu0 }
 0x4e9   :  { %v11840_v7 = vmul.f32 %v11784_v37, %v11836_v4  ;;  %v11852_v10 = vmul.f32 %v11790_v12, %v11836_v4  ;;  %v4196_v52 = vmul.f32 %v11779_v35, %v11836_v4 }
 0x4ea   :  { %v11854_v11 = vpop.f32.mrf.mxu1  ;;  %v11856_v13 = vpop.f32.mrf.mxu0 }
 0x4ec   :  { %v8622_v14 = vpop.f32.mrf.mxu1  ;;  %v8662_v18 = vpop.f32.mrf.mxu0 }
 0x4ee   :  { %v3821_v23 = vpop.f32.mrf.mxu1  ;;  %v4011_v24 = vpop.f32.mrf.mxu0 }
 0x4f0   :  { %v8623_v60 = vpop.f32.mrf.mxu1  ;;  %v8663_v26 = vpop.f32.mrf.mxu0 }
 0x4f2   :  { %v3897_v29 = vpop.f32.mrf.mxu1 }
 0x4f3   :  { %v3898_v16 = vadd.f32 %v8053_v28, %v3897_v29 }
 0x4f4   :  { %v8634_v31 = vpop.f32.mrf.mxu1 }
 0x4f5   :  { %v11866_v38 = vmul.f32 %v11784_v37, %v3898_v16  ;;  %v11875_v44 = vmul.f32 %v11790_v12, %v3898_v16 }
 0x4f6   :  { %v3900_v17 = vpop.f32.mrf.mxu1 }
 0x4f7   :  { %v3901_v32 = vadd.f32 %v8053_v28, %v3900_v17 }
 0x4f8   :  { %v8635_v33 = vpop.f32.mrf.mxu1 }
 0x4f9   :  { %v11869_v39 = vmul.f32 %v11784_v37, %v3901_v32  ;;  %v11872_v41 = vmul.f32 %v11790_v12, %v3901_v32 }
 0x4fa   :  { %v3905_v42 = vpop.f32.mrf.mxu1 }
 0x4fb   :  { %v4480_v48 = vpack.c.bf16 %v11869_v39, %v11866_v38  ;;  %v4706_v15 = vpack.c.bf16 %v11872_v41, %v11875_v44  ;;  %v3906_v25 = vadd.f32 %v8053_v28, %v3905_v42 }
 0x4fc   :  { %v8638_v62 = vpop.f32.mrf.mxu1 }
 0x4fd   :  { %v11882_v6 = vmul.f32 %v11784_v37, %v3906_v25  ;;  %v11891_v24 = vmul.f32 %v11790_v12, %v3906_v25  ;;  %v4023_v56 = vmul.f32 %v11774_v34, %v3906_v25  ;;  %v4718_v39 = vsel %vm3628_vm1, %v4706_v15, 0 }
 0x4fe   :  { %v3908_v61 = vpop.f32.mrf.mxu1 }
 0x4ff   :  { %v3909_v2 = vadd.f32 %v8053_v28, %v3908_v61 }
 0x500   :  { %v8639_v5 = vpop.f32.mrf.mxu1 }
 0x501   :  { %v11885_v14 = vmul.f32 %v11784_v37, %v3909_v2  ;;  %v11888_v18 = vmul.f32 %v11790_v12, %v3909_v2  ;;  %v4024_v59 = vmul.f32 %v11774_v34, %v3909_v2 }
 0x502   :  { %v3913_v23 = vpop.f32.mrf.mxu1 }
 0x503   :  { %v11893_v60 = vadd.f32 %v8053_v28, %v3913_v23  ;;  %v4481_v26 = vpack.c.bf16 %v11885_v14, %v11882_v6  ;;  %v4707_v31 = vpack.c.bf16 %v11888_v18, %v11891_v24 }
 0x504   :  { %v8642_v29 = vpop.f32.mrf.mxu1 }
 0x505   :  { %v4025_v17 = vmul.f32 %v11774_v34, %v11893_v60  ;;  %v4189_v33 = vmul.f32 %v11779_v35, %v11893_v60  ;;  %v4188_v29 = vmul.f32 %v11779_v35, %v3909_v2  ;;  %v4186_v2 = vmul.f32 %v11779_v35, %v3901_v32 }
 0x506   :  { %v3916_v42 = vpop.f32.mrf.mxu1  ;;  %v4705_v6 = vmul.f32 %v11790_v12, %v11893_v60  ;;  %v4721_v12 = vsel %vm3628_vm1, %v4707_v31, 0 }
 0x507   :  { %v4028_v62 = vpack.c.bf16 %v4025_v17, %v4025_v17  ;;  %v4192_v61 = vpack.c.bf16 %v4189_v33, %v4189_v33  ;;  %v4187_v17 = vmul.f32 %v11779_v35, %v3906_v25  ;;  %v4027_v33 = vpack.c.bf16 %v4024_v59, %v4023_v56 }
 0x508   :  { %v8643_v5 = vpop.f32.mrf.mxu1  ;;  %v4185_v25 = vmul.f32 %v11779_v35, %v3898_v16  ;;  %v11921_v59 = vadd.f32 %v11763_v30, %v11856_v13  ;;  %v4032_v30 = vmul.f32 %v11774_v34, %v11836_v4  ;;  %v4708_v14 = vpack.c.bf16 %v4705_v6, %v4705_v6 }
 0x509   :  { %v4053_v28 = vsel %vm3628_vm1, %v4028_v62, 0  ;;  %v4208_v23 = vsel %vm3628_vm1, %v4192_v61, 0  ;;  %v4191_v42 = vpack.c.bf16 %v4188_v29, %v4187_v17  ;;  %v4050_v62 = vsel %vm3628_vm1, %v4027_v33, 0 }
 0x50a   :  { %8665 = vmatpush3.bf16.xpose.msra.mxu1 %v4053_v28  ;;  %8683 = vmatpush3.bf16.xpose.msra.mxu0 %v4208_v23  ;;  %v4022_v5 = vmul.f32 %v11774_v34, %v3901_v32  ;;  %v4021_v28 = vmul.f32 %v11774_v34, %v3898_v16  ;;  %v4190_v29 = vpack.c.bf16 %v4186_v2, %v4185_v25  ;;  %v4724_v38 = vsel %vm3628_vm1, %v4708_v14, 0 }
 0x50b   :  { %8666 = vmatprep.subr.bf16.mxu1 %v10070_v21  ;;  %8684 = vmatprep.subr.bf16.mxu0 %v10070_v21  ;;  %v4205_v61 = vsel %vm3628_vm1, %v4191_v42, 0  ;;  %v4033_v33 = vmul.f32 %v11774_v34, %v11921_v59  ;;  %v4031_v42 = vmul.f32 %v11774_v34, %v11831_v63  ;;  %v3811_v2 = vadd.f32 %v11768_v50, %v11828_v27 }
 0x50c   :  { %v4026_v56 = vpack.c.bf16 %v4022_v5, %v4021_v28  ;;  %v4202_v32 = vsel %vm3628_vm1, %v4190_v29, 0  ;;  %v4197_v45 = vmul.f32 %v11779_v35, %v11921_v59 }
 0x50d   :  { %v4036_v16 = vpack.c.bf16 %v4033_v33, %v4033_v33  ;;  %v4035_v5 = vpack.c.bf16 %v4032_v30, %v4031_v42  ;;  %v12012_v42 = vld [vmem:[%s13557_s27 + $0x10] sm:$0xff] }
 0x50e   :  { %v4047_v17 = vsel %vm3628_vm1, %v4026_v56, 0 }
 0x50f   :  { %v4413_v13 = vsel %vm4343_vm3, %v4036_v16, 0 }
 0x512   :  { %8667 = vmatpush3.bf16.xpose.msra.mxu1 %v4050_v62  ;;  %8685 = vmatpush3.bf16.xpose.msra.mxu0 %v4205_v61  ;;  %v3814_v62 = vadd.f32 %v11768_v50, %v11833_v1  ;;  %v3819_v1 = vadd.f32 %v11768_v50, %v11854_v11  ;;  %v4200_v50 = vpack.c.bf16 %v4197_v45, %v4197_v45 }
 0x513   :  { %8668 = vmatprep.subr.bf16.mxu1 %v10070_v21  ;;  %8686 = vmatprep.subr.bf16.mxu0 %v10070_v21  ;;  %v4195_v11 = vmul.f32 %v11779_v35, %v11831_v63  ;;  %v11995_v35 = vld [vmem:[%s13557_s27] sm:$0xff] }
 0x514   :  { %v11948_v34 = vpack.c.bf16 %v3814_v62, %v3811_v2  ;;  %v11966_v27 = vpack.c.bf16 %v3819_v1, %v3819_v1 }
 0x51a   :  { %8669 = vmatpush3.bf16.xpose.msra.mxu1 %v4047_v17  ;;  %8687 = vmatpush3.bf16.xpose.msra.mxu0 %v4202_v32 }
 0x51b   :  { %9064 = vmatprep.subr.bf16.mxu1 %v10070_v21  ;;  %8718 = vmatprep.subr.bf16.mxu0 %v10070_v21 }
 0x521   :  { %8671 = vmatmul.mubr.msk.bf16.vlgmr.msra.gmra.mxu1 %vm3628_vm1, %v11803_v51  ;;  %8689 = vmatmul.mubr.msk.bf16.vlgmr.msra.gmra.mxu0 %vm3628_vm1, %v11803_v51 }
 0x522   :  { %9067 = vmatpush3.bf16.xpose.msra.mxu1 %v4208_v23  ;;  %8719 = vmatpush3.bf16.msra.mxu0 %v4413_v13  ;;  %v4199_v23 = vpack.c.bf16 %v4196_v52, %v4195_v11 }
 0x523   :  { %8720 = vmatprep.subr.bf16.mxu0 %v10070_v21  ;;  %8674 = vmatprep.mubr.msk.bf16.mxu1 %vm10071_vm2, %v10070_v21 }
 0x524   :  { %8692 = vmatprep.mubr.msk.bf16.mxu0 %vm10071_vm2, %v10070_v21  ;;  %9065 = vmatprep.subr.bf16.mxu1 %v10070_v21 }
 0x526   :  { %8721 = vmatpush3.bf16.msra.mxu0 %v4035_v5 }
 0x527   :  { %8722 = vmatprep.subr.bf16.mxu0 %v10070_v21 }
 0x529   :  { %8675 = vmatmul.mubr.msk.bf16.gmra.mxu1 %vm3628_vm1, %v11948_v34  ;;  %8693 = vmatmul.mubr.msk.bf16.gmra.mxu0 %vm3628_vm1, %v11948_v34 }
 0x52a   :  { %9068 = vmatpush3.bf16.xpose.msra.mxu1 %v4205_v61  ;;  %8723 = vmatpush3.bf16.msra.mxu0 %v4034_v57  ;;  %v4345_v57 = vsel %vm4343_vm3, %v4200_v50, 0 }
 0x52b   :  { %8678 = vmatprep.mubr.msk.bf16.mxu1 %vm10071_vm2, %v10070_v21  ;;  %9066 = vmatprep.subr.bf16.mxu1 %v10070_v21 }
 0x52c   :  { %8724 = vmatprep.mubr.msk.bf16.mxu0 %vm10071_vm2, %v10070_v21  ;;  %8754 = vmatprep.subr.bf16.mxu0 %v10070_v21 }
 0x531   :  { %8679 = vmatmul.mubr.msk.bf16.gmra.mxu1 %vm3628_vm1, %v11966_v27 }
 0x532   :  { %9069 = vmatpush3.bf16.xpose.msra.mxu1 %v4202_v32  ;;  %8696 = vmatprep.mubr.msk.bf16.mxu1 %vm10071_vm2, %v10070_v21 }
 0x533   :  { %8700 = vmatprep.subr.bf16.mxu1 %v10070_v21 }
 0x539   :  { %8697 = vmatmul.mubr.msk.bf16.vlgmr.msra.gmra.mxu1 %vm3628_vm1, %v11966_v27 }
 0x53a   :  { %8701 = vmatpush3.bf16.msra.mxu1 %v4345_v57  ;;  %8706 = vmatprep.mubr.msk.bf16.mxu1 %vm10071_vm2, %v10070_v21  ;;  %v12021_v57 = vld [vmem:[%s13557_s27 + $0x18] sm:$0xff] }
 0x53b   :  { %8702 = vmatprep.subr.bf16.mxu1 %v10070_v21 }
 0x53e   :  { %8703 = vmatpush3.bf16.msra.mxu1 %v4199_v23 }
 0x53f   :  { %8704 = vmatprep.subr.bf16.mxu1 %v10070_v21 }
 0x542   :  { %8705 = vmatpush3.bf16.msra.mxu1 %v4198_v49 }
 0x543   :  { %8736 = vmatprep.subr.bf16.mxu1 %v10070_v21 }
 0x5e1   :  { %v11990_v4 = vpop.f32.mrf.mxu1  ;;  %v4244_v61 = vpop.f32.mrf.mxu0 }
 0x5e2   :  { %v4266_v63 = vmul.f32 0.25, %v4244_v61 }
 0x5e3   :  { %v8672_v28 = vpop.f32.mrf.mxu1  ;;  %v8690_v25 = vpop.f32.mrf.mxu0 }
 0x5e4   :  { %v4271_v56 = vadd.f32 %v4266_v63, %v11995_v35 }
 0x5e5   :  { %v11998_v29 = vpop.f32.mrf.mxu1  ;;  %v4247_v46 = vpop.f32.mrf.mxu0 }
 0x5e6   :  { %v4267_v49 = vmul.f32 0.25, %v4247_v46  ;;  %v4276_v17 = vsel %vm4121_vm4, %v4271_v56, -inf }
 0x5e7   :  { %4277 = vmax.xlane.f32.xlu1 %v4276_v17  ;;  %v8673_v32 = vpop.f32.mrf.mxu1  ;;  %v8691_v33 = vpop.f32.mrf.mxu0 }
 0x5e8   :  { %v4272_v16 = vadd.f32 %v4267_v49, %v12003_v3 }
 0x5e9   :  { %v12007_v30 = vpop.f32.mrf.mxu1  ;;  %v4252_v13 = vpop.f32.mrf.mxu0 }
 0x5ea   :  { %v4268_v62 = vmul.f32 0.25, %v4252_v13  ;;  %v4279_v5 = vsel %vm4121_vm4, %v4272_v16, -inf }
 0x5eb   :  { %4280 = vmax.xlane.f32.xlu0 %v4279_v5  ;;  %v8676_v2 = vpop.f32.mrf.mxu1  ;;  %v8694_v1 = vpop.f32.mrf.mxu0  ;;  %v12029_v5 = vld [vmem:[%s13557_s27 + $0x20] sm:$0x3] }
 0x5ec   :  { %v4273_v45 = vadd.f32 %v4268_v62, %v12012_v42 }
 0x5ed   :  { %v12016_v50 = vpop.f32.mrf.mxu1  ;;  %v4255_v52 = vpop.f32.mrf.mxu0 }
 0x5ee   :  { %v4269_v11 = vmul.f32 0.25, %v4255_v52  ;;  %v4282_v23 = vsel %vm4121_vm4, %v4273_v45, -inf }
 0x5ef   :  { %4283 = vmax.xlane.f32.xlu1 %v4282_v23  ;;  %v8677_v61 = vpop.f32.mrf.mxu1  ;;  %v8695_v63 = vpop.f32.mrf.mxu0 }
 0x5f0   :  { %v4274_v28 = vadd.f32 %v4269_v11, %v12021_v57 }
 0x5f1   :  { %v4105_v25 = vpop.f32.mrf.mxu1 }
 0x5f2   :  { %v4285_v46 = vsel %vm4121_vm4, %v4274_v28, -inf }
 0x5f3   :  { %4286 = vmax.xlane.f32.xlu0 %v4285_v46  ;;  %v8680_v49 = vpop.f32.mrf.mxu1 }
 0x5f5   :  { %v4108_v17 = vpop.f32.mrf.mxu1 }
 0x5f7   :  { %v8681_v32 = vpop.f32.mrf.mxu1 }
 0x5f9   :  { %v4260_v33 = vpop.f32.mrf.mxu1 }
 0x5fa   :  { %v4270_v13 = vmul.f32 0.25, %v4260_v33 }
 0x5fb   :  { %v8698_v62 = vpop.f32.mrf.mxu1 }
 0x5fc   :  { %v4275_v2 = vadd.f32 %v4270_v13, %v12029_v5 }
 0x5fd   :  { %v4263_v1 = vpop.f32.mrf.mxu1 }
 0x5fe   :  { %v4288_v52 = vsel %vm4134_vm5, %v4275_v2, -inf }
 0x5ff   :  { %4289 = vmax.xlane.f32.xlu1 %v4288_v52  ;;  %v8699_v11 = vpop.f32.mrf.mxu1 }
 0x670   :  { %v4278_v23 = vpop.xlane.xlu1 %4277 }
 0x671   :  { %v4291_v61 = vsub.f32 %v4271_v56, %v4278_v23 }
 0x673   :  { %v4296_v63 = vmul.f32 1.442695, %v4291_v61 }
 0x674   :  { %v4281_v46 = vpop.xlane.xlu0 %4280 }
 0x675   :  { %9803 = vpow2.f32 %v4296_v63  ;;  %v4292_v49 = vsub.f32 %v4272_v16, %v4281_v46  ;;  %v4111_v63 = vmul.f32 0.25, %v11990_v4 }
 0x677   :  { %v4298_v17 = vmul.f32 1.442695, %v4292_v49 }
 0x678   :  { %v4284_v32 = vpop.xlane.xlu1 %4283 }
 0x679   :  { %9805 = vpow2.f32 %v4298_v17  ;;  %v4293_v33 = vsub.f32 %v4273_v45, %v4284_v32  ;;  %v12040_v17 = vadd.f32 %v4111_v63, %v11995_v35  ;;  %v4115_v32 = vmul.f32 0.25, %v4105_v25 }
 0x67b   :  { %v4300_v62 = vmul.f32 1.442695, %v4293_v33  ;;  %v4112_v33 = vmul.f32 0.25, %v11998_v29 }
 0x67c   :  { %v4287_v58 = vpop.xlane.xlu0 %4286 }
 0x67d   :  { %9807 = vpow2.f32 %v4300_v62  ;;  %v4294_v13 = vsub.f32 %v4274_v28, %v4287_v58  ;;  %v4113_v28 = vmul.f32 0.25, %v12007_v30  ;;  %v12051_v30 = vadd.f32 %v4115_v32, %v12029_v5 }
 0x67f   :  { %v4302_v1 = vmul.f32 1.442695, %v4294_v13  ;;  %v12045_v4 = vadd.f32 %v4113_v28, %v12012_v42  ;;  %v4135_v25 = vsel %vm4134_vm5, %v12051_v30, -inf  ;;  %v4479_v28 = vmul.f32 %v11784_v37, %v11893_v60 }
 0x681   :  { %9809 = vpow2.f32 %v4302_v1  ;;  %v4128_v62 = vsel %vm4121_vm4, %v12045_v4, -inf  ;;  %v4114_v1 = vmul.f32 0.25, %v12016_v50 }
 0x682   :  { %v9804_v22 = vpop.eup %9803 }
 0x683   :  { %v4306_v52 = vsel %vm4121_vm4, %v9804_v22, 0.0 }
 0x684   :  { %4307 = vadd.xlane.f32.xlu0 %v4306_v52 }
 0x686   :  { %v9806_v11 = vpop.eup %9805 }
 0x687   :  { %v4309_v56 = vsel %vm4121_vm4, %v9806_v11, 0.0 }
 0x688   :  { %4310 = vadd.xlane.f32.xlu1 %v4309_v56  ;;  %v4290_v23 = vpop.xlane.xlu1 %4289  ;;  %v12058_v56 = vadd.f32 %v4112_v33, %v12003_v3 }
 0x689   :  { %v4295_v16 = vsub.f32 %v4275_v2, %v4290_v23  ;;  %v4122_v2 = vsel %vm4121_vm4, %v12040_v17, -inf  ;;  %v12063_v23 = vadd.f32 %v4114_v1, %v12021_v57 }
 0x68a   :  { %v9808_v61 = vpop.eup %9807  ;;  %v4125_v29 = vsel %vm4121_vm4, %v12058_v56, -inf }
 0x68b   :  { %v4304_v45 = vmul.f32 1.442695, %v4295_v16  ;;  %v4312_v46 = vsel %vm4121_vm4, %v9808_v61, 0.0  ;;  %v4131_v50 = vsel %vm4121_vm4, %v12063_v23, -inf }
 0x68c   :  { %4313 = vadd.xlane.f32.xlu0 %v4312_v46 }
 0x68d   :  { %9811 = vpow2.f32 %v4304_v45 }
 0x68e   :  { %v9810_v58 = vpop.eup %9809 }
 0x68f   :  { %v4315_v49 = vsel %vm4121_vm4, %v9810_v58, 0.0 }
 0x690   :  { %4316 = vadd.xlane.f32.xlu1 %v4315_v49 }
 0x694   :  { %4123 = vmax.xlane.f32.xlu1 %v4122_v2 }
 0x698   :  { %4129 = vmax.xlane.f32.xlu1 %v4128_v62  ;;  %v4482_v62 = vpack.c.bf16 %v4479_v28, %v4479_v28 }
 0x69a   :  { %v9812_v13 = vpop.eup %9811 }
 0x69b   :  { %v4318_v52 = vsel %vm4134_vm5, %v9812_v13, 0.0 }
 0x69c   :  { %4136 = vmax.xlane.f32.xlu1 %v4135_v25  ;;  %4319 = vadd.xlane.f32.xlu0 %v4318_v52  ;;  %v4498_v25 = vsel %vm3628_vm1, %v4482_v62, 0 }
 0x6a0   :  { %4126 = vmax.xlane.f32.xlu0 %v4125_v29 }
 0x6a4   :  { %4132 = vmax.xlane.f32.xlu0 %v4131_v50 }
 0x70d   :  { %v4308_v16 = vpop.xlane.xlu0 %4307 }
 0x70e   :  { %9813 = vrcp.f32 %v4308_v16 }
 0x711   :  { %v4311_v63 = vpop.xlane.xlu1 %4310 }
 0x712   :  { %9815 = vrcp.f32 %v4311_v63 }
 0x715   :  { %v4314_v45 = vpop.xlane.xlu0 %4313 }
 0x716   :  { %9817 = vrcp.f32 %v4314_v45 }
 0x719   :  { %v4317_v46 = vpop.xlane.xlu1 %4316 }
 0x71a   :  { %9819 = vrcp.f32 %v4317_v46 }
 0x71b   :  { %v9814_v49 = vpop.eup %9813 }
 0x71c   :  { %v4326_v2 = vmul.f32 %v9814_v49, %v9804_v22 }
 0x71f   :  { %v9816_v32 = vpop.eup %9815 }
 0x720   :  { %v4327_v33 = vmul.f32 %v9816_v32, %v9806_v11  ;;  %v4495_v11 = vsel %vm3628_vm1, %v4481_v26, 0 }
 0x722   :  { %v4331_v1 = vpack.c.bf16 %v4327_v33, %v4326_v2 }
 0x723   :  { %v9818_v52 = vpop.eup %9817 }
 0x724   :  { %8707 = vmatmul.mubr.msk.bf16.vlgmr.msra.gmra.mxu1 %vm4121_vm4, %v4331_v1  ;;  %v4328_v37 = vmul.f32 %v9818_v52, %v9808_v61  ;;  %v4492_v61 = vsel %vm3628_vm1, %v4480_v48, 0 }
 0x725   :  { %8737 = vmatpush3.bf16.xpose.msra.mxu1 %v4498_v25  ;;  %v4320_v29 = vpop.xlane.xlu0 %4319  ;;  %8710 = vmatprep.mubr.msk.bf16.mxu1 %vm10071_vm2, %v10070_v21 }
 0x726   :  { %8738 = vmatprep.subr.bf16.mxu1 %v10070_v21  ;;  %9821 = vrcp.f32 %v4320_v29 }
 0x727   :  { %v9820_v50 = vpop.eup %9819 }
 0x728   :  { %v4329_v16 = vmul.f32 %v9820_v50, %v9810_v58 }
 0x72a   :  { %v4332_v22 = vpack.c.bf16 %v4329_v16, %v4328_v37 }
 0x72c   :  { %8711 = vmatmul.mubr.msk.bf16.gmra.mxu1 %vm4121_vm4, %v4332_v22  ;;  %v4124_v22 = vpop.xlane.xlu1 %4123 }
 0x72d   :  { %8739 = vmatpush3.bf16.xpose.msra.mxu1 %v4495_v11  ;;  %8714 = vmatprep.mubr.msk.bf16.mxu1 %vm10071_vm2, %v10070_v21 }
 0x72e   :  { %8740 = vmatprep.subr.bf16.mxu1 %v10070_v21 }
 0x733   :  { %v9822_v63 = vpop.eup %9821 }
 0x734   :  { %v4330_v58 = vmul.f32 %v9822_v63, %v9812_v13 }
 0x735   :  { %8741 = vmatpush3.bf16.xpose.msra.mxu1 %v4492_v61 }
 0x736   :  { %8772 = vmatprep.subr.bf16.mxu1 %v10070_v21  ;;  %v4333_v45 = vpack.c.bf16 %v4330_v58, %v4330_v58 }
 0x738   :  { %8715 = vmatmul.mubr.msk.bf16.gmra.mxu1 %vm4121_vm4, %v4333_v45 }
 0x739   :  { %8742 = vmatprep.mubr.msk.bf16.mxu1 %vm10071_vm2, %v10070_v21 }
 0x740   :  { %8743 = vmatmul.mubr.msk.bf16.vlgmr.msra.gmra.mxu1 %vm3628_vm1, %v11803_v51 }
 0x741   :  { %8773 = vmatpush3.bf16.xpose.msra.mxu1 %v4724_v38  ;;  %8746 = vmatprep.mubr.msk.bf16.mxu1 %vm10071_vm2, %v10070_v21 }
 0x742   :  { %8774 = vmatprep.subr.bf16.mxu1 %v10070_v21 }
 0x748   :  { %8747 = vmatmul.mubr.msk.bf16.gmra.mxu1 %vm3628_vm1, %v11948_v34 }
 0x749   :  { %8775 = vmatpush3.bf16.xpose.msra.mxu1 %v4721_v12  ;;  %8750 = vmatprep.mubr.msk.bf16.mxu1 %vm10071_vm2, %v10070_v21  ;;  %v4130_v12 = vpop.xlane.xlu1 %4129 }
 0x74a   :  { %8776 = vmatprep.subr.bf16.mxu1 %v10070_v21 }
 0x750   :  { %8751 = vmatmul.mubr.msk.bf16.gmra.mxu1 %vm3628_vm1, %v11966_v27 }
 0x751   :  { %8777 = vmatpush3.bf16.xpose.msra.mxu1 %v4718_v39  ;;  %8778 = vmatprep.mubr.msk.bf16.mxu1 %vm10071_vm2, %v10070_v21 }
 0x752   :  { %8808 = vmatprep.subr.bf16.mxu1 %v10070_v21 }
 0x758   :  { %8779 = vmatmul.mubr.msk.bf16.vlgmr.msra.gmra.mxu1 %vm3628_vm1, %v11803_v51 }
 0x759   :  { %8782 = vmatprep.mubr.msk.bf16.mxu1 %vm10071_vm2, %v10070_v21 }
 0x760   :  { %8783 = vmatmul.mubr.msk.bf16.gmra.mxu1 %vm3628_vm1, %v11948_v34 }
 0x761   :  { %8786 = vmatprep.mubr.msk.bf16.mxu1 %vm10071_vm2, %v10070_v21 }
 0x768   :  { %8787 = vmatmul.mubr.msk.bf16.gmra.mxu1 %vm3628_vm1, %v11966_v27 }
 0x769   :  { %8816 = vmatprep.mubr.msk.bf16.mxu1 %vm10071_vm2, %v10070_v21 }
 0x7e4   :  { %v12128_v41 = vpop.f32.mrf.mxu1 }
 0x7e6   :  { %v8708_v44 = vpop.f32.mrf.mxu1 }
 0x7e7   :  { %v4138_v44 = vsub.f32 %v12040_v17, %v4124_v22 }
 0x7e8   :  { %v12130_v48 = vpop.f32.mrf.mxu1 }
 0x7ea   :  { %v8709_v51 = vpop.f32.mrf.mxu1 }
 0x7eb   :  { %v4127_v51 = vpop.xlane.xlu0 %4126 }
 0x7ec   :  { %v12132_v15 = vpop.f32.mrf.mxu1 }
 0x7ee   :  { %v8712_v18 = vpop.f32.mrf.mxu1 }
 0x7f0   :  { %v12134_v24 = vpop.f32.mrf.mxu1 }
 0x7f2   :  { %v8713_v60 = vpop.f32.mrf.mxu1 }
 0x7f8   :  { %v12136_v26 = vpop.f32.mrf.mxu1 }
 0x7fa   :  { %v8716_v31 = vpop.f32.mrf.mxu1 }
 0x7fc   :  { %v4400_v34 = vpop.f32.mrf.mxu1 }
 0x7fd   :  { %v4143_v34 = vmul.f32 1.442695, %v4138_v44 }
 0x7fe   :  { %v8717_v27 = vpop.f32.mrf.mxu1 }
 0x7ff   :  { %v4140_v27 = vsub.f32 %v12045_v4, %v4130_v12  ;;  %9823 = vpow2.f32 %v4143_v34 }
 0x800   :  { %v4534_v13 = vpop.f32.mrf.mxu1 }
 0x801   :  { %v4556_v46 = vmul.f32 0.25, %v4534_v13  ;;  %v4147_v17 = vmul.f32 1.442695, %v4140_v27 }
 0x802   :  { %v8744_v28 = vpop.f32.mrf.mxu1 }
 0x803   :  { %v12139_v49 = vadd.f32 %v4556_v46, %v11995_v35  ;;  %v4137_v46 = vpop.xlane.xlu1 %4136  ;;  %v4139_v28 = vsub.f32 %v12058_v56, %v4127_v51  ;;  %9825 = vpow2.f32 %v4147_v17 }
 0x804   :  { %v4537_v32 = vpop.f32.mrf.mxu1 }
 0x805   :  { %v4557_v2 = vmul.f32 0.25, %v4537_v32  ;;  %v4566_v33 = vsel %vm4121_vm4, %v12139_v49, -inf }
 0x806   :  { %4567 = vmax.xlane.f32.xlu0 %v4566_v33  ;;  %v8745_v62 = vpop.f32.mrf.mxu1 }
 0x807   :  { %v12144_v1 = vadd.f32 %v4557_v2, %v12003_v3  ;;  %v4133_v2 = vpop.xlane.xlu0 %4132 }
 0x808   :  { %v4542_v25 = vpop.f32.mrf.mxu1 }
 0x809   :  { %v4558_v52 = vmul.f32 0.25, %v4542_v25  ;;  %v4569_v29 = vsel %vm4121_vm4, %v12144_v1, -inf  ;;  %v4142_v25 = vsub.f32 %v12051_v30, %v4137_v46 }
 0x80a   :  { %4570 = vmax.xlane.f32.xlu1 %v4569_v29  ;;  %v8748_v50 = vpop.f32.mrf.mxu1  ;;  %v4145_v29 = vmul.f32 1.442695, %v4139_v28 }
 0x80b   :  { %v12149_v37 = vadd.f32 %v4558_v52, %v12012_v42  ;;  %v4141_v50 = vsub.f32 %v12063_v23, %v4133_v2 }
 0x80c   :  { %v4545_v16 = vpop.f32.mrf.mxu1  ;;  %9827 = vpow2.f32 %v4145_v29  ;;  %v12186_v51 = vpop.eup %9823 }
 0x80d   :  { %v4559_v11 = vmul.f32 0.25, %v4545_v16  ;;  %v4572_v63 = vsel %vm4121_vm4, %v12149_v37, -inf }
 0x80e   :  { %4573 = vmax.xlane.f32.xlu0 %v4572_v63  ;;  %v8749_v61 = vpop.f32.mrf.mxu1  ;;  %v4149_v63 = vmul.f32 1.442695, %v4141_v50 }
 0x80f   :  { %v12154_v58 = vadd.f32 %v4559_v11, %v12021_v57 }
 0x810   :  { %v4550_v45 = vpop.f32.mrf.mxu1  ;;  %v12193_v27 = vpop.eup %9825 }
 0x811   :  { %v4560_v6 = vmul.f32 0.25, %v4550_v45  ;;  %v4575_v14 = vsel %vm4121_vm4, %v12154_v58, -inf }
 0x812   :  { %4576 = vmax.xlane.f32.xlu1 %v4575_v14  ;;  %v8752_v38 = vpop.f32.mrf.mxu1 }
 0x813   :  { %v12159_v39 = vadd.f32 %v4560_v6, %v12029_v5 }
 0x814   :  { %v4553_v18 = vpop.f32.mrf.mxu1 }
 0x815   :  { %v4578_v60 = vsel %vm4134_vm5, %v12159_v39, -inf }
 0x816   :  { %4579 = vmax.xlane.f32.xlu0 %v4578_v60  ;;  %v8753_v31 = vpop.f32.mrf.mxu1 }
 0x818   :  { %v4760_v13 = vpop.f32.mrf.mxu1 }
 0x819   :  { %v4782_v32 = vmul.f32 0.25, %v4760_v13  ;;  %v4153_v13 = vsel %vm4121_vm4, %v12186_v51, 0.0  ;;  %v12199_v46 = vpop.eup %9827 }
 0x81a   :  { %v8780_v33 = vpop.f32.mrf.mxu1  ;;  %v4156_v2 = vsel %vm4121_vm4, %v12199_v46, 0.0 }
 0x81b   :  { %v12167_v62 = vadd.f32 %v4782_v32, %v11995_v35  ;;  %v4151_v35 = vmul.f32 1.442695, %v4142_v25 }
 0x81c   :  { %v4763_v52 = vpop.f32.mrf.mxu1 }
 0x81d   :  { %v4783_v16 = vmul.f32 0.25, %v4763_v52  ;;  %v4792_v4 = vsel %vm4121_vm4, %v12167_v62, -inf  ;;  %9829 = vpow2.f32 %v4151_v35 }
 0x81e   :  { %4793 = vmax.xlane.f32.xlu1 %v4792_v4  ;;  %v8781_v56 = vpop.f32.mrf.mxu1  ;;  %9831 = vpow2.f32 %v4149_v63 }
 0x81f   :  { %v12174_v22 = vadd.f32 %v4783_v16, %v12003_v3 }
 0x820   :  { %v4768_v11 = vpop.f32.mrf.mxu1 }
 0x821   :  { %v4784_v61 = vmul.f32 0.25, %v4768_v11  ;;  %v4795_v30 = vsel %vm4121_vm4, %v12174_v22, -inf }
 0x822   :  { %4796 = vmax.xlane.f32.xlu0 %v4795_v30  ;;  %v8784_v23 = vpop.f32.mrf.mxu1 }
 0x823   :  { %v12179_v45 = vadd.f32 %v4784_v61, %v12012_v42 }
 0x824   :  { %v4771_v6 = vpop.f32.mrf.mxu1 }
 0x825   :  { %v4785_v14 = vmul.f32 0.25, %v4771_v6  ;;  %v4798_v3 = vsel %vm4121_vm4, %v12179_v45, -inf }
 0x826   :  { %4799 = vmax.xlane.f32.xlu1 %v4798_v3  ;;  %v8785_v38 = vpop.f32.mrf.mxu1 }
 0x827   :  { %v12184_v12 = vadd.f32 %v4785_v14, %v12021_v57 }
 0x828   :  { %v4776_v44 = vpop.f32.mrf.mxu1 }
 0x829   :  { %v4786_v18 = vmul.f32 0.25, %v4776_v44  ;;  %v4801_v42 = vsel %vm4121_vm4, %v12184_v12, -inf }
 0x82a   :  { %4802 = vmax.xlane.f32.xlu0 %v4801_v42  ;;  %v8788_v60 = vpop.f32.mrf.mxu1  ;;  %v12201_v32 = vpop.eup %9829 }
 0x82b   :  { %v12191_v31 = vadd.f32 %v4786_v18, %v12029_v5  ;;  %v4159_v5 = vsel %vm4121_vm4, %v12193_v27, 0.0  ;;  %v12207_v33 = vpop.eup %9831  ;;  %v4165_v17 = vsel %vm4134_vm5, %v12201_v32, 0.0 }
 0x82c   :  { %v4779_v34 = vpop.f32.mrf.mxu1  ;;  %v4162_v25 = vsel %vm4121_vm4, %v12207_v33, 0.0 }
 0x82d   :  { %v4804_v57 = vsel %vm4134_vm5, %v12191_v31, -inf }
 0x82e   :  { %4154 = vadd.xlane.f32.xlu0 %v4153_v13  ;;  %4805 = vmax.xlane.f32.xlu1 %v4804_v57  ;;  %v8789_v28 = vpop.f32.mrf.mxu1 }
 0x832   :  { %4160 = vadd.xlane.f32.xlu0 %v4159_v5  ;;  %4157 = vadd.xlane.f32.xlu1 %v4156_v2 }
 0x836   :  { %4166 = vadd.xlane.f32.xlu0 %v4165_v17  ;;  %4163 = vadd.xlane.f32.xlu1 %v4162_v25 }
 0x88f   :  { %v4568_v52 = vpop.xlane.xlu0 %4567 }
 0x890   :  { %v4581_v29 = vsub.f32 %v12139_v49, %v4568_v52 }
 0x892   :  { %v4586_v50 = vmul.f32 1.442695, %v4581_v29 }
 0x893   :  { %v4571_v16 = vpop.xlane.xlu1 %4570 }
 0x894   :  { %9833 = vpow2.f32 %v4586_v50  ;;  %v4582_v4 = vsub.f32 %v12144_v1, %v4571_v16 }
 0x896   :  { %v4588_v56 = vmul.f32 1.442695, %v4582_v4 }
 0x897   :  { %v4574_v35 = vpop.xlane.xlu0 %4573 }
 0x898   :  { %9835 = vpow2.f32 %v4588_v56  ;;  %v4583_v11 = vsub.f32 %v12149_v37, %v4574_v35 }
 0x89a   :  { %v4590_v63 = vmul.f32 1.442695, %v4583_v11 }
 0x89b   :  { %v4577_v61 = vpop.xlane.xlu1 %4576 }
 0x89c   :  { %9837 = vpow2.f32 %v4590_v63  ;;  %v4584_v30 = vsub.f32 %v12154_v58, %v4577_v61 }
 0x89e   :  { %v4592_v23 = vmul.f32 1.442695, %v4584_v30 }
 0x89f   :  { %v4580_v6 = vpop.xlane.xlu0 %4579 }
 0x8a0   :  { %9839 = vpow2.f32 %v4592_v23  ;;  %v4585_v49 = vsub.f32 %v12159_v39, %v4580_v6 }
 0x8a1   :  { %v12218_v14 = vpop.eup %9833 }
 0x8a2   :  { %v4594_v3 = vmul.f32 1.442695, %v4585_v49  ;;  %v4596_v1 = vsel %vm4121_vm4, %v12218_v14, 0.0 }
 0x8a3   :  { %4597 = vadd.xlane.f32.xlu1 %v4596_v1 }
 0x8a4   :  { %9841 = vpow2.f32 %v4594_v3 }
 0x8a5   :  { %v12222_v38 = vpop.eup %9835 }
 0x8a6   :  { %v4599_v37 = vsel %vm4121_vm4, %v12222_v38, 0.0 }
 0x8a7   :  { %v4794_v44 = vpop.xlane.xlu1 %4793  ;;  %4600 = vadd.xlane.f32.xlu0 %v4599_v37  ;;  %v10035_v37 = vld [vmem:[%s13556_s26 + $0x2] ss:$0 sm:$0xff] }
 0x8a8   :  { %v4807_v58 = vsub.f32 %v12167_v62, %v4794_v44  ;;  %v4487_v44 = vmul.f32 %v10035_v37, %v11921_v59 }
 0x8a9   :  { %v12227_v18 = vpop.eup %9837 }
 0x8aa   :  { %v4812_v39 = vmul.f32 1.442695, %v4807_v58  ;;  %v4602_v42 = vsel %vm4121_vm4, %v12227_v18, 0.0 }
 0x8ab   :  { %v4797_v60 = vpop.xlane.xlu0 %4796  ;;  %4603 = vadd.xlane.f32.xlu1 %v4602_v42 }
 0x8ac   :  { %9843 = vpow2.f32 %v4812_v39  ;;  %v4808_v34 = vsub.f32 %v12174_v22, %v4797_v60 }
 0x8ad   :  { %v12232_v13 = vpop.eup %9839 }
 0x8ae   :  { %v4814_v57 = vmul.f32 1.442695, %v4808_v34  ;;  %v4605_v28 = vsel %vm4121_vm4, %v12232_v13, 0.0 }
 0x8af   :  { %v4800_v5 = vpop.xlane.xlu1 %4799  ;;  %4606 = vadd.xlane.f32.xlu0 %v4605_v28 }
 0x8b0   :  { %9845 = vpow2.f32 %v4814_v57  ;;  %v4809_v62 = vsub.f32 %v12179_v45, %v4800_v5  ;;  %v4490_v57 = vpack.c.bf16 %v4487_v44, %v4487_v44 }
 0x8b1   :  { %v12237_v2 = vpop.eup %9841 }
 0x8b2   :  { %v4816_v17 = vmul.f32 1.442695, %v4809_v62  ;;  %v4608_v25 = vsel %vm4134_vm5, %v12237_v2, 0.0  ;;  %v4634_v62 = vsel %vm4343_vm3, %v4490_v57, 0 }
 0x8b3   :  { %v4803_v52 = vpop.xlane.xlu0 %4802  ;;  %4609 = vadd.xlane.f32.xlu1 %v4608_v25 }
 0x8b4   :  { %9847 = vpow2.f32 %v4816_v17  ;;  %v4810_v22 = vsub.f32 %v12184_v12, %v4803_v52 }
 0x8b6   :  { %v4818_v29 = vmul.f32 1.442695, %v4810_v22 }
 0x8b7   :  { %v4806_v50 = vpop.xlane.xlu1 %4805  ;;  %v4155_v16 = vpop.xlane.xlu0 %4154 }
 0x8b8   :  { %9849 = vpow2.f32 %v4818_v29  ;;  %v4811_v4 = vsub.f32 %v12191_v31, %v4806_v50  ;;  %v13559_v29 = vpack.c.bf16 %v11812_v19, %v11801_v47  ;;  %v10036_v19 = vld [vmem:[%s13556_s26 + $0x3] ss:$0 sm:$0xff] }
 0x8b9   :  { %v12243_v56 = vpop.eup %9843  ;;  %9851 = vrcp.f32 %v4155_v16 }
 0x8ba   :  { %v4820_v45 = vmul.f32 1.442695, %v4811_v4  ;;  %v4822_v35 = vsel %vm4121_vm4, %v12243_v56, 0.0 }
 0x8bb   :  { %4823 = vadd.xlane.f32.xlu0 %v4822_v35  ;;  %v4158_v11 = vpop.xlane.xlu1 %4157  ;;  %v4161_v31 = vpop.xlane.xlu0 %4160 }
 0x8bc   :  { %9853 = vpow2.f32 %v4820_v45 }
 0x8bd   :  { %v12247_v63 = vpop.eup %9845  ;;  %9855 = vrcp.f32 %v4158_v11 }
 0x8be   :  { %v4825_v12 = vsel %vm4121_vm4, %v12247_v63, 0.0 }
 0x8bf   :  { %4826 = vadd.xlane.f32.xlu1 %v4825_v12  ;;  %v4164_v61 = vpop.xlane.xlu1 %4163  ;;  %v4167_v3 = vpop.xlane.xlu0 %4166 }
 0x8c0   :  { %9857 = vrcp.f32 %v4164_v61 }
 0x8c1   :  { %v12251_v30 = vpop.eup %9847  ;;  %9859 = vrcp.f32 %v4161_v31 }
 0x8c2   :  { %v4828_v23 = vsel %vm4121_vm4, %v12251_v30, 0.0  ;;  %9861 = vrcp.f32 %v4167_v3  ;;  %v13560_v3 = vpack.c.bf16 %v11852_v10, %v11848_v9 }
 0x8c3   :  { %4829 = vadd.xlane.f32.xlu0 %v4828_v23 }
 0x8c5   :  { %v12255_v6 = vpop.eup %9849 }
 0x8c6   :  { %v4831_v49 = vsel %vm4121_vm4, %v12255_v6, 0.0  ;;  %v9852_v1 = vpop.eup %9851 }
 0x8c7   :  { %4832 = vadd.xlane.f32.xlu1 %v4831_v49  ;;  %v4173_v60 = vmul.f32 %v9852_v1, %v12186_v51 }
 0x8c9   :  { %v12263_v58 = vpop.eup %9853 }
 0x8ca   :  { %v4834_v39 = vsel %vm4134_vm5, %v12263_v58, 0.0  ;;  %v9856_v42 = vpop.eup %9855 }
 0x8cb   :  { %4835 = vadd.xlane.f32.xlu0 %v4834_v39  ;;  %v4174_v34 = vmul.f32 %v9856_v42, %v12199_v46  ;;  %v13558_v46 = vpack.c.bf16 %v11840_v7, %v11844_v8  ;;  %v13561_v39 = vpack.c.bf16 %v11818_v55, %v11815_v53 }
 0x8cd   :  { %v4178_v28 = vpack.c.bf16 %v4174_v34, %v4173_v60  ;;  %v9858_v5 = vpop.eup %9857 }
 0x8ce   :  { %v9860_v17 = vpop.eup %9859  ;;  %v4176_v25 = vmul.f32 %v9858_v5, %v12207_v33 }
 0x8cf   :  { %8725 = vmatmul.mubr.msk.bf16.vlgmr.msra.gmra.mxu0 %vm4121_vm4, %v4178_v28  ;;  %v4175_v51 = vmul.f32 %v9860_v17, %v12193_v27  ;;  %v9862_v22 = vpop.eup %9861 }
 0x8d0   :  { %8755 = vmatpush3.bf16.msra.mxu0 %v4634_v62  ;;  %8728 = vmatprep.mubr.msk.bf16.mxu0 %vm10071_vm2, %v10070_v21  ;;  %v4177_v33 = vmul.f32 %v9862_v22, %v12201_v32  ;;  %v4713_v32 = vmul.f32 %v10036_v19, %v11921_v59 }
 0x8d1   :  { %8756 = vmatprep.subr.bf16.mxu0 %v10070_v21  ;;  %v4179_v52 = vpack.c.bf16 %v4176_v25, %v4175_v51  ;;  %v9713_v51 = vld [vmem:[%s13509_s13 + $0x18] sm:$0xff]  }
 0x8d2   :  { %v4180_v27 = vpack.c.bf16 %v4177_v33, %v4177_v33  ;;  %v4716_v12 = vpack.c.bf16 %v4713_v32, %v4713_v32  ;;  %8809 = vmatpush3.bf16.msra.mxu1 %v9713_v51 }
 0x8d3   :  { %8810 = vmatprep.subr.bf16.mxu1 %v10070_v21 }
 0x8d4   :  { %8757 = vmatpush3.bf16.msra.mxu0 %v13558_v46  ;;  %v4860_v31 = vsel %vm4343_vm3, %v4716_v12, 0 }
 0x8d5   :  { %8758 = vmatprep.subr.bf16.mxu0 %v10070_v21 }
 0x8d7   :  { %8729 = vmatmul.mubr.msk.bf16.gmra.mxu0 %vm4121_vm4, %v4179_v52  ;;  %v9714_v52 = vld [vmem:[%s13509_s13 + $0x10] sm:$0xff]  }
 0x8d8   :  { %8759 = vmatpush3.bf16.msra.mxu0 %v13559_v29  ;;  %8732 = vmatprep.mubr.msk.bf16.mxu0 %vm10071_vm2, %v10070_v21  ;;  %v9715_v29 = vld [vmem:[%s13509_s13 + $0x8] sm:$0xff]  }
 0x8d9   :  { %8790 = vmatprep.subr.bf16.mxu0 %v10070_v21  ;;  %8811 = vmatpush3.bf16.msra.mxu1 %v9714_v52 }
 0x8da   :  { %8812 = vmatprep.subr.bf16.mxu1 %v10070_v21 }
 0x8dd   :  { %8813 = vmatpush3.bf16.msra.mxu1 %v9715_v29 }
 0x8de   :  { %8814 = vmatprep.subr.bf16.mxu1 %v10070_v21 }
 0x8df   :  { %8733 = vmatmul.mubr.msk.bf16.gmra.mxu0 %vm4121_vm4, %v4180_v27 }
 0x8e0   :  { %8760 = vmatprep.mubr.msk.bf16.mxu0 %vm10071_vm2, %v10070_v21 }
 0x92c   :  { %v4598_v7 = vpop.xlane.xlu1 %4597 }
 0x92d   :  { %9863 = vrcp.f32 %v4598_v7 }
 0x930   :  { %v4601_v8 = vpop.xlane.xlu0 %4600 }
 0x931   :  { %9865 = vrcp.f32 %v4601_v8 }
 0x934   :  { %v4604_v50 = vpop.xlane.xlu1 %4603 }
 0x935   :  { %9867 = vrcp.f32 %v4604_v50 }
 0x938   :  { %v4607_v47 = vpop.xlane.xlu0 %4606 }
 0x939   :  { %9869 = vrcp.f32 %v4607_v47  ;;  %v9716_v47 = vld [vmem:[%s13509_s13] sm:$0xff]  }
 0x93a   :  { %v9864_v16 = vpop.eup %9863  ;;  %8815 = vmatpush3.bf16.msra.mxu1 %v9716_v47 }
 0x93b   :  { %v4616_v35 = vmul.f32 %v9864_v16, %v12218_v14 }
 0x93c   :  { %v4610_v4 = vpop.xlane.xlu1 %4609 }
 0x93d   :  { %9871 = vrcp.f32 %v4610_v4 }
 0x93e   :  { %v9866_v45 = vpop.eup %9865 }
 0x93f   :  { %v4617_v11 = vmul.f32 %v9866_v45, %v12222_v38 }
 0x941   :  { %v4621_v61 = vpack.c.bf16 %v4617_v11, %v4616_v35 }
 0x942   :  { %v9868_v23 = vpop.eup %9867 }
 0x943   :  { %8761 = vmatmul.mubr.msk.bf16.vlgmr.msra.gmra.mxu0 %vm4121_vm4, %v4621_v61  ;;  %v4618_v14 = vmul.f32 %v9868_v23, %v12227_v18 }
 0x944   :  { %8791 = vmatpush3.bf16.msra.mxu0 %v4860_v31  ;;  %v4824_v49 = vpop.xlane.xlu0 %4823  ;;  %8764 = vmatprep.mubr.msk.bf16.mxu0 %vm10071_vm2, %v10070_v21 }
 0x945   :  { %8792 = vmatprep.subr.bf16.mxu0 %v10070_v21  ;;  %9873 = vrcp.f32 %v4824_v49 }
 0x946   :  { %v9870_v59 = vpop.eup %9869 }
 0x947   :  { %v4619_v38 = vmul.f32 %v9870_v59, %v12232_v13 }
 0x948   :  { %8793 = vmatpush3.bf16.msra.mxu0 %v13560_v3  ;;  %v4827_v1 = vpop.xlane.xlu1 %4826 }
 0x949   :  { %9875 = vrcp.f32 %v4827_v1  ;;  %8794 = vmatprep.subr.bf16.mxu0 %v10070_v21  ;;  %v4622_v37 = vpack.c.bf16 %v4619_v38, %v4618_v14 }
 0x94a   :  { %v9872_v44 = vpop.eup %9871 }
 0x94b   :  { %8765 = vmatmul.mubr.msk.bf16.gmra.mxu0 %vm4121_vm4, %v4622_v37  ;;  %v4620_v18 = vmul.f32 %v9872_v44, %v12237_v2 }
 0x94c   :  { %8795 = vmatpush3.bf16.msra.mxu0 %v13561_v39  ;;  %v4830_v42 = vpop.xlane.xlu0 %4829  ;;  %8768 = vmatprep.mubr.msk.bf16.mxu0 %vm10071_vm2, %v10070_v21 }
 0x94d   :  { %9877 = vrcp.f32 %v4830_v42  ;;  %v4623_v10 = vpack.c.bf16 %v4620_v18, %v4620_v18 }
 0x950   :  { %v4833_v9 = vpop.xlane.xlu1 %4832 }
 0x951   :  { %9879 = vrcp.f32 %v4833_v9 }
 0x952   :  { %v9874_v13 = vpop.eup %9873 }
 0x953   :  { %8769 = vmatmul.mubr.msk.bf16.gmra.mxu0 %vm4121_vm4, %v4623_v10  ;;  %v4842_v55 = vmul.f32 %v9874_v13, %v12243_v56 }
 0x954   :  { %v4836_v60 = vpop.xlane.xlu0 %4835  ;;  %8796 = vmatprep.mubr.msk.bf16.mxu0 %vm10071_vm2, %v10070_v21 }
 0x955   :  { %9881 = vrcp.f32 %v4836_v60 }
 0x956   :  { %v9876_v53 = vpop.eup %9875 }
 0x957   :  { %v4843_v34 = vmul.f32 %v9876_v53, %v12247_v63 }
 0x959   :  { %v4847_v57 = vpack.c.bf16 %v4843_v34, %v4842_v55 }
 0x95a   :  { %v9878_v2 = vpop.eup %9877 }
 0x95b   :  { %8797 = vmatmul.mubr.msk.bf16.vlgmr.msra.gmra.mxu0 %vm4121_vm4, %v4847_v57  ;;  %v4844_v5 = vmul.f32 %v9878_v2, %v12251_v30 }
 0x95c   :  { %8800 = vmatprep.mubr.msk.bf16.mxu0 %vm10071_vm2, %v10070_v21 }
 0x95e   :  { %v9880_v28 = vpop.eup %9879 }
 0x95f   :  { %v4845_v62 = vmul.f32 %v9880_v28, %v12255_v6 }
 0x961   :  { %v4848_v17 = vpack.c.bf16 %v4845_v62, %v4844_v5 }
 0x962   :  { %v9882_v25 = vpop.eup %9881 }
 0x963   :  { %8801 = vmatmul.mubr.msk.bf16.gmra.mxu0 %vm4121_vm4, %v4848_v17  ;;  %v4846_v56 = vmul.f32 %v9882_v25, %v12263_v58 }
 0x964   :  { %8804 = vmatprep.mubr.msk.bf16.mxu0 %vm10071_vm2, %v10070_v21 }
 0x965   :  { %v4849_v63 = vpack.c.bf16 %v4846_v56, %v4846_v56 }
 0x96b   :  { %8805 = vmatmul.mubr.msk.bf16.gmra.mxu0 %vm4121_vm4, %v4849_v63 }
 0x98f   :  { %v4449_v30 = vpop.f32.mrf.mxu0 }
 0x990   :  { %v4450_v3 = vadd.f32 %v4449_v30, %v12128_v41 }
 0x991   :  { %v8726_v6 = vpop.f32.mrf.mxu0 }
 0x993   :  { %v4452_v46 = vpop.f32.mrf.mxu0 }
 0x994   :  { %v4453_v1 = vadd.f32 %v4452_v46, %v12130_v48 }
 0x995   :  { %v8727_v22 = vpop.f32.mrf.mxu0 }
 0x997   :  { %v4457_v58 = vpop.f32.mrf.mxu0 }
 0x998   :  { %v4458_v53 = vadd.f32 %v4457_v58, %v12132_v15 }
 0x999   :  { %v8730_v33 = vpop.f32.mrf.mxu0 }
 0x99b   :  { %v4460_v27 = vpop.f32.mrf.mxu0 }
 0x99c   :  { %v4461_v55 = vadd.f32 %v4460_v27, %v12134_v24 }
 0x99d   :  { %v8731_v7 = vpop.f32.mrf.mxu0 }
 0x99f   :  { %v4465_v8 = vpop.f32.mrf.mxu0 }
 0x9a0   :  { %v4466_v62 = vadd.f32 %v4465_v8, %v12136_v26  ;;  %v8104_v26 = vld [vmem:[%s13510_s14] ss:$0 sm:$0xff] }
 0x9a1   :  { %v8734_v50 = vpop.f32.mrf.mxu0 }
 0x9a3   :  { %v4468_v19 = vpop.f32.mrf.mxu0 }
 0x9a5   :  { %v8735_v32 = vpop.f32.mrf.mxu0 }
 0xa03   :  { %v4670_v16 = vpop.f32.mrf.mxu0 }
 0xa04   :  { %v4692_v44 = vadd.f32 %v4670_v16, %v4450_v3 }
 0xa05   :  { %v8762_v4 = vpop.f32.mrf.mxu0 }
 0xa07   :  { %v4673_v45 = vpop.f32.mrf.mxu0 }
 0xa08   :  { %v4693_v39 = vadd.f32 %v4673_v45, %v4453_v1 }
 0xa09   :  { %v8763_v35 = vpop.f32.mrf.mxu0 }
 0xa0b   :  { %v4678_v11 = vpop.f32.mrf.mxu0 }
 0xa0c   :  { %v4694_v41 = vadd.f32 %v4678_v11, %v4458_v53 }
 0xa0d   :  { %v8766_v12 = vpop.f32.mrf.mxu0 }
 0xa0f   :  { %v4681_v61 = vpop.f32.mrf.mxu0 }
 0xa10   :  { %v4695_v48 = vadd.f32 %v4681_v61, %v4461_v55 }
 0xa11   :  { %v8767_v31 = vpop.f32.mrf.mxu0 }
 0xa13   :  { %v4686_v23 = vpop.f32.mrf.mxu0 }
 0xa14   :  { %v4696_v56 = vadd.f32 %v4686_v23, %v4466_v62  ;;  %v9719_v62 = vld [vmem:[%s13513_s17 + $0x34] ss:$8 sps:$4 sm:$0xff]  }
 0xa15   :  { %v8770_v49 = vpop.f32.mrf.mxu0  ;;  %5209 = vmatprep.subr.bf16.mxu0 %v9719_v62  ;;  %v9737_v62 = vld [vmem:[%s13515_s19 + $0x58] sm:$0xff]  }
 0xa17   :  { %v4689_v59 = vpop.f32.mrf.mxu0 }
 0xa19   :  { %v8771_v14 = vpop.f32.mrf.mxu0 }
 0xa1b   :  { %v4896_v38 = vpop.f32.mrf.mxu0 }
 0xa1c   :  { %v4918_v18 = vadd.f32 %v4896_v38, %v4692_v44 }
 0xa1d   :  { %v8798_v37 = vpop.f32.mrf.mxu0 }
 0xa1f   :  { %v4899_v42 = vpop.f32.mrf.mxu0 }
 0xa20   :  { %v4919_v9 = vadd.f32 %v4899_v42, %v4693_v39 }
 0xa21   :  { %v8799_v10 = vpop.f32.mrf.mxu0 }
 0xa22   :  { %v4931_v13 = vpack.c.bf16 %v4919_v9, %v4918_v18 }
 0xa23   :  { %v4904_v60 = vpop.f32.mrf.mxu0 }
 0xa24   :  { %8817 = vmatmul.mubr.msk.bf16.vlgmr.msra.gmra.mxu1 %vm3628_vm1, %v4931_v13  ;;  %v4920_v2 = vadd.f32 %v4904_v60, %v4694_v41 }
 0xa25   :  { %v8802_v34 = vpop.f32.mrf.mxu0  ;;  %8820 = vmatprep.mubr.msk.bf16.mxu1 %vm10071_vm2, %v10070_v21 }
 0xa27   :  { %v4907_v57 = vpop.f32.mrf.mxu0 }
 0xa28   :  { %v4921_v28 = vadd.f32 %v4907_v57, %v4695_v48 }
 0xa29   :  { %v8803_v5 = vpop.f32.mrf.mxu0 }
 0xa2a   :  { %v4932_v17 = vpack.c.bf16 %v4921_v28, %v4920_v2 }
 0xa2b   :  { %v4912_v25 = vpop.f32.mrf.mxu0 }
 0xa2c   :  { %8821 = vmatmul.mubr.msk.bf16.gmra.mxu1 %vm3628_vm1, %v4932_v17  ;;  %v4922_v24 = vadd.f32 %v4912_v25, %v4696_v56  ;;  %v9717_v17 = vld [vmem:[%s13513_s17 + $0x30] ss:$8 sps:$4 sm:$0xff]   ;;  %v9722_v25 = vld [vmem:[%s13513_s17 + $0x24] ss:$8 sps:$4 sm:$0xff]   ;;  %v9720_v56 = vld [vmem:[%s13513_s17 + $0x20] ss:$8 sps:$4 sm:$0xff]  }
 0xa2d   :  { %v8806_v15 = vpop.f32.mrf.mxu0  ;;  %8824 = vmatprep.mubr.msk.bf16.mxu1 %vm10071_vm2, %v10070_v21  ;;  %5210 = vmatpush1.bf16.msra.mxu0 %v9717_v17  ;;  %v9738_v17 = vld [vmem:[%s13515_s19 + $0x18] sm:$0xff]  }
 0xa2e   :  { %v4933_v30 = vpack.c.bf16 %v4922_v24, %v4922_v24  ;;  %5211 = vmatprep.subr.bf16.mxu0 %v9722_v25  ;;  %v9725_v15 = vld [vmem:[%s13513_s17 + $0x14] ss:$8 sps:$4 sm:$0xff]   ;;  %v9723_v24 = vld [vmem:[%s13513_s17 + $0x10] ss:$8 sps:$4 sm:$0xff]  }
 0xa2f   :  { %v4915_v63 = vpop.f32.mrf.mxu0  ;;  %v9739_v25 = vld [vmem:[%s13515_s19 + $0x50] sm:$0xff]  }
 0xa30   :  { %v9728_v63 = vld [vmem:[%s13513_s17 + $0x4] ss:$8 sps:$4 sm:$0xff]  }
 0xa31   :  { %v8807_v51 = vpop.f32.mrf.mxu0  ;;  %5212 = vmatpush1.bf16.msra.mxu0 %v9720_v56  ;;  %v9740_v56 = vld [vmem:[%s13515_s19 + $0x10] sm:$0xff]  }
 0xa32   :  { %5213 = vmatprep.subr.bf16.mxu0 %v9725_v15  ;;  %v9726_v51 = vld [vmem:[%s13513_s17] ss:$8 sps:$4 sm:$0xff]  }
 0xa33   :  { %v9741_v15 = vld [vmem:[%s13515_s19 + $0x48] sm:$0xff]  }
 0xa34   :  { %8825 = vmatmul.mubr.msk.bf16.gmra.mxu1 %vm3628_vm1, %v4933_v30  ;;  %v13534_v30 = vmov 0  }
 0xa35   :  { %5214 = vmatpush1.bf16.msra.mxu0 %v9723_v24  ;;  %5233 = vmatprep.mubr.bf16.mxu0 %v13534_v30  ;;  %v9742_v24 = vld [vmem:[%s13515_s19 + $0x8] sm:$0xff]  }
 0xa36   :  { %5215 = vmatprep.subr.bf16.mxu0 %v9728_v63  ;;  %v9743_v63 = vld [vmem:[%s13515_s19 + $0x40] sm:$0xff]  }
 0xa39   :  { %5216 = vmatpush1.bf16.msra.mxu0 %v9726_v51  ;;  %v9744_v51 = vld [vmem:[%s13515_s19] sm:$0xff]  }
 0xa3a   :  { %8828 = vmatprep.subr.bf16.mxu0 %v10070_v21 }
 0xae4   :  { %v5001_v6 = vpop.f32.mrf.mxu1 }
 0xae5   :  { %v5023_v46 = vadd.f32 %v5001_v6, %v11609_v36 }
 0xae6   :  { %v8818_v52 = vpop.f32.mrf.mxu1 }
 0xae7   :  { %v12361_v22 = vadd.f32 %v8104_v26, %v5023_v46 }
 0xae8   :  { %v5004_v58 = vpop.f32.mrf.mxu1 }
 0xae9   :  { %v5024_v29 = vadd.f32 %v5004_v58, %v11616_v40  ;;  %v5042_v33 = vsel %vm3628_vm1, %v12361_v22, 0.0 }
 0xaea   :  { %5043 = vadd.xlane.f32.xlu1 %v5042_v33  ;;  %v8819_v27 = vpop.f32.mrf.mxu1 }
 0xaeb   :  { %v12366_v7 = vadd.f32 %v8104_v26, %v5024_v29 }
 0xaec   :  { %v5009_v8 = vpop.f32.mrf.mxu1 }
 0xaed   :  { %v5025_v50 = vadd.f32 %v5009_v8, %v11637_v20  ;;  %v5045_v47 = vsel %vm3628_vm1, %v12366_v7, 0.0 }
 0xaee   :  { %5046 = vadd.xlane.f32.xlu0 %v5045_v47  ;;  %v8822_v36 = vpop.f32.mrf.mxu1 }
 0xaef   :  { %v12371_v19 = vadd.f32 %v8104_v26, %v5025_v50 }
 0xaf0   :  { %v5012_v32 = vpop.f32.mrf.mxu1 }
 0xaf1   :  { %v5026_v40 = vadd.f32 %v5012_v32, %v11644_v0  ;;  %v5048_v16 = vsel %vm3628_vm1, %v12371_v19, 0.0 }
 0xaf2   :  { %5049 = vadd.xlane.f32.xlu1 %v5048_v16  ;;  %v8823_v4 = vpop.f32.mrf.mxu1 }
 0xaf3   :  { %v12376_v45 = vadd.f32 %v8104_v26, %v5026_v40 }
 0xaf4   :  { %v5017_v35 = vpop.f32.mrf.mxu1 }
 0xaf5   :  { %v5027_v20 = vadd.f32 %v5017_v35, %v11626_v54  ;;  %v5051_v11 = vsel %vm3628_vm1, %v12376_v45, 0.0 }
 0xaf6   :  { %5052 = vadd.xlane.f32.xlu0 %v5051_v11  ;;  %v8826_v12 = vpop.f32.mrf.mxu1 }
 0xaf7   :  { %v12381_v61 = vadd.f32 %v8104_v26, %v5027_v20  ;;  %v8105_v20 = vld [vmem:[%s13511_s15] ss:$0 sm:$0xff] }
 0xaf8   :  { %v5020_v31 = vpop.f32.mrf.mxu1 }
 0xaf9   :  { %v5054_v0 = vsel %vm3478_vm0, %v12381_v61, 0.0 }
 0xafa   :  { %5055 = vadd.xlane.f32.xlu1 %v5054_v0  ;;  %v8827_v23 = vpop.f32.mrf.mxu1  ;;  %v8106_v0 = vld [vmem:[%s13512_s16] ss:$0 sm:$0xff] }
 0xb73   :  { %v5044_v49 = vpop.xlane.xlu1 %5043 }
 0xb74   :  { %v5057_v59 = vmul.f32 0.015625, %v5044_v49 }
 0xb76   :  { %v12386_v14 = vsub.f32 %v12361_v22, %v5057_v59 }
 0xb77   :  { %v5047_v38 = vpop.xlane.xlu0 %5046 }
 0xb78   :  { %v5058_v54 = vmul.f32 0.015625, %v5047_v38  ;;  %v5067_v3 = vmul.f32 %v12386_v14, %v12386_v14 }
 0xb7a   :  { %v12391_v1 = vsub.f32 %v12366_v7, %v5058_v54  ;;  %v5072_v37 = vsel %vm3628_vm1, %v5067_v3, 0.0 }
 0xb7b   :  { %v5050_v44 = vpop.xlane.xlu1 %5049  ;;  %5073 = vadd.xlane.f32.xlu0 %v5072_v37 }
 0xb7c   :  { %v5059_v39 = vmul.f32 0.015625, %v5050_v44  ;;  %v5068_v42 = vmul.f32 %v12391_v1, %v12391_v1 }
 0xb7e   :  { %v12397_v18 = vsub.f32 %v12371_v19, %v5059_v39  ;;  %v5075_v9 = vsel %vm3628_vm1, %v5068_v42, 0.0 }
 0xb7f   :  { %v5053_v10 = vpop.xlane.xlu0 %5052  ;;  %5076 = vadd.xlane.f32.xlu1 %v5075_v9 }
 0xb80   :  { %v5060_v13 = vmul.f32 0.015625, %v5053_v10  ;;  %v5069_v60 = vmul.f32 %v12397_v18, %v12397_v18 }
 0xb82   :  { %v12403_v53 = vsub.f32 %v12376_v45, %v5060_v13  ;;  %v5078_v55 = vsel %vm3628_vm1, %v5069_v60, 0.0 }
 0xb83   :  { %5079 = vadd.xlane.f32.xlu0 %v5078_v55  ;;  %v5056_v34 = vpop.xlane.xlu1 %5055 }
 0xb84   :  { %v5061_v41 = vmul.f32 0.015625, %v5056_v34  ;;  %v5070_v48 = vmul.f32 %v12403_v53, %v12403_v53  ;;  %v9730_v34 = vld [vmem:[%s13515_s19 + $0x38] sm:$0xff]  }
 0xb86   :  { %v12409_v57 = vsub.f32 %v12381_v61, %v5061_v41  ;;  %v5081_v2 = vsel %vm3628_vm1, %v5070_v48, 0.0  ;;  %v9731_v41 = vld [vmem:[%s13515_s19 + $0x70] sm:$0xff]  }
 0xb87   :  { %5082 = vadd.xlane.f32.xlu1 %v5081_v2  ;;  %v9732_v48 = vld [vmem:[%s13515_s19 + $0x30] sm:$0xff]   ;;  %v9734_v2 = vld [vmem:[%s13515_s19 + $0x28] sm:$0xff]  }
 0xb88   :  { %v5071_v28 = vmul.f32 %v12409_v57, %v12409_v57 }
 0xb8a   :  { %v5084_v5 = vsel %vm3478_vm0, %v5071_v28, 0.0  ;;  %v9735_v28 = vld [vmem:[%s13515_s19 + $0x60] sm:$0xff]  }
 0xb8b   :  { %5085 = vadd.xlane.f32.xlu0 %v5084_v5  ;;  %v9736_v5 = vld [vmem:[%s13515_s19 + $0x20] sm:$0xff]  }
 0xc04   :  { %v5074_v6 = vpop.xlane.xlu0 %5073 }
 0xc05   :  { %v5087_v26 = vmul.f32 0.015625, %v5074_v6  ;;  %v13533_v6 = vsub.s32 0, %v10321_v43 }
 0xc07   :  { %v5092_v46 = vadd.f32 1e-06, %v5087_v26  ;;  %v5140_v26 = vld [vmem:[%s13514_s18] sm:$0x3] }
 0xc08   :  { %v5077_v52 = vpop.xlane.xlu1 %5076 }
 0xc09   :  { %9883 = vrsqrt.f32 %v5092_v46  ;;  %v5088_v58 = vmul.f32 0.015625, %v5077_v52  ;;  %v13532_v46 = vsub.s32 1, %v10321_v43  ;;  %v5145_v52 = vrot.slane %v5140_v26, %v13533_v6 }
 0xc0b   :  { %v5093_v29 = vadd.f32 1e-06, %v5088_v58  ;;  %v5149_v58 = vrot.slane %v5140_v26, %v13532_v46 }
 0xc0c   :  { %v5080_v33 = vpop.xlane.xlu0 %5079 }
 0xc0d   :  { %9885 = vrsqrt.f32 %v5093_v29  ;;  %v5089_v27 = vmul.f32 0.015625, %v5080_v33 }
 0xc0f   :  { %v5094_v8 = vadd.f32 1e-06, %v5089_v27 }
 0xc10   :  { %v5083_v50 = vpop.xlane.xlu1 %5082 }
 0xc11   :  { %9887 = vrsqrt.f32 %v5094_v8  ;;  %v5090_v47 = vmul.f32 0.015625, %v5083_v50 }
 0xc13   :  { %v5095_v36 = vadd.f32 1e-06, %v5090_v47 }
 0xc14   :  { %v5086_v32 = vpop.xlane.xlu0 %5085 }
 0xc15   :  { %9889 = vrsqrt.f32 %v5095_v36  ;;  %v5091_v40 = vmul.f32 0.015625, %v5086_v32 }
 0xc16   :  { %v9884_v16 = vpop.eup %9883 }
 0xc17   :  { %v5102_v4 = vmul.f32 %v9884_v16, %v12386_v14  ;;  %v5096_v35 = vadd.f32 1e-06, %v5091_v40 }
 0xc19   :  { %9891 = vrsqrt.f32 %v5096_v35  ;;  %v5113_v12 = vmul.f32 %v8105_v20, %v5102_v4 }
 0xc1a   :  { %v9886_v11 = vpop.eup %9885 }
 0xc1b   :  { %v5103_v31 = vmul.f32 %v9886_v11, %v12391_v1  ;;  %v5124_v59 = vadd.f32 %v8106_v0, %v5113_v12 }
 0xc1d   :  { %v5114_v23 = vmul.f32 %v8105_v20, %v5103_v31 }
 0xc1e   :  { %v9888_v49 = vpop.eup %9887 }
 0xc1f   :  { %v5125_v38 = vadd.f32 %v8106_v0, %v5114_v23  ;;  %v5104_v14 = vmul.f32 %v9888_v49, %v12397_v18 }
 0xc21   :  { %v5137_v54 = vpack.c.bf16 %v5125_v38, %v5124_v59  ;;  %v5115_v44 = vmul.f32 %v8105_v20, %v5104_v14 }
 0xc22   :  { %v9890_v3 = vpop.eup %9889 }
 0xc23   :  { %8115 = vmatmul.mubr.msk.bf16.vlgmr.msra.gmra.mxu0 %vm3628_vm1, %v5137_v54  ;;  %v5105_v37 = vmul.f32 %v9890_v3, %v12403_v53  ;;  %v5126_v42 = vadd.f32 %v8106_v0, %v5115_v44  ;;  %v9729_v53 = vld [vmem:[%s13515_s19 + $0x78] sm:$0xff]  }
 0xc24   :  { %5243 = vmatprep.mubr.bf16.mxu0 %v13534_v30  ;;  %8455 = vmatprep.subr.bf16.mxu1 %v9729_v53 }
 0xc25   :  { %v5116_v1 = vmul.f32 %v8105_v20, %v5105_v37  ;;  %8456 = vmatpush3.bf16.msra.mxu1 %v9730_v34 }
 0xc26   :  { %v9892_v39 = vpop.eup %9891  ;;  %8457 = vmatprep.subr.bf16.mxu1 %v9731_v41 }
 0xc27   :  { %v5127_v9 = vadd.f32 %v8106_v0, %v5116_v1  ;;  %v5106_v10 = vmul.f32 %v9892_v39, %v12409_v57  ;;  %v9733_v57 = vld [vmem:[%s13515_s19 + $0x68] sm:$0xff]  }
 0xc29   :  { %v5138_v13 = vpack.c.bf16 %v5127_v9, %v5126_v42  ;;  %v5117_v60 = vmul.f32 %v8105_v20, %v5106_v10  ;;  %8458 = vmatpush3.bf16.msra.mxu1 %v9732_v48 }
 0xc2a   :  { %8459 = vmatprep.subr.bf16.mxu1 %v9733_v57 }
 0xc2b   :  { %8116 = vmatmul.mubr.msk.bf16.gmra.mxu0 %vm3628_vm1, %v5138_v13  ;;  %v5128_v18 = vadd.f32 %v8106_v0, %v5117_v60 }
 0xc2c   :  { %5253 = vmatprep.mubr.bf16.mxu0 %v13534_v30 }
 0xc2d   :  { %v5139_v55 = vpack.c.bf16 %v5128_v18, %v5128_v18  ;;  %8460 = vmatpush3.bf16.msra.mxu1 %v9734_v2 }
 0xc2e   :  { %8461 = vmatprep.subr.bf16.mxu1 %v9735_v28 }
 0xc31   :  { %8462 = vmatpush3.bf16.msra.mxu1 %v9736_v5 }
 0xc32   :  { %8463 = vmatprep.subr.bf16.mxu1 %v9737_v62 }
 0xc33   :  { %8117 = vmatmul.mubr.msk.bf16.gmra.mxu0 %vm3628_vm1, %v5139_v55 }
 0xc34   :  { %8836 = vmatprep.mubr.msk.bf16.mxu0 %vm10071_vm2, %v10070_v21 }
 0xc35   :  { %8464 = vmatpush3.bf16.msra.mxu1 %v9738_v17 }
 0xc36   :  { %8465 = vmatprep.subr.bf16.mxu1 %v9739_v25 }
 0xc39   :  { %8466 = vmatpush3.bf16.msra.mxu1 %v9740_v56 }
 0xc3a   :  { %8467 = vmatprep.subr.bf16.mxu1 %v9741_v15 }
 0xc3d   :  { %8468 = vmatpush3.bf16.msra.mxu1 %v9742_v24 }
 0xc3e   :  { %8469 = vmatprep.subr.bf16.mxu1 %v9743_v63 }
 0xc41   :  { %8470 = vmatpush3.bf16.msra.mxu1 %v9744_v51 }
 0xc42   :  { %8868 = vmatprep.subr.bf16.mxu1 %v10070_v21 }
 0xce3   :  { %v5235_v29 = vpop.f32.mrf.mxu0 }
 0xce4   :  { %v12517_v33 = vadd.f32 %v5235_v29, %v5145_v52 }
 0xce5   :  { %v5237_v27 = vpop.f32.mrf.mxu0 }
 0xce6   :  { %v5272_v8 = vmul.f32 0.044715, %v12517_v33  ;;  %v12520_v50 = vadd.f32 %v5237_v27, %v5149_v58 }
 0xce7   :  { %v5239_v47 = vpop.f32.mrf.mxu0 }
 0xce8   :  { %v5282_v36 = vmul.f32 %v5272_v8, %v12517_v33  ;;  %v5273_v32 = vmul.f32 0.044715, %v12520_v50  ;;  %v12524_v40 = vadd.f32 %v5239_v47, %v5145_v52 }
 0xce9   :  { %v5241_v16 = vpop.f32.mrf.mxu0 }
 0xcea   :  { %v5292_v4 = vmul.f32 %v5282_v36, %v12517_v33  ;;  %v5283_v35 = vmul.f32 %v5273_v32, %v12520_v50  ;;  %v5274_v20 = vmul.f32 0.044715, %v12524_v40  ;;  %v12529_v11 = vadd.f32 %v5241_v16, %v5149_v58 }
 0xceb   :  { %v5245_v12 = vpop.f32.mrf.mxu0 }
 0xcec   :  { %v5302_v31 = vadd.f32 %v5292_v4, %v12517_v33  ;;  %v5293_v0 = vmul.f32 %v5283_v35, %v12520_v50  ;;  %v5284_v23 = vmul.f32 %v5274_v20, %v12524_v40  ;;  %v12534_v49 = vadd.f32 %v5245_v12, %v5145_v52 }
 0xced   :  { %v5275_v59 = vmul.f32 0.044715, %v12529_v11  ;;  %v5247_v38 = vpop.f32.mrf.mxu0 }
 0xcee   :  { %v5312_v14 = vmul.f32 0.7978846, %v5302_v31  ;;  %v5294_v54 = vmul.f32 %v5284_v23, %v12524_v40  ;;  %v5276_v3 = vmul.f32 0.044715, %v12534_v49  ;;  %v12539_v37 = vadd.f32 %v5247_v38, %v5149_v58 }
 0xcef   :  { %v5285_v44 = vmul.f32 %v5275_v59, %v12529_v11  ;;  %v5249_v1 = vpop.f32.mrf.mxu0  ;;  %v5303_v39 = vadd.f32 %v5293_v0, %v12520_v50 }
 0xcf0   :  { %v5304_v42 = vadd.f32 %v5294_v54, %v12524_v40  ;;  %v5286_v9 = vmul.f32 %v5276_v3, %v12534_v49  ;;  %v5277_v10 = vmul.f32 0.044715, %v12539_v37  ;;  %9893 = vtanh.f32 %v5312_v14 }
 0xcf1   :  { %v5295_v13 = vmul.f32 %v5285_v44, %v12529_v11  ;;  %v12547_v60 = vadd.f32 %v5249_v1, %v5145_v52  ;;  %v5251_v18 = vpop.f32.mrf.mxu0  ;;  %v5313_v55 = vmul.f32 0.7978846, %v5303_v39 }
 0xcf2   :  { %v5314_v53 = vmul.f32 0.7978846, %v5304_v42  ;;  %v5296_v34 = vmul.f32 %v5286_v9, %v12534_v49  ;;  %v5287_v41 = vmul.f32 %v5277_v10, %v12539_v37  ;;  %v12551_v48 = vadd.f32 %v5251_v18, %v5149_v58 }
 0xcf3   :  { %v5278_v57 = vmul.f32 0.044715, %v12547_v60  ;;  %v5255_v2 = vpop.f32.mrf.mxu0  ;;  %v5305_v28 = vadd.f32 %v5295_v13, %v12529_v11  ;;  %9895 = vtanh.f32 %v5313_v55  ;;  %v5264_v13 = vmul.f32 0.5, %v12524_v40 }
 0xcf4   :  { %9897 = vtanh.f32 %v5314_v53  ;;  %v5306_v5 = vadd.f32 %v5296_v34, %v12534_v49  ;;  %v5297_v62 = vmul.f32 %v5287_v41, %v12539_v37  ;;  %v5279_v17 = vmul.f32 0.044715, %v12551_v48 }
 0xcf5   :  { %v5288_v25 = vmul.f32 %v5278_v57, %v12547_v60  ;;  %v12559_v56 = vadd.f32 %v5255_v2, %v5145_v52  ;;  %v5257_v15 = vpop.f32.mrf.mxu0  ;;  %v5315_v24 = vmul.f32 0.7978846, %v5305_v28  ;;  %v5263_v18 = vmul.f32 0.5, %v12520_v50 }
 0xcf6   :  { %v5289_v63 = vmul.f32 %v5279_v17, %v12551_v48  ;;  %v12562_v51 = vadd.f32 %v5257_v15, %v5149_v58  ;;  %v5307_v26 = vadd.f32 %v5297_v62, %v12539_v37  ;;  %v5316_v47 = vmul.f32 0.7978846, %v5306_v5 }
 0xcf7   :  { %v5298_v29 = vmul.f32 %v5288_v25, %v12547_v60  ;;  %v5280_v27 = vmul.f32 0.044715, %v12559_v56  ;;  %v5259_v8 = vpop.f32.mrf.mxu0  ;;  %9899 = vtanh.f32 %v5315_v24  ;;  %v5265_v55 = vmul.f32 0.5, %v12529_v11 }
 0xcf8   :  { %v5299_v36 = vmul.f32 %v5289_v63, %v12551_v48  ;;  %v5281_v52 = vmul.f32 0.044715, %v12562_v51  ;;  %v5317_v32 = vmul.f32 0.7978846, %v5307_v26  ;;  %v5262_v34 = vmul.f32 0.5, %v12517_v33 }
 0xcf9   :  { %v5308_v16 = vadd.f32 %v5298_v29, %v12547_v60  ;;  %v5290_v4 = vmul.f32 %v5280_v27, %v12559_v56  ;;  %v5260_v58 = vpop.f32.mrf.mxu0  ;;  %v5267_v40 = vmul.f32 0.5, %v12539_v37  ;;  %v5269_v11 = vmul.f32 0.5, %v12551_v48 }
 0xcfa   :  { %v5291_v35 = vmul.f32 %v5281_v52, %v12562_v51  ;;  %v5309_v20 = vadd.f32 %v5299_v36, %v12551_v48  ;;  %9901 = vtanh.f32 %v5317_v32  ;;  %v5268_v33 = vmul.f32 0.5, %v12547_v60 }
 0xcfb   :  { %v5318_v12 = vmul.f32 0.7978846, %v5308_v16  ;;  %v5300_v31 = vmul.f32 %v5290_v4, %v12559_v56  ;;  %9903 = vtanh.f32 %v5316_v47  ;;  %v5266_v36 = vmul.f32 0.5, %v12534_v49 }
 0xcfc   :  { %v5319_v0 = vmul.f32 0.7978846, %v5309_v20  ;;  %v5301_v23 = vmul.f32 %v5291_v35, %v12562_v51  ;;  %v5271_v58 = vmul.f32 0.5, %v12562_v51  ;;  %v5270_v60 = vmul.f32 0.5, %v12559_v56 }
 0xcfd   :  { %9905 = vtanh.f32 %v5318_v12  ;;  %v5310_v59 = vadd.f32 %v5300_v31, %v12559_v56  ;;  %v9894_v38 = vpop.eup %9893 }
 0xcfe   :  { %9907 = vtanh.f32 %v5319_v0  ;;  %v5311_v14 = vadd.f32 %v5301_v23, %v12562_v51  ;;  %v5332_v10 = vadd.f32 1.0, %v9894_v38  ;;  %v8134_v51 = vld [vmem:[%s13516_s20] ss:$0 sm:$0xff] }
 0xcff   :  { %v5320_v54 = vmul.f32 0.7978846, %v5310_v59 }
 0xd00   :  { %v9896_v3 = vpop.eup %9895  ;;  %v5321_v44 = vmul.f32 0.7978846, %v5311_v14  ;;  %v5342_v5 = vmul.f32 %v5332_v10, %v5262_v34 }
 0xd01   :  { %v9898_v1 = vpop.eup %9897  ;;  %9909 = vtanh.f32 %v5320_v54  ;;  %v5333_v42 = vadd.f32 1.0, %v9896_v3 }
 0xd02   :  { %v5334_v39 = vadd.f32 1.0, %v9898_v1  ;;  %9911 = vtanh.f32 %v5321_v44 }
 0xd03   :  { %v5343_v2 = vmul.f32 %v5333_v42, %v5263_v18 }
 0xd04   :  { %v9900_v9 = vpop.eup %9899  ;;  %v5344_v41 = vmul.f32 %v5334_v39, %v5264_v13 }
 0xd05   :  { %v5335_v53 = vadd.f32 1.0, %v9900_v9 }
 0xd06   :  { %v5384_v15 = vpack.c.bf16 %v5344_v41, %v5342_v5 }
 0xd07   :  { %v9902_v57 = vpop.eup %9901  ;;  %v5345_v28 = vmul.f32 %v5335_v53, %v5265_v55 }
 0xd08   :  { %v9904_v62 = vpop.eup %9903  ;;  %v5337_v24 = vadd.f32 1.0, %v9902_v57 }
 0xd09   :  { %v5385_v17 = vpack.c.bf16 %v5345_v28, %v5343_v2  ;;  %v5336_v29 = vadd.f32 1.0, %v9904_v62 }
 0xd0a   :  { %v9906_v25 = vpop.eup %9905  ;;  %v5347_v8 = vmul.f32 %v5337_v24, %v5267_v40 }
 0xd0b   :  { %v9908_v63 = vpop.eup %9907  ;;  %5518 = vmatprep.mubr.bf16.mxu1 %v5385_v17  ;;  %v5338_v50 = vadd.f32 1.0, %v9906_v25  ;;  %v5346_v4 = vmul.f32 %v5336_v29, %v5266_v36 }
 0xd0c   :  { %5519 = vmatmul.mubr.bf16.vlgmr.msra.gmra.mxu1 %v5384_v15  ;;  %v5339_v26 = vadd.f32 1.0, %v9908_v63 }
 0xd0d   :  { %v5348_v52 = vmul.f32 %v5338_v50, %v5268_v33 }
 0xd0e   :  { %v9910_v27 = vpop.eup %9909  ;;  %v5349_v47 = vmul.f32 %v5339_v26, %v5269_v11 }
 0xd0f   :  { %v9912_v32 = vpop.eup %9911  ;;  %v5386_v35 = vpack.c.bf16 %v5348_v52, %v5346_v4  ;;  %v5340_v48 = vadd.f32 1.0, %v9910_v27 }
 0xd10   :  { %v5387_v16 = vpack.c.bf16 %v5349_v47, %v5347_v8  ;;  %v5341_v37 = vadd.f32 1.0, %v9912_v32 }
 0xd11   :  { %v5350_v31 = vmul.f32 %v5340_v48, %v5270_v60 }
 0xd12   :  { %5526 = vmatprep.mubr.bf16.mxu1 %v5387_v16  ;;  %v5351_v20 = vmul.f32 %v5341_v37, %v5271_v58 }
 0xd13   :  { %v5388_v0 = vpack.c.bf16 %v5350_v31, %v5350_v31 }
 0xd14   :  { %5527 = vmatmul.mubr.bf16.gmra.mxu1 %v5386_v35  ;;  %v5389_v12 = vpack.c.bf16 %v5351_v20, %v5351_v20 }
 0xd16   :  { %5534 = vmatprep.mubr.bf16.mxu1 %v5389_v12 }
 0xd1c   :  { %5535 = vmatmul.mubr.bf16.gmra.mxu1 %v5388_v0  ;;  %v9745_v0 = vld [vmem:[%s13551_s4 + $0x38] sm:$0xff]  }
 0xd1d   :  { %8876 = vmatprep.mubr.msk.bf16.mxu1 %vm10071_vm2, %v10070_v21  ;;  %8829 = vmatpush3.bf16.msra.mxu0 %v9745_v0 }
 0xd1e   :  { %8830 = vmatprep.subr.bf16.mxu0 %v10070_v21 }
 0xdcc   :  { %v8471_v49 = vpop.f32.mrf.mxu1 }
 0xdce   :  { %v8472_v23 = vpop.f32.mrf.mxu1 }
 0xdcf   :  { %v8473_v59 = vadd.f32 %v8472_v23, %v8471_v49  ;;  %v9747_v49 = vld [vmem:[%s13507_s11 + $0x38] sm:$0xff]   ;;  %v9746_v23 = vld [vmem:[%s13551_s4 + $0x30] sm:$0xff]  }
 0xdd0   :  { %v8474_v38 = vpop.f32.mrf.mxu1  ;;  %8869 = vmatpush3.bf16.msra.mxu1 %v9747_v49  ;;  %8831 = vmatpush3.bf16.msra.mxu0 %v9746_v23 }
 0xdd1   :  { %v5542_v14 = vadd.f32 %v8473_v59, %v12361_v22  ;;  %8870 = vmatprep.subr.bf16.mxu1 %v10070_v21  ;;  %v9749_v59 = vld [vmem:[%s13507_s11 + $0x30] sm:$0xff]   ;;  %8832 = vmatprep.subr.bf16.mxu0 %v10070_v21 }
 0xdd2   :  { %v8475_v54 = vpop.f32.mrf.mxu1 }
 0xdd3   :  { %v12593_v3 = vadd.f32 %v8134_v51, %v5542_v14  ;;  %v8476_v56 = vadd.f32 %v8475_v54, %v8474_v38  ;;  %v9750_v38 = vld [vmem:[%s13507_s11 + $0x28] sm:$0xff]   ;;  %v9751_v14 = vld [vmem:[%s13551_s4 + $0x20] sm:$0xff]  }
 0xdd4   :  { %v8477_v44 = vpop.f32.mrf.mxu1  ;;  %8871 = vmatpush3.bf16.msra.mxu1 %v9749_v59  ;;  %v9752_v54 = vld [vmem:[%s13507_s11 + $0x20] sm:$0xff]  }
 0xdd5   :  { %v5543_v1 = vadd.f32 %v8476_v56, %v12366_v7  ;;  %v5563_v39 = vsel %vm3628_vm1, %v12593_v3, 0.0  ;;  %8872 = vmatprep.subr.bf16.mxu1 %v10070_v21 }
 0xdd6   :  { %v8478_v42 = vpop.f32.mrf.mxu1  ;;  %5564 = vadd.xlane.f32.xlu1 %v5563_v39 }
 0xdd7   :  { %v12598_v9 = vadd.f32 %v8134_v51, %v5543_v1  ;;  %v8479_v10 = vadd.f32 %v8478_v42, %v8477_v44 }
 0xdd8   :  { %v8480_v13 = vpop.f32.mrf.mxu1  ;;  %8873 = vmatpush3.bf16.msra.mxu1 %v9750_v38 }
 0xdd9   :  { %v5544_v18 = vadd.f32 %v8479_v10, %v12371_v19  ;;  %v5566_v22 = vsel %vm3628_vm1, %v12598_v9, 0.0  ;;  %8874 = vmatprep.subr.bf16.mxu1 %v10070_v21 }
 0xdda   :  { %v8481_v55 = vpop.f32.mrf.mxu1  ;;  %5567 = vadd.xlane.f32.xlu0 %v5566_v22 }
 0xddb   :  { %v12603_v53 = vadd.f32 %v8134_v51, %v5544_v18  ;;  %v8482_v34 = vadd.f32 %v8481_v55, %v8480_v13 }
 0xddc   :  { %v8483_v7 = vpop.f32.mrf.mxu1  ;;  %8875 = vmatpush3.bf16.msra.mxu1 %v9752_v54  ;;  %v12747_v54 = vld [vmem:[%s13556_s26] ss:$0 sm:$0xff] }
 0xddd   :  { %v5545_v41 = vadd.f32 %v8482_v34, %v12376_v45  ;;  %v5569_v57 = vsel %vm3628_vm1, %v12603_v53, 0.0  ;;  %8906 = vmatprep.subr.bf16.mxu1 %v10070_v21 }
 0xdde   :  { %v8484_v2 = vpop.f32.mrf.mxu1  ;;  %5570 = vadd.xlane.f32.xlu1 %v5569_v57 }
 0xddf   :  { %v12608_v28 = vadd.f32 %v8134_v51, %v5545_v41  ;;  %v8485_v5 = vadd.f32 %v8484_v2, %v8483_v7 }
 0xde0   :  { %v8486_v19 = vpop.f32.mrf.mxu1 }
 0xde1   :  { %v5546_v62 = vadd.f32 %v8485_v5, %v12381_v61  ;;  %v5572_v17 = vsel %vm3628_vm1, %v12608_v28, 0.0 }
 0xde2   :  { %v8487_v25 = vpop.f32.mrf.mxu1  ;;  %5573 = vadd.xlane.f32.xlu0 %v5572_v17 }
 0xde3   :  { %v12613_v15 = vadd.f32 %v8134_v51, %v5546_v62  ;;  %v9748_v51 = vld [vmem:[%s13551_s4 + $0x28] sm:$0xff]   ;;  %v8137_v62 = vld [vmem:[%s13552_s5 + $0x1] ss:$0 sm:$0xff] }
 0xde4   :  { %8833 = vmatpush3.bf16.msra.mxu0 %v9748_v51 }
 0xde5   :  { %v5575_v45 = vsel %vm3478_vm0, %v12613_v15, 0.0  ;;  %8834 = vmatprep.subr.bf16.mxu0 %v10070_v21 }
 0xde6   :  { %5576 = vadd.xlane.f32.xlu1 %v5575_v45 }
 0xde8   :  { %8835 = vmatpush3.bf16.msra.mxu0 %v9751_v14 }
 0xde9   :  { %8848 = vmatprep.subr.bf16.mxu0 %v10070_v21 }
 0xe5f   :  { %v5565_v24 = vpop.xlane.xlu1 %5564 }
 0xe60   :  { %v5578_v63 = vmul.f32 0.015625, %v5565_v24  ;;  %v8138_v24 = vld [vmem:[%s13553_s2 + $0x1] ss:$0 sm:$0xff] }
 0xe62   :  { %v12618_v40 = vsub.f32 %v12593_v3, %v5578_v63 }
 0xe63   :  { %v5568_v50 = vpop.xlane.xlu0 %5567 }
 0xe64   :  { %v5579_v11 = vmul.f32 0.015625, %v5568_v50  ;;  %v5588_v61 = vmul.f32 %v12618_v40, %v12618_v40 }
 0xe66   :  { %v12623_v26 = vsub.f32 %v12598_v9, %v5579_v11  ;;  %v5593_v33 = vsel %vm3628_vm1, %v5588_v61, 0.0 }
 0xe67   :  { %5594 = vadd.xlane.f32.xlu0 %v5593_v33  ;;  %v5571_v29 = vpop.xlane.xlu1 %5570  ;;  %v9753_v33 = vld [vmem:[%s13554_s30 + $0x38] sm:$0xff]  }
 0xe68   :  { %v5580_v27 = vmul.f32 0.015625, %v5571_v29  ;;  %v5589_v8 = vmul.f32 %v12623_v26, %v12623_v26 }
 0xe6a   :  { %v12629_v47 = vsub.f32 %v12603_v53, %v5580_v27  ;;  %v5596_v36 = vsel %vm3628_vm1, %v5589_v8, 0.0 }
 0xe6b   :  { %v5574_v52 = vpop.xlane.xlu0 %5573  ;;  %5597 = vadd.xlane.f32.xlu1 %v5596_v36 }
 0xe6c   :  { %v5581_v32 = vmul.f32 0.015625, %v5574_v52  ;;  %v5590_v16 = vmul.f32 %v12629_v47, %v12629_v47 }
 0xe6e   :  { %v12635_v4 = vsub.f32 %v12608_v28, %v5581_v32  ;;  %v5599_v58 = vsel %vm3628_vm1, %v5590_v16, 0.0 }
 0xe6f   :  { %5600 = vadd.xlane.f32.xlu0 %v5599_v58  ;;  %v5577_v37 = vpop.xlane.xlu1 %5576  ;;  %v9755_v58 = vld [vmem:[%s13554_s30 + $0x28] sm:$0xff]  }
 0xe70   :  { %v5582_v35 = vmul.f32 0.015625, %v5577_v37  ;;  %v5591_v20 = vmul.f32 %v12635_v4, %v12635_v4 }
 0xe72   :  { %v12641_v48 = vsub.f32 %v12613_v15, %v5582_v35  ;;  %v5602_v12 = vsel %vm3628_vm1, %v5591_v20, 0.0  ;;  %v9756_v20 = vld [vmem:[%s13554_s30 + $0x20] sm:$0xff]  }
 0xe73   :  { %5603 = vadd.xlane.f32.xlu1 %v5602_v12 }
 0xe74   :  { %v5592_v60 = vmul.f32 %v12641_v48, %v12641_v48 }
 0xe76   :  { %v5605_v31 = vsel %vm3478_vm0, %v5592_v60, 0.0  ;;  %v12736_v60 = vld [vmem:[%s13508_s12 + $0x1] ss:$0 sm:$0xff] }
 0xe77   :  { %5606 = vadd.xlane.f32.xlu0 %v5605_v31 }
 0xef0   :  { %v5595_v56 = vpop.xlane.xlu0 %5594 }
 0xef1   :  { %v5608_v44 = vmul.f32 0.015625, %v5595_v56 }
 0xef3   :  { %v5613_v1 = vadd.f32 1e-06, %v5608_v44 }
 0xef4   :  { %v5598_v39 = vpop.xlane.xlu1 %5597 }
 0xef5   :  { %9913 = vrsqrt.f32 %v5613_v1  ;;  %v5609_v42 = vmul.f32 0.015625, %v5598_v39  ;;  %v12755_v39 = vld [vmem:[%s13556_s26 + $0x1] ss:$0 sm:$0xff] }
 0xef7   :  { %v5614_v10 = vadd.f32 1e-06, %v5609_v42 }
 0xef8   :  { %v5601_v13 = vpop.xlane.xlu0 %5600 }
 0xef9   :  { %9915 = vrsqrt.f32 %v5614_v10  ;;  %v5610_v18 = vmul.f32 0.015625, %v5601_v13 }
 0xefb   :  { %v5615_v22 = vadd.f32 1e-06, %v5610_v18  ;;  %v12769_v18 = vld [vmem:[%s13556_s26 + $0x2] ss:$0 sm:$0xff] }
 0xefc   :  { %v5604_v55 = vpop.xlane.xlu1 %5603 }
 0xefd   :  { %9917 = vrsqrt.f32 %v5615_v22  ;;  %v5611_v34 = vmul.f32 0.015625, %v5604_v55 }
 0xeff   :  { %v5616_v7 = vadd.f32 1e-06, %v5611_v34  ;;  %v12780_v34 = vld [vmem:[%s13556_s26 + $0x3] ss:$0 sm:$0xff] }
 0xf00   :  { %v5607_v41 = vpop.xlane.xlu0 %5606 }
 0xf01   :  { %9919 = vrsqrt.f32 %v5616_v7  ;;  %v5612_v57 = vmul.f32 0.015625, %v5607_v41 }
 0xf02   :  { %v9914_v2 = vpop.eup %9913 }
 0xf03   :  { %v5623_v5 = vmul.f32 %v9914_v2, %v12618_v40  ;;  %v5617_v19 = vadd.f32 1e-06, %v5612_v57 }
 0xf05   :  { %9921 = vrsqrt.f32 %v5617_v19  ;;  %v5634_v25 = vmul.f32 %v8137_v62, %v5623_v5 }
 0xf06   :  { %v9916_v17 = vpop.eup %9915 }
 0xf07   :  { %v5624_v45 = vmul.f32 %v9916_v17, %v12623_v26  ;;  %v5645_v11 = vadd.f32 %v8138_v24, %v5634_v25 }
 0xf09   :  { %v5635_v63 = vmul.f32 %v8137_v62, %v5624_v45 }
 0xf0a   :  { %v9918_v50 = vpop.eup %9917 }
 0xf0b   :  { %v5646_v61 = vadd.f32 %v8138_v24, %v5635_v63  ;;  %v5625_v40 = vmul.f32 %v9918_v50, %v12629_v47  ;;  %v9754_v47 = vld [vmem:[%s13554_s30 + $0x30] sm:$0xff]  }
 0xf0d   :  { %v5659_v29 = vpack.c.bf16 %v5646_v61, %v5645_v11  ;;  %v5636_v8 = vmul.f32 %v8137_v62, %v5625_v40 }
 0xf0e   :  { %v9920_v27 = vpop.eup %9919 }
 0xf0f   :  { %8837 = vmatmul.mubr.msk.bf16.vlgmr.msra.gmra.mxu0 %vm3628_vm1, %v5659_v29  ;;  %8877 = vmatmul.mubr.msk.bf16.vlgmr.msra.gmra.mxu1 %vm3628_vm1, %v5659_v29  ;;  %v5626_v26 = vmul.f32 %v9920_v27, %v12635_v4  ;;  %v5647_v32 = vadd.f32 %v8138_v24, %v5636_v8 }
 0xf10   :  { %8849 = vmatpush3.bf16.msra.mxu0 %v9753_v33  ;;  %8840 = vmatprep.mubr.msk.bf16.mxu0 %vm10071_vm2, %v10070_v21 }
 0xf11   :  { %8850 = vmatprep.subr.bf16.mxu0 %v10070_v21  ;;  %8880 = vmatprep.mubr.msk.bf16.mxu1 %vm10071_vm2, %v10070_v21  ;;  %v5637_v36 = vmul.f32 %v8137_v62, %v5626_v26 }
 0xf12   :  { %v9922_v52 = vpop.eup %9921 }
 0xf13   :  { %v5648_v16 = vadd.f32 %v8138_v24, %v5637_v36  ;;  %v5627_v4 = vmul.f32 %v9922_v52, %v12641_v48 }
 0xf14   :  { %8851 = vmatpush3.bf16.msra.mxu0 %v9754_v47 }
 0xf15   :  { %v5660_v37 = vpack.c.bf16 %v5648_v16, %v5647_v32  ;;  %8852 = vmatprep.subr.bf16.mxu0 %v10070_v21  ;;  %v5638_v35 = vmul.f32 %v8137_v62, %v5627_v4 }
 0xf17   :  { %8841 = vmatmul.mubr.msk.bf16.gmra.mxu0 %vm3628_vm1, %v5660_v37  ;;  %8881 = vmatmul.mubr.msk.bf16.gmra.mxu1 %vm3628_vm1, %v5660_v37  ;;  %v5649_v48 = vadd.f32 %v8138_v24, %v5638_v35 }
 0xf18   :  { %8853 = vmatpush3.bf16.msra.mxu0 %v9755_v58  ;;  %8844 = vmatprep.mubr.msk.bf16.mxu0 %vm10071_vm2, %v10070_v21 }
 0xf19   :  { %8884 = vmatprep.mubr.msk.bf16.mxu1 %vm10071_vm2, %v10070_v21  ;;  %8854 = vmatprep.subr.bf16.mxu0 %v10070_v21  ;;  %v5661_v12 = vpack.c.bf16 %v5649_v48, %v5649_v48 }
 0xf1c   :  { %8855 = vmatpush3.bf16.msra.mxu0 %v9756_v20  ;;  %v8165_v20 = vld [vmem:[%s13506_s10 + $0x1] ss:$0 sm:$0xff] }
 0xf1d   :  { %8888 = vmatprep.subr.bf16.mxu0 %v10070_v21 }
 0xf1f   :  { %8845 = vmatmul.mubr.msk.bf16.gmra.mxu0 %vm3628_vm1, %v5661_v12  ;;  %8885 = vmatmul.mubr.msk.bf16.gmra.mxu1 %vm3628_vm1, %v5661_v12 }
 0xf20   :  { %8856 = vmatprep.mubr.msk.bf16.mxu0 %vm10071_vm2, %v10070_v21  ;;  %8912 = vmatprep.mubr.msk.bf16.mxu1 %vm10071_vm2, %v10070_v21 }
 0xf27   :  { %8857 = vmatmul.mubr.msk.bf16.vlgmr.msra.gmra.mxu0 %vm3628_vm1, %v5659_v29 }
 0xf28   :  { %8860 = vmatprep.mubr.msk.bf16.mxu0 %vm10071_vm2, %v10070_v21 }
 0xf2f   :  { %8861 = vmatmul.mubr.msk.bf16.gmra.mxu0 %vm3628_vm1, %v5660_v37 }
 0xf30   :  { %8864 = vmatprep.mubr.msk.bf16.mxu0 %vm10071_vm2, %v10070_v21 }
 0xf37   :  { %8865 = vmatmul.mubr.msk.bf16.gmra.mxu0 %vm3628_vm1, %v5661_v12 }
 0xf38   :  { %8894 = vmatprep.mubr.msk.bf16.mxu0 %vm10071_vm2, %v10070_v21 }
 0xfcf   :  { %v12738_v31 = vpop.f32.mrf.mxu0  ;;  %v5931_v0 = vpop.f32.mrf.mxu1 }
 0xfd0   :  { %v5932_v49 = vadd.f32 %v12736_v60, %v5931_v0 }
 0xfd1   :  { %v8838_v23 = vpop.f32.mrf.mxu0  ;;  %v8878_v59 = vpop.f32.mrf.mxu1 }
 0xfd2   :  { %v12750_v56 = vmul.f32 %v12747_v54, %v5932_v49  ;;  %v12758_v42 = vmul.f32 %v12755_v39, %v5932_v49  ;;  %v12775_v55 = vmul.f32 %v12769_v18, %v5932_v49  ;;  %v12783_v7 = vmul.f32 %v12780_v34, %v5932_v49 }
 0xfd3   :  { %v12741_v51 = vpop.f32.mrf.mxu0  ;;  %v5934_v38 = vpop.f32.mrf.mxu1 }
 0xfd4   :  { %v5935_v14 = vadd.f32 %v12736_v60, %v5934_v38 }
 0xfd5   :  { %v8839_v44 = vpop.f32.mrf.mxu0  ;;  %v8879_v1 = vpop.f32.mrf.mxu1 }
 0xfd6   :  { %v12761_v10 = vmul.f32 %v12747_v54, %v5935_v14  ;;  %v12764_v13 = vmul.f32 %v12755_v39, %v5935_v14  ;;  %v12772_v22 = vmul.f32 %v12769_v18, %v5935_v14  ;;  %v12786_v41 = vmul.f32 %v12780_v34, %v5935_v14 }
 0xfd7   :  { %v12788_v57 = vpop.f32.mrf.mxu0  ;;  %v5939_v2 = vpop.f32.mrf.mxu1 }
 0xfd8   :  { %v6127_v5 = vpack.c.bf16 %v12764_v13, %v12758_v42  ;;  %v5969_v19 = vpack.c.bf16 %v12761_v10, %v12750_v56  ;;  %v12799_v24 = vadd.f32 %v12736_v60, %v5939_v2 }
 0xfd9   :  { %v8842_v62 = vpop.f32.mrf.mxu0  ;;  %v8882_v17 = vpop.f32.mrf.mxu1 }
 0xfda   :  { %v12812_v29 = vmul.f32 %v12769_v18, %v12799_v24  ;;  %v12816_v27 = vmul.f32 %v12780_v34, %v12799_v24 }
 0xfdb   :  { %v12801_v63 = vpop.f32.mrf.mxu0  ;;  %v5942_v50 = vpop.f32.mrf.mxu1 }
 0xfdc   :  { %v12804_v11 = vadd.f32 %v12736_v60, %v5942_v50 }
 0xfdd   :  { %v8843_v61 = vpop.f32.mrf.mxu0  ;;  %v8883_v40 = vpop.f32.mrf.mxu1 }
 0xfde   :  { %v12808_v33 = vmul.f32 %v12769_v18, %v12804_v11  ;;  %v12820_v26 = vmul.f32 %v12780_v34, %v12804_v11 }
 0xfdf   :  { %v12822_v8 = vpop.f32.mrf.mxu0  ;;  %v12824_v47 = vpop.f32.mrf.mxu1 }
 0xfe1   :  { %v8846_v36 = vpop.f32.mrf.mxu0  ;;  %v8886_v52 = vpop.f32.mrf.mxu1 }
 0xfe3   :  { %v5756_v4 = vpop.f32.mrf.mxu0  ;;  %v5950_v58 = vpop.f32.mrf.mxu1 }
 0xfe5   :  { %v8847_v37 = vpop.f32.mrf.mxu0  ;;  %v8887_v35 = vpop.f32.mrf.mxu1 }
 0xfe7   :  { %v5834_v48 = vpop.f32.mrf.mxu0 }
 0xfe8   :  { %v5835_v0 = vadd.f32 %v8165_v20, %v5834_v48 }
 0xfe9   :  { %v8858_v12 = vpop.f32.mrf.mxu0 }
 0xfea   :  { %v12834_v38 = vmul.f32 %v12769_v18, %v5835_v0  ;;  %v12843_v2 = vmul.f32 %v12780_v34, %v5835_v0 }
 0xfeb   :  { %v5837_v49 = vpop.f32.mrf.mxu0 }
 0xfec   :  { %v5838_v23 = vadd.f32 %v8165_v20, %v5837_v49 }
 0xfed   :  { %v8859_v59 = vpop.f32.mrf.mxu0 }
 0xfee   :  { %v12837_v14 = vmul.f32 %v12769_v18, %v5838_v23  ;;  %v12840_v44 = vmul.f32 %v12780_v34, %v5838_v23 }
 0xfef   :  { %v5842_v1 = vpop.f32.mrf.mxu0 }
 0xff0   :  { %v6404_v62 = vpack.c.bf16 %v12837_v14, %v12834_v38  ;;  %v5843_v61 = vadd.f32 %v8165_v20, %v5842_v1  ;;  %v13562_v14 = vpack.c.bf16 %v12840_v44, %v12843_v2 }
 0xff1   :  { %v8862_v17 = vpop.f32.mrf.mxu0 }
 0xff2   :  { %v12850_v4 = vmul.f32 %v12769_v18, %v5843_v61  ;;  %v12859_v48 = vmul.f32 %v12780_v34, %v5843_v61  ;;  %v5958_v16 = vmul.f32 %v12747_v54, %v5843_v61 }
 0xff3   :  { %v5845_v40 = vpop.f32.mrf.mxu0 }
 0xff4   :  { %v5846_v36 = vadd.f32 %v8165_v20, %v5845_v40 }
 0xff5   :  { %v8863_v52 = vpop.f32.mrf.mxu0 }
 0xff6   :  { %v12853_v58 = vmul.f32 %v12769_v18, %v5846_v36  ;;  %v12856_v37 = vmul.f32 %v12780_v34, %v5846_v36  ;;  %v5959_v45 = vmul.f32 %v12747_v54, %v5846_v36 }
 0xff7   :  { %v5850_v35 = vpop.f32.mrf.mxu0 }
 0xff8   :  { %v12861_v12 = vadd.f32 %v8165_v20, %v5850_v35  ;;  %v6405_v49 = vpack.c.bf16 %v12853_v58, %v12850_v4  ;;  %v6627_v1 = vpack.c.bf16 %v12856_v37, %v12859_v48 }
 0xff9   :  { %v8866_v59 = vpop.f32.mrf.mxu0 }
 0xffa   :  { %v5960_v17 = vmul.f32 %v12747_v54, %v12861_v12  ;;  %v6118_v40 = vmul.f32 %v12755_v39, %v12861_v12  ;;  %v6117_v59 = vmul.f32 %v12755_v39, %v5846_v36  ;;  %v6115_v36 = vmul.f32 %v12755_v39, %v5838_v23 }
 0xffb   :  { %v5853_v52 = vpop.f32.mrf.mxu0  ;;  %v6625_v4 = vmul.f32 %v12780_v34, %v12861_v12  ;;  %v6641_v38 = vsel %vm3628_vm1, %v6627_v1, 0 }
 0xffc   :  { %v5963_v46 = vpack.c.bf16 %v5960_v17, %v5960_v17  ;;  %v6121_v6 = vpack.c.bf16 %v6118_v40, %v6118_v40  ;;  %v6116_v17 = vmul.f32 %v12755_v39, %v5843_v61  ;;  %v5962_v40 = vpack.c.bf16 %v5959_v45, %v5958_v16 }
 0xffd   :  { %v8867_v30 = vpop.f32.mrf.mxu0  ;;  %v5957_v52 = vmul.f32 %v12747_v54, %v5838_v23  ;;  %v6114_v61 = vmul.f32 %v12755_v39, %v5835_v0  ;;  %v12889_v45 = vadd.f32 %v12736_v60, %v12824_v47  ;;  %v6628_v58 = vpack.c.bf16 %v6625_v4, %v6625_v4 }
 0xffe   :  { %v5988_v20 = vsel %vm3628_vm1, %v5963_v46, 0  ;;  %v6137_v35 = vsel %vm3628_vm1, %v6121_v6, 0  ;;  %v6120_v30 = vpack.c.bf16 %v6117_v59, %v6116_v17  ;;  %v5985_v46 = vsel %vm3628_vm1, %v5962_v40, 0 }
 0xfff   :  { %8889 = vmatpush3.bf16.xpose.msra.mxu0 %v5988_v20  ;;  %8907 = vmatpush3.bf16.xpose.msra.mxu1 %v6137_v35  ;;  %v5956_v20 = vmul.f32 %v12747_v54, %v5835_v0  ;;  %v6119_v35 = vpack.c.bf16 %v6115_v36, %v6114_v61  ;;  %v6126_v17 = vmul.f32 %v12755_v39, %v12889_v45  ;;  %v8148_v0 = vld [vmem:[%s13555_s28 + $0x1] ss:$0 sm:$0xff] }
0x1000   :  { %8890 = vmatprep.subr.bf16.mxu0 %v10070_v21  ;;  %8908 = vmatprep.subr.bf16.mxu1 %v10070_v21  ;;  %v6134_v6 = vsel %vm3628_vm1, %v6120_v30, 0  ;;  %v5968_v40 = vmul.f32 %v12747_v54, %v12889_v45  ;;  %v5741_v60 = vadd.f32 %v8148_v0, %v12741_v51  ;;  %v5738_v47 = vadd.f32 %v8148_v0, %v12738_v31 }
0x1001   :  { %v5961_v16 = vpack.c.bf16 %v5957_v52, %v5956_v20  ;;  %v6131_v23 = vsel %vm3628_vm1, %v6119_v35, 0  ;;  %v6129_v30 = vpack.c.bf16 %v6126_v17, %v6126_v17  ;;  %v5967_v52 = vmul.f32 %v12747_v54, %v12804_v11 }
0x1002   :  { %v6125_v36 = vmul.f32 %v12755_v39, %v12804_v11  ;;  %v5966_v20 = vmul.f32 %v12747_v54, %v12799_v24  ;;  %v6124_v61 = vmul.f32 %v12755_v39, %v12799_v24  ;;  %v5749_v11 = vadd.f32 %v8148_v0, %v12801_v63 }
0x1003   :  { %v5982_v59 = vsel %vm3628_vm1, %v5961_v16, 0  ;;  %v6273_v51 = vsel %vm4343_vm3, %v6129_v30, 0  ;;  %v5746_v54 = vadd.f32 %v8148_v0, %v12788_v57  ;;  %v5754_v57 = vadd.f32 %v8148_v0, %v12822_v8 }
0x1004   :  { %v6128_v16 = vpack.c.bf16 %v6125_v36, %v6124_v61  ;;  %v5970_v35 = vpack.c.bf16 %v5967_v52, %v5966_v20  ;;  %v12982_v20 = vld [vmem:[%s13557_s27 + $0x10] sm:$0xff] }
0x1005   :  { %v12928_v39 = vpack.c.bf16 %v5749_v11, %v5746_v54  ;;  %v12949_v24 = vpack.c.bf16 %v5754_v57, %v5754_v57 }
0x1007   :  { %8891 = vmatpush3.bf16.xpose.msra.mxu0 %v5985_v46  ;;  %8909 = vmatpush3.bf16.xpose.msra.mxu1 %v6134_v6  ;;  %v5971_v46 = vpack.c.bf16 %v5968_v40, %v5968_v40  ;;  %v12904_v6 = vpack.c.bf16 %v5741_v60, %v5738_v47  ;;  %v12973_v60 = vld [vmem:[%s13557_s27 + $0x8] sm:$0xff] }
0x1008   :  { %8892 = vmatprep.subr.bf16.mxu0 %v10070_v21  ;;  %8910 = vmatprep.subr.bf16.mxu1 %v10070_v21 }
0x1009   :  { %v6341_v31 = vsel %vm4343_vm3, %v5971_v46, 0 }
0x100f   :  { %8893 = vmatpush3.bf16.xpose.msra.mxu0 %v5982_v59  ;;  %8911 = vmatpush3.bf16.xpose.msra.mxu1 %v6131_v23 }
0x1010   :  { %8924 = vmatprep.subr.bf16.mxu0 %v10070_v21  ;;  %8942 = vmatprep.subr.bf16.mxu1 %v10070_v21 }
0x1016   :  { %8895 = vmatmul.mubr.msk.bf16.vlgmr.msra.gmra.mxu0 %vm3628_vm1, %v12904_v6  ;;  %8913 = vmatmul.mubr.msk.bf16.vlgmr.msra.gmra.mxu1 %vm3628_vm1, %v12904_v6 }
0x1017   :  { %8925 = vmatpush3.bf16.msra.mxu0 %v6273_v51  ;;  %8943 = vmatpush3.bf16.msra.mxu1 %v6341_v31 }
0x1018   :  { %8926 = vmatprep.subr.bf16.mxu0 %v10070_v21  ;;  %8944 = vmatprep.subr.bf16.mxu1 %v10070_v21 }
0x1019   :  { %8898 = vmatprep.mubr.msk.bf16.mxu0 %vm10071_vm2, %v10070_v21  ;;  %8916 = vmatprep.mubr.msk.bf16.mxu1 %vm10071_vm2, %v10070_v21 }
0x101b   :  { %8927 = vmatpush3.bf16.msra.mxu0 %v6128_v16  ;;  %8945 = vmatpush3.bf16.msra.mxu1 %v5970_v35 }
0x101c   :  { %8928 = vmatprep.subr.bf16.mxu0 %v10070_v21  ;;  %8946 = vmatprep.subr.bf16.mxu1 %v10070_v21 }
0x101e   :  { %8899 = vmatmul.mubr.msk.bf16.gmra.mxu0 %vm3628_vm1, %v12928_v39  ;;  %8917 = vmatmul.mubr.msk.bf16.gmra.mxu1 %vm3628_vm1, %v12928_v39 }
0x101f   :  { %8929 = vmatpush3.bf16.msra.mxu0 %v6127_v5  ;;  %8947 = vmatpush3.bf16.msra.mxu1 %v5969_v19  ;;  %v12964_v19 = vld [vmem:[%s13557_s27] sm:$0xff] }
0x1020   :  { %8902 = vmatprep.mubr.msk.bf16.mxu0 %vm10071_vm2, %v10070_v21  ;;  %8920 = vmatprep.mubr.msk.bf16.mxu1 %vm10071_vm2, %v10070_v21 }
0x1021   :  { %8960 = vmatprep.subr.bf16.mxu0 %v10070_v21  ;;  %8978 = vmatprep.subr.bf16.mxu1 %v10070_v21 }
0x1026   :  { %8903 = vmatmul.mubr.msk.bf16.gmra.mxu0 %vm3628_vm1, %v12949_v24  ;;  %8921 = vmatmul.mubr.msk.bf16.gmra.mxu1 %vm3628_vm1, %v12949_v24 }
0x1027   :  { %8930 = vmatprep.mubr.msk.bf16.mxu0 %vm10071_vm2, %v10070_v21  ;;  %8948 = vmatprep.mubr.msk.bf16.mxu1 %vm10071_vm2, %v10070_v21 }
0x10d6   :  { %v12959_v56 = vpop.f32.mrf.mxu0  ;;  %v6173_v42 = vpop.f32.mrf.mxu1 }
0x10d7   :  { %v6195_v10 = vmul.f32 0.25, %v6173_v42 }
0x10d8   :  { %v8896_v13 = vpop.f32.mrf.mxu0  ;;  %v8914_v5 = vpop.f32.mrf.mxu1 }
0x10d9   :  { %v6200_v63 = vadd.f32 %v12964_v19, %v6195_v10  ;;  %v12991_v10 = vld [vmem:[%s13557_s27 + $0x18] sm:$0xff] }
0x10da   :  { %v12967_v8 = vpop.f32.mrf.mxu0  ;;  %v6176_v59 = vpop.f32.mrf.mxu1 }
0x10db   :  { %v6196_v23 = vmul.f32 0.25, %v6176_v59  ;;  %v6205_v17 = vsel %vm4121_vm4, %v6200_v63, -inf }
0x10dc   :  { %6206 = vmax.xlane.f32.xlu1 %v6205_v17  ;;  %v8897_v40 = vpop.f32.mrf.mxu0  ;;  %v8915_v0 = vpop.f32.mrf.mxu1 }
0x10dd   :  { %v6201_v47 = vadd.f32 %v12973_v60, %v6196_v23 }
0x10de   :  { %v12976_v30 = vpop.f32.mrf.mxu0  ;;  %v6181_v46 = vpop.f32.mrf.mxu1 }
0x10df   :  { %v6197_v52 = vmul.f32 0.25, %v6181_v46  ;;  %v6208_v36 = vsel %vm4121_vm4, %v6201_v47, -inf  ;;  %v12998_v46 = vld [vmem:[%s13557_s27 + $0x20] sm:$0x3] }
0x10e0   :  { %6209 = vmax.xlane.f32.xlu0 %v6208_v36  ;;  %v8900_v51 = vpop.f32.mrf.mxu0  ;;  %v8918_v31 = vpop.f32.mrf.mxu1 }
0x10e1   :  { %v6202_v61 = vadd.f32 %v12982_v20, %v6197_v52 }
0x10e2   :  { %v12985_v11 = vpop.f32.mrf.mxu0  ;;  %v6184_v16 = vpop.f32.mrf.mxu1 }
0x10e3   :  { %v6198_v35 = vmul.f32 0.25, %v6184_v16  ;;  %v6211_v54 = vsel %vm4121_vm4, %v6202_v61, -inf }
0x10e4   :  { %6212 = vmax.xlane.f32.xlu1 %v6211_v54  ;;  %v8901_v57 = vpop.f32.mrf.mxu0  ;;  %v8919_v42 = vpop.f32.mrf.mxu1 }
0x10e5   :  { %v6203_v13 = vadd.f32 %v12991_v10, %v6198_v35 }
0x10e6   :  { %v6040_v5 = vpop.f32.mrf.mxu0  ;;  %v6189_v59 = vpop.f32.mrf.mxu1 }
0x10e7   :  { %v6199_v23 = vmul.f32 0.25, %v6189_v59  ;;  %v6214_v17 = vsel %vm4121_vm4, %v6203_v13, -inf }
0x10e8   :  { %6215 = vmax.xlane.f32.xlu0 %v6214_v17  ;;  %v8904_v40 = vpop.f32.mrf.mxu0  ;;  %v8922_v0 = vpop.f32.mrf.mxu1 }
0x10e9   :  { %v6204_v52 = vadd.f32 %v12998_v46, %v6199_v23 }
0x10ea   :  { %v6043_v36 = vpop.f32.mrf.mxu0  ;;  %v6192_v51 = vpop.f32.mrf.mxu1 }
0x10eb   :  { %v6217_v31 = vsel %vm4134_vm5, %v6204_v52, -inf }
0x10ec   :  { %6218 = vmax.xlane.f32.xlu1 %v6217_v31  ;;  %v8905_v16 = vpop.f32.mrf.mxu0  ;;  %v8923_v35 = vpop.f32.mrf.mxu1 }
0x1165   :  { %v6207_v54 = vpop.xlane.xlu1 %6206 }
0x1166   :  { %v6220_v57 = vsub.f32 %v6200_v63, %v6207_v54 }
0x1168   :  { %v6225_v42 = vmul.f32 1.442695, %v6220_v57 }
0x1169   :  { %v6210_v59 = vpop.xlane.xlu0 %6209 }
0x116a   :  { %9923 = vpow2.f32 %v6225_v42  ;;  %v6221_v17 = vsub.f32 %v6201_v47, %v6210_v59 }
0x116c   :  { %v6227_v40 = vmul.f32 1.442695, %v6221_v17 }
0x116d   :  { %v6213_v0 = vpop.xlane.xlu1 %6212 }
0x116e   :  { %9925 = vpow2.f32 %v6227_v40  ;;  %v6222_v25 = vsub.f32 %v6202_v61, %v6213_v0  ;;  %v6047_v61 = vmul.f32 0.25, %v12967_v8  ;;  %v6049_v40 = vmul.f32 0.25, %v12985_v11 }
0x116f   :  { %v6050_v0 = vmul.f32 0.25, %v6040_v5 }
0x1170   :  { %v6229_v32 = vmul.f32 1.442695, %v6222_v25  ;;  %v6046_v25 = vmul.f32 0.25, %v12959_v56  ;;  %v13015_v56 = vadd.f32 %v12973_v60, %v6047_v61 }
0x1171   :  { %v6216_v50 = vpop.xlane.xlu0 %6215 }
0x1172   :  { %9927 = vpow2.f32 %v6229_v32  ;;  %v6223_v23 = vsub.f32 %v6203_v13, %v6216_v50  ;;  %v13008_v13 = vadd.f32 %v12964_v19, %v6046_v25 }
0x1174   :  { %v6231_v36 = vmul.f32 1.442695, %v6223_v23  ;;  %v6056_v17 = vsel %vm4121_vm4, %v13008_v13, -inf }
0x1175   :  { %v6219_v51 = vpop.xlane.xlu1 %6218 }
0x1176   :  { %9929 = vpow2.f32 %v6231_v36  ;;  %v6224_v31 = vsub.f32 %v6204_v52, %v6219_v51  ;;  %v6048_v52 = vmul.f32 0.25, %v12976_v30  ;;  %v6059_v30 = vsel %vm4121_vm4, %v13015_v56, -inf }
0x1177   :  { %v9924_v16 = vpop.eup %9923  ;;  %v13027_v51 = vadd.f32 %v12991_v10, %v6049_v40 }
0x1178   :  { %v6233_v35 = vmul.f32 1.442695, %v6224_v31  ;;  %v6235_v63 = vsel %vm4121_vm4, %v9924_v16, 0.0  ;;  %v13020_v23 = vadd.f32 %v12982_v20, %v6048_v52  ;;  %v13030_v31 = vadd.f32 %v12998_v46, %v6050_v0 }
0x1179   :  { %6236 = vadd.xlane.f32.xlu0 %v6235_v63  ;;  %v6065_v11 = vsel %vm4121_vm4, %v13027_v51, -inf }
0x117a   :  { %9931 = vpow2.f32 %v6233_v35  ;;  %v6062_v36 = vsel %vm4121_vm4, %v13020_v23, -inf  ;;  %v6068_v5 = vsel %vm4134_vm5, %v13030_v31, -inf }
0x117b   :  { %v9926_v54 = vpop.eup %9925 }
0x117c   :  { %v6238_v47 = vsel %vm4121_vm4, %v9926_v54, 0.0 }
0x117d   :  { %6239 = vadd.xlane.f32.xlu1 %v6238_v47 }
0x117f   :  { %v9928_v57 = vpop.eup %9927 }
0x1180   :  { %v6241_v32 = vsel %vm4121_vm4, %v9928_v57, 0.0 }
0x1181   :  { %6242 = vadd.xlane.f32.xlu0 %v6241_v32  ;;  %v6403_v32 = vmul.f32 %v12769_v18, %v12861_v12 }
0x1183   :  { %v9930_v50 = vpop.eup %9929  ;;  %v6406_v0 = vpack.c.bf16 %v6403_v32, %v6403_v32 }
0x1184   :  { %v6244_v42 = vsel %vm4121_vm4, %v9930_v50, 0.0 }
0x1185   :  { %6245 = vadd.xlane.f32.xlu1 %v6244_v42 }
0x1187   :  { %v9932_v59 = vpop.eup %9931 }
0x1188   :  { %v6247_v8 = vsel %vm4134_vm5, %v9932_v59, 0.0 }
0x1189   :  { %6248 = vadd.xlane.f32.xlu0 %v6247_v8  ;;  %6057 = vmax.xlane.f32.xlu1 %v6056_v17 }
0x118d   :  { %6060 = vmax.xlane.f32.xlu0 %v6059_v30  ;;  %6063 = vmax.xlane.f32.xlu1 %v6062_v36  ;;  %v6422_v30 = vsel %vm3628_vm1, %v6406_v0, 0 }
0x1191   :  { %6066 = vmax.xlane.f32.xlu0 %v6065_v11  ;;  %6069 = vmax.xlane.f32.xlu1 %v6068_v5 }
0x1202   :  { %v6237_v35 = vpop.xlane.xlu0 %6236 }
0x1203   :  { %9933 = vrcp.f32 %v6237_v35 }
0x1206   :  { %v6240_v63 = vpop.xlane.xlu1 %6239 }
0x1207   :  { %9935 = vrcp.f32 %v6240_v63 }
0x120a   :  { %v6243_v47 = vpop.xlane.xlu0 %6242 }
0x120b   :  { %9937 = vrcp.f32 %v6243_v47 }
0x120e   :  { %v6246_v25 = vpop.xlane.xlu1 %6245 }
0x120f   :  { %9939 = vrcp.f32 %v6246_v25 }
0x1210   :  { %v9934_v61 = vpop.eup %9933 }
0x1211   :  { %v6255_v17 = vmul.f32 %v9934_v61, %v9924_v16  ;;  %v6419_v16 = vsel %vm3628_vm1, %v6405_v49, 0  ;;  %v6644_v49 = vsel %vm3628_vm1, %v6628_v58, 0 }
0x1212   :  { %v6249_v52 = vpop.xlane.xlu0 %6248 }
0x1213   :  { %9941 = vrcp.f32 %v6249_v52 }
0x1214   :  { %v9936_v42 = vpop.eup %9935 }
0x1215   :  { %v6256_v40 = vmul.f32 %v9936_v42, %v9926_v54  ;;  %v6058_v42 = vpop.xlane.xlu1 %6057 }
0x1217   :  { %v6260_v8 = vpack.c.bf16 %v6256_v40, %v6255_v17 }
0x1218   :  { %v9938_v36 = vpop.eup %9937 }
0x1219   :  { %8931 = vmatmul.mubr.msk.bf16.vlgmr.msra.gmra.mxu0 %vm4121_vm4, %v6260_v8  ;;  %v6257_v5 = vmul.f32 %v9938_v36, %v9928_v57  ;;  %v6416_v57 = vsel %vm3628_vm1, %v6404_v62, 0  ;;  %v6638_v62 = vsel %vm3628_vm1, %v13562_v14, 0 }
0x121a   :  { %8961 = vmatpush3.bf16.xpose.msra.mxu0 %v6422_v30  ;;  %8934 = vmatprep.mubr.msk.bf16.mxu0 %vm10071_vm2, %v10070_v21 }
0x121b   :  { %8962 = vmatprep.subr.bf16.mxu0 %v10070_v21 }
0x121c   :  { %v9940_v11 = vpop.eup %9939 }
0x121d   :  { %v6258_v35 = vmul.f32 %v9940_v11, %v9930_v50  ;;  %v6061_v11 = vpop.xlane.xlu0 %6060 }
0x121e   :  { %v6072_v58 = vsub.f32 %v13015_v56, %v6061_v11 }
0x121f   :  { %v6261_v63 = vpack.c.bf16 %v6258_v35, %v6257_v5  ;;  %v6071_v35 = vsub.f32 %v13008_v13, %v6058_v42 }
0x1220   :  { %v9942_v47 = vpop.eup %9941 }
0x1221   :  { %8935 = vmatmul.mubr.msk.bf16.gmra.mxu0 %vm4121_vm4, %v6261_v63  ;;  %v6259_v54 = vmul.f32 %v9942_v47, %v9932_v59  ;;  %v6064_v63 = vpop.xlane.xlu1 %6063  ;;  %v6076_v4 = vmul.f32 1.442695, %v6071_v35  ;;  %v6067_v14 = vpop.xlane.xlu0 %6066 }
0x1222   :  { %8963 = vmatpush3.bf16.xpose.msra.mxu0 %v6419_v16  ;;  %8938 = vmatprep.mubr.msk.bf16.mxu0 %vm10071_vm2, %v10070_v21 }
0x1223   :  { %8964 = vmatprep.subr.bf16.mxu0 %v10070_v21  ;;  %v6262_v25 = vpack.c.bf16 %v6259_v54, %v6259_v54  ;;  %9943 = vpow2.f32 %v6076_v4 }
0x1229   :  { %8939 = vmatmul.mubr.msk.bf16.gmra.mxu0 %vm4121_vm4, %v6262_v25 }
0x122a   :  { %8965 = vmatpush3.bf16.xpose.msra.mxu0 %v6416_v57  ;;  %8966 = vmatprep.mubr.msk.bf16.mxu0 %vm10071_vm2, %v10070_v21 }
0x122b   :  { %8996 = vmatprep.subr.bf16.mxu0 %v10070_v21 }
0x1231   :  { %8967 = vmatmul.mubr.msk.bf16.vlgmr.msra.gmra.mxu0 %vm3628_vm1, %v12904_v6 }
0x1232   :  { %8997 = vmatpush3.bf16.xpose.msra.mxu0 %v6644_v49  ;;  %8970 = vmatprep.mubr.msk.bf16.mxu0 %vm10071_vm2, %v10070_v21 }
0x1233   :  { %8998 = vmatprep.subr.bf16.mxu0 %v10070_v21 }
0x1239   :  { %8971 = vmatmul.mubr.msk.bf16.gmra.mxu0 %vm3628_vm1, %v12928_v39 }
0x123a   :  { %8999 = vmatpush3.bf16.xpose.msra.mxu0 %v6641_v38  ;;  %8974 = vmatprep.mubr.msk.bf16.mxu0 %vm10071_vm2, %v10070_v21  ;;  %v6073_v38 = vsub.f32 %v13020_v23, %v6064_v63 }
0x123b   :  { %9000 = vmatprep.subr.bf16.mxu0 %v10070_v21 }
0x123c   :  { %v6080_v56 = vmul.f32 1.442695, %v6073_v38 }
0x1241   :  { %8975 = vmatmul.mubr.msk.bf16.gmra.mxu0 %vm3628_vm1, %v12949_v24 }
0x1242   :  { %9001 = vmatpush3.bf16.xpose.msra.mxu0 %v6638_v62  ;;  %9002 = vmatprep.mubr.msk.bf16.mxu0 %vm10071_vm2, %v10070_v21 }
0x1243   :  { %9032 = vmatprep.subr.bf16.mxu0 %v10070_v21 }
0x1249   :  { %9003 = vmatmul.mubr.msk.bf16.vlgmr.msra.gmra.mxu0 %vm3628_vm1, %v12904_v6 }
0x124a   :  { %9006 = vmatprep.mubr.msk.bf16.mxu0 %vm10071_vm2, %v10070_v21 }
0x1251   :  { %9007 = vmatmul.mubr.msk.bf16.gmra.mxu0 %vm3628_vm1, %v12928_v39 }
0x1252   :  { %9010 = vmatprep.mubr.msk.bf16.mxu0 %vm10071_vm2, %v10070_v21 }
0x1259   :  { %9011 = vmatmul.mubr.msk.bf16.gmra.mxu0 %vm3628_vm1, %v12949_v24 }
0x125a   :  { %9040 = vmatprep.mubr.msk.bf16.mxu0 %vm10071_vm2, %v10070_v21 }
0x12d9   :  { %v13097_v44 = vpop.f32.mrf.mxu0 }
0x12db   :  { %v8932_v2 = vpop.f32.mrf.mxu0 }
0x12dc   :  { %v6070_v2 = vpop.xlane.xlu1 %6069 }
0x12dd   :  { %v13099_v37 = vpop.f32.mrf.mxu0 }
0x12df   :  { %v8933_v48 = vpop.f32.mrf.mxu0 }
0x12e1   :  { %v13101_v12 = vpop.f32.mrf.mxu0 }
0x12e3   :  { %v8936_v1 = vpop.f32.mrf.mxu0 }
0x12e5   :  { %v13103_v6 = vpop.f32.mrf.mxu0 }
0x12e7   :  { %v8937_v39 = vpop.f32.mrf.mxu0 }
0x12e8   :  { %v6078_v39 = vmul.f32 1.442695, %v6072_v58 }
0x12e9   :  { %v13105_v50 = vpop.f32.mrf.mxu0 }
0x12ea   :  { %9945 = vpow2.f32 %v6078_v39 }
0x12eb   :  { %v8940_v59 = vpop.f32.mrf.mxu0  ;;  %9947 = vpow2.f32 %v6080_v56 }
0x12ec   :  { %v6074_v59 = vsub.f32 %v13027_v51, %v6067_v14 }
0x12ed   :  { %v6328_v32 = vpop.f32.mrf.mxu0 }
0x12ef   :  { %v8941_v24 = vpop.f32.mrf.mxu0 }
0x12f0   :  { %v6075_v24 = vsub.f32 %v13030_v31, %v6070_v2 }
0x12f1   :  { %v6458_v61 = vpop.f32.mrf.mxu0 }
0x12f2   :  { %v6480_v52 = vmul.f32 0.25, %v6458_v61 }
0x12f3   :  { %v8968_v17 = vpop.f32.mrf.mxu0 }
0x12f4   :  { %v13108_v40 = vadd.f32 %v12964_v19, %v6480_v52  ;;  %v6082_v17 = vmul.f32 1.442695, %v6074_v59 }
0x12f5   :  { %v6461_v0 = vpop.f32.mrf.mxu0 }
0x12f6   :  { %v6481_v8 = vmul.f32 0.25, %v6461_v0  ;;  %v6490_v30 = vsel %vm4121_vm4, %v13108_v40, -inf  ;;  %9949 = vpow2.f32 %v6082_v17 }
0x12f7   :  { %6491 = vmax.xlane.f32.xlu0 %v6490_v30  ;;  %v8969_v36 = vpop.f32.mrf.mxu0 }
0x12f8   :  { %v13113_v5 = vadd.f32 %v12973_v60, %v6481_v8  ;;  %v6084_v8 = vmul.f32 1.442695, %v6075_v24 }
0x12f9   :  { %v6466_v47 = vpop.f32.mrf.mxu0 }
0x12fa   :  { %v6482_v16 = vmul.f32 0.25, %v6466_v47  ;;  %v6493_v54 = vsel %vm4121_vm4, %v13113_v5, -inf  ;;  %9951 = vpow2.f32 %v6084_v8  ;;  %v13138_v47 = vpop.eup %9943 }
0x12fb   :  { %6494 = vmax.xlane.f32.xlu1 %v6493_v54  ;;  %v8972_v25 = vpop.f32.mrf.mxu0  ;;  %v6086_v38 = vsel %vm4121_vm4, %v13138_v47, 0.0 }
0x12fc   :  { %v13119_v57 = vadd.f32 %v12982_v20, %v6482_v16 }
0x12fd   :  { %v6469_v49 = vpop.f32.mrf.mxu0 }
0x12fe   :  { %v6483_v62 = vmul.f32 0.25, %v6469_v49  ;;  %v6496_v13 = vsel %vm4121_vm4, %v13119_v57, -inf  ;;  %v13144_v49 = vpop.eup %9945 }
0x12ff   :  { %6497 = vmax.xlane.f32.xlu0 %v6496_v13  ;;  %v8973_v48 = vpop.f32.mrf.mxu0 }
0x1300   :  { %v13126_v1 = vadd.f32 %v12991_v10, %v6483_v62  ;;  %v6089_v48 = vsel %vm4121_vm4, %v13144_v49, 0.0 }
0x1301   :  { %v6474_v32 = vpop.f32.mrf.mxu0 }
0x1302   :  { %v6484_v23 = vmul.f32 0.25, %v6474_v32  ;;  %v6499_v61 = vsel %vm4121_vm4, %v13126_v1, -inf }
0x1303   :  { %6500 = vmax.xlane.f32.xlu1 %v6499_v61  ;;  %v8976_v52 = vpop.f32.mrf.mxu0 }
0x1304   :  { %v13133_v42 = vadd.f32 %v12998_v46, %v6484_v23 }
0x1305   :  { %v6477_v0 = vpop.f32.mrf.mxu0 }
0x1306   :  { %v6502_v51 = vsel %vm4134_vm5, %v13133_v42, -inf }
0x1307   :  { %6503 = vmax.xlane.f32.xlu0 %v6502_v51  ;;  %v8977_v30 = vpop.f32.mrf.mxu0 }
0x1309   :  { %v6680_v31 = vpop.f32.mrf.mxu0 }
0x130a   :  { %v6702_v36 = vmul.f32 0.25, %v6680_v31 }
0x130b   :  { %v9004_v11 = vpop.f32.mrf.mxu0 }
0x130c   :  { %v6707_v35 = vadd.f32 %v12964_v19, %v6702_v36  ;;  %v13149_v19 = vpop.eup %9947 }
0x130d   :  { %v6683_v63 = vpop.f32.mrf.mxu0  ;;  %v13153_v2 = vpop.eup %9949 }
0x130e   :  { %v6703_v16 = vmul.f32 0.25, %v6683_v63  ;;  %v6712_v54 = vsel %vm4121_vm4, %v6707_v35, -inf  ;;  %v13159_v39 = vpop.eup %9951  ;;  %v6095_v24 = vsel %vm4121_vm4, %v13153_v2, 0.0 }
0x130f   :  { %6713 = vmax.xlane.f32.xlu1 %v6712_v54  ;;  %v9005_v25 = vpop.f32.mrf.mxu0  ;;  %v6098_v56 = vsel %vm4134_vm5, %v13159_v39, 0.0 }
0x1310   :  { %v6708_v4 = vadd.f32 %v12973_v60, %v6703_v16  ;;  %v6092_v60 = vsel %vm4121_vm4, %v13149_v19, 0.0 }
0x1311   :  { %v13142_v58 = vpop.f32.mrf.mxu0 }
0x1312   :  { %v6715_v14 = vsel %vm4121_vm4, %v6708_v4, -inf }
0x1313   :  { %6087 = vadd.xlane.f32.xlu1 %v6086_v38  ;;  %6716 = vmax.xlane.f32.xlu0 %v6715_v14  ;;  %v9008_v62 = vpop.f32.mrf.mxu0 }
0x1315   :  { %v13151_v13 = vpop.f32.mrf.mxu0 }
0x1317   :  { %6093 = vadd.xlane.f32.xlu1 %v6092_v60  ;;  %6090 = vadd.xlane.f32.xlu0 %v6089_v48  ;;  %v9009_v59 = vpop.f32.mrf.mxu0 }
0x1319   :  { %v6696_v32 = vpop.f32.mrf.mxu0 }
0x131b   :  { %6099 = vadd.xlane.f32.xlu1 %v6098_v56  ;;  %6096 = vadd.xlane.f32.xlu0 %v6095_v24  ;;  %v9012_v23 = vpop.f32.mrf.mxu0 }
0x131d   :  { %v6699_v61 = vpop.f32.mrf.mxu0 }
0x131f   :  { %v9013_v52 = vpop.f32.mrf.mxu0 }
0x1380   :  { %v6492_v17 = vpop.xlane.xlu0 %6491 }
0x1381   :  { %v6505_v0 = vsub.f32 %v13108_v40, %v6492_v17 }
0x1383   :  { %v6510_v8 = vmul.f32 1.442695, %v6505_v0 }
0x1384   :  { %v6495_v51 = vpop.xlane.xlu1 %6494 }
0x1385   :  { %9953 = vpow2.f32 %v6510_v8  ;;  %v6506_v30 = vsub.f32 %v13113_v5, %v6495_v51 }
0x1387   :  { %v6512_v31 = vmul.f32 1.442695, %v6506_v30 }
0x1388   :  { %v6498_v36 = vpop.xlane.xlu0 %6497 }
0x1389   :  { %9955 = vpow2.f32 %v6512_v31  ;;  %v6507_v11 = vsub.f32 %v13119_v57, %v6498_v36 }
0x138b   :  { %v6514_v63 = vmul.f32 1.442695, %v6507_v11 }
0x138c   :  { %v6501_v16 = vpop.xlane.xlu1 %6500 }
0x138d   :  { %9957 = vpow2.f32 %v6514_v63  ;;  %v6508_v54 = vsub.f32 %v13126_v1, %v6501_v16  ;;  %v6705_v63 = vmul.f32 0.25, %v13151_v13  ;;  %v6706_v16 = vmul.f32 0.25, %v6696_v32 }
0x138f   :  { %v6516_v25 = vmul.f32 1.442695, %v6508_v54  ;;  %v13209_v13 = vadd.f32 %v12998_v46, %v6706_v16 }
0x1390   :  { %v6504_v38 = vpop.xlane.xlu0 %6503 }
0x1391   :  { %9959 = vpow2.f32 %v6516_v25  ;;  %v6509_v40 = vsub.f32 %v13133_v42, %v6504_v38  ;;  %v6724_v46 = vsel %vm4134_vm5, %v13209_v13, -inf }
0x1392   :  { %v13170_v14 = vpop.eup %9953 }
0x1393   :  { %v6518_v62 = vmul.f32 1.442695, %v6509_v40  ;;  %v6520_v5 = vsel %vm4121_vm4, %v13170_v14, 0.0 }
0x1394   :  { %6521 = vadd.xlane.f32.xlu0 %v6520_v5 }
0x1395   :  { %9961 = vpow2.f32 %v6518_v62 }
0x1396   :  { %v13174_v60 = vpop.eup %9955 }
0x1397   :  { %v6523_v57 = vsel %vm4121_vm4, %v13174_v60, 0.0 }
0x1398   :  { %6524 = vadd.xlane.f32.xlu1 %v6523_v57  ;;  %v6714_v1 = vpop.xlane.xlu1 %6713 }
0x1399   :  { %v6727_v48 = vsub.f32 %v6707_v35, %v6714_v1 }
0x139a   :  { %v13178_v59 = vpop.eup %9957 }
0x139b   :  { %v6732_v56 = vmul.f32 1.442695, %v6727_v48  ;;  %v6526_v42 = vsel %vm4121_vm4, %v13178_v59, 0.0 }
0x139c   :  { %6527 = vadd.xlane.f32.xlu0 %v6526_v42  ;;  %v6717_v24 = vpop.xlane.xlu0 %6716  ;;  %v6088_v23 = vpop.xlane.xlu1 %6087 }
0x139d   :  { %9963 = vpow2.f32 %v6732_v56  ;;  %v6728_v61 = vsub.f32 %v6708_v4, %v6717_v24  ;;  %v6704_v4 = vmul.f32 0.25, %v13142_v58  ;;  %v6411_v58 = vmul.f32 %v12769_v18, %v12889_v45 }
0x139e   :  { %v13182_v52 = vpop.eup %9959  ;;  %9965 = vrcp.f32 %v6088_v23  ;;  %v13563_v23 = vpack.c.bf16 %v12808_v33, %v12812_v29 }
0x139f   :  { %v6734_v17 = vmul.f32 1.442695, %v6728_v61  ;;  %v6529_v0 = vsel %vm4121_vm4, %v13182_v52, 0.0  ;;  %v13194_v11 = vadd.f32 %v12982_v20, %v6704_v4  ;;  %v13206_v20 = vadd.f32 %v12991_v10, %v6705_v63 }
0x13a0   :  { %6530 = vadd.xlane.f32.xlu1 %v6529_v0  ;;  %v6091_v35 = vpop.xlane.xlu0 %6090  ;;  %v6094_v31 = vpop.xlane.xlu1 %6093  ;;  %v6414_v1 = vpack.c.bf16 %v6411_v58, %v6411_v58  ;;  %v13564_v0 = vpack.c.bf16 %v12772_v22, %v12775_v55  ;;  %v6633_v55 = vmul.f32 %v12780_v34, %v12889_v45 }
0x13a1   :  { %9967 = vpow2.f32 %v6734_v17  ;;  %v6718_v62 = vsel %vm4121_vm4, %v13194_v11, -inf  ;;  %v6721_v10 = vsel %vm4121_vm4, %v13206_v20, -inf }
0x13a2   :  { %v13186_v8 = vpop.eup %9961  ;;  %9969 = vrcp.f32 %v6091_v35  ;;  %v6558_v42 = vsel %vm4343_vm3, %v6414_v1, 0  ;;  %v6636_v63 = vpack.c.bf16 %v6633_v55, %v6633_v55 }
0x13a3   :  { %v6532_v51 = vsel %vm4134_vm5, %v13186_v8, 0.0 }
0x13a4   :  { %6533 = vadd.xlane.f32.xlu0 %v6532_v51  ;;  %v6097_v30 = vpop.xlane.xlu0 %6096  ;;  %v6100_v25 = vpop.xlane.xlu1 %6099 }
0x13a5   :  { %9971 = vrcp.f32 %v6097_v30 }
0x13a6   :  { %9973 = vrcp.f32 %v6094_v31 }
0x13a7   :  { %9975 = vrcp.f32 %v6100_v25 }
0x13aa   :  { %v13191_v36 = vpop.eup %9963 }
0x13ab   :  { %v6742_v54 = vsel %vm4121_vm4, %v13191_v36, 0.0  ;;  %v9966_v38 = vpop.eup %9965 }
0x13ac   :  { %6743 = vadd.xlane.f32.xlu1 %v6742_v54  ;;  %v6106_v18 = vmul.f32 %v9966_v38, %v13138_v47  ;;  %v6780_v54 = vsel %vm4343_vm3, %v6636_v63, 0 }
0x13ae   :  { %v13201_v40 = vpop.eup %9967 }
0x13af   :  { %v6745_v32 = vsel %vm4121_vm4, %v13201_v40, 0.0  ;;  %v9970_v5 = vpop.eup %9969 }
0x13b0   :  { %6746 = vadd.xlane.f32.xlu0 %v6745_v32  ;;  %6719 = vmax.xlane.f32.xlu1 %v6718_v62  ;;  %v6107_v57 = vmul.f32 %v9970_v5, %v13144_v49 }
0x13b2   :  { %v6111_v48 = vpack.c.bf16 %v6107_v57, %v6106_v18  ;;  %v9972_v56 = vpop.eup %9971 }
0x13b3   :  { %v9974_v24 = vpop.eup %9973  ;;  %v6109_v47 = vmul.f32 %v9972_v56, %v13153_v2 }
0x13b4   :  { %6722 = vmax.xlane.f32.xlu0 %v6721_v10  ;;  %6725 = vmax.xlane.f32.xlu1 %v6724_v46  ;;  %v6108_v49 = vmul.f32 %v9974_v24, %v13149_v19  ;;  %v9976_v17 = vpop.eup %9975 }
0x13b5   :  { %8949 = vmatmul.mubr.msk.bf16.vlgmr.msra.gmra.mxu1 %vm4121_vm4, %v6111_v48  ;;  %v6110_v2 = vmul.f32 %v9976_v17, %v13159_v39 }
0x13b6   :  { %8979 = vmatpush3.bf16.msra.mxu1 %v6558_v42  ;;  %8952 = vmatprep.mubr.msk.bf16.mxu1 %vm10071_vm2, %v10070_v21  ;;  %v6112_v61 = vpack.c.bf16 %v6109_v47, %v6108_v49 }
0x13b7   :  { %8980 = vmatprep.subr.bf16.mxu1 %v10070_v21  ;;  %v6113_v19 = vpack.c.bf16 %v6110_v2, %v6110_v2  ;;  %v9757_v2 = vld [vmem:[%s13509_s13 + $0x38] sm:$0xff]  }
0x13b8   :  { %9033 = vmatpush3.bf16.msra.mxu0 %v9757_v2 }
0x13b9   :  { %9034 = vmatprep.subr.bf16.mxu0 %v10070_v21 }
0x13ba   :  { %8981 = vmatpush3.bf16.msra.mxu1 %v13563_v23 }
0x13bb   :  { %8982 = vmatprep.subr.bf16.mxu1 %v10070_v21 }
0x13bd   :  { %8953 = vmatmul.mubr.msk.bf16.gmra.mxu1 %vm4121_vm4, %v6112_v61 }
0x13be   :  { %8983 = vmatpush3.bf16.msra.mxu1 %v13564_v0  ;;  %8956 = vmatprep.mubr.msk.bf16.mxu1 %vm10071_vm2, %v10070_v21 }
0x13bf   :  { %9014 = vmatprep.subr.bf16.mxu1 %v10070_v21 }
0x13c5   :  { %8957 = vmatmul.mubr.msk.bf16.gmra.mxu1 %vm4121_vm4, %v6113_v19 }
0x13c6   :  { %8984 = vmatprep.mubr.msk.bf16.mxu1 %vm10071_vm2, %v10070_v21 }
0x141d   :  { %v6522_v33 = vpop.xlane.xlu0 %6521 }
0x141e   :  { %9977 = vrcp.f32 %v6522_v33 }
0x1421   :  { %v6525_v29 = vpop.xlane.xlu1 %6524 }
0x1422   :  { %9979 = vrcp.f32 %v6525_v29 }
0x1425   :  { %v6528_v35 = vpop.xlane.xlu0 %6527 }
0x1426   :  { %9981 = vrcp.f32 %v6528_v35 }
0x1429   :  { %v6531_v22 = vpop.xlane.xlu1 %6530 }
0x142a   :  { %9983 = vrcp.f32 %v6531_v22  ;;  %v9758_v22 = vld [vmem:[%s13509_s13 + $0x30] sm:$0xff]  }
0x142b   :  { %v9978_v39 = vpop.eup %9977  ;;  %9035 = vmatpush3.bf16.msra.mxu0 %v9758_v22 }
0x142c   :  { %v6540_v4 = vmul.f32 %v9978_v39, %v13170_v14  ;;  %9036 = vmatprep.subr.bf16.mxu0 %v10070_v21 }
0x142d   :  { %v6534_v51 = vpop.xlane.xlu0 %6533 }
0x142e   :  { %9985 = vrcp.f32 %v6534_v51  ;;  %v9759_v51 = vld [vmem:[%s13509_s13 + $0x28] sm:$0xff]  }
0x142f   :  { %v9980_v30 = vpop.eup %9979  ;;  %9037 = vmatpush3.bf16.msra.mxu0 %v9759_v51 }
0x1430   :  { %v6541_v31 = vmul.f32 %v9980_v30, %v13174_v60  ;;  %v13565_v60 = vpack.c.bf16 %v12820_v26, %v12816_v27  ;;  %9038 = vmatprep.subr.bf16.mxu0 %v10070_v21 }
0x1432   :  { %v6545_v16 = vpack.c.bf16 %v6541_v31, %v6540_v4  ;;  %v9760_v4 = vld [vmem:[%s13509_s13 + $0x20] sm:$0xff]  }
0x1433   :  { %v9982_v25 = vpop.eup %9981  ;;  %9039 = vmatpush3.bf16.msra.mxu0 %v9760_v4 }
0x1434   :  { %8985 = vmatmul.mubr.msk.bf16.vlgmr.msra.gmra.mxu1 %vm4121_vm4, %v6545_v16  ;;  %v6542_v45 = vmul.f32 %v9982_v25, %v13178_v59  ;;  %v13566_v59 = vpack.c.bf16 %v12786_v41, %v12783_v7 }
0x1435   :  { %9015 = vmatpush3.bf16.msra.mxu1 %v6780_v54  ;;  %v6744_v38 = vpop.xlane.xlu1 %6743  ;;  %8988 = vmatprep.mubr.msk.bf16.mxu1 %vm10071_vm2, %v10070_v21 }
0x1436   :  { %9016 = vmatprep.subr.bf16.mxu1 %v10070_v21  ;;  %9987 = vrcp.f32 %v6744_v38 }
0x1437   :  { %v9984_v34 = vpop.eup %9983 }
0x1438   :  { %v6543_v14 = vmul.f32 %v9984_v34, %v13182_v52 }
0x1439   :  { %9017 = vmatpush3.bf16.msra.mxu1 %v13565_v60  ;;  %v6747_v58 = vpop.xlane.xlu0 %6746  ;;  %v6720_v62 = vpop.xlane.xlu1 %6719 }
0x143a   :  { %9989 = vrcp.f32 %v6747_v58  ;;  %v6729_v32 = vsub.f32 %v13194_v11, %v6720_v62  ;;  %9018 = vmatprep.subr.bf16.mxu1 %v10070_v21  ;;  %v6546_v5 = vpack.c.bf16 %v6543_v14, %v6542_v45 }
0x143b   :  { %v9986_v18 = vpop.eup %9985 }
0x143c   :  { %v6736_v57 = vmul.f32 1.442695, %v6729_v32  ;;  %8989 = vmatmul.mubr.msk.bf16.gmra.mxu1 %vm4121_vm4, %v6546_v5  ;;  %v6544_v11 = vmul.f32 %v9986_v18, %v13186_v8  ;;  %v13567_v5 = vmov 0  }
0x143d   :  { %9019 = vmatpush3.bf16.msra.mxu1 %v13566_v59  ;;  %v6723_v52 = vpop.xlane.xlu0 %6722  ;;  %v6726_v1 = vpop.xlane.xlu1 %6725  ;;  %8992 = vmatprep.mubr.msk.bf16.mxu1 %vm10071_vm2, %v10070_v21 }
0x143e   :  { %9991 = vpow2.f32 %v6736_v57  ;;  %v6730_v27 = vsub.f32 %v13206_v20, %v6723_v52  ;;  %v6731_v26 = vsub.f32 %v13209_v13, %v6726_v1  ;;  %v6547_v46 = vpack.c.bf16 %v6544_v11, %v6544_v11 }
0x1440   :  { %v6738_v48 = vmul.f32 1.442695, %v6730_v27  ;;  %v6740_v10 = vmul.f32 1.442695, %v6731_v26 }
0x1442   :  { %9993 = vpow2.f32 %v6738_v48 }
0x1443   :  { %9995 = vpow2.f32 %v6740_v10  ;;  %v9988_v7 = vpop.eup %9987 }
0x1444   :  { %8993 = vmatmul.mubr.msk.bf16.gmra.mxu1 %vm4121_vm4, %v6547_v46  ;;  %v6762_v56 = vmul.f32 %v9988_v7, %v13191_v36 }
0x1445   :  { %9020 = vmatprep.mubr.msk.bf16.mxu1 %vm10071_vm2, %v10070_v21 }
0x1447   :  { %v9990_v41 = vpop.eup %9989 }
0x1448   :  { %v6763_v20 = vmul.f32 %v9990_v41, %v13201_v40 }
0x144a   :  { %v6767_v42 = vpack.c.bf16 %v6763_v20, %v6762_v56 }
0x144b   :  { %v9992_v13 = vpop.eup %9991 }
0x144c   :  { %9021 = vmatmul.mubr.msk.bf16.vlgmr.msra.gmra.mxu1 %vm4121_vm4, %v6767_v42  ;;  %v6748_v8 = vsel %vm4121_vm4, %v9992_v13, 0.0 }
0x144d   :  { %6749 = vadd.xlane.f32.xlu0 %v6748_v8  ;;  %9024 = vmatprep.mubr.msk.bf16.mxu1 %vm10071_vm2, %v10070_v21 }
0x144f   :  { %v9994_v24 = vpop.eup %9993 }
0x1450   :  { %v9996_v47 = vpop.eup %9995  ;;  %v6751_v49 = vsel %vm4121_vm4, %v9994_v24, 0.0 }
0x1451   :  { %6752 = vadd.xlane.f32.xlu1 %v6751_v49  ;;  %v6754_v23 = vsel %vm4134_vm5, %v9996_v47, 0.0 }
0x1452   :  { %6755 = vadd.xlane.f32.xlu0 %v6754_v23 }
0x1475   :  { %v6377_v36 = vpop.f32.mrf.mxu1 }
0x1476   :  { %v6378_v8 = vadd.f32 %v6377_v36, %v13097_v44 }
0x1477   :  { %v8950_v40 = vpop.f32.mrf.mxu1 }
0x1479   :  { %v6380_v61 = vpop.f32.mrf.mxu1 }
0x147b   :  { %v8951_v17 = vpop.f32.mrf.mxu1 }
0x147d   :  { %v6385_v0 = vpop.f32.mrf.mxu1 }
0x147e   :  { %v6386_v59 = vadd.f32 %v6385_v0, %v13101_v12  ;;  %v6381_v12 = vadd.f32 %v6380_v61, %v13099_v37 }
0x147f   :  { %v8954_v19 = vpop.f32.mrf.mxu1 }
0x1481   :  { %v6388_v33 = vpop.f32.mrf.mxu1 }
0x1482   :  { %v6389_v26 = vadd.f32 %v6388_v33, %v13103_v6 }
0x1483   :  { %v8955_v29 = vpop.f32.mrf.mxu1 }
0x1485   :  { %v6393_v35 = vpop.f32.mrf.mxu1 }
0x1486   :  { %v6394_v46 = vadd.f32 %v6393_v35, %v13105_v50 }
0x1487   :  { %v8958_v55 = vpop.f32.mrf.mxu1 }
0x1489   :  { %v6396_v39 = vpop.f32.mrf.mxu1 }
0x148b   :  { %v8959_v30 = vpop.f32.mrf.mxu1 }
0x148c   :  { %v8230_v30 = vld [vmem:[%s13510_s14 + $0x1] ss:$0 sm:$0xff] }
0x14d6   :  { %v6750_v31 = vpop.xlane.xlu0 %6749 }
0x14d7   :  { %9997 = vrcp.f32 %v6750_v31 }
0x14da   :  { %v6753_v63 = vpop.xlane.xlu1 %6752 }
0x14db   :  { %9999 = vrcp.f32 %v6753_v63  ;;  %v6756_v16 = vpop.xlane.xlu0 %6755 }
0x14dc   :  { %10001 = vrcp.f32 %v6756_v16 }
0x14e4   :  { %v9998_v54 = vpop.eup %9997 }
0x14e5   :  { %v6764_v38 = vmul.f32 %v9998_v54, %v9992_v13 }
0x14e8   :  { %v10000_v25 = vpop.eup %9999 }
0x14e9   :  { %v6765_v34 = vmul.f32 %v10000_v25, %v9994_v24  ;;  %v10002_v14 = vpop.eup %10001 }
0x14ea   :  { %v6766_v60 = vmul.f32 %v10002_v14, %v9996_v47 }
0x14eb   :  { %v6768_v45 = vpack.c.bf16 %v6765_v34, %v6764_v38 }
0x14ec   :  { %v6769_v58 = vpack.c.bf16 %v6766_v60, %v6766_v60 }
0x14ed   :  { %9025 = vmatmul.mubr.msk.bf16.gmra.mxu1 %vm4121_vm4, %v6768_v45 }
0x14ee   :  { %9028 = vmatprep.mubr.msk.bf16.mxu1 %vm10071_vm2, %v10070_v21 }
0x14f4   :  { %v6594_v62 = vpop.f32.mrf.mxu1 }
0x14f5   :  { %9029 = vmatmul.mubr.msk.bf16.gmra.mxu1 %vm4121_vm4, %v6769_v58  ;;  %v6616_v47 = vadd.f32 %v6594_v62, %v6378_v8 }
0x14f6   :  { %v8986_v32 = vpop.f32.mrf.mxu1  ;;  %7159 = vmatprep.mubr.bf16.mxu1 %v13567_v5 }
0x14f8   :  { %v6597_v18 = vpop.f32.mrf.mxu1 }
0x14f9   :  { %v6617_v49 = vadd.f32 %v6597_v18, %v6381_v12 }
0x14fa   :  { %v8987_v57 = vpop.f32.mrf.mxu1 }
0x14fc   :  { %v6602_v52 = vpop.f32.mrf.mxu1 }
0x14fd   :  { %v6618_v1 = vadd.f32 %v6602_v52, %v6386_v59 }
0x14fe   :  { %v8990_v27 = vpop.f32.mrf.mxu1 }
0x1500   :  { %v6605_v11 = vpop.f32.mrf.mxu1 }
0x1501   :  { %v6619_v48 = vadd.f32 %v6605_v11, %v6389_v26 }
0x1502   :  { %v8991_v10 = vpop.f32.mrf.mxu1 }
0x1504   :  { %v6610_v7 = vpop.f32.mrf.mxu1 }
0x1505   :  { %v6620_v41 = vadd.f32 %v6610_v7, %v6394_v46 }
0x1506   :  { %v8994_v56 = vpop.f32.mrf.mxu1 }
0x1508   :  { %v6613_v20 = vpop.f32.mrf.mxu1 }
0x150a   :  { %v8995_v42 = vpop.f32.mrf.mxu1 }
0x150c   :  { %v6816_v13 = vpop.f32.mrf.mxu1 }
0x150d   :  { %v6838_v6 = vadd.f32 %v6816_v13, %v6616_v47  ;;  %v9764_v47 = vld [vmem:[%s13513_s17 + $0x60] ss:$8 sps:$4 sm:$0xff]  }
0x150e   :  { %v9022_v24 = vpop.f32.mrf.mxu1 }
0x150f   :  { %v9761_v24 = vld [vmem:[%s13513_s17 + $0x70] ss:$8 sps:$4 sm:$0xff]  }
0x1510   :  { %v6819_v23 = vpop.f32.mrf.mxu1 }
0x1511   :  { %v6839_v40 = vadd.f32 %v6819_v23, %v6617_v49  ;;  %v9769_v49 = vld [vmem:[%s13513_s17 + $0x54] ss:$8 sps:$4 sm:$0xff]   ;;  %v9767_v23 = vld [vmem:[%s13513_s17 + $0x50] ss:$8 sps:$4 sm:$0xff]  }
0x1512   :  { %v9023_v17 = vpop.f32.mrf.mxu1 }
0x1513   :  { %v6852_v0 = vpack.c.bf16 %v6839_v40, %v6838_v6  ;;  %v9772_v6 = vld [vmem:[%s13513_s17 + $0x44] ss:$8 sps:$4 sm:$0xff]   ;;  %v9770_v40 = vld [vmem:[%s13513_s17 + $0x40] ss:$8 sps:$4 sm:$0xff]  }
0x1515   :  { %9041 = vmatmul.mubr.msk.bf16.vlgmr.msra.gmra.mxu0 %vm3628_vm1, %v6852_v0 }
0x1516   :  { %9044 = vmatprep.mubr.msk.bf16.mxu0 %vm10071_vm2, %v10070_v21 }
0x15ad   :  { %v6824_v50 = vpop.f32.mrf.mxu1 }
0x15ae   :  { %v6840_v33 = vadd.f32 %v6824_v50, %v6618_v1 }
0x15af   :  { %v9026_v2 = vpop.f32.mrf.mxu1 }
0x15b1   :  { %v6827_v19 = vpop.f32.mrf.mxu1 }
0x15b2   :  { %v6841_v44 = vadd.f32 %v6827_v19, %v6619_v48 }
0x15b3   :  { %v9027_v36 = vpop.f32.mrf.mxu1 }
0x15b4   :  { %v6853_v37 = vpack.c.bf16 %v6841_v44, %v6840_v33 }
0x15b5   :  { %v6832_v61 = vpop.f32.mrf.mxu1 }
0x15b6   :  { %9045 = vmatmul.mubr.msk.bf16.gmra.mxu0 %vm3628_vm1, %v6853_v37  ;;  %v6842_v35 = vadd.f32 %v6832_v61, %v6620_v41 }
0x15b7   :  { %v9030_v29 = vpop.f32.mrf.mxu1  ;;  %9048 = vmatprep.mubr.msk.bf16.mxu0 %vm10071_vm2, %v10070_v21 }
0x15b8   :  { %v6854_v39 = vpack.c.bf16 %v6842_v35, %v6842_v35  ;;  %v13358_v35 = vld [vmem:[%s13511_s15 + $0x1] ss:$0 sm:$0xff] }
0x15b9   :  { %v6835_v22 = vpop.f32.mrf.mxu1 }
0x15bb   :  { %v9031_v55 = vpop.f32.mrf.mxu1 }
0x15be   :  { %9049 = vmatmul.mubr.msk.bf16.gmra.mxu0 %vm3628_vm1, %v6854_v39 }
0x15d5   :  { %v6922_v51 = vpop.f32.mrf.mxu0 }
0x15d6   :  { %v6944_v4 = vadd.f32 %v6922_v51, %v12593_v3 }
0x15d7   :  { %v9042_v31 = vpop.f32.mrf.mxu0 }
0x15d8   :  { %v13313_v63 = vadd.f32 %v8230_v30, %v6944_v4 }
0x15d9   :  { %v6925_v16 = vpop.f32.mrf.mxu0 }
0x15da   :  { %v6945_v54 = vadd.f32 %v6925_v16, %v12598_v9  ;;  %v6966_v25 = vsel %vm3628_vm1, %v13313_v63, 0.0 }
0x15db   :  { %6967 = vadd.xlane.f32.xlu1 %v6966_v25  ;;  %v9043_v38 = vpop.f32.mrf.mxu0 }
0x15dc   :  { %v6958_v34 = vadd.f32 %v8230_v30, %v6945_v54  ;;  %v13369_v54 = vld [vmem:[%s13512_s16 + $0x1] ss:$0 sm:$0xff] }
0x15de   :  { %v6969_v45 = vsel %vm3628_vm1, %v6958_v34, 0.0 }
0x15df   :  { %6970 = vadd.xlane.f32.xlu0 %v6969_v45 }
0x1664   :  { %v6968_v14 = vpop.xlane.xlu1 %6967 }
0x1665   :  { %v6981_v60 = vmul.f32 0.015625, %v6968_v14 }
0x1667   :  { %v6986_v58 = vsub.f32 %v13313_v63, %v6981_v60 }
0x1668   :  { %v6971_v3 = vpop.xlane.xlu0 %6970 }
0x1669   :  { %v6982_v62 = vmul.f32 0.015625, %v6971_v3  ;;  %v6991_v32 = vmul.f32 %v6986_v58, %v6986_v58 }
0x166b   :  { %v6987_v18 = vsub.f32 %v6958_v34, %v6982_v62  ;;  %v6996_v57 = vsel %vm3628_vm1, %v6991_v32, 0.0 }
0x166c   :  { %6997 = vadd.xlane.f32.xlu1 %v6996_v57  ;;  %v9773_v57 = vld [vmem:[%s13515_s19 + $0xf8] sm:$0xff]  }
0x166d   :  { %v6992_v9 = vmul.f32 %v6987_v18, %v6987_v18  ;;  %8565 = vmatprep.subr.bf16.mxu0 %v9773_v57 }
0x166f   :  { %v6999_v59 = vsel %vm3628_vm1, %v6992_v9, 0.0  ;;  %v9774_v9 = vld [vmem:[%s13515_s19 + $0xb8] sm:$0xff]  }
0x1670   :  { %7000 = vadd.xlane.f32.xlu0 %v6999_v59  ;;  %8566 = vmatpush3.bf16.msra.mxu0 %v9774_v9  ;;  %v9775_v59 = vld [vmem:[%s13515_s19 + $0xf0] sm:$0xff]  }
0x1671   :  { %8567 = vmatprep.subr.bf16.mxu0 %v9775_v59 }
0x1676   :  { %v6930_v52 = vpop.f32.mrf.mxu0 }
0x1677   :  { %v6946_v1 = vadd.f32 %v6930_v52, %v12603_v53  ;;  %v9776_v52 = vld [vmem:[%s13515_s19 + $0xb0] sm:$0xff]  }
0x1678   :  { %v9046_v27 = vpop.f32.mrf.mxu0  ;;  %8568 = vmatpush3.bf16.msra.mxu0 %v9776_v52 }
0x1679   :  { %v6959_v26 = vadd.f32 %v8230_v30, %v6946_v1  ;;  %v9777_v1 = vld [vmem:[%s13515_s19 + $0xe8] sm:$0xff]  }
0x167a   :  { %v6933_v11 = vpop.f32.mrf.mxu0  ;;  %v9778_v27 = vld [vmem:[%s13515_s19 + $0xa8] sm:$0xff]   ;;  %8569 = vmatprep.subr.bf16.mxu0 %v9777_v1 }
0x167b   :  { %v6947_v48 = vadd.f32 %v6933_v11, %v12608_v28  ;;  %v6972_v10 = vsel %vm3628_vm1, %v6959_v26, 0.0  ;;  %v9763_v28 = vld [vmem:[%s13513_s17 + $0x74] ss:$8 sps:$4 sm:$0xff]   ;;  %v9780_v11 = vld [vmem:[%s13515_s19 + $0xa0] sm:$0xff]  }
0x167c   :  { %6973 = vadd.xlane.f32.xlu1 %v6972_v10  ;;  %v9047_v46 = vpop.f32.mrf.mxu0  ;;  %7135 = vmatprep.subr.bf16.mxu1 %v9763_v28  ;;  %v9782_v10 = vld [vmem:[%s13515_s19 + $0x98] sm:$0xff]  }
0x167d   :  { %v6960_v7 = vadd.f32 %v8230_v30, %v6947_v48  ;;  %7136 = vmatpush1.bf16.msra.mxu1 %v9761_v24  ;;  %8570 = vmatpush3.bf16.msra.mxu0 %v9778_v27  ;;  %v9781_v48 = vld [vmem:[%s13515_s19 + $0xd8] sm:$0xff]   ;;  %v9783_v46 = vld [vmem:[%s13515_s19 + $0xd0] sm:$0xff]  }
0x167e   :  { %v6938_v41 = vpop.f32.mrf.mxu0 }
0x167f   :  { %v6948_v56 = vadd.f32 %v6938_v41, %v12613_v15  ;;  %v6975_v20 = vsel %vm3628_vm1, %v6960_v7, 0.0  ;;  %v9766_v15 = vld [vmem:[%s13513_s17 + $0x64] ss:$8 sps:$4 sm:$0xff]   ;;  %s10073_s17 = smov [#allocation4]  }
0x1680   :  { %6976 = vadd.xlane.f32.xlu0 %v6975_v20  ;;  %v9050_v42 = vpop.f32.mrf.mxu0  ;;  %7137 = vmatprep.subr.bf16.mxu1 %v9766_v15  ;;  %v9785_v41 = vld [vmem:[%s13515_s19 + $0xc8] sm:$0xff]   ;;  %v9787_v20 = vld [vmem:[%s13515_s19 + $0xc0] sm:$0xff]   ;;  %s7594_s29 = sshll.u32 %s10073_s17, 4  ;;  %s7595_s29 = int_to_ptr.vmem [resolvable:$true] %s7594_s29 }
0x1681   :  { %v6961_v13 = vadd.f32 %v8230_v30, %v6948_v56  ;;  %7138 = vmatpush1.bf16.msra.mxu1 %v9764_v47  ;;  %v9786_v56 = vld [vmem:[%s13515_s19 + $0x88] sm:$0xff]   ;;  %v9788_v42 = vld [vmem:[%s13515_s19 + $0x80] sm:$0xff]   ;;  %p10051_p1 = scmp.lt.s32.totalorder %s7595_s29, %s7595_s29 }
0x1682   :  { %v6941_v8 = vpop.f32.mrf.mxu0  ;;  %7139 = vmatprep.subr.bf16.mxu1 %v9769_v49 }
0x1683   :  { %v6978_v53 = vsel %vm3478_vm0, %v6961_v13, 0.0 }
0x1684   :  { %6979 = vadd.xlane.f32.xlu1 %v6978_v53  ;;  %v9051_v12 = vpop.f32.mrf.mxu0 }
0x1685   :  { %7140 = vmatpush1.bf16.msra.mxu1 %v9767_v23 }
0x1686   :  { %7141 = vmatprep.subr.bf16.mxu1 %v9772_v6 }
0x1689   :  { %7142 = vmatpush1.bf16.msra.mxu1 %v9770_v40 }
0x168a   :  { %9052 = vmatprep.subr.bf16.mxu1 %v10070_v21 }
0x16f5   :  { %v6998_v17 = vpop.xlane.xlu1 %6997 }
0x16f6   :  { %v7011_v0 = vmul.f32 0.015625, %v6998_v17 }
0x16f8   :  { %v7016_v50 = vadd.f32 1e-06, %v7011_v0 }
0x16f9   :  { %v7001_v2 = vpop.xlane.xlu0 %7000 }
0x16fa   :  { %10003 = vrsqrt.f32 %v7016_v50  ;;  %v7012_v19 = vmul.f32 0.015625, %v7001_v2 }
0x16fc   :  { %v7017_v33 = vadd.f32 1e-06, %v7012_v19 }
0x16fe   :  { %10005 = vrsqrt.f32 %v7017_v33 }
0x1705   :  { %v6974_v44 = vpop.xlane.xlu1 %6973 }
0x1706   :  { %v6983_v36 = vmul.f32 0.015625, %v6974_v44 }
0x1707   :  { %v10004_v37 = vpop.eup %10003 }
0x1708   :  { %v7026_v61 = vmul.f32 %v10004_v37, %v6986_v58  ;;  %v13353_v29 = vsub.f32 %v6959_v26, %v6983_v36  ;;  %v9779_v26 = vld [vmem:[%s13515_s19 + $0xe0] sm:$0xff]  }
0x1709   :  { %v6977_v22 = vpop.xlane.xlu0 %6976  ;;  %8571 = vmatprep.subr.bf16.mxu0 %v9779_v26 }
0x170a   :  { %v6984_v55 = vmul.f32 0.015625, %v6977_v22  ;;  %v6993_v39 = vmul.f32 %v13353_v29, %v13353_v29  ;;  %v7037_v30 = vmul.f32 %v13358_v35, %v7026_v61  ;;  %8572 = vmatpush3.bf16.msra.mxu0 %v9780_v11  ;;  %v8243_v22 = vld [vmem:[%s13514_s18 + $0x2] sm:$0x3] }
0x170b   :  { %v10006_v51 = vpop.eup %10005  ;;  %8573 = vmatprep.subr.bf16.mxu0 %v9781_v48 }
0x170c   :  { %v7027_v4 = vmul.f32 %v10006_v51, %v6987_v18  ;;  %v13363_v31 = vsub.f32 %v6960_v7, %v6984_v55  ;;  %v7002_v16 = vsel %vm3628_vm1, %v6993_v39, 0.0  ;;  %v7048_v14 = vadd.f32 %v13369_v54, %v7037_v30  ;;  %v9784_v7 = vld [vmem:[%s13515_s19 + $0x90] sm:$0xff]  }
0x170d   :  { %7003 = vadd.xlane.f32.xlu0 %v7002_v16  ;;  %v6980_v25 = vpop.xlane.xlu1 %6979  ;;  %v13568_v55 = vsub.s32 0, %v10321_v43 }
0x170e   :  { %v7038_v38 = vmul.f32 %v13358_v35, %v7027_v4  ;;  %v6985_v34 = vmul.f32 0.015625, %v6980_v25  ;;  %v6994_v45 = vmul.f32 %v13363_v31, %v13363_v31  ;;  %8574 = vmatpush3.bf16.msra.mxu0 %v9782_v10 }
0x170f   :  { %8575 = vmatprep.subr.bf16.mxu0 %v9783_v46  ;;  %v13446_v39 = vrot.slane %v8243_v22, %v13568_v55 }
0x1710   :  { %v7049_v60 = vadd.f32 %v13369_v54, %v7038_v38  ;;  %v6990_v58 = vsub.f32 %v6961_v13, %v6985_v34  ;;  %v7005_v3 = vsel %vm3628_vm1, %v6994_v45, 0.0 }
0x1711   :  { %7006 = vadd.xlane.f32.xlu1 %v7005_v3 }
0x1712   :  { %v7062_v62 = vpack.c.bf16 %v7049_v60, %v7048_v14  ;;  %v6995_v32 = vmul.f32 %v6990_v58, %v6990_v58  ;;  %8576 = vmatpush3.bf16.msra.mxu0 %v9784_v7 }
0x1713   :  { %8577 = vmatprep.subr.bf16.mxu0 %v9785_v41 }
0x1714   :  { %8252 = vmatmul.mubr.msk.bf16.vlgmr.msra.gmra.mxu1 %vm3628_vm1, %v7062_v62  ;;  %v7008_v18 = vsel %vm3478_vm0, %v6995_v32, 0.0 }
0x1715   :  { %7009 = vadd.xlane.f32.xlu0 %v7008_v18  ;;  %7169 = vmatprep.mubr.bf16.mxu1 %v13567_v5 }
0x1716   :  { %8578 = vmatpush3.bf16.msra.mxu0 %v9786_v56 }
0x1717   :  { %8579 = vmatprep.subr.bf16.mxu0 %v9787_v20 }
0x171a   :  { %8580 = vmatpush3.bf16.msra.mxu0 %v9788_v42 }
0x1796   :  { %v7004_v13 = vpop.xlane.xlu0 %7003 }
0x1797   :  { %v7013_v8 = vmul.f32 0.015625, %v7004_v13 }
0x1799   :  { %v7018_v53 = vadd.f32 1e-06, %v7013_v8 }
0x179a   :  { %v7007_v12 = vpop.xlane.xlu1 %7006 }
0x179b   :  { %10007 = vrsqrt.f32 %v7018_v53  ;;  %v7014_v28 = vmul.f32 0.015625, %v7007_v12 }
0x179d   :  { %v7019_v24 = vadd.f32 1e-06, %v7014_v28 }
0x179e   :  { %v7010_v15 = vpop.xlane.xlu0 %7009 }
0x179f   :  { %10009 = vrsqrt.f32 %v7019_v24  ;;  %v7015_v47 = vmul.f32 0.015625, %v7010_v15 }
0x17a1   :  { %v7020_v49 = vadd.f32 1e-06, %v7015_v47 }
0x17a3   :  { %10011 = vrsqrt.f32 %v7020_v49 }
0x17a8   :  { %v10008_v23 = vpop.eup %10007 }
0x17a9   :  { %v7028_v6 = vmul.f32 %v10008_v23, %v13353_v29 }
0x17ab   :  { %v7039_v0 = vmul.f32 %v13358_v35, %v7028_v6 }
0x17ac   :  { %v10010_v40 = vpop.eup %10009 }
0x17ad   :  { %v7029_v17 = vmul.f32 %v10010_v40, %v13363_v31  ;;  %v7050_v33 = vadd.f32 %v13369_v54, %v7039_v0 }
0x17af   :  { %v7040_v50 = vmul.f32 %v13358_v35, %v7029_v17 }
0x17b0   :  { %v10012_v2 = vpop.eup %10011 }
0x17b1   :  { %v7030_v19 = vmul.f32 %v10012_v2, %v6990_v58  ;;  %v7051_v44 = vadd.f32 %v13369_v54, %v7040_v50 }
0x17b3   :  { %v7063_v36 = vpack.c.bf16 %v7051_v44, %v7050_v33  ;;  %v7041_v37 = vmul.f32 %v13358_v35, %v7030_v19  ;;  %v13569_v35 = vsub.s32 1, %v10321_v43 }
0x17b5   :  { %8253 = vmatmul.mubr.msk.bf16.gmra.mxu1 %vm3628_vm1, %v7063_v36  ;;  %v7052_v61 = vadd.f32 %v13369_v54, %v7041_v37  ;;  %v13450_v51 = vrot.slane %v8243_v22, %v13569_v35 }
0x17b6   :  { %7179 = vmatprep.mubr.bf16.mxu1 %v13567_v5 }
0x17b7   :  { %v7064_v29 = vpack.c.bf16 %v7052_v61, %v7052_v61 }
0x17bd   :  { %8254 = vmatmul.mubr.msk.bf16.gmra.mxu1 %vm3628_vm1, %v7064_v29 }
0x17be   :  { %9060 = vmatprep.mubr.msk.bf16.mxu1 %vm10071_vm2, %v10070_v21 }
0x17d4   :  { %v7161_v5 = vpop.f32.mrf.mxu1 }
0x17d5   :  { %v7162_v30 = vadd.f32 %v7161_v5, %v13446_v39 }
0x17d6   :  { %v7163_v4 = vpop.f32.mrf.mxu1 }
0x17d7   :  { %v7198_v31 = vmul.f32 0.044715, %v7162_v30  ;;  %v7164_v16 = vadd.f32 %v7163_v4, %v13450_v51  ;;  %v7188_v24 = vmul.f32 0.5, %v7162_v30 }
0x17d8   :  { %v7165_v54 = vpop.f32.mrf.mxu1 }
0x17d9   :  { %v7208_v25 = vmul.f32 %v7198_v31, %v7162_v30  ;;  %v7199_v38 = vmul.f32 0.044715, %v7164_v16  ;;  %v7166_v34 = vadd.f32 %v7165_v54, %v13446_v39  ;;  %v7189_v53 = vmul.f32 0.5, %v7164_v16 }
0x17da   :  { %v7167_v45 = vpop.f32.mrf.mxu1 }
0x17db   :  { %v7218_v14 = vmul.f32 %v7208_v25, %v7162_v30  ;;  %v7209_v60 = vmul.f32 %v7199_v38, %v7164_v16  ;;  %v7200_v58 = vmul.f32 0.044715, %v7166_v34  ;;  %v7168_v43 = vadd.f32 %v7167_v45, %v13450_v51 }
0x17dc   :  { %v7190_v8 = vmul.f32 0.5, %v7166_v34 }
0x17dd   :  { %v7228_v3 = vadd.f32 %v7218_v14, %v7162_v30  ;;  %v7219_v62 = vmul.f32 %v7209_v60, %v7164_v16  ;;  %v7210_v32 = vmul.f32 %v7200_v58, %v7166_v34  ;;  %v7201_v18 = vmul.f32 0.044715, %v7168_v43 }
0x17de   :  { %v7191_v12 = vmul.f32 0.5, %v7168_v43 }
0x17df   :  { %v7238_v57 = vmul.f32 0.7978846, %v7228_v3  ;;  %v7220_v9 = vmul.f32 %v7210_v32, %v7166_v34  ;;  %v7229_v59 = vadd.f32 %v7219_v62, %v7164_v16  ;;  %v7211_v52 = vmul.f32 %v7201_v18, %v7168_v43 }
0x17e1   :  { %v7230_v1 = vadd.f32 %v7220_v9, %v7166_v34  ;;  %v7239_v27 = vmul.f32 0.7978846, %v7229_v59  ;;  %v7221_v26 = vmul.f32 %v7211_v52, %v7168_v43  ;;  %10013 = vtanh.f32 %v7238_v57 }
0x17e3   :  { %v7240_v11 = vmul.f32 0.7978846, %v7230_v1  ;;  %v7231_v48 = vadd.f32 %v7221_v26, %v7168_v43  ;;  %10015 = vtanh.f32 %v7239_v27 }
0x17e5   :  { %10017 = vtanh.f32 %v7240_v11  ;;  %v7241_v10 = vmul.f32 0.7978846, %v7231_v48 }
0x17e7   :  { %10019 = vtanh.f32 %v7241_v10 }
0x17ee   :  { %v10014_v46 = vpop.eup %10013 }
0x17ef   :  { %v7258_v13 = vadd.f32 1.0, %v10014_v46 }
0x17f0   :  { %v10016_v7 = vpop.eup %10015 }
0x17f1   :  { %v7259_v20 = vadd.f32 1.0, %v10016_v7  ;;  %v7268_v23 = vmul.f32 %v7258_v13, %v7188_v24 }
0x17f2   :  { %v10018_v41 = vpop.eup %10017 }
0x17f3   :  { %v7260_v56 = vadd.f32 1.0, %v10018_v41  ;;  %v7269_v47 = vmul.f32 %v7259_v20, %v7189_v53 }
0x17f4   :  { %v10020_v42 = vpop.eup %10019 }
0x17f5   :  { %v7261_v28 = vadd.f32 1.0, %v10020_v42  ;;  %v7270_v15 = vmul.f32 %v7260_v56, %v7190_v8 }
0x17f7   :  { %v7271_v49 = vmul.f32 %v7261_v28, %v7191_v12  ;;  %v7311_v40 = vpack.c.bf16 %v7270_v15, %v7268_v23 }
0x17f9   :  { %v7312_v6 = vpack.c.bf16 %v7271_v49, %v7269_v47 }
0x17fb   :  { %7445 = vmatprep.mubr.bf16.mxu0 %v7312_v6 }
0x17fc   :  { %7446 = vmatmul.mubr.bf16.vlgmr.msra.gmra.mxu0 %v7311_v40 }
0x1875   :  { %v7171_v17 = vpop.f32.mrf.mxu1 }
0x1876   :  { %v7172_v0 = vadd.f32 %v7171_v17, %v13446_v39 }
0x1877   :  { %v7173_v50 = vpop.f32.mrf.mxu1 }
0x1878   :  { %v7202_v2 = vmul.f32 0.044715, %v7172_v0  ;;  %v7174_v19 = vadd.f32 %v7173_v50, %v13450_v51  ;;  %v7192_v24 = vmul.f32 0.5, %v7172_v0 }
0x1879   :  { %v7175_v33 = vpop.f32.mrf.mxu1 }
0x187a   :  { %v7212_v44 = vmul.f32 %v7202_v2, %v7172_v0  ;;  %v7203_v36 = vmul.f32 0.044715, %v7174_v19  ;;  %v7176_v37 = vadd.f32 %v7175_v33, %v13446_v39  ;;  %v7193_v53 = vmul.f32 0.5, %v7174_v19 }
0x187b   :  { %v7177_v61 = vpop.f32.mrf.mxu1 }
0x187c   :  { %v7222_v29 = vmul.f32 %v7212_v44, %v7172_v0  ;;  %v7213_v22 = vmul.f32 %v7203_v36, %v7174_v19  ;;  %v7204_v55 = vmul.f32 0.044715, %v7176_v37  ;;  %v7178_v35 = vadd.f32 %v7177_v61, %v13450_v51 }
0x187d   :  { %v7181_v5 = vpop.f32.mrf.mxu1  ;;  %v7194_v13 = vmul.f32 0.5, %v7176_v37 }
0x187e   :  { %v7232_v30 = vadd.f32 %v7222_v29, %v7172_v0  ;;  %v7223_v4 = vmul.f32 %v7213_v22, %v7174_v19  ;;  %v7214_v31 = vmul.f32 %v7204_v55, %v7176_v37  ;;  %v7205_v16 = vmul.f32 0.044715, %v7178_v35 }
0x187f   :  { %v7182_v54 = vadd.f32 %v7181_v5, %v13446_v39  ;;  %v7183_v25 = vpop.f32.mrf.mxu1  ;;  %v7195_v12 = vmul.f32 0.5, %v7178_v35  ;;  %v8304_v5 = vld [vmem:[%s13516_s20 + $0x1] ss:$0 sm:$0xff] }
0x1880   :  { %v7242_v38 = vmul.f32 0.7978846, %v7232_v30  ;;  %v7224_v34 = vmul.f32 %v7214_v31, %v7176_v37  ;;  %v7215_v45 = vmul.f32 %v7205_v16, %v7178_v35  ;;  %v7184_v14 = vadd.f32 %v7183_v25, %v13450_v51 }
0x1881   :  { %v7206_v60 = vmul.f32 0.044715, %v7182_v54  ;;  %v7185_v58 = vpop.f32.mrf.mxu1  ;;  %v7233_v43 = vadd.f32 %v7223_v4, %v7174_v19 }
0x1882   :  { %v7234_v3 = vadd.f32 %v7224_v34, %v7176_v37  ;;  %v7225_v62 = vmul.f32 %v7215_v45, %v7178_v35  ;;  %v7207_v32 = vmul.f32 0.044715, %v7184_v14  ;;  %10021 = vtanh.f32 %v7242_v38 }
0x1883   :  { %v7216_v18 = vmul.f32 %v7206_v60, %v7182_v54  ;;  %v7186_v57 = vpop.f32.mrf.mxu1  ;;  %v7243_v9 = vmul.f32 0.7978846, %v7233_v43  ;;  %v7197_v50 = vmul.f32 0.5, %v7184_v14  ;;  %v7196_v37 = vmul.f32 0.5, %v7182_v54 }
0x1884   :  { %v7244_v59 = vmul.f32 0.7978846, %v7234_v3  ;;  %v7217_v52 = vmul.f32 %v7207_v32, %v7184_v14  ;;  %v7235_v1 = vadd.f32 %v7225_v62, %v7178_v35  ;;  %v9790_v57 = vld [vmem:[%s13519_s23 + $0x10] sm:$0xff]  }
0x1885   :  { %v7226_v39 = vmul.f32 %v7216_v18, %v7182_v54  ;;  %10023 = vtanh.f32 %v7243_v9  ;;  %v9789_v18 = vld [vmem:[%s13519_s23 + $0x18] sm:$0xff]   ;;  %v9791_v9 = vld [vmem:[%s13519_s23 + $0x8] sm:$0xff]  }
0x1886   :  { %10025 = vtanh.f32 %v7244_v59  ;;  %v7245_v27 = vmul.f32 0.7978846, %v7235_v1  ;;  %v7227_v26 = vmul.f32 %v7217_v52, %v7184_v14  ;;  %9053 = vmatpush3.bf16.msra.mxu1 %v9789_v18  ;;  %v9792_v59 = vld [vmem:[%s13519_s23] sm:$0xff]  }
0x1887   :  { %v7236_v11 = vadd.f32 %v7226_v39, %v7182_v54  ;;  %9054 = vmatprep.subr.bf16.mxu1 %v10070_v21 }
0x1888   :  { %10027 = vtanh.f32 %v7245_v27  ;;  %v7237_v51 = vadd.f32 %v7227_v26, %v7184_v14  ;;  %v8305_v26 = vld [vmem:[%s13517_s21] ss:$0 sm:$0xff]  ;;  %s10046_s21 = scalar_lea.vmem %s7595_s29, 32 }
0x1889   :  { %v7246_v48 = vmul.f32 0.7978846, %v7236_v11  ;;  %p10047_p0 = scmp.ne.s32.totalorder %s7595_s29, %s10046_s21  ;;  %p10052_p2 = scmp.lt.s32.totalorder %s10046_s21, %s10046_s21 }
0x188a   :  { %v7247_v10 = vmul.f32 0.7978846, %v7237_v51  ;;  %9055 = vmatpush3.bf16.msra.mxu1 %v9790_v57  ;;  %v8306_v51 = vld [vmem:[%s13518_s22] ss:$0 sm:$0xff] }
0x188b   :  { %10029 = vtanh.f32 %v7246_v48  ;;  %9056 = vmatprep.subr.bf16.mxu1 %v10070_v21  ;;  %p10053_p3 = por %p10052_p2, %p10051_p1 }
0x188c   :  { %10031 = vtanh.f32 %v7247_v10 }
0x188d   :  { %p10054_p4 = pnand %p10053_p3, %p10047_p0 }
0x188e   :  { %9057 = vmatpush3.bf16.msra.mxu1 %v9791_v9 }
0x188f   :  { %v10022_v46 = vpop.eup %10021  ;;  %9058 = vmatprep.subr.bf16.mxu1 %v10070_v21 }
0x1890   :  { %v7262_v8 = vadd.f32 1.0, %v10022_v46  ;;  %v8307_v46 = vld [vmem:[%s13570_s0] ss:$0 sm:$0xff] }
0x1892   :  { %v10024_v7 = vpop.eup %10023  ;;  %v7272_v40 = vmul.f32 %v7262_v8, %v7192_v24  ;;  %9059 = vmatpush3.bf16.msra.mxu1 %v9792_v59 }
0x1893   :  { %v10026_v41 = vpop.eup %10025  ;;  %v7263_v56 = vadd.f32 1.0, %v10024_v7 }
0x1894   :  { %v7264_v20 = vadd.f32 1.0, %v10026_v41 }
0x1895   :  { %v10028_v42 = vpop.eup %10027  ;;  %v7273_v49 = vmul.f32 %v7263_v56, %v7193_v53 }
0x1896   :  { %v7265_v28 = vadd.f32 1.0, %v10028_v42  ;;  %v7274_v15 = vmul.f32 %v7264_v20, %v7194_v13 }
0x1898   :  { %v10030_v47 = vpop.eup %10029  ;;  %v7275_v23 = vmul.f32 %v7265_v28, %v7195_v12  ;;  %v7313_v33 = vpack.c.bf16 %v7274_v15, %v7272_v40 }
0x1899   :  { %v10032_v6 = vpop.eup %10031  ;;  %v7266_v44 = vadd.f32 1.0, %v10030_v47 }
0x189a   :  { %v7314_v17 = vpack.c.bf16 %v7275_v23, %v7273_v49  ;;  %v7267_v2 = vadd.f32 1.0, %v10032_v6 }
0x189b   :  { %v7276_v19 = vmul.f32 %v7266_v44, %v7196_v37 }
0x189c   :  { %7452 = vmatprep.mubr.bf16.mxu0 %v7314_v17  ;;  %v7277_v36 = vmul.f32 %v7267_v2, %v7197_v50 }
0x189d   :  { %7453 = vmatmul.mubr.bf16.gmra.mxu0 %v7313_v33  ;;  %v7315_v29 = vpack.c.bf16 %v7276_v19, %v7276_v19 }
0x189e   :  { %v7316_v61 = vpack.c.bf16 %v7277_v36, %v7277_v36 }
0x18a0   :  { %7458 = vmatprep.mubr.bf16.mxu0 %v7316_v61 }
0x18a5   :  { %7459 = vmatmul.mubr.bf16.gmra.mxu0 %v7315_v29 }
0x18bc   :  { %v8581_v0 = vpop.f32.mrf.mxu0 }
0x18be   :  { %v8582_v22 = vpop.f32.mrf.mxu0 }
0x18bf   :  { %v8583_v55 = vadd.f32 %v8582_v22, %v8581_v0 }
0x18c0   :  { %v8584_v35 = vpop.f32.mrf.mxu0 }
0x18c1   :  { %v7465_v30 = vadd.f32 %v8583_v55, %v13313_v63 }
0x18c2   :  { %v8585_v4 = vpop.f32.mrf.mxu0 }
0x18c3   :  { %v7474_v31 = vadd.f32 %v8304_v5, %v7465_v30 }
0x18c5   :  { %v7477_v16 = vsel %vm3628_vm1, %v7474_v31, 0.0 }
0x18c6   :  { %7478 = vadd.xlane.f32.xlu1 %v7477_v16 }
0x194f   :  { %v7479_v54 = vpop.xlane.xlu1 %7478 }
0x1950   :  { %v7480_v25 = vmul.f32 0.015625, %v7479_v54 }
0x1952   :  { %v7481_v38 = vsub.f32 %v7474_v31, %v7480_v25 }
0x1954   :  { %v7482_v34 = vmul.f32 %v7481_v38, %v7481_v38 }
0x1956   :  { %v7483_v45 = vsel %vm3628_vm1, %v7482_v34, 0.0 }
0x1957   :  { %7484 = vadd.xlane.f32.xlu0 %v7483_v45 }
0x195d   :  { %v8587_v14 = vpop.f32.mrf.mxu0 }
0x195f   :  { %v8588_v60 = vpop.f32.mrf.mxu0 }
0x1961   :  { %v8590_v58 = vpop.f32.mrf.mxu0 }
0x1963   :  { %v8591_v43 = vpop.f32.mrf.mxu0 }
0x1965   :  { %v8593_v3 = vpop.f32.mrf.mxu0 }
0x1967   :  { %v8594_v62 = vpop.f32.mrf.mxu0 }
0x1969   :  { %v8596_v32 = vpop.f32.mrf.mxu0 }
0x196b   :  { %v8597_v63 = vpop.f32.mrf.mxu0 }
0x19e0   :  { %v7485_v52 = vpop.xlane.xlu0 %7484 }
0x19e1   :  { %v7486_v1 = vmul.f32 0.015625, %v7485_v52 }
0x19e3   :  { %v7487_v39 = vadd.f32 1e-06, %v7486_v1 }
0x19e5   :  { %10033 = vrsqrt.f32 %v7487_v39 }
0x19f2   :  { %v10034_v27 = vpop.eup %10033 }
0x19f3   :  { %v7489_v11 = vmul.f32 %v10034_v27, %v7481_v38 }
0x19f5   :  { %v7496_v21 = vmul.f32 %v8305_v26, %v7489_v11 }
0x19f7   :  { %v7503_v48 = vadd.f32 %v8306_v51, %v7496_v21 }
0x19f9   :  { %v7512_v10 = vpack.c.bf16 %v7503_v48, %v7503_v48 }
0x19fb   :  { %9061 = vmatmul.mubr.msk.bf16.vlgmr.msra.gmra.mxu1 %vm3628_vm1, %v7512_v10 }
0x1abb   :  { %v7581_v7 = vpop.f32.mrf.mxu1 }
0x1abc   :  { %v7582_v41 = vadd.f32 %v8307_v46, %v7581_v7 }
0x1abd   :  { %v9062_v56 = vpop.f32.mrf.mxu1 }
0x1abe   :  { %7587 = vst [vmem:[#allocation4] sm:$0x3] %v7582_v41 }
0x1abf   :  { %v7584_v20 = vpop.f32.mrf.mxu1 }
0x1ac0   :  { %10057 = shalt.err (!%p10054_p4)
}
0x1ac1   :  { %s13571_s15 = sld [smem:[#allocation18_spill]]  ;;  %v9063_v42 = vpop.f32.mrf.mxu1 }
0x1ac7   :  { %7597 = dma.vmem_to_hbm [thread:$0]  %s7595_s29, 32, %s13571_s15, [#allocation5]  }
0x1ac8   :  { %10066 = dma.done.wait [#allocation5], 32  }
0x1ac9   :  { %10067 = vsyncadd [#allocation5], 4294967264 }
0x1aca   :  { %7601 = vsyncpa [#allocation5], 1 }

</bundles_post_ra>
